<compile_context>
chip_gen: v5e
topology: v5e:2x2
jax: 0.10.0
libtpu: 0.0.40
codegen_flags: <defaults>
</compile_context>

<pallas_src>
import functools

import jax
import jax.numpy as jnp
from jax.experimental import pallas as pl
from jax.experimental.pallas import tpu as pltpu

_COL0 = 8  # sublane-aligned column offset of the un-padded interior


# ---------------------------------------------------------------------------
# Fused kernel: BN1 -> ReLU -> 1x1 conv -> BN2 -> ReLU -> 3x3 conv -> concat
# Activations are channels-last, flattened to (M, C) with M = N*H*W so channels
# map to lanes and both convs run on the MXU.
# ---------------------------------------------------------------------------
def _dense_layer_kernel(x_ref, g1_ref, b1_ref, w1_ref, g2_ref, b2_ref, w2_ref,
                        o_ref, pad_ref, taps_ref, *, n, h, w, eps):
    m, cin = x_ref.shape
    cmid = w1_ref.shape[1]
    g = w2_ref.shape[1]

    x = x_ref[...]                                            # (M, Cin) f32

    # ---- BN1 (training-mode batch stats, two-pass variance) + ReLU ----
    mean1 = jnp.mean(x, axis=0, keepdims=True)                # (1, Cin)
    xc = x - mean1
    var1 = jnp.mean(xc * xc, axis=0, keepdims=True)
    a1 = jnp.maximum(xc * (g1_ref[...] * jax.lax.rsqrt(var1 + eps))
                     + b1_ref[...], 0.0)                      # (M, Cin)

    # ---- 1x1 conv == one (M, Cin) @ (Cin, Cmid) MXU matmul, f32 accumulate ----
    y = jnp.dot(a1.astype(w1_ref.dtype), w1_ref[...],
                preferred_element_type=jnp.float32)           # (M, Cmid) f32

    # ---- BN2 from the VMEM-resident bottleneck (no HBM round trip) + ReLU ----
    mean2 = jnp.mean(y, axis=0, keepdims=True)                # (1, Cmid)
    yc = y - mean2
    var2 = jnp.mean(yc * yc, axis=0, keepdims=True)
    a2 = jnp.maximum(yc * (g2_ref[...] * jax.lax.rsqrt(var2 + eps))
                     + b2_ref[...], 0.0)                      # (M, Cmid)

    # ---- zero-padded copy of a2 in VMEM scratch (no concat copies) ----
    # Interior starts at column _COL0 (multiple of 8) -> the store covers whole
    # sublane tiles; the row padding lives on a major dim so it is free.
    pad_ref[...] = jnp.zeros_like(pad_ref)
    pad_ref[:, 1:h + 1, _COL0:_COL0 + w, :] = a2.reshape(n, h, w, cmid)

    # ---- im2col: pack the 9 shifted taps along K into (M, 9*Cmid) ----
    for dh in range(3):                                       # static unroll
        for dw in range(3):
            t = dh * 3 + dw
            tap = pad_ref[:, dh:dh + h, _COL0 - 1 + dw:_COL0 - 1 + dw + w, :]
            taps_ref[:, t * cmid:(t + 1) * cmid] = (
                tap.reshape(m, cmid).astype(taps_ref.dtype))

    # ---- 3x3 conv == ONE (M, 9*Cmid) @ (9*Cmid, G) MXU matmul ----
    new = jnp.dot(taps_ref[...], w2_ref[...],
                  preferred_element_type=jnp.float32)         # (M, G) f32

    # ---- fused channel concat: rows are [ x | new_features ] ----
    o_ref[:, :cin] = x.astype(o_ref.dtype)
    o_ref[:, cin:cin + g] = new.astype(o_ref.dtype)


# ---------------------------------------------------------------------------
# NHWC fast path (no transposes anywhere)
# ---------------------------------------------------------------------------
def dense_layer_forward_nhwc(x_nhwc, params, *, eps=1e-5, drop_rate=0.0,
                             matmul_dtype=jnp.float32):
    """x_nhwc: (N, H, W, Cin) f32 -> (N, H, W, Cin + G) f32."""
    del drop_rate  # TODO(synk): see header — drop_rate=0 path only.

    n, h, w, cin = x_nhwc.shape
    cmid = params["w1"].shape[1]
    g = params["w2"].shape[-1]
    m = n * h * w

    x_flat = x_nhwc.reshape(m, cin).astype(jnp.float32)
    g1 = params["gamma1"].reshape(1, cin).astype(jnp.float32)
    b1 = params["beta1"].reshape(1, cin).astype(jnp.float32)
    g2 = params["gamma2"].reshape(1, cmid).astype(jnp.float32)
    b2 = params["beta2"].reshape(1, cmid).astype(jnp.float32)
    w1 = params["w1"].astype(matmul_dtype)                    # (Cin, Cmid)
    # Pre-flatten w2 (HWIO) to (9*Cmid, G), tap-major, matching the im2col K order.
    w2f = params["w2"].reshape(9 * cmid, g).astype(matmul_dtype)

    itemsize = jnp.dtype(matmul_dtype).itemsize
    cost = pl.CostEstimate(
        flops=2 * m * cin * cmid + 2 * m * 9 * cmid * g,
        transcendentals=cin + cmid,
        bytes_accessed=int(4 * (m * cin + m * (cin + g) + 2 * cin + 2 * cmid)
                           + itemsize * (cin * cmid + 9 * cmid * g)),
    )

    kernel = functools.partial(_dense_layer_kernel, n=n, h=h, w=w, eps=eps)

    out_flat = pl.pallas_call(
        kernel,
        out_shape=jax.ShapeDtypeStruct((m, cin + g), jnp.float32),
        grid=(1,),
        in_specs=[
            pl.BlockSpec((m, cin), lambda i: (0, 0)),
            pl.BlockSpec((1, cin), lambda i: (0, 0)),
            pl.BlockSpec((1, cin), lambda i: (0, 0)),
            pl.BlockSpec((cin, cmid), lambda i: (0, 0)),
            pl.BlockSpec((1, cmid), lambda i: (0, 0)),
            pl.BlockSpec((1, cmid), lambda i: (0, 0)),
            pl.BlockSpec((9 * cmid, g), lambda i: (0, 0)),
        ],
        out_specs=pl.BlockSpec((m, cin + g), lambda i: (0, 0)),
        scratch_shapes=[
            # zero-padded a2: (N, H+2, W + 2*_COL0, Cmid); f32 so interior stores
            # never hit packed-dtype sublane shifting.
            pltpu.VMEM((n, h + 2, w + 2 * _COL0, cmid), jnp.float32),
            # im2col tap tensor feeding the MXU (bf16 when matmul_dtype=bf16).
            pltpu.VMEM((m, 9 * cmid), matmul_dtype),
        ],
        compiler_params=pltpu.CompilerParams(
            dimension_semantics=("arbitrary",)),
        cost_estimate=cost,
    )(x_flat, g1, b1, w1, g2, b2, w2f)

    return out_flat.reshape(n, h, w, cin + g)


# ---------------------------------------------------------------------------
# NCHW wrapper matching the PyTorch module interface (boundary transposes only;
# a full DenseNet should stay NHWC and call dense_layer_forward_nhwc directly).
# ---------------------------------------------------------------------------
def dense_layer_forward(x_nchw, params, *, eps=1e-5, drop_rate=0.0,
                        matmul_dtype=jnp.float32):
    out_nhwc = dense_layer_forward_nhwc(
        jnp.transpose(x_nchw, (0, 2, 3, 1)), params, eps=eps,
        drop_rate=drop_rate, matmul_dtype=matmul_dtype)
    return jnp.transpose(out_nhwc, (0, 3, 1, 2))              # (N, Cin+G, H, W)


# ---------------------------------------------------------------------------
# Pure-JAX reference (same math as the PyTorch module) for a correctness check
# ---------------------------------------------------------------------------
def _reference_forward(x_nchw, params, eps=1e-5):
    x = jnp.transpose(x_nchw, (0, 2, 3, 1))                    # NHWC

    def bn(v, gamma, beta):
        mean = jnp.mean(v, axis=(0, 1, 2))
        var = jnp.mean((v - mean) ** 2, axis=(0, 1, 2))        # biased variance
        return (v - mean) * (gamma / jnp.sqrt(var + eps)) + beta

    a1 = jnp.maximum(bn(x, params["gamma1"], params["beta1"]), 0.0)
    y = jnp.einsum("nhwc,cd->nhwd", a1, params["w1"])
    a2 = jnp.maximum(bn(y, params["gamma2"], params["beta2"]), 0.0)
    nf = jax.lax.conv_general_dilated(
        a2, params["w2"], window_strides=(1, 1), padding="SAME",
        dimension_numbers=("NHWC", "HWIO", "NHWC"))
    out = jnp.concatenate([x, nf], axis=-1)
    return jnp.transpose(out, (0, 3, 1, 2))


if __name__ == "__main__":
    # _DenseLayer(num_input_features=32, growth_rate=16, bn_size=4, drop_rate=0)
    N, C_IN, H, W = 2, 32, 16, 16
    GROWTH, BN_SIZE = 16, 4
    C_MID = BN_SIZE * GROWTH  # 64

    key = jax.random.PRNGKey(0)
    kx, kw1, kw2, kg1, kg2 = jax.random.split(key, 5)

    x = jax.random.normal(kx, (N, C_IN, H, W), dtype=jnp.float32)

    params = {
        # BatchNorm affine params (PyTorch init gamma=1, beta=0; gamma perturbed
        # deterministically so the affine path is exercised).
        "gamma1": 1.0 + 0.1 * jax.random.normal(kg1, (C_IN,), jnp.float32),
        "beta1": jnp.zeros((C_IN,), jnp.float32),
        "gamma2": 1.0 + 0.1 * jax.random.normal(kg2, (C_MID,), jnp.float32),
        "beta2": jnp.zeros((C_MID,), jnp.float32),
        # conv1: PyTorch weight (C_mid, C_in, 1, 1) -> stored as (C_in, C_mid)
        "w1": 0.1 * jax.random.normal(kw1, (C_IN, C_MID), jnp.float32),
        # conv2: PyTorch weight (G, C_mid, 3, 3) -> stored HWIO (3, 3, C_mid, G)
        "w2": 0.1 * jax.random.normal(kw2, (3, 3, C_MID, GROWTH), jnp.float32),
    }

    ref = jax.block_until_ready(_reference_forward(x, params))

    # f32 MXU path: bit-level parity with the f32 reference math.
    out = jax.block_until_ready(dense_layer_forward(x, params))
    assert out.shape == (N, C_IN + GROWTH, H, W), out.shape
    max_err = float(jnp.max(jnp.abs(out - ref)))
    assert jnp.allclose(out, ref, rtol=1e-4, atol=1e-4), max_err

    # bf16 MXU path (full-rate MXU on v5e/v6e/v7x; f32 accumulate, BN in f32).
    out_bf16 = jax.block_until_ready(
        dense_layer_forward(x, params, matmul_dtype=jnp.bfloat16))
    max_err_bf16 = float(jnp.max(jnp.abs(out_bf16 - ref)))
    assert max_err_bf16 < 0.15, max_err_bf16  # loose tol for reduced precision

    print("KERNEL_OK")
</pallas_src>

<mosaic_0001>
module attributes {stable_mosaic.version = 11 : i64} {
  func.func @_dense_layer_kernel(%arg0: i32, %arg1: memref<512x32xf32, #tpu.memory_space<vmem>>, %arg2: memref<1x32xf32, #tpu.memory_space<vmem>>, %arg3: memref<1x32xf32, #tpu.memory_space<vmem>>, %arg4: memref<32x64xf32, #tpu.memory_space<vmem>>, %arg5: memref<1x64xf32, #tpu.memory_space<vmem>>, %arg6: memref<1x64xf32, #tpu.memory_space<vmem>>, %arg7: memref<576x16xf32, #tpu.memory_space<vmem>>, %arg8: memref<512x48xf32, #tpu.memory_space<vmem>>, %arg9: memref<2x18x32x64xf32, #tpu.memory_space<vmem>>, %arg10: memref<512x576xf32, #tpu.memory_space<vmem>>) attributes {dimension_semantics = [#tpu.dimension_semantics<arbitrary>], iteration_bounds = array<i64: 1>, scalar_prefetch = 0 : i64, scratch_operands = 2 : i64, tpu.core_type = #tpu.core_type<tc>, window_params = [{pipeline_mode = #tpu.pipeline_mode<synchronous>, transform_indices = @transform_0, window_bounds = array<i64: 512, 32>}, {pipeline_mode = #tpu.pipeline_mode<synchronous>, transform_indices = @transform_1, window_bounds = array<i64: 1, 32>}, {pipeline_mode = #tpu.pipeline_mode<synchronous>, transform_indices = @transform_2, window_bounds = array<i64: 1, 32>}, {pipeline_mode = #tpu.pipeline_mode<synchronous>, transform_indices = @transform_3, window_bounds = array<i64: 32, 64>}, {pipeline_mode = #tpu.pipeline_mode<synchronous>, transform_indices = @transform_4, window_bounds = array<i64: 1, 64>}, {pipeline_mode = #tpu.pipeline_mode<synchronous>, transform_indices = @transform_5, window_bounds = array<i64: 1, 64>}, {pipeline_mode = #tpu.pipeline_mode<synchronous>, transform_indices = @transform_6, window_bounds = array<i64: 576, 16>}, {pipeline_mode = #tpu.pipeline_mode<synchronous>, transform_indices = @transform_7, window_bounds = array<i64: 512, 48>}]} {
    %c0 = arith.constant 0 : index
    %c0_0 = arith.constant 0 : index
    %0 = vector.load %arg1[%c0, %c0_0] : memref<512x32xf32, #tpu.memory_space<vmem>>, vector<512x32xf32>
    %cst = arith.constant dense<0.000000e+00> : vector<32xf32>
    %1 = vector.multi_reduction <add>, %0, %cst [0] : vector<512x32xf32> to vector<32xf32>
    %2 = vector.shape_cast %1 : vector<32xf32> to vector<1x32xf32>
    %cst_1 = arith.constant 5.120000e+02 : f32
    %3 = vector.broadcast %cst_1 : f32 to vector<1x32xf32>
    %4 = arith.divf %2, %3 : vector<1x32xf32>
    %5 = vector.broadcast %4 : vector<1x32xf32> to vector<512x32xf32>
    %6 = arith.subf %0, %5 : vector<512x32xf32>
    %7 = arith.mulf %6, %6 : vector<512x32xf32>
    %cst_2 = arith.constant dense<0.000000e+00> : vector<32xf32>
    %8 = vector.multi_reduction <add>, %7, %cst_2 [0] : vector<512x32xf32> to vector<32xf32>
    %9 = vector.shape_cast %8 : vector<32xf32> to vector<1x32xf32>
    %cst_3 = arith.constant 5.120000e+02 : f32
    %10 = vector.broadcast %cst_3 : f32 to vector<1x32xf32>
    %11 = arith.divf %9, %10 : vector<1x32xf32>
    %c0_4 = arith.constant 0 : index
    %c0_5 = arith.constant 0 : index
    %12 = vector.load %arg2[%c0_4, %c0_5] : memref<1x32xf32, #tpu.memory_space<vmem>>, vector<1x32xf32>
    %cst_6 = arith.constant 9.99999974E-6 : f32
    %13 = vector.broadcast %cst_6 : f32 to vector<1x32xf32>
    %14 = arith.addf %11, %13 : vector<1x32xf32>
    %15 = math.rsqrt %14 : vector<1x32xf32>
    %16 = arith.mulf %12, %15 : vector<1x32xf32>
    %17 = vector.broadcast %16 : vector<1x32xf32> to vector<512x32xf32>
    %18 = arith.mulf %6, %17 : vector<512x32xf32>
    %c0_7 = arith.constant 0 : index
    %c0_8 = arith.constant 0 : index
    %19 = vector.load %arg3[%c0_7, %c0_8] : memref<1x32xf32, #tpu.memory_space<vmem>>, vector<1x32xf32>
    %20 = vector.broadcast %19 : vector<1x32xf32> to vector<512x32xf32>
    %21 = arith.addf %18, %20 : vector<512x32xf32>
    %cst_9 = arith.constant 0.000000e+00 : f32
    %22 = vector.broadcast %cst_9 : f32 to vector<512x32xf32>
    %23 = arith.maximumf %21, %22 : vector<512x32xf32>
    %c0_10 = arith.constant 0 : index
    %c0_11 = arith.constant 0 : index
    %24 = vector.load %arg4[%c0_10, %c0_11] : memref<32x64xf32, #tpu.memory_space<vmem>>, vector<32x64xf32>
    %cst_12 = arith.constant dense<0.000000e+00> : vector<512x64xf32>
    %25 = tpu.matmul %23, %24, %cst_12 {dimension_numbers = #tpu.dot_dimension_numbers<[1], [0], [0], [1], [0, 0, 1, 1], [], []>} : vector<512x32xf32>, vector<32x64xf32>, vector<512x64xf32> -> vector<512x64xf32>
    %cst_13 = arith.constant dense<0.000000e+00> : vector<64xf32>
    %26 = vector.multi_reduction <add>, %25, %cst_13 [0] : vector<512x64xf32> to vector<64xf32>
    %27 = vector.shape_cast %26 : vector<64xf32> to vector<1x64xf32>
    %cst_14 = arith.constant 5.120000e+02 : f32
    %28 = vector.broadcast %cst_14 : f32 to vector<1x64xf32>
    %29 = arith.divf %27, %28 : vector<1x64xf32>
    %30 = vector.broadcast %29 : vector<1x64xf32> to vector<512x64xf32>
    %31 = arith.subf %25, %30 : vector<512x64xf32>
    %32 = arith.mulf %31, %31 : vector<512x64xf32>
    %cst_15 = arith.constant dense<0.000000e+00> : vector<64xf32>
    %33 = vector.multi_reduction <add>, %32, %cst_15 [0] : vector<512x64xf32> to vector<64xf32>
    %34 = vector.shape_cast %33 : vector<64xf32> to vector<1x64xf32>
    %cst_16 = arith.constant 5.120000e+02 : f32
    %35 = vector.broadcast %cst_16 : f32 to vector<1x64xf32>
    %36 = arith.divf %34, %35 : vector<1x64xf32>
    %c0_17 = arith.constant 0 : index
    %c0_18 = arith.constant 0 : index
    %37 = vector.load %arg5[%c0_17, %c0_18] : memref<1x64xf32, #tpu.memory_space<vmem>>, vector<1x64xf32>
    %cst_19 = arith.constant 9.99999974E-6 : f32
    %38 = vector.broadcast %cst_19 : f32 to vector<1x64xf32>
    %39 = arith.addf %36, %38 : vector<1x64xf32>
    %40 = math.rsqrt %39 : vector<1x64xf32>
    %41 = arith.mulf %37, %40 : vector<1x64xf32>
    %42 = vector.broadcast %41 : vector<1x64xf32> to vector<512x64xf32>
    %43 = arith.mulf %31, %42 : vector<512x64xf32>
    %c0_20 = arith.constant 0 : index
    %c0_21 = arith.constant 0 : index
    %44 = vector.load %arg6[%c0_20, %c0_21] : memref<1x64xf32, #tpu.memory_space<vmem>>, vector<1x64xf32>
    %45 = vector.broadcast %44 : vector<1x64xf32> to vector<512x64xf32>
    %46 = arith.addf %43, %45 : vector<512x64xf32>
    %cst_22 = arith.constant 0.000000e+00 : f32
    %47 = vector.broadcast %cst_22 : f32 to vector<512x64xf32>
    %48 = arith.maximumf %46, %47 : vector<512x64xf32>
    %cst_23 = arith.constant 0.000000e+00 : f32
    %49 = vector.broadcast %cst_23 : f32 to vector<2x18x32x64xf32>
    %c0_24 = arith.constant 0 : index
    %c0_25 = arith.constant 0 : index
    %c0_26 = arith.constant 0 : index
    %c0_27 = arith.constant 0 : index
    %50 = vector.load %arg9[%c0_24, %c0_25, %c0_26, %c0_27] : memref<2x18x32x64xf32, #tpu.memory_space<vmem>>, vector<2x18x32x64xf32>
    tpu.vector_store %arg9[%c0_24, %c0_25, %c0_26, %c0_27], %49 {strides = array<i32>} : memref<2x18x32x64xf32, #tpu.memory_space<vmem>>, vector<2x18x32x64xf32>,
    %51 = vector.shape_cast %48 : vector<512x64xf32> to vector<2x16x16x64xf32>
    %c0_28 = arith.constant 0 : index
    %c1 = arith.constant 1 : index
    %c8 = arith.constant 8 : index
    %c0_29 = arith.constant 0 : index
    %52 = vector.load %arg9[%c0_28, %c1, %c8, %c0_29] : memref<2x18x32x64xf32, #tpu.memory_space<vmem>>, vector<2x16x16x64xf32>
    tpu.vector_store %arg9[%c0_28, %c1, %c8, %c0_29], %51 {strides = array<i32>} : memref<2x18x32x64xf32, #tpu.memory_space<vmem>>, vector<2x16x16x64xf32>,
    %c0_30 = arith.constant 0 : index
    %c0_31 = arith.constant 0 : index
    %c7 = arith.constant 7 : index
    %c0_32 = arith.constant 0 : index
    %53 = vector.load %arg9[%c0_30, %c0_31, %c7, %c0_32] : memref<2x18x32x64xf32, #tpu.memory_space<vmem>>, vector<2x16x16x64xf32>
    %54 = vector.shape_cast %53 : vector<2x16x16x64xf32> to vector<512x64xf32>
    %c0_33 = arith.constant 0 : index
    %c0_34 = arith.constant 0 : index
    %55 = vector.load %arg10[%c0_33, %c0_34] : memref<512x576xf32, #tpu.memory_space<vmem>>, vector<512x64xf32>
    tpu.vector_store %arg10[%c0_33, %c0_34], %54 {strides = array<i32>} : memref<512x576xf32, #tpu.memory_space<vmem>>, vector<512x64xf32>,
    %c0_35 = arith.constant 0 : index
    %c0_36 = arith.constant 0 : index
    %c8_37 = arith.constant 8 : index
    %c0_38 = arith.constant 0 : index
    %56 = vector.load %arg9[%c0_35, %c0_36, %c8_37, %c0_38] : memref<2x18x32x64xf32, #tpu.memory_space<vmem>>, vector<2x16x16x64xf32>
    %57 = vector.shape_cast %56 : vector<2x16x16x64xf32> to vector<512x64xf32>
    %c0_39 = arith.constant 0 : index
    %c64 = arith.constant 64 : index
    %58 = vector.load %arg10[%c0_39, %c64] : memref<512x576xf32, #tpu.memory_space<vmem>>, vector<512x64xf32>
    tpu.vector_store %arg10[%c0_39, %c64], %57 {strides = array<i32>} : memref<512x576xf32, #tpu.memory_space<vmem>>, vector<512x64xf32>,
    %c0_40 = arith.constant 0 : index
    %c0_41 = arith.constant 0 : index
    %c9 = arith.constant 9 : index
    %c0_42 = arith.constant 0 : index
    %59 = vector.load %arg9[%c0_40, %c0_41, %c9, %c0_42] : memref<2x18x32x64xf32, #tpu.memory_space<vmem>>, vector<2x16x16x64xf32>
    %60 = vector.shape_cast %59 : vector<2x16x16x64xf32> to vector<512x64xf32>
    %c0_43 = arith.constant 0 : index
    %c128 = arith.constant 128 : index
    %61 = vector.load %arg10[%c0_43, %c128] : memref<512x576xf32, #tpu.memory_space<vmem>>, vector<512x64xf32>
    tpu.vector_store %arg10[%c0_43, %c128], %60 {strides = array<i32>} : memref<512x576xf32, #tpu.memory_space<vmem>>, vector<512x64xf32>,
    %c0_44 = arith.constant 0 : index
    %c1_45 = arith.constant 1 : index
    %c7_46 = arith.constant 7 : index
    %c0_47 = arith.constant 0 : index
    %62 = vector.load %arg9[%c0_44, %c1_45, %c7_46, %c0_47] : memref<2x18x32x64xf32, #tpu.memory_space<vmem>>, vector<2x16x16x64xf32>
    %63 = vector.shape_cast %62 : vector<2x16x16x64xf32> to vector<512x64xf32>
    %c0_48 = arith.constant 0 : index
    %c192 = arith.constant 192 : index
    %64 = vector.load %arg10[%c0_48, %c192] : memref<512x576xf32, #tpu.memory_space<vmem>>, vector<512x64xf32>
    tpu.vector_store %arg10[%c0_48, %c192], %63 {strides = array<i32>} : memref<512x576xf32, #tpu.memory_space<vmem>>, vector<512x64xf32>,
    %c0_49 = arith.constant 0 : index
    %c1_50 = arith.constant 1 : index
    %c8_51 = arith.constant 8 : index
    %c0_52 = arith.constant 0 : index
    %65 = vector.load %arg9[%c0_49, %c1_50, %c8_51, %c0_52] : memref<2x18x32x64xf32, #tpu.memory_space<vmem>>, vector<2x16x16x64xf32>
    %66 = vector.shape_cast %65 : vector<2x16x16x64xf32> to vector<512x64xf32>
    %c0_53 = arith.constant 0 : index
    %c256 = arith.constant 256 : index
    %67 = vector.load %arg10[%c0_53, %c256] : memref<512x576xf32, #tpu.memory_space<vmem>>, vector<512x64xf32>
    tpu.vector_store %arg10[%c0_53, %c256], %66 {strides = array<i32>} : memref<512x576xf32, #tpu.memory_space<vmem>>, vector<512x64xf32>,
    %c0_54 = arith.constant 0 : index
    %c1_55 = arith.constant 1 : index
    %c9_56 = arith.constant 9 : index
    %c0_57 = arith.constant 0 : index
    %68 = vector.load %arg9[%c0_54, %c1_55, %c9_56, %c0_57] : memref<2x18x32x64xf32, #tpu.memory_space<vmem>>, vector<2x16x16x64xf32>
    %69 = vector.shape_cast %68 : vector<2x16x16x64xf32> to vector<512x64xf32>
    %c0_58 = arith.constant 0 : index
    %c320 = arith.constant 320 : index
    %70 = vector.load %arg10[%c0_58, %c320] : memref<512x576xf32, #tpu.memory_space<vmem>>, vector<512x64xf32>
    tpu.vector_store %arg10[%c0_58, %c320], %69 {strides = array<i32>} : memref<512x576xf32, #tpu.memory_space<vmem>>, vector<512x64xf32>,
    %c0_59 = arith.constant 0 : index
    %c2 = arith.constant 2 : index
    %c7_60 = arith.constant 7 : index
    %c0_61 = arith.constant 0 : index
    %71 = vector.load %arg9[%c0_59, %c2, %c7_60, %c0_61] : memref<2x18x32x64xf32, #tpu.memory_space<vmem>>, vector<2x16x16x64xf32>
    %72 = vector.shape_cast %71 : vector<2x16x16x64xf32> to vector<512x64xf32>
    %c0_62 = arith.constant 0 : index
    %c384 = arith.constant 384 : index
    %73 = vector.load %arg10[%c0_62, %c384] : memref<512x576xf32, #tpu.memory_space<vmem>>, vector<512x64xf32>
    tpu.vector_store %arg10[%c0_62, %c384], %72 {strides = array<i32>} : memref<512x576xf32, #tpu.memory_space<vmem>>, vector<512x64xf32>,
    %c0_63 = arith.constant 0 : index
    %c2_64 = arith.constant 2 : index
    %c8_65 = arith.constant 8 : index
    %c0_66 = arith.constant 0 : index
    %74 = vector.load %arg9[%c0_63, %c2_64, %c8_65, %c0_66] : memref<2x18x32x64xf32, #tpu.memory_space<vmem>>, vector<2x16x16x64xf32>
    %75 = vector.shape_cast %74 : vector<2x16x16x64xf32> to vector<512x64xf32>
    %c0_67 = arith.constant 0 : index
    %c448 = arith.constant 448 : index
    %76 = vector.load %arg10[%c0_67, %c448] : memref<512x576xf32, #tpu.memory_space<vmem>>, vector<512x64xf32>
    tpu.vector_store %arg10[%c0_67, %c448], %75 {strides = array<i32>} : memref<512x576xf32, #tpu.memory_space<vmem>>, vector<512x64xf32>,
    %c0_68 = arith.constant 0 : index
    %c2_69 = arith.constant 2 : index
    %c9_70 = arith.constant 9 : index
    %c0_71 = arith.constant 0 : index
    %77 = vector.load %arg9[%c0_68, %c2_69, %c9_70, %c0_71] : memref<2x18x32x64xf32, #tpu.memory_space<vmem>>, vector<2x16x16x64xf32>
    %78 = vector.shape_cast %77 : vector<2x16x16x64xf32> to vector<512x64xf32>
    %c0_72 = arith.constant 0 : index
    %c512 = arith.constant 512 : index
    %79 = vector.load %arg10[%c0_72, %c512] : memref<512x576xf32, #tpu.memory_space<vmem>>, vector<512x64xf32>
    tpu.vector_store %arg10[%c0_72, %c512], %78 {strides = array<i32>} : memref<512x576xf32, #tpu.memory_space<vmem>>, vector<512x64xf32>,
    %c0_73 = arith.constant 0 : index
    %c0_74 = arith.constant 0 : index
    %80 = vector.load %arg10[%c0_73, %c0_74] : memref<512x576xf32, #tpu.memory_space<vmem>>, vector<512x576xf32>
    %c0_75 = arith.constant 0 : index
    %c0_76 = arith.constant 0 : index
    %81 = vector.load %arg7[%c0_75, %c0_76] : memref<576x16xf32, #tpu.memory_space<vmem>>, vector<576x16xf32>
    %cst_77 = arith.constant dense<0.000000e+00> : vector<512x16xf32>
    %82 = tpu.matmul %80, %81, %cst_77 {dimension_numbers = #tpu.dot_dimension_numbers<[1], [0], [0], [1], [0, 0, 1, 1], [], []>} : vector<512x576xf32>, vector<576x16xf32>, vector<512x16xf32> -> vector<512x16xf32>
    %c0_78 = arith.constant 0 : index
    %c0_79 = arith.constant 0 : index
    %83 = vector.load %arg8[%c0_78, %c0_79] : memref<512x48xf32, #tpu.memory_space<vmem>>, vector<512x32xf32>
    tpu.vector_store %arg8[%c0_78, %c0_79], %0 {strides = array<i32>} : memref<512x48xf32, #tpu.memory_space<vmem>>, vector<512x32xf32>,
    %c0_80 = arith.constant 0 : index
    %c32 = arith.constant 32 : index
    %84 = vector.load %arg8[%c0_80, %c32] : memref<512x48xf32, #tpu.memory_space<vmem>>, vector<512x16xf32>
    tpu.vector_store %arg8[%c0_80, %c32], %82 {strides = array<i32>} : memref<512x48xf32, #tpu.memory_space<vmem>>, vector<512x16xf32>,
    return
  }
  func.func @transform_0(%arg0: i32) -> (i32, i32) {
    %c0_i32 = arith.constant 0 : i32
    %c0_i32_0 = arith.constant 0 : i32
    %c0_i32_1 = arith.constant 0 : i32
    return %c0_i32, %c0_i32_0 : i32, i32
  }
  func.func @transform_1(%arg0: i32) -> (i32, i32) {
    %c0_i32 = arith.constant 0 : i32
    %c0_i32_0 = arith.constant 0 : i32
    %c0_i32_1 = arith.constant 0 : i32
    return %c0_i32, %c0_i32_0 : i32, i32
  }
  func.func @transform_2(%arg0: i32) -> (i32, i32) {
    %c0_i32 = arith.constant 0 : i32
    %c0_i32_0 = arith.constant 0 : i32
    %c0_i32_1 = arith.constant 0 : i32
    return %c0_i32, %c0_i32_0 : i32, i32
  }
  func.func @transform_3(%arg0: i32) -> (i32, i32) {
    %c0_i32 = arith.constant 0 : i32
    %c0_i32_0 = arith.constant 0 : i32
    %c0_i32_1 = arith.constant 0 : i32
    return %c0_i32, %c0_i32_0 : i32, i32
  }
  func.func @transform_4(%arg0: i32) -> (i32, i32) {
    %c0_i32 = arith.constant 0 : i32
    %c0_i32_0 = arith.constant 0 : i32
    %c0_i32_1 = arith.constant 0 : i32
    return %c0_i32, %c0_i32_0 : i32, i32
  }
  func.func @transform_5(%arg0: i32) -> (i32, i32) {
    %c0_i32 = arith.constant 0 : i32
    %c0_i32_0 = arith.constant 0 : i32
    %c0_i32_1 = arith.constant 0 : i32
    return %c0_i32, %c0_i32_0 : i32, i32
  }
  func.func @transform_6(%arg0: i32) -> (i32, i32) {
    %c0_i32 = arith.constant 0 : i32
    %c0_i32_0 = arith.constant 0 : i32
    %c0_i32_1 = arith.constant 0 : i32
    return %c0_i32, %c0_i32_0 : i32, i32
  }
  func.func @transform_7(%arg0: i32) -> (i32, i32) {
    %c0_i32 = arith.constant 0 : i32
    %c0_i32_0 = arith.constant 0 : i32
    %c0_i32_1 = arith.constant 0 : i32
    return %c0_i32, %c0_i32_0 : i32, i32
  }
}

</mosaic_0001>

<bundles_post_ra>
// kernel: tpu_custom_call.1
= control target key start
LH: loop header
LB: loop body
LE: loop exit
PB: predicated region body
PF: predicated region fallthrough
CT: control target
= control target key end

     0   :  { %vm90_vm0 = vcmask 261120   ;;  %vm1111_vm5 = vcmask 523264   ;;  %vm2377_vm9 = vcmask 1048064   ;;  %s6302_s22 = smov 32   ;;  %vm6056_vm10 = vcmask 392448   ;;  %s12001_s3 = inlined_call_operand.vmem [shape: f32[32,64], index: 3, kind: input, shape index: {}]   ;;  %s12002_s0 = inlined_call_operand.vmem [shape: f32[512,32], index: 0, kind: input, shape index: {}]   ;;  %s12003_s2 = inlined_call_operand.vmem [shape: f32[1,32], index: 2, kind: input, shape index: {}]   ;;  %s12004_s1 = inlined_call_operand.vmem [shape: f32[1,32], index: 1, kind: input, shape index: {}]   ;;  %s12005_s5 = inlined_call_operand.vmem [shape: f32[1,64], index: 5, kind: input, shape index: {}]   ;;  %s12006_s4 = inlined_call_operand.vmem [shape: f32[1,64], index: 4, kind: input, shape index: {}]   ;;  %s12007_s6 = inlined_call_operand.vmem [shape: f32[576,16], index: 6, kind: input, shape index: {}]   ;;  %s12008_s7 = inlined_call_operand.vmem [shape: f32[512,48], index: 7, kind: output, shape index: {}]  }
   0x1   :  { %v709_v0 = vld [vmem:[%s12001_s3 + $0x18] sm:$0xff]  ;;  %v708_v1 = vld [vmem:[%s12001_s3 + $0x10] sm:$0xff]  ;;  %v6352_v2 = vld [vmem:[%s12002_s0] sm:$0xff] }
   0x2   :  { %914 = vmatpush.msra.mxu0 %v709_v0  ;;  %12170 = vst [vmem:[#allocation4_spill] sm:$0xff] %v6352_v2  ;;  %v6357_v3 = vld [vmem:[%s12002_s0 + $0x8] sm:$0xff]  ;;  %6253 = vmatpush.msra.mxu3 %v709_v0  ;;  %v6365_v5 = vld [vmem:[%s12002_s0 + $0x10] sm:$0xff]  ;;  %v6370_v6 = vld [vmem:[%s12002_s0 + $0x18] sm:$0xff]  ;;  %v91_v7 = vsel %vm90_vm0, %v6352_v2, 0.0 }
   0x3   :  { %12171 = vst [vmem:[#allocation5_spill] sm:$0xff] %v6357_v3  ;;  %v707_v4 = vld [vmem:[%s12001_s3 + $0x8] sm:$0xff]  ;;  %v92_v8 = vsel %vm90_vm0, %v6357_v3, 0.0  ;;  %v6379_v9 = vld [vmem:[%s12002_s0 + $0x20] sm:$0xff]  ;;  %v94_v11 = vsel %vm90_vm0, %v6365_v5, 0.0  ;;  %v96_v13 = vsel %vm90_vm0, %v6370_v6, 0.0 }
   0x4   :  { %12172 = vst [vmem:[#allocation6_spill] sm:$0xff] %v6365_v5  ;;  %915 = vmatpush.msra.mxu0 %v708_v1  ;;  %v93_v10 = vadd.f32 %v92_v8, %v91_v7  ;;  %6254 = vmatpush.msra.mxu3 %v708_v1  ;;  %v706_v12 = vld [vmem:[%s12001_s3] sm:$0xff]  ;;  %v6391_v14 = vld [vmem:[%s12002_s0 + $0x28] sm:$0xff]  ;;  %v98_v16 = vsel %vm90_vm0, %v6379_v9, 0.0  ;;  %v6398_v17 = vld [vmem:[%s12002_s0 + $0x30] sm:$0xff] }
   0x5   :  { %12173 = vst [vmem:[#allocation7_spill] sm:$0xff] %v6370_v6  ;;  %v100_v19 = vsel %vm90_vm0, %v6391_v14, 0.0  ;;  %v6405_v20 = vld [vmem:[%s12002_s0 + $0x38] sm:$0xff]  ;;  %v102_v22 = vsel %vm90_vm0, %v6398_v17, 0.0  ;;  %v6412_v23 = vld [vmem:[%s12002_s0 + $0x40] sm:$0xff]  ;;  %v6419_v26 = vld [vmem:[%s12002_s0 + $0x48] sm:$0xff] }
   0x6   :  { %12174 = vst [vmem:[#allocation8_spill] sm:$0xff] %v6379_v9  ;;  %916 = vmatpush.msra.mxu0 %v707_v4  ;;  %v95_v15 = vadd.f32 %v94_v11, %v93_v10  ;;  %6255 = vmatpush.msra.mxu3 %v707_v4  ;;  %v104_v25 = vsel %vm90_vm0, %v6405_v20, 0.0  ;;  %v106_v28 = vsel %vm90_vm0, %v6412_v23, 0.0  ;;  %v6426_v29 = vld [vmem:[%s12002_s0 + $0x50] sm:$0xff]  ;;  %v108_v31 = vsel %vm90_vm0, %v6419_v26, 0.0  ;;  %v6433_v32 = vld [vmem:[%s12002_s0 + $0x58] sm:$0xff] }
   0x7   :  { %12175 = vst [vmem:[#allocation9_spill] sm:$0xff] %v6391_v14  ;;  %v110_v34 = vsel %vm90_vm0, %v6426_v29, 0.0  ;;  %v6440_v35 = vld [vmem:[%s12002_s0 + $0x60] sm:$0xff]  ;;  %v112_v37 = vsel %vm90_vm0, %v6433_v32, 0.0  ;;  %v6447_v38 = vld [vmem:[%s12002_s0 + $0x68] sm:$0xff]  ;;  %v6454_v41 = vld [vmem:[%s12002_s0 + $0x70] sm:$0xff] }
   0x8   :  { %917 = vmatpush.msra.mxu0 %v706_v12  ;;  %12176 = vst [vmem:[#allocation10_spill] sm:$0xff] %v6398_v17  ;;  %v97_v18 = vadd.f32 %v96_v13, %v95_v15  ;;  %6256 = vmatpush.msra.mxu3 %v706_v12  ;;  %v114_v40 = vsel %vm90_vm0, %v6440_v35, 0.0  ;;  %v116_v43 = vsel %vm90_vm0, %v6447_v38, 0.0  ;;  %v6461_v44 = vld [vmem:[%s12002_s0 + $0x78] sm:$0xff]  ;;  %v118_v46 = vsel %vm90_vm0, %v6454_v41, 0.0  ;;  %v6468_v47 = vld [vmem:[%s12002_s0 + $0x80] sm:$0xff] }
   0x9   :  { %12177 = vst [vmem:[#allocation11_spill] sm:$0xff] %v6405_v20  ;;  %v120_v49 = vsel %vm90_vm0, %v6461_v44, 0.0  ;;  %v6475_v50 = vld [vmem:[%s12002_s0 + $0x88] sm:$0xff]  ;;  %v122_v52 = vsel %vm90_vm0, %v6468_v47, 0.0  ;;  %v6482_v53 = vld [vmem:[%s12002_s0 + $0x90] sm:$0xff]  ;;  %v6489_v56 = vld [vmem:[%s12002_s0 + $0x98] sm:$0xff] }
   0xa   :  { %v99_v21 = vadd.f32 %v98_v16, %v97_v18  ;;  %12178 = vst [vmem:[#allocation12_spill] sm:$0xff] %v6412_v23  ;;  %v124_v55 = vsel %vm90_vm0, %v6475_v50, 0.0  ;;  %v126_v58 = vsel %vm90_vm0, %v6482_v53, 0.0  ;;  %v6496_v59 = vld [vmem:[%s12002_s0 + $0xa0] sm:$0xff]  ;;  %v128_v61 = vsel %vm90_vm0, %v6489_v56, 0.0  ;;  %v6503_v62 = vld [vmem:[%s12002_s0 + $0xa8] sm:$0xff] }
   0xb   :  { %12179 = vst [vmem:[#allocation13_spill] sm:$0xff] %v6419_v26  ;;  %v130_v0 = vsel %vm90_vm0, %v6496_v59, 0.0  ;;  %v6510_v1 = vld [vmem:[%s12002_s0 + $0xb0] sm:$0xff]  ;;  %v132_v7 = vsel %vm90_vm0, %v6503_v62, 0.0  ;;  %v6517_v8 = vld [vmem:[%s12002_s0 + $0xb8] sm:$0xff]  ;;  %v6524_v12 = vld [vmem:[%s12002_s0 + $0xc0] sm:$0xff] }
   0xc   :  { %v101_v24 = vadd.f32 %v100_v19, %v99_v21  ;;  %12180 = vst [vmem:[#allocation14_spill] sm:$0xff] %v6426_v29  ;;  %v134_v11 = vsel %vm90_vm0, %v6510_v1, 0.0  ;;  %v136_v15 = vsel %vm90_vm0, %v6517_v8, 0.0  ;;  %v6531_v16 = vld [vmem:[%s12002_s0 + $0xc8] sm:$0xff]  ;;  %v138_v19 = vsel %vm90_vm0, %v6524_v12, 0.0  ;;  %v6538_v21 = vld [vmem:[%s12002_s0 + $0xd0] sm:$0xff] }
   0xd   :  { %12181 = vst [vmem:[#allocation15_spill] sm:$0xff] %v6433_v32 }
   0xe   :  { %v103_v27 = vadd.f32 %v102_v22, %v101_v24  ;;  %12182 = vst [vmem:[#allocation16_spill] sm:$0xff] %v6440_v35  ;;  %v140_v24 = vsel %vm90_vm0, %v6531_v16, 0.0 }
   0xf   :  { %12183 = vst [vmem:[#allocation17_spill] sm:$0xff] %v6447_v38 }
  0x10   :  { %v105_v30 = vadd.f32 %v104_v25, %v103_v27  ;;  %12184 = vst [vmem:[#allocation18_spill] sm:$0xff] %v6454_v41  ;;  %v6545_v25 = vld [vmem:[%s12002_s0 + $0xd8] sm:$0xff] }
  0x11   :  { %12185 = vst [vmem:[#allocation19_spill] sm:$0xff] %v6461_v44 }
  0x12   :  { %v107_v33 = vadd.f32 %v106_v28, %v105_v30  ;;  %12186 = vst [vmem:[#allocation20_spill] sm:$0xff] %v6468_v47  ;;  %v142_v28 = vsel %vm90_vm0, %v6538_v21, 0.0  ;;  %v6552_v30 = vld [vmem:[%s12002_s0 + $0xe0] sm:$0xff] }
  0x13   :  { %12187 = vst [vmem:[#allocation21_spill] sm:$0xff] %v6475_v50 }
  0x14   :  { %v109_v36 = vadd.f32 %v108_v31, %v107_v33  ;;  %12188 = vst [vmem:[#allocation22_spill] sm:$0xff] %v6482_v53  ;;  %v144_v33 = vsel %vm90_vm0, %v6545_v25, 0.0 }
  0x15   :  { %12189 = vst [vmem:[#allocation23_spill] sm:$0xff] %v6489_v56 }
  0x16   :  { %v111_v39 = vadd.f32 %v110_v34, %v109_v36  ;;  %12190 = vst [vmem:[#allocation24_spill] sm:$0xff] %v6496_v59  ;;  %v6559_v34 = vld [vmem:[%s12002_s0 + $0xe8] sm:$0xff] }
  0x17   :  { %12191 = vst [vmem:[#allocation25_spill] sm:$0xff] %v6503_v62 }
  0x18   :  { %v113_v42 = vadd.f32 %v112_v37, %v111_v39  ;;  %12192 = vst [vmem:[#allocation26_spill] sm:$0xff] %v6510_v1  ;;  %v146_v37 = vsel %vm90_vm0, %v6552_v30, 0.0  ;;  %v6566_v39 = vld [vmem:[%s12002_s0 + $0xf0] sm:$0xff] }
  0x19   :  { %12193 = vst [vmem:[#allocation27_spill] sm:$0xff] %v6517_v8 }
  0x1a   :  { %v115_v45 = vadd.f32 %v114_v40, %v113_v42  ;;  %12194 = vst [vmem:[#allocation28_spill] sm:$0xff] %v6524_v12  ;;  %v148_v42 = vsel %vm90_vm0, %v6559_v34, 0.0 }
  0x1b   :  { %12195 = vst [vmem:[#allocation29_spill] sm:$0xff] %v6531_v16 }
  0x1c   :  { %v117_v48 = vadd.f32 %v116_v43, %v115_v45  ;;  %12196 = vst [vmem:[#allocation30_spill] sm:$0xff] %v6538_v21  ;;  %v6573_v43 = vld [vmem:[%s12002_s0 + $0xf8] sm:$0xff] }
  0x1d   :  { %12197 = vst [vmem:[#allocation31_spill] sm:$0xff] %v6545_v25 }
  0x1e   :  { %v119_v51 = vadd.f32 %v118_v46, %v117_v48  ;;  %12198 = vst [vmem:[#allocation32_spill] sm:$0xff] %v6552_v30  ;;  %v150_v46 = vsel %vm90_vm0, %v6566_v39, 0.0  ;;  %v6580_v48 = vld [vmem:[%s12002_s0 + $0x100] sm:$0xff] }
  0x1f   :  { %12199 = vst [vmem:[#allocation33_spill] sm:$0xff] %v6559_v34 }
  0x20   :  { %v121_v54 = vadd.f32 %v120_v49, %v119_v51  ;;  %12200 = vst [vmem:[#allocation34_spill] sm:$0xff] %v6566_v39  ;;  %v152_v51 = vsel %vm90_vm0, %v6573_v43, 0.0 }
  0x21   :  { %12201 = vst [vmem:[#allocation35_spill] sm:$0xff] %v6573_v43 }
  0x22   :  { %v123_v57 = vadd.f32 %v122_v52, %v121_v54  ;;  %12202 = vst [vmem:[#allocation36_spill] sm:$0xff] %v6580_v48  ;;  %v6587_v52 = vld [vmem:[%s12002_s0 + $0x108] sm:$0xff] }
  0x23   :  { %12203 = vst [vmem:[#allocation37_spill] sm:$0xff] %v6587_v52 }
  0x24   :  { %v125_v60 = vadd.f32 %v124_v55, %v123_v57  ;;  %v154_v55 = vsel %vm90_vm0, %v6580_v48, 0.0  ;;  %v6594_v57 = vld [vmem:[%s12002_s0 + $0x110] sm:$0xff] }
  0x25   :  { %12204 = vst [vmem:[#allocation38_spill] sm:$0xff] %v6594_v57 }
  0x26   :  { %v127_v63 = vadd.f32 %v126_v58, %v125_v60  ;;  %v156_v60 = vsel %vm90_vm0, %v6587_v52, 0.0 }
  0x28   :  { %v129_v4 = vadd.f32 %v128_v61, %v127_v63  ;;  %v6601_v61 = vld [vmem:[%s12002_s0 + $0x118] sm:$0xff] }
  0x29   :  { %12205 = vst [vmem:[#allocation39_spill] sm:$0xff] %v6601_v61 }
  0x2a   :  { %v131_v10 = vadd.f32 %v130_v0, %v129_v4  ;;  %v158_v0 = vsel %vm90_vm0, %v6594_v57, 0.0  ;;  %v6608_v4 = vld [vmem:[%s12002_s0 + $0x120] sm:$0xff] }
  0x2b   :  { %12206 = vst [vmem:[#allocation40_spill] sm:$0xff] %v6608_v4 }
  0x2c   :  { %v133_v13 = vadd.f32 %v132_v7, %v131_v10  ;;  %v160_v10 = vsel %vm90_vm0, %v6601_v61, 0.0 }
  0x2e   :  { %v135_v18 = vadd.f32 %v134_v11, %v133_v13  ;;  %v6615_v11 = vld [vmem:[%s12002_s0 + $0x128] sm:$0xff] }
  0x2f   :  { %12207 = vst [vmem:[#allocation41_spill] sm:$0xff] %v6615_v11 }
  0x30   :  { %v137_v22 = vadd.f32 %v136_v15, %v135_v18  ;;  %v162_v15 = vsel %vm90_vm0, %v6608_v4, 0.0  ;;  %v6622_v18 = vld [vmem:[%s12002_s0 + $0x130] sm:$0xff] }
  0x31   :  { %12208 = vst [vmem:[#allocation42_spill] sm:$0xff] %v6622_v18 }
  0x32   :  { %v139_v27 = vadd.f32 %v138_v19, %v137_v22  ;;  %v164_v22 = vsel %vm90_vm0, %v6615_v11, 0.0 }
  0x34   :  { %v141_v31 = vadd.f32 %v140_v24, %v139_v27  ;;  %v6629_v24 = vld [vmem:[%s12002_s0 + $0x138] sm:$0xff] }
  0x35   :  { %12209 = vst [vmem:[#allocation43_spill] sm:$0xff] %v6629_v24 }
  0x36   :  { %v143_v36 = vadd.f32 %v142_v28, %v141_v31  ;;  %v166_v28 = vsel %vm90_vm0, %v6622_v18, 0.0  ;;  %v6636_v31 = vld [vmem:[%s12002_s0 + $0x140] sm:$0xff] }
  0x37   :  { %12210 = vst [vmem:[#allocation44_spill] sm:$0xff] %v6636_v31 }
  0x38   :  { %v145_v40 = vadd.f32 %v144_v33, %v143_v36  ;;  %v168_v36 = vsel %vm90_vm0, %v6629_v24, 0.0 }
  0x3a   :  { %v147_v45 = vadd.f32 %v146_v37, %v145_v40  ;;  %v6643_v37 = vld [vmem:[%s12002_s0 + $0x148] sm:$0xff] }
  0x3b   :  { %12211 = vst [vmem:[#allocation45_spill] sm:$0xff] %v6643_v37 }
  0x3c   :  { %v149_v49 = vadd.f32 %v148_v42, %v147_v45  ;;  %v170_v42 = vsel %vm90_vm0, %v6636_v31, 0.0  ;;  %v6650_v45 = vld [vmem:[%s12002_s0 + $0x150] sm:$0xff] }
  0x3d   :  { %12212 = vst [vmem:[#allocation46_spill] sm:$0xff] %v6650_v45 }
  0x3e   :  { %v151_v54 = vadd.f32 %v150_v46, %v149_v49  ;;  %v172_v49 = vsel %vm90_vm0, %v6643_v37, 0.0 }
  0x40   :  { %v153_v58 = vadd.f32 %v152_v51, %v151_v54  ;;  %v6657_v51 = vld [vmem:[%s12002_s0 + $0x158] sm:$0xff] }
  0x41   :  { %12213 = vst [vmem:[#allocation47_spill] sm:$0xff] %v6657_v51 }
  0x42   :  { %v155_v63 = vadd.f32 %v154_v55, %v153_v58  ;;  %v174_v55 = vsel %vm90_vm0, %v6650_v45, 0.0  ;;  %v6664_v58 = vld [vmem:[%s12002_s0 + $0x160] sm:$0xff] }
  0x43   :  { %12214 = vst [vmem:[#allocation48_spill] sm:$0xff] %v6664_v58 }
  0x44   :  { %v157_v7 = vadd.f32 %v156_v60, %v155_v63  ;;  %v176_v63 = vsel %vm90_vm0, %v6657_v51, 0.0 }
  0x46   :  { %v159_v13 = vadd.f32 %v158_v0, %v157_v7  ;;  %v6671_v0 = vld [vmem:[%s12002_s0 + $0x168] sm:$0xff] }
  0x47   :  { %12215 = vst [vmem:[#allocation49_spill] sm:$0xff] %v6671_v0 }
  0x48   :  { %v161_v19 = vadd.f32 %v160_v10, %v159_v13  ;;  %v178_v10 = vsel %vm90_vm0, %v6664_v58, 0.0  ;;  %v6678_v13 = vld [vmem:[%s12002_s0 + $0x170] sm:$0xff] }
  0x49   :  { %12216 = vst [vmem:[#allocation50_spill] sm:$0xff] %v6678_v13 }
  0x4a   :  { %v163_v27 = vadd.f32 %v162_v15, %v161_v19  ;;  %v180_v19 = vsel %vm90_vm0, %v6671_v0, 0.0 }
  0x4c   :  { %v165_v33 = vadd.f32 %v164_v22, %v163_v27  ;;  %v6685_v22 = vld [vmem:[%s12002_s0 + $0x178] sm:$0xff] }
  0x4d   :  { %12217 = vst [vmem:[#allocation51_spill] sm:$0xff] %v6685_v22 }
  0x4e   :  { %v167_v40 = vadd.f32 %v166_v28, %v165_v33  ;;  %v182_v28 = vsel %vm90_vm0, %v6678_v13, 0.0  ;;  %v6692_v33 = vld [vmem:[%s12002_s0 + $0x180] sm:$0xff] }
  0x4f   :  { %12218 = vst [vmem:[#allocation52_spill] sm:$0xff] %v6692_v33 }
  0x50   :  { %v169_v46 = vadd.f32 %v168_v36, %v167_v40  ;;  %v184_v40 = vsel %vm90_vm0, %v6685_v22, 0.0 }
  0x52   :  { %v171_v54 = vadd.f32 %v170_v42, %v169_v46  ;;  %v6699_v42 = vld [vmem:[%s12002_s0 + $0x188] sm:$0xff] }
  0x53   :  { %12219 = vst [vmem:[#allocation53_spill] sm:$0xff] %v6699_v42 }
  0x54   :  { %v173_v60 = vadd.f32 %v172_v49, %v171_v54  ;;  %v186_v49 = vsel %vm90_vm0, %v6692_v33, 0.0  ;;  %v6706_v54 = vld [vmem:[%s12002_s0 + $0x190] sm:$0xff] }
  0x55   :  { %12220 = vst [vmem:[#allocation54_spill] sm:$0xff] %v6706_v54 }
  0x56   :  { %v175_v7 = vadd.f32 %v174_v55, %v173_v60  ;;  %v188_v60 = vsel %vm90_vm0, %v6699_v42, 0.0 }
  0x58   :  { %v177_v15 = vadd.f32 %v176_v63, %v175_v7  ;;  %v6713_v63 = vld [vmem:[%s12002_s0 + $0x198] sm:$0xff] }
  0x59   :  { %12221 = vst [vmem:[#allocation55_spill] sm:$0xff] %v6713_v63 }
  0x5a   :  { %v179_v27 = vadd.f32 %v178_v10, %v177_v15  ;;  %v190_v10 = vsel %vm90_vm0, %v6706_v54, 0.0  ;;  %v6720_v15 = vld [vmem:[%s12002_s0 + $0x1a0] sm:$0xff] }
  0x5b   :  { %12222 = vst [vmem:[#allocation56_spill] sm:$0xff] %v6720_v15 }
  0x5c   :  { %v181_v36 = vadd.f32 %v180_v19, %v179_v27  ;;  %v192_v27 = vsel %vm90_vm0, %v6713_v63, 0.0 }
  0x5e   :  { %v183_v46 = vadd.f32 %v182_v28, %v181_v36  ;;  %v6727_v28 = vld [vmem:[%s12002_s0 + $0x1a8] sm:$0xff] }
  0x5f   :  { %12223 = vst [vmem:[#allocation57_spill] sm:$0xff] %v6727_v28 }
  0x60   :  { %v185_v55 = vadd.f32 %v184_v40, %v183_v46  ;;  %v194_v40 = vsel %vm90_vm0, %v6720_v15, 0.0  ;;  %v6734_v46 = vld [vmem:[%s12002_s0 + $0x1b0] sm:$0xff] }
  0x61   :  { %12224 = vst [vmem:[#allocation58_spill] sm:$0xff] %v6734_v46 }
  0x62   :  { %v187_v7 = vadd.f32 %v186_v49, %v185_v55  ;;  %v196_v55 = vsel %vm90_vm0, %v6727_v28, 0.0 }
  0x64   :  { %v189_v19 = vadd.f32 %v188_v60, %v187_v7  ;;  %v6741_v60 = vld [vmem:[%s12002_s0 + $0x1b8] sm:$0xff] }
  0x65   :  { %12225 = vst [vmem:[#allocation59_spill] sm:$0xff] %v6741_v60 }
  0x66   :  { %v191_v36 = vadd.f32 %v190_v10, %v189_v19  ;;  %v198_v10 = vsel %vm90_vm0, %v6734_v46, 0.0  ;;  %v6748_v19 = vld [vmem:[%s12002_s0 + $0x1c0] sm:$0xff] }
  0x67   :  { %12226 = vst [vmem:[#allocation60_spill] sm:$0xff] %v6748_v19 }
  0x68   :  { %v193_v49 = vadd.f32 %v192_v27, %v191_v36  ;;  %v200_v27 = vsel %vm90_vm0, %v6741_v60, 0.0  ;;  %v6755_v36 = vld [vmem:[%s12002_s0 + $0x1c8] sm:$0xff] }
  0x69   :  { %12227 = vst [vmem:[#allocation61_spill] sm:$0xff] %v6755_v36 }
  0x6a   :  { %v195_v7 = vadd.f32 %v194_v40, %v193_v49  ;;  %v202_v40 = vsel %vm90_vm0, %v6748_v19, 0.0  ;;  %v6762_v49 = vld [vmem:[%s12002_s0 + $0x1d0] sm:$0xff] }
  0x6b   :  { %12228 = vst [vmem:[#allocation62_spill] sm:$0xff] %v6762_v49 }
  0x6c   :  { %v197_v15 = vadd.f32 %v196_v55, %v195_v7  ;;  %v204_v55 = vsel %vm90_vm0, %v6755_v36, 0.0  ;;  %v6769_v7 = vld [vmem:[%s12002_s0 + $0x1d8] sm:$0xff] }
  0x6d   :  { %12229 = vst [vmem:[#allocation63_spill] sm:$0xff] %v6769_v7  ;;  %v208_v19 = vsel %vm90_vm0, %v6769_v7, 0.0 }
  0x6e   :  { %v199_v28 = vadd.f32 %v198_v10, %v197_v15  ;;  %v206_v15 = vsel %vm90_vm0, %v6762_v49, 0.0 }
  0x70   :  { %v201_v46 = vadd.f32 %v200_v27, %v199_v28  ;;  %v6778_v28 = vld [vmem:[%s12002_s0 + $0x1e0] sm:$0xff] }
  0x71   :  { %12230 = vst [vmem:[#allocation64_spill] sm:$0xff] %v6778_v28  ;;  %v210_v63 = vsel %vm90_vm0, %v6778_v28, 0.0 }
  0x72   :  { %v203_v60 = vadd.f32 %v202_v40, %v201_v46  ;;  %v6785_v46 = vld [vmem:[%s12002_s0 + $0x1e8] sm:$0xff] }
  0x73   :  { %12231 = vst [vmem:[#allocation65_spill] sm:$0xff] %v6785_v46 }
  0x74   :  { %v205_v10 = vadd.f32 %v204_v55, %v203_v60  ;;  %v212_v60 = vsel %vm90_vm0, %v6785_v46, 0.0  ;;  %v6792_v55 = vld [vmem:[%s12002_s0 + $0x1f0] sm:$0xff] }
  0x75   :  { %12232 = vst [vmem:[#allocation66_spill] sm:$0xff] %v6792_v55 }
  0x76   :  { %v207_v27 = vadd.f32 %v206_v15, %v205_v10  ;;  %v6799_v15 = vld [vmem:[%s12002_s0 + $0x1f8] sm:$0xff] }
  0x77   :  { %12233 = vst [vmem:[#allocation67_spill] sm:$0xff] %v6799_v15 }
  0x78   :  { %v209_v36 = vadd.f32 %v208_v19, %v207_v27  ;;  %v214_v19 = vsel %vm90_vm0, %v6792_v55, 0.0  ;;  %v6299_v27 = vmov 512.0  }
  0x79   :  { %6287 = vrcp.f32 %v6299_v27 }
  0x7a   :  { %v211_v40 = vadd.f32 %v210_v63, %v209_v36  ;;  %v216_v63 = vsel %vm90_vm0, %v6799_v15, 0.0 }
  0x7c   :  { %v213_v7 = vadd.f32 %v212_v60, %v211_v40 }
  0x7e   :  { %v215_v10 = vadd.f32 %v214_v19, %v213_v7 }
  0x7f   :  { %v6288_v28 = vpop.eup %6287 }
  0x80   :  { %v217_v36 = vadd.f32 %v216_v63, %v215_v10  ;;  %v225_v54 = vmul.f32 512.0, %v6288_v28  ;;  %vm229_vm1 = vweird.f32 %v6288_v28 }
  0x82   :  { %v218_v46 = vrot.slane %v217_v36, 4  ;;  %v226_v60 = vsub.f32 1.0, %v225_v54 }
  0x84   :  { %v219_v49 = vadd.f32 %v218_v46, %v217_v36  ;;  %v227_v55 = vmul.f32 %v6288_v28, %v226_v60 }
  0x86   :  { %v220_v40 = vrot.slane %v219_v49, 2  ;;  %v228_v22 = vadd.f32 %v6288_v28, %v227_v55 }
  0x88   :  { %v221_v42 = vadd.f32 %v220_v40, %v219_v49  ;;  %v6803_v0 = vsel %vm229_vm1, %v6288_v28, %v228_v22 }
  0x8a   :  { %v222_v33 = vrot.slane %v221_v42, 1 }
  0x8c   :  { %v223_v13 = vadd.f32 %v222_v33, %v221_v42 }
  0x8e   :  { %v6806_v7 = vmul.f32 %v6803_v0, %v223_v13 }
  0x90   :  { %v6810_v19 = vsub.f32 %v6352_v2, %v6806_v7  ;;  %v6814_v46 = vsub.f32 %v6357_v3, %v6806_v7  ;;  %v6818_v54 = vsub.f32 %v6365_v5, %v6806_v7  ;;  %v6822_v33 = vsub.f32 %v6370_v6, %v6806_v7 }
  0x91   :  { %v6826_v13 = vsub.f32 %v6379_v9, %v6806_v7  ;;  %v6836_v28 = vsub.f32 %v6391_v14, %v6806_v7  ;;  %v6842_v10 = vsub.f32 %v6398_v17, %v6806_v7  ;;  %v6851_v14 = vsub.f32 %v6405_v20, %v6806_v7 }
  0x92   :  { %v296_v22 = vmul.f32 %v6810_v19, %v6810_v19  ;;  %v297_v42 = vmul.f32 %v6814_v46, %v6814_v46  ;;  %v298_v49 = vmul.f32 %v6818_v54, %v6818_v54  ;;  %v299_v55 = vmul.f32 %v6822_v33, %v6822_v33 }
  0x93   :  { %v300_v63 = vmul.f32 %v6826_v13, %v6826_v13  ;;  %v301_v9 = vmul.f32 %v6836_v28, %v6836_v28  ;;  %v6858_v5 = vsub.f32 %v6412_v23, %v6806_v7 }
  0x94   :  { %v360_v36 = vsel %vm90_vm0, %v296_v22, 0.0  ;;  %v361_v27 = vsel %vm90_vm0, %v297_v42, 0.0  ;;  %v363_v40 = vsel %vm90_vm0, %v298_v49, 0.0  ;;  %v365_v17 = vsel %vm90_vm0, %v299_v55, 0.0 }
  0x95   :  { %v362_v60 = vadd.f32 %v361_v27, %v360_v36  ;;  %v302_v22 = vmul.f32 %v6842_v10, %v6842_v10  ;;  %v367_v42 = vsel %vm90_vm0, %v300_v63, 0.0  ;;  %v6865_v36 = vsub.f32 %v6419_v26, %v6806_v7 }
  0x96   :  { %v303_v27 = vmul.f32 %v6851_v14, %v6851_v14  ;;  %v369_v55 = vsel %vm90_vm0, %v301_v9, 0.0  ;;  %v304_v23 = vmul.f32 %v6858_v5, %v6858_v5 }
  0x97   :  { %v364_v6 = vadd.f32 %v363_v40, %v362_v60  ;;  %v6872_v60 = vsub.f32 %v6426_v29, %v6806_v7  ;;  %v371_v63 = vsel %vm90_vm0, %v302_v22, 0.0  ;;  %v305_v26 = vmul.f32 %v6865_v36, %v6865_v36 }
  0x98   :  { %v373_v9 = vsel %vm90_vm0, %v303_v27, 0.0  ;;  %v375_v22 = vsel %vm90_vm0, %v304_v23, 0.0 }
  0x99   :  { %v366_v49 = vadd.f32 %v365_v17, %v364_v6  ;;  %v6879_v17 = vsub.f32 %v6433_v32, %v6806_v7  ;;  %v306_v29 = vmul.f32 %v6872_v60, %v6872_v60  ;;  %v377_v27 = vsel %vm90_vm0, %v305_v26, 0.0 }
  0x9b   :  { %v368_v40 = vadd.f32 %v367_v42, %v366_v49  ;;  %v6886_v49 = vsub.f32 %v6440_v35, %v6806_v7  ;;  %v307_v32 = vmul.f32 %v6879_v17, %v6879_v17  ;;  %v379_v23 = vsel %vm90_vm0, %v306_v29, 0.0 }
  0x9d   :  { %v370_v6 = vadd.f32 %v369_v55, %v368_v40  ;;  %v6893_v40 = vsub.f32 %v6447_v38, %v6806_v7  ;;  %v308_v35 = vmul.f32 %v6886_v49, %v6886_v49  ;;  %v381_v26 = vsel %vm90_vm0, %v307_v32, 0.0 }
  0x9f   :  { %v372_v42 = vadd.f32 %v371_v63, %v370_v6  ;;  %v6900_v6 = vsub.f32 %v6454_v41, %v6806_v7  ;;  %v309_v38 = vmul.f32 %v6893_v40, %v6893_v40  ;;  %v383_v29 = vsel %vm90_vm0, %v308_v35, 0.0 }
  0xa1   :  { %v374_v55 = vadd.f32 %v373_v9, %v372_v42  ;;  %v6907_v42 = vsub.f32 %v6461_v44, %v6806_v7  ;;  %v310_v41 = vmul.f32 %v6900_v6, %v6900_v6  ;;  %v385_v32 = vsel %vm90_vm0, %v309_v38, 0.0 }
  0xa3   :  { %v376_v63 = vadd.f32 %v375_v22, %v374_v55  ;;  %v6914_v55 = vsub.f32 %v6468_v47, %v6806_v7  ;;  %v311_v44 = vmul.f32 %v6907_v42, %v6907_v42  ;;  %v387_v35 = vsel %vm90_vm0, %v310_v41, 0.0 }
  0xa5   :  { %v378_v9 = vadd.f32 %v377_v27, %v376_v63  ;;  %v6921_v63 = vsub.f32 %v6475_v50, %v6806_v7  ;;  %v312_v47 = vmul.f32 %v6914_v55, %v6914_v55  ;;  %v389_v38 = vsel %vm90_vm0, %v311_v44, 0.0 }
  0xa7   :  { %v380_v22 = vadd.f32 %v379_v23, %v378_v9  ;;  %v6928_v9 = vsub.f32 %v6482_v53, %v6806_v7  ;;  %v313_v50 = vmul.f32 %v6921_v63, %v6921_v63  ;;  %v391_v41 = vsel %vm90_vm0, %v312_v47, 0.0 }
  0xa9   :  { %v382_v27 = vadd.f32 %v381_v26, %v380_v22  ;;  %v6935_v22 = vsub.f32 %v6489_v56, %v6806_v7  ;;  %v314_v53 = vmul.f32 %v6928_v9, %v6928_v9  ;;  %v393_v44 = vsel %vm90_vm0, %v313_v50, 0.0 }
  0xab   :  { %v384_v23 = vadd.f32 %v383_v29, %v382_v27  ;;  %v6942_v27 = vsub.f32 %v6496_v59, %v6806_v7  ;;  %v315_v56 = vmul.f32 %v6935_v22, %v6935_v22  ;;  %v395_v47 = vsel %vm90_vm0, %v314_v53, 0.0 }
  0xad   :  { %v386_v26 = vadd.f32 %v385_v32, %v384_v23  ;;  %v6949_v23 = vsub.f32 %v6503_v62, %v6806_v7  ;;  %v316_v59 = vmul.f32 %v6942_v27, %v6942_v27  ;;  %v397_v50 = vsel %vm90_vm0, %v315_v56, 0.0 }
  0xaf   :  { %v388_v29 = vadd.f32 %v387_v35, %v386_v26  ;;  %v6956_v26 = vsub.f32 %v6510_v1, %v6806_v7  ;;  %v317_v62 = vmul.f32 %v6949_v23, %v6949_v23  ;;  %v399_v53 = vsel %vm90_vm0, %v316_v59, 0.0 }
  0xb1   :  { %v390_v32 = vadd.f32 %v389_v38, %v388_v29  ;;  %v6963_v29 = vsub.f32 %v6517_v8, %v6806_v7  ;;  %v318_v1 = vmul.f32 %v6956_v26, %v6956_v26  ;;  %v401_v56 = vsel %vm90_vm0, %v317_v62, 0.0 }
  0xb3   :  { %v392_v35 = vadd.f32 %v391_v41, %v390_v32  ;;  %v6970_v32 = vsub.f32 %v6524_v12, %v6806_v7  ;;  %v319_v8 = vmul.f32 %v6963_v29, %v6963_v29  ;;  %v403_v59 = vsel %vm90_vm0, %v318_v1, 0.0 }
  0xb5   :  { %v394_v38 = vadd.f32 %v393_v44, %v392_v35  ;;  %v6977_v35 = vsub.f32 %v6531_v16, %v6806_v7  ;;  %v320_v12 = vmul.f32 %v6970_v32, %v6970_v32  ;;  %v405_v62 = vsel %vm90_vm0, %v319_v8, 0.0 }
  0xb7   :  { %v396_v41 = vadd.f32 %v395_v47, %v394_v38  ;;  %12234 = vst [vmem:[#allocation68_spill] sm:$0xff] %v6977_v35  ;;  %v6984_v38 = vsub.f32 %v6538_v21, %v6806_v7  ;;  %v321_v16 = vmul.f32 %v6977_v35, %v6977_v35  ;;  %v407_v1 = vsel %vm90_vm0, %v320_v12, 0.0 }
  0xb9   :  { %v398_v44 = vadd.f32 %v397_v50, %v396_v41  ;;  %12235 = vst [vmem:[#allocation69_spill] sm:$0xff] %v6984_v38  ;;  %v6991_v41 = vsub.f32 %v6545_v25, %v6806_v7  ;;  %v322_v21 = vmul.f32 %v6984_v38, %v6984_v38  ;;  %v409_v8 = vsel %vm90_vm0, %v321_v16, 0.0 }
  0xbb   :  { %v400_v47 = vadd.f32 %v399_v53, %v398_v44  ;;  %12236 = vst [vmem:[#allocation70_spill] sm:$0xff] %v6991_v41  ;;  %v6998_v44 = vsub.f32 %v6552_v30, %v6806_v7  ;;  %v323_v25 = vmul.f32 %v6991_v41, %v6991_v41  ;;  %v411_v12 = vsel %vm90_vm0, %v322_v21, 0.0 }
  0xbd   :  { %v402_v50 = vadd.f32 %v401_v56, %v400_v47  ;;  %12237 = vst [vmem:[#allocation71_spill] sm:$0xff] %v6998_v44  ;;  %v7005_v47 = vsub.f32 %v6559_v34, %v6806_v7  ;;  %v324_v30 = vmul.f32 %v6998_v44, %v6998_v44  ;;  %v413_v16 = vsel %vm90_vm0, %v323_v25, 0.0 }
  0xbf   :  { %v404_v53 = vadd.f32 %v403_v59, %v402_v50  ;;  %12238 = vst [vmem:[#allocation72_spill] sm:$0xff] %v7005_v47  ;;  %v7012_v50 = vsub.f32 %v6566_v39, %v6806_v7  ;;  %v325_v34 = vmul.f32 %v7005_v47, %v7005_v47  ;;  %v415_v21 = vsel %vm90_vm0, %v324_v30, 0.0 }
  0xc1   :  { %v406_v56 = vadd.f32 %v405_v62, %v404_v53  ;;  %12239 = vst [vmem:[#allocation73_spill] sm:$0xff] %v7012_v50  ;;  %v7019_v53 = vsub.f32 %v6573_v43, %v6806_v7  ;;  %v326_v39 = vmul.f32 %v7012_v50, %v7012_v50  ;;  %v417_v25 = vsel %vm90_vm0, %v325_v34, 0.0 }
  0xc3   :  { %v408_v59 = vadd.f32 %v407_v1, %v406_v56  ;;  %12240 = vst [vmem:[#allocation74_spill] sm:$0xff] %v7019_v53  ;;  %v7026_v56 = vsub.f32 %v6580_v48, %v6806_v7  ;;  %v327_v43 = vmul.f32 %v7019_v53, %v7019_v53  ;;  %v419_v30 = vsel %vm90_vm0, %v326_v39, 0.0 }
  0xc5   :  { %v410_v62 = vadd.f32 %v409_v8, %v408_v59  ;;  %12241 = vst [vmem:[#allocation75_spill] sm:$0xff] %v7026_v56  ;;  %v7033_v59 = vsub.f32 %v6587_v52, %v6806_v7  ;;  %v328_v48 = vmul.f32 %v7026_v56, %v7026_v56  ;;  %v421_v34 = vsel %vm90_vm0, %v327_v43, 0.0 }
  0xc7   :  { %v412_v1 = vadd.f32 %v411_v12, %v410_v62  ;;  %12242 = vst [vmem:[#allocation76_spill] sm:$0xff] %v7033_v59  ;;  %v7040_v62 = vsub.f32 %v6594_v57, %v6806_v7  ;;  %v329_v52 = vmul.f32 %v7033_v59, %v7033_v59  ;;  %v423_v39 = vsel %vm90_vm0, %v328_v48, 0.0 }
  0xc9   :  { %v414_v8 = vadd.f32 %v413_v16, %v412_v1  ;;  %v7047_v1 = vsub.f32 %v6601_v61, %v6806_v7  ;;  %v330_v57 = vmul.f32 %v7040_v62, %v7040_v62  ;;  %v425_v43 = vsel %vm90_vm0, %v329_v52, 0.0 }
  0xcb   :  { %v416_v12 = vadd.f32 %v415_v21, %v414_v8  ;;  %v7054_v8 = vsub.f32 %v6608_v4, %v6806_v7  ;;  %v331_v61 = vmul.f32 %v7047_v1, %v7047_v1  ;;  %v427_v48 = vsel %vm90_vm0, %v330_v57, 0.0 }
  0xcd   :  { %v418_v16 = vadd.f32 %v417_v25, %v416_v12  ;;  %v7061_v12 = vsub.f32 %v6615_v11, %v6806_v7  ;;  %v332_v4 = vmul.f32 %v7054_v8, %v7054_v8  ;;  %v429_v52 = vsel %vm90_vm0, %v331_v61, 0.0 }
  0xcf   :  { %v420_v21 = vadd.f32 %v419_v30, %v418_v16  ;;  %v7068_v16 = vsub.f32 %v6622_v18, %v6806_v7  ;;  %v333_v11 = vmul.f32 %v7061_v12, %v7061_v12  ;;  %v431_v57 = vsel %vm90_vm0, %v332_v4, 0.0 }
  0xd1   :  { %v422_v25 = vadd.f32 %v421_v34, %v420_v21  ;;  %v7075_v21 = vsub.f32 %v6629_v24, %v6806_v7  ;;  %v334_v18 = vmul.f32 %v7068_v16, %v7068_v16  ;;  %v433_v61 = vsel %vm90_vm0, %v333_v11, 0.0 }
  0xd3   :  { %v424_v30 = vadd.f32 %v423_v39, %v422_v25  ;;  %v7082_v25 = vsub.f32 %v6636_v31, %v6806_v7  ;;  %v335_v24 = vmul.f32 %v7075_v21, %v7075_v21  ;;  %v435_v4 = vsel %vm90_vm0, %v334_v18, 0.0 }
  0xd5   :  { %v426_v34 = vadd.f32 %v425_v43, %v424_v30  ;;  %v7089_v30 = vsub.f32 %v6643_v37, %v6806_v7  ;;  %v336_v31 = vmul.f32 %v7082_v25, %v7082_v25  ;;  %v437_v11 = vsel %vm90_vm0, %v335_v24, 0.0 }
  0xd7   :  { %v428_v39 = vadd.f32 %v427_v48, %v426_v34  ;;  %v7096_v34 = vsub.f32 %v6650_v45, %v6806_v7  ;;  %v337_v37 = vmul.f32 %v7089_v30, %v7089_v30  ;;  %v439_v18 = vsel %vm90_vm0, %v336_v31, 0.0 }
  0xd9   :  { %v430_v43 = vadd.f32 %v429_v52, %v428_v39  ;;  %v7103_v39 = vsub.f32 %v6657_v51, %v6806_v7  ;;  %v338_v45 = vmul.f32 %v7096_v34, %v7096_v34  ;;  %v441_v24 = vsel %vm90_vm0, %v337_v37, 0.0 }
  0xdb   :  { %v432_v48 = vadd.f32 %v431_v57, %v430_v43  ;;  %v7110_v43 = vsub.f32 %v6664_v58, %v6806_v7  ;;  %v339_v20 = vmul.f32 %v7103_v39, %v7103_v39  ;;  %v443_v31 = vsel %vm90_vm0, %v338_v45, 0.0 }
  0xdd   :  { %v434_v52 = vadd.f32 %v433_v61, %v432_v48  ;;  %v12243_v48 = vld [vmem:[#allocation49_spill] sm:$0xff]  ;;  %v340_v2 = vmul.f32 %v7110_v43, %v7110_v43  ;;  %v445_v37 = vsel %vm90_vm0, %v339_v20, 0.0 }
  0xde   :  { %v7117_v51 = vsub.f32 %v12243_v48, %v6806_v7 }
  0xdf   :  { %v436_v57 = vadd.f32 %v435_v4, %v434_v52  ;;  %v12244_v52 = vld [vmem:[#allocation50_spill] sm:$0xff]  ;;  %v447_v45 = vsel %vm90_vm0, %v340_v2, 0.0 }
  0xe0   :  { %v7124_v58 = vsub.f32 %v12244_v52, %v6806_v7  ;;  %v341_v3 = vmul.f32 %v7117_v51, %v7117_v51 }
  0xe1   :  { %v438_v61 = vadd.f32 %v437_v11, %v436_v57  ;;  %v12245_v57 = vld [vmem:[#allocation51_spill] sm:$0xff] }
  0xe2   :  { %v7131_v48 = vsub.f32 %v12245_v57, %v6806_v7  ;;  %v342_v59 = vmul.f32 %v7124_v58, %v7124_v58  ;;  %v449_v20 = vsel %vm90_vm0, %v341_v3, 0.0 }
  0xe3   :  { %v440_v4 = vadd.f32 %v439_v18, %v438_v61  ;;  %v12246_v61 = vld [vmem:[#allocation52_spill] sm:$0xff] }
  0xe4   :  { %v7138_v52 = vsub.f32 %v12246_v61, %v6806_v7  ;;  %v343_v56 = vmul.f32 %v7131_v48, %v7131_v48  ;;  %v451_v2 = vsel %vm90_vm0, %v342_v59, 0.0 }
  0xe5   :  { %v442_v11 = vadd.f32 %v441_v24, %v440_v4  ;;  %v12247_v4 = vld [vmem:[#allocation53_spill] sm:$0xff] }
  0xe6   :  { %v7145_v57 = vsub.f32 %v12247_v4, %v6806_v7  ;;  %v344_v53 = vmul.f32 %v7138_v52, %v7138_v52  ;;  %v453_v3 = vsel %vm90_vm0, %v343_v56, 0.0 }
  0xe7   :  { %v444_v18 = vadd.f32 %v443_v31, %v442_v11  ;;  %v12248_v11 = vld [vmem:[#allocation54_spill] sm:$0xff] }
  0xe8   :  { %v7152_v61 = vsub.f32 %v12248_v11, %v6806_v7  ;;  %v345_v50 = vmul.f32 %v7145_v57, %v7145_v57  ;;  %v455_v59 = vsel %vm90_vm0, %v344_v53, 0.0 }
  0xe9   :  { %v446_v24 = vadd.f32 %v445_v37, %v444_v18  ;;  %v12249_v18 = vld [vmem:[#allocation55_spill] sm:$0xff] }
  0xea   :  { %v7159_v4 = vsub.f32 %v12249_v18, %v6806_v7  ;;  %v346_v47 = vmul.f32 %v7152_v61, %v7152_v61  ;;  %v457_v56 = vsel %vm90_vm0, %v345_v50, 0.0 }
  0xeb   :  { %v448_v31 = vadd.f32 %v447_v45, %v446_v24  ;;  %v12251_v24 = vld [vmem:[#allocation56_spill] sm:$0xff] }
  0xec   :  { %12250 = vst [vmem:[#allocation77_spill] sm:$0xff] %v7159_v4  ;;  %v7166_v11 = vsub.f32 %v12251_v24, %v6806_v7  ;;  %v347_v44 = vmul.f32 %v7159_v4, %v7159_v4  ;;  %v459_v53 = vsel %vm90_vm0, %v346_v47, 0.0 }
  0xed   :  { %v450_v37 = vadd.f32 %v449_v20, %v448_v31  ;;  %v12253_v31 = vld [vmem:[#allocation57_spill] sm:$0xff] }
  0xee   :  { %12252 = vst [vmem:[#allocation78_spill] sm:$0xff] %v7166_v11  ;;  %v7173_v18 = vsub.f32 %v12253_v31, %v6806_v7  ;;  %v348_v41 = vmul.f32 %v7166_v11, %v7166_v11  ;;  %v461_v50 = vsel %vm90_vm0, %v347_v44, 0.0 }
  0xef   :  { %v452_v45 = vadd.f32 %v451_v2, %v450_v37  ;;  %v12255_v37 = vld [vmem:[#allocation58_spill] sm:$0xff] }
  0xf0   :  { %12254 = vst [vmem:[#allocation79_spill] sm:$0xff] %v7173_v18  ;;  %v7180_v24 = vsub.f32 %v12255_v37, %v6806_v7  ;;  %v349_v38 = vmul.f32 %v7173_v18, %v7173_v18  ;;  %v463_v47 = vsel %vm90_vm0, %v348_v41, 0.0 }
  0xf1   :  { %v454_v20 = vadd.f32 %v453_v3, %v452_v45  ;;  %v12257_v45 = vld [vmem:[#allocation59_spill] sm:$0xff] }
  0xf2   :  { %12256 = vst [vmem:[#allocation80_spill] sm:$0xff] %v7180_v24  ;;  %v7187_v31 = vsub.f32 %v12257_v45, %v6806_v7  ;;  %v350_v11 = vmul.f32 %v7180_v24, %v7180_v24  ;;  %v465_v44 = vsel %vm90_vm0, %v349_v38, 0.0 }
  0xf3   :  { %v456_v2 = vadd.f32 %v455_v59, %v454_v20  ;;  %v12259_v20 = vld [vmem:[#allocation60_spill] sm:$0xff] }
  0xf4   :  { %12258 = vst [vmem:[#allocation81_spill] sm:$0xff] %v7187_v31  ;;  %v7194_v37 = vsub.f32 %v12259_v20, %v6806_v7  ;;  %v351_v18 = vmul.f32 %v7187_v31, %v7187_v31  ;;  %v467_v41 = vsel %vm90_vm0, %v350_v11, 0.0 }
  0xf5   :  { %v458_v3 = vadd.f32 %v457_v56, %v456_v2  ;;  %v12261_v2 = vld [vmem:[#allocation61_spill] sm:$0xff] }
  0xf6   :  { %12260 = vst [vmem:[#allocation82_spill] sm:$0xff] %v7194_v37  ;;  %v7201_v45 = vsub.f32 %v12261_v2, %v6806_v7  ;;  %v352_v24 = vmul.f32 %v7194_v37, %v7194_v37  ;;  %v469_v38 = vsel %vm90_vm0, %v351_v18, 0.0 }
  0xf7   :  { %v460_v59 = vadd.f32 %v459_v53, %v458_v3  ;;  %v12263_v3 = vld [vmem:[#allocation62_spill] sm:$0xff] }
  0xf8   :  { %12262 = vst [vmem:[#allocation83_spill] sm:$0xff] %v7201_v45  ;;  %v7208_v20 = vsub.f32 %v12263_v3, %v6806_v7  ;;  %v353_v31 = vmul.f32 %v7201_v45, %v7201_v45  ;;  %v471_v11 = vsel %vm90_vm0, %v352_v24, 0.0 }
  0xf9   :  { %v462_v56 = vadd.f32 %v461_v50, %v460_v59  ;;  %v12265_v59 = vld [vmem:[#allocation63_spill] sm:$0xff] }
  0xfa   :  { %12264 = vst [vmem:[#allocation84_spill] sm:$0xff] %v7208_v20  ;;  %v7215_v2 = vsub.f32 %v12265_v59, %v6806_v7  ;;  %v354_v37 = vmul.f32 %v7208_v20, %v7208_v20  ;;  %v473_v18 = vsel %vm90_vm0, %v353_v31, 0.0 }
  0xfb   :  { %v464_v53 = vadd.f32 %v463_v47, %v462_v56  ;;  %v12267_v56 = vld [vmem:[#allocation64_spill] sm:$0xff] }
  0xfc   :  { %12266 = vst [vmem:[#allocation85_spill] sm:$0xff] %v7215_v2  ;;  %v7222_v3 = vsub.f32 %v12267_v56, %v6806_v7  ;;  %v355_v45 = vmul.f32 %v7215_v2, %v7215_v2  ;;  %v475_v24 = vsel %vm90_vm0, %v354_v37, 0.0 }
  0xfd   :  { %v466_v50 = vadd.f32 %v465_v44, %v464_v53  ;;  %v12269_v53 = vld [vmem:[#allocation65_spill] sm:$0xff] }
  0xfe   :  { %12268 = vst [vmem:[#allocation86_spill] sm:$0xff] %v7222_v3  ;;  %v7229_v59 = vsub.f32 %v12269_v53, %v6806_v7  ;;  %v356_v20 = vmul.f32 %v7222_v3, %v7222_v3  ;;  %v477_v31 = vsel %vm90_vm0, %v355_v45, 0.0 }
  0xff   :  { %v468_v47 = vadd.f32 %v467_v41, %v466_v50  ;;  %v12271_v50 = vld [vmem:[#allocation66_spill] sm:$0xff] }
 0x100   :  { %12270 = vst [vmem:[#allocation87_spill] sm:$0xff] %v7229_v59  ;;  %v7236_v56 = vsub.f32 %v12271_v50, %v6806_v7  ;;  %v357_v53 = vmul.f32 %v7229_v59, %v7229_v59  ;;  %v479_v50 = vsel %vm90_vm0, %v356_v20, 0.0 }
 0x101   :  { %v470_v44 = vadd.f32 %v469_v38, %v468_v47  ;;  %v7243_v47 = vsub.f32 %v6799_v15, %v6806_v7 }
 0x102   :  { %12272 = vst [vmem:[#allocation88_spill] sm:$0xff] %v7236_v56 }
 0x103   :  { %v472_v41 = vadd.f32 %v471_v11, %v470_v44  ;;  %12273 = vst [vmem:[#allocation89_spill] sm:$0xff] %v7243_v47  ;;  %v358_v44 = vmul.f32 %v7236_v56, %v7236_v56  ;;  %v359_v37 = vmul.f32 %v7243_v47, %v7243_v47 }
 0x105   :  { %v474_v38 = vadd.f32 %v473_v18, %v472_v41  ;;  %v481_v18 = vsel %vm90_vm0, %v357_v53, 0.0  ;;  %v483_v7 = vsel %vm90_vm0, %v358_v44, 0.0  ;;  %v485_v59 = vsel %vm90_vm0, %v359_v37, 0.0 }
 0x107   :  { %v476_v11 = vadd.f32 %v475_v24, %v474_v38 }
 0x109   :  { %v478_v2 = vadd.f32 %v477_v31, %v476_v11 }
 0x10b   :  { %v480_v41 = vadd.f32 %v479_v50, %v478_v2 }
 0x10d   :  { %v482_v15 = vadd.f32 %v481_v18, %v480_v41 }
 0x10f   :  { %v484_v3 = vadd.f32 %v483_v7, %v482_v15  ;;  %v494_v15 = vld [vmem:[%s12004_s1] sm:$0x1]  ;;  %s6301_s1 = smov 64  }
 0x111   :  { %v486_v45 = vadd.f32 %v485_v59, %v484_v3 }
 0x113   :  { %v487_v24 = vrot.slane %v486_v45, 4 }
 0x115   :  { %v488_v38 = vadd.f32 %v487_v24, %v486_v45 }
 0x117   :  { %v489_v35 = vrot.slane %v488_v38, 2 }
 0x119   :  { %v490_v56 = vadd.f32 %v489_v35, %v488_v38 }
 0x11b   :  { %v491_v4 = vrot.slane %v490_v56, 1 }
 0x11d   :  { %v492_v20 = vadd.f32 %v491_v4, %v490_v56  ;;  %v7265_v56 = vld [vmem:[%s12003_s2] ss:$0 sm:$0xff] }
 0x11f   :  { %v493_v31 = vmul.f32 %v492_v20, %v6803_v0 }
 0x121   :  { %v495_v11 = vadd.f32 1e-05, %v493_v31 }
 0x123   :  { %6289 = vrsqrt.f32 %v495_v11  ;;  %vm502_vm2 = vweird.f32 %v495_v11 }
 0x129   :  { %v6290_v47 = vpop.eup %6289 }
 0x12a   :  { %v497_v53 = vmul.f32 %v6290_v47, %v495_v11  ;;  %vm503_vm3 = vweird.f32 %v6290_v47 }
 0x12b   :  { %vm504_vm4 = vmor %vm502_vm2, %vm503_vm3 }
 0x12c   :  { %v498_v2 = vmul.f32 %v6290_v47, %v497_v53 }
 0x12e   :  { %v499_v50 = vmul.f32 0.5, %v498_v2 }
 0x130   :  { %v500_v44 = vsub.f32 1.5, %v499_v50 }
 0x132   :  { %v501_v3 = vmul.f32 %v6290_v47, %v500_v44 }
 0x134   :  { %v505_v35 = vsel %vm504_vm4, %v6290_v47, %v501_v3 }
 0x135   :  { %v506_v59 = vmul.f32 %v505_v35, %v494_v15 }
 0x137   :  { %v7260_v4 = vperm.slane %v506_v59, 0 }
 0x139   :  { %v510_v37 = vmul.f32 %v7260_v4, %v6810_v19  ;;  %v511_v41 = vmul.f32 %v7260_v4, %v6814_v46  ;;  %v512_v24 = vmul.f32 %v7260_v4, %v6818_v54  ;;  %v513_v19 = vmul.f32 %v7260_v4, %v6822_v33 }
 0x13a   :  { %v514_v11 = vmul.f32 %v7260_v4, %v6826_v13  ;;  %v515_v2 = vmul.f32 %v7260_v4, %v6836_v28  ;;  %v516_v44 = vmul.f32 %v7260_v4, %v6842_v10  ;;  %v517_v3 = vmul.f32 %v7260_v4, %v6851_v14 }
 0x13b   :  { %v578_v18 = vadd.f32 %v7265_v56, %v510_v37  ;;  %v579_v47 = vadd.f32 %v7265_v56, %v511_v41  ;;  %v580_v38 = vadd.f32 %v7265_v56, %v512_v24  ;;  %v581_v46 = vadd.f32 %v7265_v56, %v513_v19 }
 0x13c   :  { %v582_v54 = vadd.f32 %v7265_v56, %v514_v11  ;;  %v583_v33 = vadd.f32 %v7265_v56, %v515_v2  ;;  %v584_v13 = vadd.f32 %v7265_v56, %v516_v44  ;;  %v585_v28 = vadd.f32 %v7265_v56, %v517_v3 }
 0x13d   :  { %v642_v7 = vmax.f32 %v578_v18, 0.0  ;;  %v643_v45 = vmax.f32 %v579_v47, 0.0  ;;  %v644_v20 = vmax.f32 %v580_v38, 0.0  ;;  %v645_v31 = vmax.f32 %v581_v46, 0.0 }
 0x13e   :  { %v646_v53 = vmax.f32 %v582_v54, 0.0  ;;  %v647_v50 = vmax.f32 %v583_v33, 0.0  ;;  %v648_v15 = vmax.f32 %v584_v13, 0.0  ;;  %v544_v35 = vmul.f32 %v7260_v4, %v7040_v62 }
 0x13f   :  { %6125 = vmatmul.msk.f32.vlgmr.msra.gmra.mxu0 %vm90_vm0, %v642_v7  ;;  %v649_v37 = vmax.f32 %v585_v28, 0.0  ;;  %v518_v10 = vmul.f32 %v7260_v4, %v6858_v5  ;;  %v545_v41 = vmul.f32 %v7260_v4, %v7047_v1  ;;  %v519_v62 = vmul.f32 %v7260_v4, %v6865_v36 }
 0x140   :  { %v612_v59 = vadd.f32 %v7265_v56, %v544_v35  ;;  %v546_v24 = vmul.f32 %v7260_v4, %v7054_v8  ;;  %v520_v1 = vmul.f32 %v7260_v4, %v6872_v60  ;;  %v547_v46 = vmul.f32 %v7260_v4, %v7061_v12 }
 0x141   :  { %v586_v14 = vadd.f32 %v7265_v56, %v518_v10  ;;  %v613_v7 = vadd.f32 %v7265_v56, %v545_v41  ;;  %v587_v5 = vadd.f32 %v7265_v56, %v519_v62  ;;  %v521_v8 = vmul.f32 %v7260_v4, %v6879_v17 }
 0x142   :  { %v676_v18 = vmax.f32 %v612_v59, 0.0  ;;  %v614_v38 = vadd.f32 %v7265_v56, %v546_v24  ;;  %v588_v36 = vadd.f32 %v7265_v56, %v520_v1  ;;  %v522_v12 = vmul.f32 %v7260_v4, %v6886_v49 }
 0x143   :  { %v650_v47 = vmax.f32 %v586_v14, 0.0  ;;  %v589_v60 = vadd.f32 %v7265_v56, %v521_v8  ;;  %v549_v44 = vmul.f32 %v7260_v4, %v7075_v21  ;;  %v6300_v49 = vmov 0.0  }
 0x144   :  { %6159 = vmatmul.msk.f32.vlgmr.msra.gmra.mxu3 %vm90_vm0, %v676_v18  ;;  %v678_v19 = vmax.f32 %v614_v38, 0.0  ;;  %v652_v11 = vmax.f32 %v588_v36, 0.0  ;;  %v590_v17 = vadd.f32 %v7265_v56, %v522_v12  ;;  %1725 = vst.msk [vmem:[#allocation2 + $0x28] sm:$0xff] %vm1111_vm5, %v6300_v49  ;;  %v550_v21 = vmul.f32 %v7260_v4, %v7082_v25 }
 0x145   :  { %v653_v33 = vmax.f32 %v589_v60, 0.0  ;;  %v617_v13 = vadd.f32 %v7265_v56, %v549_v44  ;;  %1720 = vst.msk [vmem:[#allocation2] sm:$0xff] %vm1111_vm5, %v6300_v49  ;;  %v524_v59 = vmul.f32 %v7260_v4, %v6900_v6  ;;  %v551_v6 = vmul.f32 %v7260_v4, %v7089_v30 }
 0x146   :  { %1721 = vst.msk [vmem:[#allocation2 + $0x8] sm:$0xff] %vm1111_vm5, %v6300_v49  ;;  %v525_v14 = vmul.f32 %v7260_v4, %v6907_v42  ;;  %v552_v42 = vmul.f32 %v7260_v4, %v7096_v34  ;;  %v526_v62 = vmul.f32 %v7260_v4, %v6914_v55  ;;  %v553_v55 = vmul.f32 %v7260_v4, %v7103_v39 }
 0x147   :  { %6126 = vmatmul.msk.f32.gmra.mxu0 %vm90_vm0, %v643_v45  ;;  %v677_v45 = vmax.f32 %v613_v7, 0.0  ;;  %v681_v3 = vmax.f32 %v617_v13, 0.0  ;;  %1722 = vst.msk [vmem:[#allocation2 + $0x10] sm:$0xff] %vm1111_vm5, %v6300_v49  ;;  %v592_v25 = vadd.f32 %v7265_v56, %v524_v59  ;;  %v619_v10 = vadd.f32 %v7265_v56, %v551_v6 }
 0x148   :  { %1723 = vst.msk [vmem:[#allocation2 + $0x18] sm:$0xff] %vm1111_vm5, %v6300_v49  ;;  %v593_v30 = vadd.f32 %v7265_v56, %v525_v14  ;;  %v620_v7 = vadd.f32 %v7265_v56, %v552_v42  ;;  %v594_v34 = vadd.f32 %v7265_v56, %v526_v62  ;;  %v527_v38 = vmul.f32 %v7260_v4, %v6921_v63 }
 0x149   :  { %1724 = vst.msk [vmem:[#allocation2 + $0x20] sm:$0xff] %vm1111_vm5, %v6300_v49  ;;  %v656_v18 = vmax.f32 %v592_v25, 0.0  ;;  %v683_v41 = vmax.f32 %v619_v10, 0.0  ;;  %v554_v1 = vmul.f32 %v7260_v4, %v7110_v43  ;;  %v529_v60 = vmul.f32 %v7260_v4, %v6935_v22 }
 0x14a   :  { %1726 = vst.msk [vmem:[#allocation2 + $0x30] sm:$0xff] %vm1111_vm5, %v6300_v49  ;;  %v658_v24 = vmax.f32 %v594_v34, 0.0  ;;  %v595_v63 = vadd.f32 %v7265_v56, %v527_v38  ;;  %v557_v44 = vmul.f32 %v7260_v4, %v7131_v48  ;;  %v533_v10 = vmul.f32 %v7260_v4, %v6963_v29 }
 0x14b   :  { %1727 = vst.msk [vmem:[#allocation2 + $0x38] sm:$0xff] %vm1111_vm5, %v6300_v49  ;;  %v597_v22 = vadd.f32 %v7265_v56, %v529_v60  ;;  %v560_v14 = vmul.f32 %v7260_v4, %v7152_v61  ;;  %v534_v42 = vmul.f32 %v7260_v4, %v6970_v32 }
 0x14c   :  { %6160 = vmatmul.msk.f32.gmra.mxu3 %vm90_vm0, %v677_v45  ;;  %1728 = vst.msk [vmem:[#allocation2 + $0x40] sm:$0xff] %vm1111_vm5, %v6300_v49  ;;  %v684_v45 = vmax.f32 %v620_v7, 0.0  ;;  %v659_v36 = vmax.f32 %v595_v63, 0.0  ;;  %v625_v13 = vadd.f32 %v7265_v56, %v557_v44  ;;  %v601_v29 = vadd.f32 %v7265_v56, %v533_v10 }
 0x14d   :  { %1729 = vst.msk [vmem:[#allocation2 + $0x48] sm:$0xff] %vm1111_vm5, %v6300_v49  ;;  %v661_v12 = vmax.f32 %v597_v22, 0.0  ;;  %v602_v32 = vadd.f32 %v7265_v56, %v534_v42 }
 0x14e   :  { %1730 = vst.msk [vmem:[#allocation2 + $0x50] sm:$0xff] %vm1111_vm5, %v6300_v49 }
 0x14f   :  { %6127 = vmatmul.msk.f32.gmra.mxu0 %vm90_vm0, %v644_v20  ;;  %v651_v20 = vmax.f32 %v587_v5, 0.0  ;;  %1731 = vst.msk [vmem:[#allocation2 + $0x58] sm:$0xff] %vm1111_vm5, %v6300_v49  ;;  %v621_v5 = vadd.f32 %v7265_v56, %v553_v55  ;;  %v666_v55 = vmax.f32 %v602_v32, 0.0 }
 0x150   :  { %1732 = vst.msk [vmem:[#allocation2 + $0x60] sm:$0xff] %vm1111_vm5, %v6300_v49 }
 0x151   :  { %1733 = vst.msk [vmem:[#allocation2 + $0x68] sm:$0xff] %vm1111_vm5, %v6300_v49 }
 0x152   :  { %1734 = vst.msk [vmem:[#allocation2 + $0x70] sm:$0xff] %vm1111_vm5, %v6300_v49 }
 0x153   :  { %1735 = vst.msk [vmem:[#allocation2 + $0x78] sm:$0xff] %vm1111_vm5, %v6300_v49 }
 0x154   :  { %6161 = vmatmul.msk.f32.gmra.mxu3 %vm90_vm0, %v678_v19  ;;  %1736 = vst.msk [vmem:[#allocation2 + $0x80] sm:$0xff] %vm1111_vm5, %v6300_v49  ;;  %v622_v19 = vadd.f32 %v7265_v56, %v554_v1  ;;  %v12277_v1 = vld [vmem:[#allocation78_spill] sm:$0xff] }
 0x155   :  { %1737 = vst.msk [vmem:[#allocation2 + $0x88] sm:$0xff] %vm1111_vm5, %v6300_v49 }
 0x156   :  { %1738 = vst.msk [vmem:[#allocation2 + $0x90] sm:$0xff] %vm1111_vm5, %v6300_v49 }
 0x157   :  { %6128 = vmatmul.msk.f32.gmra.mxu0 %vm90_vm0, %v645_v31  ;;  %v615_v31 = vadd.f32 %v7265_v56, %v547_v46  ;;  %1739 = vst.msk [vmem:[#allocation2 + $0x98] sm:$0xff] %vm1111_vm5, %v6300_v49  ;;  %v528_v46 = vmul.f32 %v7260_v4, %v6928_v9 }
 0x158   :  { %1740 = vst.msk [vmem:[#allocation2 + $0xa0] sm:$0xff] %vm1111_vm5, %v6300_v49 }
 0x159   :  { %v679_v54 = vmax.f32 %v615_v31, 0.0  ;;  %1741 = vst.msk [vmem:[#allocation2 + $0xa8] sm:$0xff] %vm1111_vm5, %v6300_v49  ;;  %v686_v31 = vmax.f32 %v622_v19, 0.0  ;;  %v596_v9 = vadd.f32 %v7265_v56, %v528_v46  ;;  %v562_v19 = vmul.f32 %v7260_v4, %v12277_v1  ;;  %v12288_v1 = vld [vmem:[#allocation83_spill] sm:$0xff] }
 0x15a   :  { %1742 = vst.msk [vmem:[#allocation2 + $0xb0] sm:$0xff] %vm1111_vm5, %v6300_v49 }
 0x15b   :  { %1743 = vst.msk [vmem:[#allocation2 + $0xb8] sm:$0xff] %vm1111_vm5, %v6300_v49  ;;  %v630_v46 = vadd.f32 %v7265_v56, %v562_v19  ;;  %v567_v19 = vmul.f32 %v7260_v4, %v12288_v1 }
 0x15c   :  { %6162 = vmatmul.msk.f32.gmra.mxu3 %vm90_vm0, %v679_v54  ;;  %1744 = vst.msk [vmem:[#allocation2 + $0xc0] sm:$0xff] %vm1111_vm5, %v6300_v49  ;;  %v660_v54 = vmax.f32 %v596_v9, 0.0  ;;  %v12278_v9 = vld [vmem:[#allocation69_spill] sm:$0xff] }
 0x15d   :  { %1745 = vst.msk [vmem:[#allocation2 + $0xc8] sm:$0xff] %vm1111_vm5, %v6300_v49 }
 0x15e   :  { %1746 = vst.msk [vmem:[#allocation2 + $0xd0] sm:$0xff] %vm1111_vm5, %v6300_v49 }
 0x15f   :  { %6129 = vmatmul.msk.f32.gmra.mxu0 %vm90_vm0, %v646_v53  ;;  %v548_v53 = vmul.f32 %v7260_v4, %v7068_v16  ;;  %v523_v16 = vmul.f32 %v7260_v4, %v6893_v40  ;;  %v618_v40 = vadd.f32 %v7265_v56, %v550_v21  ;;  %1747 = vst.msk [vmem:[#allocation2 + $0xd8] sm:$0xff] %vm1111_vm5, %v6300_v49 }
 0x160   :  { %1748 = vst.msk [vmem:[#allocation2 + $0xe0] sm:$0xff] %vm1111_vm5, %v6300_v49 }
 0x161   :  { %v616_v2 = vadd.f32 %v7265_v56, %v548_v53  ;;  %v591_v28 = vadd.f32 %v7265_v56, %v523_v16  ;;  %1749 = vst.msk [vmem:[#allocation2 + $0xe8] sm:$0xff] %vm1111_vm5, %v6300_v49  ;;  %v531_v16 = vmul.f32 %v7260_v4, %v6949_v23 }
 0x162   :  { %1750 = vst.msk [vmem:[#allocation2 + $0xf0] sm:$0xff] %vm1111_vm5, %v6300_v49 }
 0x163   :  { %v655_v35 = vmax.f32 %v591_v28, 0.0  ;;  %1751 = vst.msk [vmem:[#allocation2 + $0xf8] sm:$0xff] %vm1111_vm5, %v6300_v49  ;;  %v599_v23 = vadd.f32 %v7265_v56, %v531_v16  ;;  %v558_v28 = vmul.f32 %v7260_v4, %v7138_v52 }
 0x164   :  { %1752 = vst.msk [vmem:[#allocation2 + $0x100] sm:$0xff] %vm1111_vm5, %v6300_v49 }
 0x165   :  { %1753 = vst.msk [vmem:[#allocation2 + $0x108] sm:$0xff] %vm1111_vm5, %v6300_v49  ;;  %v626_v21 = vadd.f32 %v7265_v56, %v558_v28 }
 0x166   :  { %1754 = vst.msk [vmem:[#allocation2 + $0x110] sm:$0xff] %vm1111_vm5, %v6300_v49 }
 0x167   :  { %6130 = vmatmul.msk.f32.gmra.mxu0 %vm90_vm0, %v647_v50  ;;  %v680_v50 = vmax.f32 %v616_v2, 0.0  ;;  %1755 = vst.msk [vmem:[#allocation2 + $0x118] sm:$0xff] %vm1111_vm5, %v6300_v49  ;;  %v556_v2 = vmul.f32 %v7260_v4, %v7124_v58  ;;  %v690_v59 = vmax.f32 %v626_v21, 0.0  ;;  %v12282_v21 = vld [vmem:[#allocation71_spill] sm:$0xff] }
 0x168   :  { %1756 = vst.msk [vmem:[#allocation2 + $0x120] sm:$0xff] %vm1111_vm5, %v6300_v49 }
 0x169   :  { %6163 = vmatmul.msk.f32.gmra.mxu3 %vm90_vm0, %v680_v50  ;;  %1757 = vst.msk [vmem:[#allocation2 + $0x128] sm:$0xff] %vm1111_vm5, %v6300_v49  ;;  %v530_v50 = vmul.f32 %v7260_v4, %v6942_v27 }
 0x16a   :  { %1758 = vst.msk [vmem:[#allocation2 + $0x130] sm:$0xff] %vm1111_vm5, %v6300_v49 }
 0x16b   :  { %1759 = vst.msk [vmem:[#allocation2 + $0x138] sm:$0xff] %vm1111_vm5, %v6300_v49  ;;  %v598_v27 = vadd.f32 %v7265_v56, %v530_v50  ;;  %v12280_v50 = vld [vmem:[#allocation70_spill] sm:$0xff] }
 0x16c   :  { %1760 = vst.msk [vmem:[#allocation2 + $0x140] sm:$0xff] %vm1111_vm5, %v6300_v49 }
 0x16d   :  { %1761 = vst.msk [vmem:[#allocation2 + $0x148] sm:$0xff] %vm1111_vm5, %v6300_v49 }
 0x16e   :  { %1762 = vst.msk [vmem:[#allocation2 + $0x150] sm:$0xff] %vm1111_vm5, %v6300_v49 }
 0x16f   :  { %6131 = vmatmul.msk.f32.gmra.mxu0 %vm90_vm0, %v648_v15  ;;  %v654_v15 = vmax.f32 %v590_v17, 0.0  ;;  %1763 = vst.msk [vmem:[#allocation2 + $0x158] sm:$0xff] %vm1111_vm5, %v6300_v49 }
 0x170   :  { %1764 = vst.msk [vmem:[#allocation2 + $0x160] sm:$0xff] %vm1111_vm5, %v6300_v49 }
 0x171   :  { %6164 = vmatmul.msk.f32.gmra.mxu3 %vm90_vm0, %v681_v3  ;;  %1765 = vst.msk [vmem:[#allocation2 + $0x168] sm:$0xff] %vm1111_vm5, %v6300_v49  ;;  %v689_v3 = vmax.f32 %v625_v13, 0.0 }
 0x172   :  { %1766 = vst.msk [vmem:[#allocation2 + $0x170] sm:$0xff] %vm1111_vm5, %v6300_v49 }
 0x173   :  { %1767 = vst.msk [vmem:[#allocation2 + $0x178] sm:$0xff] %vm1111_vm5, %v6300_v49 }
 0x174   :  { %1768 = vst.msk [vmem:[#allocation2 + $0x180] sm:$0xff] %vm1111_vm5, %v6300_v49 }
 0x175   :  { %1769 = vst.msk [vmem:[#allocation2 + $0x188] sm:$0xff] %vm1111_vm5, %v6300_v49 }
 0x176   :  { %1770 = vst.msk [vmem:[#allocation2 + $0x190] sm:$0xff] %vm1111_vm5, %v6300_v49 }
 0x177   :  { %6132 = vmatmul.msk.f32.gmra.mxu0 %vm90_vm0, %v649_v37  ;;  %v682_v37 = vmax.f32 %v618_v40, 0.0  ;;  %1771 = vst.msk [vmem:[#allocation2 + $0x198] sm:$0xff] %vm1111_vm5, %v6300_v49  ;;  %v663_v40 = vmax.f32 %v599_v23, 0.0 }
 0x178   :  { %1772 = vst.msk [vmem:[#allocation2 + $0x1a0] sm:$0xff] %vm1111_vm5, %v6300_v49 }
 0x179   :  { %6165 = vmatmul.msk.f32.gmra.mxu3 %vm90_vm0, %v682_v37  ;;  %1773 = vst.msk [vmem:[#allocation2 + $0x1a8] sm:$0xff] %vm1111_vm5, %v6300_v49  ;;  %v559_v37 = vmul.f32 %v7260_v4, %v7145_v57 }
 0x17a   :  { %1774 = vst.msk [vmem:[#allocation2 + $0x1b0] sm:$0xff] %vm1111_vm5, %v6300_v49 }
 0x17b   :  { %1775 = vst.msk [vmem:[#allocation2 + $0x1b8] sm:$0xff] %vm1111_vm5, %v6300_v49  ;;  %v627_v25 = vadd.f32 %v7265_v56, %v559_v37  ;;  %v12283_v37 = vld [vmem:[#allocation81_spill] sm:$0xff] }
 0x17c   :  { %1776 = vst.msk [vmem:[#allocation2 + $0x1c0] sm:$0xff] %vm1111_vm5, %v6300_v49 }
 0x17d   :  { %1777 = vst.msk [vmem:[#allocation2 + $0x1c8] sm:$0xff] %vm1111_vm5, %v6300_v49 }
 0x17e   :  { %1778 = vst.msk [vmem:[#allocation2 + $0x1d0] sm:$0xff] %vm1111_vm5, %v6300_v49 }
 0x17f   :  { %6133 = vmatmul.msk.f32.gmra.mxu0 %vm90_vm0, %v650_v47  ;;  %v657_v47 = vmax.f32 %v593_v30, 0.0  ;;  %1779 = vst.msk [vmem:[#allocation2 + $0x1d8] sm:$0xff] %vm1111_vm5, %v6300_v49  ;;  %v665_v30 = vmax.f32 %v601_v29, 0.0  ;;  %v12284_v29 = vld [vmem:[#allocation72_spill] sm:$0xff] }
 0x180   :  { %1780 = vst.msk [vmem:[#allocation2 + $0x1e0] sm:$0xff] %vm1111_vm5, %v6300_v49 }
 0x181   :  { %6166 = vmatmul.msk.f32.gmra.mxu3 %vm90_vm0, %v683_v41  ;;  %1781 = vst.msk [vmem:[#allocation2 + $0x1e8] sm:$0xff] %vm1111_vm5, %v6300_v49  ;;  %v628_v41 = vadd.f32 %v7265_v56, %v560_v14  ;;  %v539_v14 = vmul.f32 %v7260_v4, %v12284_v29 }
 0x182   :  { %1782 = vst.msk [vmem:[#allocation2 + $0x1f0] sm:$0xff] %vm1111_vm5, %v6300_v49 }
 0x183   :  { %1783 = vst.msk [vmem:[#allocation2 + $0x1f8] sm:$0xff] %vm1111_vm5, %v6300_v49  ;;  %v692_v7 = vmax.f32 %v628_v41, 0.0  ;;  %v607_v42 = vadd.f32 %v7265_v56, %v539_v14  ;;  %v12294_v14 = vld [vmem:[#allocation86_spill] sm:$0xff] }
 0x184   :  { %1784 = vst.msk [vmem:[#allocation2 + $0x200] sm:$0xff] %vm1111_vm5, %v6300_v49 }
 0x185   :  { %1785 = vst.msk [vmem:[#allocation2 + $0x208] sm:$0xff] %vm1111_vm5, %v6300_v49 }
 0x186   :  { %1786 = vst.msk [vmem:[#allocation2 + $0x210] sm:$0xff] %vm1111_vm5, %v6300_v49 }
 0x187   :  { %6134 = vmatmul.msk.f32.gmra.mxu0 %vm90_vm0, %v651_v20  ;;  %v685_v20 = vmax.f32 %v621_v5, 0.0  ;;  %1787 = vst.msk [vmem:[#allocation2 + $0x218] sm:$0xff] %vm1111_vm5, %v6300_v49  ;;  %v12276_v5 = vld [vmem:[#allocation68_spill] sm:$0xff] }
 0x188   :  { %1788 = vst.msk [vmem:[#allocation2 + $0x220] sm:$0xff] %vm1111_vm5, %v6300_v49 }
 0x189   :  { %6167 = vmatmul.msk.f32.gmra.mxu3 %vm90_vm0, %v684_v45  ;;  %1789 = vst.msk [vmem:[#allocation2 + $0x228] sm:$0xff] %vm1111_vm5, %v6300_v49 }
 0x18a   :  { %1790 = vst.msk [vmem:[#allocation2 + $0x230] sm:$0xff] %vm1111_vm5, %v6300_v49 }
 0x18b   :  { %1791 = vst.msk [vmem:[#allocation2 + $0x238] sm:$0xff] %vm1111_vm5, %v6300_v49 }
 0x18c   :  { %1792 = vst.msk [vmem:[#allocation2 + $0x240] sm:$0xff] %vm1111_vm5, %v6300_v49 }
 0x18d   :  { %1793 = vst.msk [vmem:[#allocation2 + $0x248] sm:$0xff] %vm1111_vm5, %v6300_v49 }
 0x18e   :  { %1794 = vst.msk [vmem:[#allocation2 + $0x250] sm:$0xff] %vm1111_vm5, %v6300_v49 }
 0x18f   :  { %6135 = vmatmul.msk.f32.gmra.mxu0 %vm90_vm0, %v652_v11  ;;  %v555_v11 = vmul.f32 %v7260_v4, %v7117_v51  ;;  %1795 = vst.msk [vmem:[#allocation2 + $0x258] sm:$0xff] %vm1111_vm5, %v6300_v49 }
 0x190   :  { %1796 = vst.msk [vmem:[#allocation2 + $0x260] sm:$0xff] %vm1111_vm5, %v6300_v49 }
 0x191   :  { %6168 = vmatmul.msk.f32.gmra.mxu3 %vm90_vm0, %v685_v20  ;;  %v623_v8 = vadd.f32 %v7265_v56, %v555_v11  ;;  %1797 = vst.msk [vmem:[#allocation2 + $0x268] sm:$0xff] %vm1111_vm5, %v6300_v49  ;;  %v536_v11 = vmul.f32 %v7260_v4, %v12278_v9 }
 0x192   :  { %1798 = vst.msk [vmem:[#allocation2 + $0x270] sm:$0xff] %vm1111_vm5, %v6300_v49 }
 0x193   :  { %v687_v53 = vmax.f32 %v623_v8, 0.0  ;;  %1799 = vst.msk [vmem:[#allocation2 + $0x278] sm:$0xff] %vm1111_vm5, %v6300_v49  ;;  %v694_v8 = vmax.f32 %v630_v46, 0.0  ;;  %v604_v60 = vadd.f32 %v7265_v56, %v536_v11  ;;  %v12289_v11 = vld [vmem:[#allocation74_spill] sm:$0xff] }
 0x194   :  { %1800 = vst.msk [vmem:[#allocation2 + $0x280] sm:$0xff] %vm1111_vm5, %v6300_v49 }
 0x195   :  { %1801 = vst.msk [vmem:[#allocation2 + $0x288] sm:$0xff] %vm1111_vm5, %v6300_v49 }
 0x196   :  { %1802 = vst.msk [vmem:[#allocation2 + $0x290] sm:$0xff] %vm1111_vm5, %v6300_v49 }
 0x197   :  { %6136 = vmatmul.msk.f32.gmra.mxu0 %vm90_vm0, %v653_v33  ;;  %v624_v33 = vadd.f32 %v7265_v56, %v556_v2  ;;  %1803 = vst.msk [vmem:[#allocation2 + $0x298] sm:$0xff] %vm1111_vm5, %v6300_v49 }
 0x198   :  { %1804 = vst.msk [vmem:[#allocation2 + $0x2a0] sm:$0xff] %vm1111_vm5, %v6300_v49 }
 0x199   :  { %6169 = vmatmul.msk.f32.gmra.mxu3 %vm90_vm0, %v686_v31  ;;  %v688_v17 = vmax.f32 %v624_v33, 0.0  ;;  %1805 = vst.msk [vmem:[#allocation2 + $0x2a8] sm:$0xff] %vm1111_vm5, %v6300_v49 }
 0x19a   :  { %1806 = vst.msk [vmem:[#allocation2 + $0x2b0] sm:$0xff] %vm1111_vm5, %v6300_v49 }
 0x19b   :  { %1807 = vst.msk [vmem:[#allocation2 + $0x2b8] sm:$0xff] %vm1111_vm5, %v6300_v49 }
 0x19c   :  { %1808 = vst.msk [vmem:[#allocation2 + $0x2c0] sm:$0xff] %vm1111_vm5, %v6300_v49 }
 0x19d   :  { %1809 = vst.msk [vmem:[#allocation2 + $0x2c8] sm:$0xff] %vm1111_vm5, %v6300_v49 }
 0x19e   :  { %1810 = vst.msk [vmem:[#allocation2 + $0x2d0] sm:$0xff] %vm1111_vm5, %v6300_v49 }
 0x19f   :  { %6137 = vmatmul.msk.f32.gmra.mxu0 %vm90_vm0, %v654_v15  ;;  %v662_v15 = vmax.f32 %v598_v27, 0.0  ;;  %1811 = vst.msk [vmem:[#allocation2 + $0x2d8] sm:$0xff] %vm1111_vm5, %v6300_v49 }
 0x1a0   :  { %1812 = vst.msk [vmem:[#allocation2 + $0x2e0] sm:$0xff] %vm1111_vm5, %v6300_v49 }
 0x1a1   :  { %6170 = vmatmul.msk.f32.gmra.mxu3 %vm90_vm0, %v687_v53  ;;  %1813 = vst.msk [vmem:[#allocation2 + $0x2e8] sm:$0xff] %vm1111_vm5, %v6300_v49  ;;  %v12279_v53 = vld [vmem:[#allocation79_spill] sm:$0xff] }
 0x1a2   :  { %1814 = vst.msk [vmem:[#allocation2 + $0x2f0] sm:$0xff] %vm1111_vm5, %v6300_v49  ;;  %v563_v22 = vmul.f32 %v7260_v4, %v12279_v53 }
 0x1a3   :  { %1815 = vst.msk [vmem:[#allocation2 + $0x2f8] sm:$0xff] %vm1111_vm5, %v6300_v49 }
 0x1a4   :  { %1816 = vst.msk [vmem:[#allocation2 + $0x300] sm:$0xff] %vm1111_vm5, %v6300_v49  ;;  %v631_v33 = vadd.f32 %v7265_v56, %v563_v22 }
 0x1a5   :  { %1817 = vst.msk [vmem:[#allocation2 + $0x308] sm:$0xff] %vm1111_vm5, %v6300_v49 }
 0x1a6   :  { %1818 = vst.msk [vmem:[#allocation2 + $0x310] sm:$0xff] %vm1111_vm5, %v6300_v49  ;;  %v695_v27 = vmax.f32 %v631_v33, 0.0  ;;  %v12290_v33 = vld [vmem:[#allocation84_spill] sm:$0xff] }
 0x1a7   :  { %6138 = vmatmul.msk.f32.gmra.mxu0 %vm90_vm0, %v655_v35  ;;  %v532_v35 = vmul.f32 %v7260_v4, %v6956_v26  ;;  %1819 = vst.msk [vmem:[#allocation2 + $0x318] sm:$0xff] %vm1111_vm5, %v6300_v49 }
 0x1a8   :  { %1820 = vst.msk [vmem:[#allocation2 + $0x320] sm:$0xff] %vm1111_vm5, %v6300_v49 }
 0x1a9   :  { %6171 = vmatmul.msk.f32.gmra.mxu3 %vm90_vm0, %v688_v17  ;;  %v600_v26 = vadd.f32 %v7265_v56, %v532_v35  ;;  %1821 = vst.msk [vmem:[#allocation2 + $0x328] sm:$0xff] %vm1111_vm5, %v6300_v49  ;;  %v537_v17 = vmul.f32 %v7260_v4, %v12280_v50 }
 0x1aa   :  { %1822 = vst.msk [vmem:[#allocation2 + $0x330] sm:$0xff] %vm1111_vm5, %v6300_v49 }
 0x1ab   :  { %v664_v6 = vmax.f32 %v600_v26, 0.0  ;;  %1823 = vst.msk [vmem:[#allocation2 + $0x338] sm:$0xff] %vm1111_vm5, %v6300_v49  ;;  %v605_v13 = vadd.f32 %v7265_v56, %v537_v17 }
 0x1ac   :  { %1824 = vst.msk [vmem:[#allocation2 + $0x340] sm:$0xff] %vm1111_vm5, %v6300_v49 }
 0x1ad   :  { %1825 = vst.msk [vmem:[#allocation2 + $0x348] sm:$0xff] %vm1111_vm5, %v6300_v49  ;;  %v669_v28 = vmax.f32 %v605_v13, 0.0  ;;  %v12291_v13 = vld [vmem:[#allocation75_spill] sm:$0xff] }
 0x1ae   :  { %1826 = vst.msk [vmem:[#allocation2 + $0x350] sm:$0xff] %vm1111_vm5, %v6300_v49 }
 0x1af   :  { %6139 = vmatmul.msk.f32.gmra.mxu0 %vm90_vm0, %v656_v18  ;;  %v691_v18 = vmax.f32 %v627_v25, 0.0  ;;  %1827 = vst.msk [vmem:[#allocation2 + $0x358] sm:$0xff] %vm1111_vm5, %v6300_v49  ;;  %v565_v25 = vmul.f32 %v7260_v4, %v12283_v37  ;;  %v12293_v37 = vld [vmem:[#allocation76_spill] sm:$0xff] }
 0x1b0   :  { %1828 = vst.msk [vmem:[#allocation2 + $0x360] sm:$0xff] %vm1111_vm5, %v6300_v49 }
 0x1b1   :  { %6172 = vmatmul.msk.f32.gmra.mxu3 %vm90_vm0, %v689_v3  ;;  %1829 = vst.msk [vmem:[#allocation2 + $0x368] sm:$0xff] %vm1111_vm5, %v6300_v49  ;;  %v633_v10 = vadd.f32 %v7265_v56, %v565_v25  ;;  %v543_v25 = vmul.f32 %v7260_v4, %v12293_v37 }
 0x1b2   :  { %1830 = vst.msk [vmem:[#allocation2 + $0x370] sm:$0xff] %vm1111_vm5, %v6300_v49 }
 0x1b3   :  { %1831 = vst.msk [vmem:[#allocation2 + $0x378] sm:$0xff] %vm1111_vm5, %v6300_v49  ;;  %v697_v41 = vmax.f32 %v633_v10, 0.0  ;;  %v611_v29 = vadd.f32 %v7265_v56, %v543_v25 }
 0x1b4   :  { %1832 = vst.msk [vmem:[#allocation2 + $0x380] sm:$0xff] %vm1111_vm5, %v6300_v49 }
 0x1b5   :  { %1833 = vst.msk [vmem:[#allocation2 + $0x388] sm:$0xff] %vm1111_vm5, %v6300_v49 }
 0x1b6   :  { %1834 = vst.msk [vmem:[#allocation2 + $0x390] sm:$0xff] %vm1111_vm5, %v6300_v49 }
 0x1b7   :  { %6140 = vmatmul.msk.f32.gmra.mxu0 %vm90_vm0, %v657_v47  ;;  %v12274_v47 = vld [vmem:[#allocation77_spill] sm:$0xff]  ;;  %1835 = vst.msk [vmem:[#allocation2 + $0x398] sm:$0xff] %vm1111_vm5, %v6300_v49 }
 0x1b8   :  { %v561_v62 = vmul.f32 %v7260_v4, %v12274_v47  ;;  %1836 = vst.msk [vmem:[#allocation2 + $0x3a0] sm:$0xff] %vm1111_vm5, %v6300_v49 }
 0x1b9   :  { %6173 = vmatmul.msk.f32.gmra.mxu3 %vm90_vm0, %v690_v59  ;;  %1837 = vst.msk [vmem:[#allocation2 + $0x3a8] sm:$0xff] %vm1111_vm5, %v6300_v49 }
 0x1ba   :  { %v629_v34 = vadd.f32 %v7265_v56, %v561_v62  ;;  %1838 = vst.msk [vmem:[#allocation2 + $0x3b0] sm:$0xff] %vm1111_vm5, %v6300_v49 }
 0x1bb   :  { %1839 = vst.msk [vmem:[#allocation2 + $0x3b8] sm:$0xff] %vm1111_vm5, %v6300_v49 }
 0x1bc   :  { %v7435_v39 = vpop.f32.mrf.mxu0  ;;  %v693_v38 = vmax.f32 %v629_v34, 0.0  ;;  %1840 = vst.msk [vmem:[#allocation2 + $0x3c0] sm:$0xff] %vm1111_vm5, %v6300_v49  ;;  %v671_v34 = vmax.f32 %v607_v42, 0.0 }
 0x1bd   :  { %1841 = vst.msk [vmem:[#allocation2 + $0x3c8] sm:$0xff] %vm1111_vm5, %v6300_v49 }
 0x1be   :  { %1842 = vst.msk [vmem:[#allocation2 + $0x3d0] sm:$0xff] %vm1111_vm5, %v6300_v49 }
 0x1bf   :  { %6141 = vmatmul.msk.f32.gmra.mxu0 %vm90_vm0, %v658_v24  ;;  %v535_v24 = vmul.f32 %v7260_v4, %v12276_v5  ;;  %1843 = vst.msk [vmem:[#allocation2 + $0x3d8] sm:$0xff] %vm1111_vm5, %v6300_v49 }
 0x1c0   :  { %1844 = vst.msk [vmem:[#allocation2 + $0x3e0] sm:$0xff] %vm1111_vm5, %v6300_v49 }
 0x1c1   :  { %6174 = vmatmul.msk.f32.gmra.mxu3 %vm90_vm0, %v691_v18  ;;  %v603_v63 = vadd.f32 %v7265_v56, %v535_v24  ;;  %1845 = vst.msk [vmem:[#allocation2 + $0x3e8] sm:$0xff] %vm1111_vm5, %v6300_v49 }
 0x1c2   :  { %1846 = vst.msk [vmem:[#allocation2 + $0x3f0] sm:$0xff] %vm1111_vm5, %v6300_v49 }
 0x1c3   :  { %v667_v31 = vmax.f32 %v603_v63, 0.0  ;;  %1847 = vst.msk [vmem:[#allocation2 + $0x3f8] sm:$0xff] %vm1111_vm5, %v6300_v49 }
 0x1c4   :  { %v7463_v43 = vpop.f32.mrf.mxu0  ;;  %1848 = vst.msk [vmem:[#allocation2 + $0x400] sm:$0xff] %vm1111_vm5, %v6300_v49 }
 0x1c5   :  { %1849 = vst.msk [vmem:[#allocation2 + $0x408] sm:$0xff] %vm1111_vm5, %v6300_v49  ;;  %v1113_v37 = vsel %vm1111_vm5, %v7463_v43, 0.0 }
 0x1c6   :  { %1850 = vst.msk [vmem:[#allocation2 + $0x410] sm:$0xff] %vm1111_vm5, %v6300_v49 }
 0x1c7   :  { %6142 = vmatmul.msk.f32.gmra.mxu0 %vm90_vm0, %v659_v36  ;;  %v7634_v45 = vpop.f32.mrf.mxu3  ;;  %1851 = vst.msk [vmem:[#allocation2 + $0x418] sm:$0xff] %vm1111_vm5, %v6300_v49 }
 0x1c8   :  { %12275 = vst [vmem:[#allocation77_spill] sm:$0xff] %v7634_v45 }
 0x1c9   :  { %6175 = vmatmul.msk.f32.gmra.mxu3 %vm90_vm0, %v692_v7  ;;  %v12285_v7 = vld [vmem:[#allocation82_spill] sm:$0xff]  ;;  %1852 = vst.msk [vmem:[#allocation2 + $0x420] sm:$0xff] %vm1111_vm5, %v6300_v49 }
 0x1ca   :  { %v566_v32 = vmul.f32 %v7260_v4, %v12285_v7  ;;  %1853 = vst.msk [vmem:[#allocation2 + $0x428] sm:$0xff] %vm1111_vm5, %v6300_v49 }
 0x1cb   :  { %1854 = vst.msk [vmem:[#allocation2 + $0x430] sm:$0xff] %vm1111_vm5, %v6300_v49 }
 0x1cc   :  { %v7489_v51 = vpop.f32.mrf.mxu0  ;;  %v634_v62 = vadd.f32 %v7265_v56, %v566_v32  ;;  %1855 = vst.msk [vmem:[#allocation2 + $0x438] sm:$0xff] %vm1111_vm5, %v6300_v49  ;;  %v675_v32 = vmax.f32 %v611_v29, 0.0 }
 0x1cd   :  { %1856 = vst.msk [vmem:[#allocation2 + $0x440] sm:$0xff] %vm1111_vm5, %v6300_v49  ;;  %v1115_v29 = vsel %vm1111_vm5, %v7489_v51, 0.0 }
 0x1ce   :  { %v698_v24 = vmax.f32 %v634_v62, 0.0  ;;  %1857 = vst.msk [vmem:[#allocation2 + $0x448] sm:$0xff] %vm1111_vm5, %v6300_v49 }
 0x1cf   :  { %6143 = vmatmul.msk.f32.gmra.mxu0 %vm90_vm0, %v660_v54  ;;  %v7662_v36 = vpop.f32.mrf.mxu3  ;;  %1858 = vst.msk [vmem:[#allocation2 + $0x450] sm:$0xff] %vm1111_vm5, %v6300_v49 }
 0x1d0   :  { %1859 = vst.msk [vmem:[#allocation2 + $0x458] sm:$0xff] %vm1111_vm5, %v6300_v49 }
 0x1d1   :  { %6176 = vmatmul.msk.f32.gmra.mxu3 %vm90_vm0, %v693_v38  ;;  %1860 = vst.msk [vmem:[#allocation2 + $0x460] sm:$0xff] %vm1111_vm5, %v6300_v49 }
 0x1d2   :  { %1861 = vst.msk [vmem:[#allocation2 + $0x468] sm:$0xff] %vm1111_vm5, %v6300_v49 }
 0x1d3   :  { %1862 = vst.msk [vmem:[#allocation2 + $0x470] sm:$0xff] %vm1111_vm5, %v6300_v49 }
 0x1d4   :  { %v7515_v58 = vpop.f32.mrf.mxu0  ;;  %1863 = vst.msk [vmem:[#allocation2 + $0x478] sm:$0xff] %vm1111_vm5, %v6300_v49 }
 0x1d7   :  { %6144 = vmatmul.msk.f32.gmra.mxu0 %vm90_vm0, %v661_v12  ;;  %v7690_v2 = vpop.f32.mrf.mxu3  ;;  %v668_v12 = vmax.f32 %v604_v60, 0.0 }
 0x1d9   :  { %6177 = vmatmul.msk.f32.gmra.mxu3 %vm90_vm0, %v694_v8  ;;  %v541_v8 = vmul.f32 %v7260_v4, %v12289_v11 }
 0x1db   :  { %v609_v22 = vadd.f32 %v7265_v56, %v541_v8 }
 0x1dc   :  { %v7541_v48 = vpop.f32.mrf.mxu0 }
 0x1df   :  { %6145 = vmatmul.msk.f32.gmra.mxu0 %vm90_vm0, %v662_v15  ;;  %v12281_v15 = vld [vmem:[#allocation80_spill] sm:$0xff]  ;;  %v7718_v3 = vpop.f32.mrf.mxu3 }
 0x1e0   :  { %v564_v16 = vmul.f32 %v7260_v4, %v12281_v15  ;;  %v542_v15 = vmul.f32 %v7260_v4, %v12291_v13 }
 0x1e1   :  { %6178 = vmatmul.msk.f32.gmra.mxu3 %vm90_vm0, %v695_v27  ;;  %v673_v27 = vmax.f32 %v609_v22, 0.0 }
 0x1e2   :  { %v632_v23 = vadd.f32 %v7265_v56, %v564_v16  ;;  %v610_v49 = vadd.f32 %v7265_v56, %v542_v15 }
 0x1e4   :  { %v7567_v52 = vpop.f32.mrf.mxu0  ;;  %v696_v35 = vmax.f32 %v632_v23, 0.0 }
 0x1e7   :  { %6146 = vmatmul.msk.f32.gmra.mxu0 %vm90_vm0, %v663_v40  ;;  %v538_v40 = vmul.f32 %v7260_v4, %v12282_v21 }
 0x1e9   :  { %6179 = vmatmul.msk.f32.gmra.mxu3 %vm90_vm0, %v696_v35  ;;  %v606_v26 = vadd.f32 %v7265_v56, %v538_v40 }
 0x1eb   :  { %v670_v18 = vmax.f32 %v606_v26, 0.0  ;;  %v674_v26 = vmax.f32 %v610_v49, 0.0 }
 0x1ec   :  { %v7593_v57 = vpop.f32.mrf.mxu0 }
 0x1ef   :  { %6147 = vmatmul.msk.f32.gmra.mxu0 %vm90_vm0, %v664_v6  ;;  %v7746_v6 = vpop.f32.mrf.mxu3 }
 0x1f1   :  { %6180 = vmatmul.msk.f32.gmra.mxu3 %vm90_vm0, %v697_v41  ;;  %v570_v41 = vmul.f32 %v7260_v4, %v12294_v14 }
 0x1f3   :  { %v638_v7 = vadd.f32 %v7265_v56, %v570_v41  ;;  %v1117_v41 = vsel %vm1111_vm5, %v7515_v58, 0.0 }
 0x1f4   :  { %v7619_v61 = vpop.f32.mrf.mxu0 }
 0x1f5   :  { %v702_v62 = vmax.f32 %v638_v7, 0.0 }
 0x1f7   :  { %6148 = vmatmul.msk.f32.gmra.mxu0 %vm90_vm0, %v665_v30  ;;  %v7774_v47 = vpop.f32.mrf.mxu3 }
 0x1f8   :  { %12286 = vst [vmem:[#allocation68_spill] sm:$0xff] %v7774_v47 }
 0x1f9   :  { %6181 = vmatmul.msk.f32.gmra.mxu3 %vm90_vm0, %v698_v24 }
 0x1fc   :  { %v7647_v20 = vpop.f32.mrf.mxu0 }
 0x1ff   :  { %6149 = vmatmul.msk.f32.gmra.mxu0 %vm90_vm0, %v666_v55  ;;  %v12287_v55 = vld [vmem:[#allocation73_spill] sm:$0xff]  ;;  %v7802_v46 = vpop.f32.mrf.mxu3 }
 0x200   :  { %v540_v5 = vmul.f32 %v7260_v4, %v12287_v55  ;;  %v12295_v55 = vld [vmem:[#allocation87_spill] sm:$0xff] }
 0x202   :  { %v608_v63 = vadd.f32 %v7265_v56, %v540_v5  ;;  %v571_v5 = vmul.f32 %v7260_v4, %v12295_v55  ;;  %v1121_v55 = vsel %vm1111_vm5, %v7567_v52, 0.0 }
 0x204   :  { %v7675_v54 = vpop.f32.mrf.mxu0  ;;  %v672_v9 = vmax.f32 %v608_v63, 0.0  ;;  %v639_v63 = vadd.f32 %v7265_v56, %v571_v5 }
 0x206   :  { %v703_v1 = vmax.f32 %v639_v63, 0.0 }
 0x207   :  { %6150 = vmatmul.msk.f32.gmra.mxu0 %vm90_vm0, %v667_v31  ;;  %v635_v31 = vadd.f32 %v7265_v56, %v567_v19  ;;  %v7824_v50 = vpop.f32.mrf.mxu3 }
 0x209   :  { %v699_v60 = vmax.f32 %v635_v31, 0.0  ;;  %v12297_v31 = vld [vmem:[#allocation88_spill] sm:$0xff] }
 0x20b   :  { %6182 = vmatmul.msk.f32.gmra.mxu3 %vm90_vm0, %v699_v60 }
 0x20c   :  { %v7703_v44 = vpop.f32.mrf.mxu0 }
 0x20f   :  { %6151 = vmatmul.msk.f32.gmra.mxu0 %vm90_vm0, %v668_v12  ;;  %v568_v12 = vmul.f32 %v7260_v4, %v12290_v33  ;;  %v7836_v40 = vpop.f32.mrf.mxu3  ;;  %v12298_v33 = vld [vmem:[#allocation89_spill] sm:$0xff] }
 0x211   :  { %v636_v17 = vadd.f32 %v7265_v56, %v568_v12  ;;  %v573_v12 = vmul.f32 %v7260_v4, %v12298_v33  ;;  %v1127_v33 = vsel %vm1111_vm5, %v7647_v20, 0.0 }
 0x213   :  { %v700_v16 = vmax.f32 %v636_v17, 0.0  ;;  %v641_v17 = vadd.f32 %v7265_v56, %v573_v12 }
 0x214   :  { %v7731_v59 = vpop.f32.mrf.mxu0 }
 0x215   :  { %6183 = vmatmul.msk.f32.gmra.mxu3 %vm90_vm0, %v700_v16  ;;  %v705_v13 = vmax.f32 %v641_v17, 0.0  ;;  %v1129_v17 = vsel %vm1111_vm5, %v7675_v54, 0.0 }
 0x217   :  { %6152 = vmatmul.msk.f32.gmra.mxu0 %vm90_vm0, %v669_v28  ;;  %v12292_v28 = vld [vmem:[#allocation85_spill] sm:$0xff]  ;;  %v7848_v42 = vpop.f32.mrf.mxu3 }
 0x218   :  { %v569_v21 = vmul.f32 %v7260_v4, %v12292_v28 }
 0x21a   :  { %v637_v35 = vadd.f32 %v7265_v56, %v569_v21 }
 0x21c   :  { %v7759_v30 = vpop.f32.mrf.mxu0  ;;  %v701_v10 = vmax.f32 %v637_v35, 0.0 }
 0x21e   :  { %6184 = vmatmul.msk.f32.gmra.mxu3 %vm90_vm0, %v701_v10  ;;  %v1112_v10 = vsel %vm1111_vm5, %v7435_v39, 0.0 }
 0x21f   :  { %6153 = vmatmul.msk.f32.gmra.mxu0 %vm90_vm0, %v670_v18  ;;  %v7857_v24 = vpop.f32.mrf.mxu3  ;;  %v1114_v14 = vadd.f32 %v1113_v37, %v1112_v10  ;;  %v1131_v10 = vsel %vm1111_vm5, %v7703_v44, 0.0 }
 0x220   :  { %12296 = vst [vmem:[#allocation78_spill] sm:$0xff] %v7857_v24 }
 0x221   :  { %v1116_v7 = vadd.f32 %v1115_v29, %v1114_v14 }
 0x224   :  { %v7787_v38 = vpop.f32.mrf.mxu0 }
 0x226   :  { %6185 = vmatmul.msk.f32.gmra.mxu3 %vm90_vm0, %v702_v62  ;;  %v1118_v62 = vadd.f32 %v1117_v41, %v1116_v7  ;;  %v1133_v41 = vsel %vm1111_vm5, %v7731_v59, 0.0 }
 0x227   :  { %6154 = vmatmul.msk.f32.gmra.mxu0 %vm90_vm0, %v671_v34  ;;  %v7865_v11 = vpop.f32.mrf.mxu3 }
 0x22c   :  { %v7815_v53 = vpop.f32.mrf.mxu0 }
 0x22e   :  { %6186 = vmatmul.msk.f32.gmra.mxu3 %vm90_vm0, %v703_v1 }
 0x22f   :  { %6155 = vmatmul.msk.f32.gmra.mxu0 %vm90_vm0, %v672_v9  ;;  %v572_v9 = vmul.f32 %v7260_v4, %v12297_v31  ;;  %v1123_v31 = vsel %vm1111_vm5, %v7593_v57, 0.0 }
 0x231   :  { %v640_v8 = vadd.f32 %v7265_v56, %v572_v9 }
 0x233   :  { %v704_v60 = vmax.f32 %v640_v8, 0.0  ;;  %v1125_v8 = vsel %vm1111_vm5, %v7619_v61, 0.0 }
 0x234   :  { %v7829_v23 = vpop.f32.mrf.mxu0 }
 0x236   :  { %6187 = vmatmul.msk.f32.gmra.mxu3 %vm90_vm0, %v704_v60 }
 0x237   :  { %6156 = vmatmul.msk.f32.gmra.mxu0 %vm90_vm0, %v673_v27  ;;  %v7874_v27 = vpop.f32.mrf.mxu3 }
 0x23c   :  { %v7841_v18 = vpop.f32.mrf.mxu0 }
 0x23e   :  { %6188 = vmatmul.msk.f32.gmra.mxu3 %vm90_vm0, %v705_v13 }
 0x23f   :  { %6157 = vmatmul.msk.f32.gmra.mxu0 %vm90_vm0, %v674_v26  ;;  %v7881_v49 = vpop.f32.mrf.mxu3 }
 0x244   :  { %v7851_v34 = vpop.f32.mrf.mxu0 }
 0x247   :  { %6158 = vmatmul.msk.f32.gmra.mxu0 %vm90_vm0, %v675_v32  ;;  %v7885_v21 = vpop.f32.mrf.mxu3  ;;  %v1119_v32 = vsel %vm1111_vm5, %v7541_v48, 0.0 }
 0x248   :  { %v1120_v5 = vadd.f32 %v1119_v32, %v1118_v62  ;;  %v1135_v32 = vsel %vm1111_vm5, %v7759_v30, 0.0 }
 0x24a   :  { %v1122_v9 = vadd.f32 %v1121_v55, %v1120_v5  ;;  %v1137_v55 = vsel %vm1111_vm5, %v7787_v38, 0.0 }
 0x24c   :  { %v7860_v19 = vpop.f32.mrf.mxu0  ;;  %v1124_v60 = vadd.f32 %v1123_v31, %v1122_v9  ;;  %v1139_v9 = vsel %vm1111_vm5, %v7815_v53, 0.0 }
 0x24e   :  { %v1126_v12 = vadd.f32 %v1125_v8, %v1124_v60  ;;  %v1141_v60 = vsel %vm1111_vm5, %v7829_v23, 0.0 }
 0x24f   :  { %v7889_v4 = vpop.f32.mrf.mxu3 }
 0x250   :  { %12301 = vst [vmem:[#allocation70_spill] sm:$0xff] %v7889_v4  ;;  %v1128_v13 = vadd.f32 %v1127_v33, %v1126_v12 }
 0x252   :  { %v1130_v29 = vadd.f32 %v1129_v17, %v1128_v13  ;;  %v1143_v17 = vsel %vm1111_vm5, %v7841_v18, 0.0 }
 0x254   :  { %v7868_v22 = vpop.f32.mrf.mxu0  ;;  %v1132_v7 = vadd.f32 %v1131_v10, %v1130_v29  ;;  %v1145_v10 = vsel %vm1111_vm5, %v7851_v34, 0.0 }
 0x256   :  { %v1134_v62 = vadd.f32 %v1133_v41, %v1132_v7  ;;  %v1147_v7 = vsel %vm1111_vm5, %v7860_v19, 0.0 }
 0x257   :  { %v7893_v26 = vpop.f32.mrf.mxu3 }
 0x258   :  { %v1136_v5 = vadd.f32 %v1135_v32, %v1134_v62  ;;  %v1149_v62 = vsel %vm1111_vm5, %v7868_v22, 0.0 }
 0x25a   :  { %v1138_v8 = vadd.f32 %v1137_v55, %v1136_v5 }
 0x25c   :  { %v7876_v15 = vpop.f32.mrf.mxu0  ;;  %v1140_v33 = vadd.f32 %v1139_v9, %v1138_v8 }
 0x25d   :  { %12299 = vst [vmem:[#allocation69_spill] sm:$0xff] %v7876_v15  ;;  %v1151_v5 = vsel %vm1111_vm5, %v7876_v15, 0.0 }
 0x25e   :  { %v1142_v13 = vadd.f32 %v1141_v60, %v1140_v33 }
 0x25f   :  { %v7911_v1 = vpop.f32.mrf.mxu3 }
 0x260   :  { %v1144_v29 = vadd.f32 %v1143_v17, %v1142_v13 }
 0x262   :  { %v1146_v32 = vadd.f32 %v1145_v10, %v1144_v29 }
 0x264   :  { %v7879_v16 = vpop.f32.mrf.mxu0  ;;  %v1148_v55 = vadd.f32 %v1147_v7, %v1146_v32 }
 0x265   :  { %12300 = vst [vmem:[#allocation79_spill] sm:$0xff] %v7879_v16  ;;  %v1153_v60 = vsel %vm1111_vm5, %v7879_v16, 0.0 }
 0x266   :  { %v1150_v9 = vadd.f32 %v1149_v62, %v1148_v55 }
 0x267   :  { %v7925_v14 = vpop.f32.mrf.mxu3 }
 0x268   :  { %v1152_v33 = vadd.f32 %v1151_v5, %v1150_v9 }
 0x26a   :  { %v1154_v10 = vadd.f32 %v1153_v60, %v1152_v33 }
 0x26c   :  { %v7883_v28 = vpop.f32.mrf.mxu0 }
 0x26d   :  { %v1155_v13 = vsel %vm1111_vm5, %v7883_v28, 0.0 }
 0x26e   :  { %v1156_v7 = vadd.f32 %v1155_v13, %v1154_v10 }
 0x26f   :  { %v7939_v12 = vpop.f32.mrf.mxu3 }
 0x274   :  { %v7887_v35 = vpop.f32.mrf.mxu0 }
 0x275   :  { %v1157_v29 = vsel %vm1111_vm5, %v7887_v35, 0.0 }
 0x276   :  { %v1158_v62 = vadd.f32 %v1157_v29, %v1156_v7 }
 0x277   :  { %v7953_v8 = vpop.f32.mrf.mxu3 }
 0x278   :  { %12305 = vst [vmem:[#allocation72_spill] sm:$0xff] %v7953_v8 }
 0x27c   :  { %v7891_v56 = vpop.f32.mrf.mxu0 }
 0x27d   :  { %12302 = vst [vmem:[#allocation80_spill] sm:$0xff] %v7891_v56  ;;  %v1159_v32 = vsel %vm1111_vm5, %v7891_v56, 0.0 }
 0x27e   :  { %v1160_v15 = vadd.f32 %v1159_v32, %v1158_v62 }
 0x27f   :  { %v7969_v5 = vpop.f32.mrf.mxu3 }
 0x284   :  { %v7897_v25 = vpop.f32.mrf.mxu0 }
 0x285   :  { %12303 = vst [vmem:[#allocation71_spill] sm:$0xff] %v7897_v25  ;;  %v1161_v55 = vsel %vm1111_vm5, %v7897_v25, 0.0 }
 0x286   :  { %v1162_v60 = vadd.f32 %v1161_v55, %v1160_v15 }
 0x28c   :  { %v7909_v63 = vpop.f32.mrf.mxu0 }
 0x28d   :  { %12304 = vst [vmem:[#allocation81_spill] sm:$0xff] %v7909_v63  ;;  %v1163_v9 = vsel %vm1111_vm5, %v7909_v63, 0.0  ;;  %v7983_v63 = vpop.f32.mrf.mxu3 }
 0x28e   :  { %v1164_v13 = vadd.f32 %v1163_v9, %v1162_v60 }
 0x294   :  { %v7921_v37 = vpop.f32.mrf.mxu0 }
 0x295   :  { %v1165_v33 = vsel %vm1111_vm5, %v7921_v37, 0.0 }
 0x296   :  { %v1166_v29 = vadd.f32 %v1165_v33, %v1164_v13 }
 0x29c   :  { %v7933_v31 = vpop.f32.mrf.mxu0 }
 0x29d   :  { %v1167_v10 = vsel %vm1111_vm5, %v7933_v31, 0.0 }
 0x29e   :  { %v1168_v32 = vadd.f32 %v1167_v10, %v1166_v29 }
 0x2a4   :  { %v7945_v41 = vpop.f32.mrf.mxu0 }
 0x2a5   :  { %v1169_v7 = vsel %vm1111_vm5, %v7945_v41, 0.0 }
 0x2a6   :  { %v1170_v56 = vadd.f32 %v1169_v7, %v1168_v32  ;;  %v1179_v7 = vsel %vm1111_vm5, %v7634_v45, 0.0 }
 0x2ac   :  { %v7957_v17 = vpop.f32.mrf.mxu0 }
 0x2ad   :  { %12306 = vst [vmem:[#allocation82_spill] sm:$0xff] %v7957_v17  ;;  %v1171_v25 = vsel %vm1111_vm5, %v7957_v17, 0.0  ;;  %v7995_v17 = vpop.f32.mrf.mxu3 }
 0x2ae   :  { %v1172_v55 = vadd.f32 %v1171_v25, %v1170_v56  ;;  %12307 = vst [vmem:[#allocation73_spill] sm:$0xff] %v7995_v17  ;;  %v1181_v56 = vsel %vm1111_vm5, %v7662_v36, 0.0 }
 0x2b4   :  { %v7967_v16 = vpop.f32.mrf.mxu0 }
 0x2b5   :  { %v1173_v15 = vsel %vm1111_vm5, %v7967_v16, 0.0  ;;  %v8007_v45 = vpop.f32.mrf.mxu3 }
 0x2b6   :  { %v1174_v60 = vadd.f32 %v1173_v15, %v1172_v55  ;;  %v1183_v15 = vsel %vm1111_vm5, %v7690_v2, 0.0  ;;  %12308 = vst [vmem:[#allocation83_spill] sm:$0xff] %v8007_v45 }
 0x2bc   :  { %v7979_v62 = vpop.f32.mrf.mxu0 }
 0x2bd   :  { %v1175_v9 = vsel %vm1111_vm5, %v7979_v62, 0.0 }
 0x2be   :  { %v1176_v33 = vadd.f32 %v1175_v9, %v1174_v60  ;;  %v1185_v9 = vsel %vm1111_vm5, %v7718_v3, 0.0 }
 0x2c4   :  { %v7989_v13 = vpop.f32.mrf.mxu0 }
 0x2c5   :  { %v1177_v10 = vsel %vm1111_vm5, %v7989_v13, 0.0 }
 0x2c6   :  { %v1178_v29 = vadd.f32 %v1177_v10, %v1176_v33  ;;  %v1187_v33 = vsel %vm1111_vm5, %v7746_v6, 0.0 }
 0x2c8   :  { %v1180_v32 = vadd.f32 %v1179_v7, %v1178_v29  ;;  %v1189_v29 = vsel %vm1111_vm5, %v7774_v47, 0.0  ;;  %v8019_v47 = vpop.f32.mrf.mxu3 }
 0x2c9   :  { %12309 = vst [vmem:[#allocation74_spill] sm:$0xff] %v8019_v47 }
 0x2ca   :  { %v1182_v25 = vadd.f32 %v1181_v56, %v1180_v32  ;;  %v1191_v32 = vsel %vm1111_vm5, %v7802_v46, 0.0 }
 0x2cc   :  { %v1184_v55 = vadd.f32 %v1183_v15, %v1182_v25  ;;  %v1193_v25 = vsel %vm1111_vm5, %v7824_v50, 0.0 }
 0x2ce   :  { %v1186_v60 = vadd.f32 %v1185_v9, %v1184_v55  ;;  %v1195_v55 = vsel %vm1111_vm5, %v7836_v40, 0.0 }
 0x2d0   :  { %v1188_v10 = vadd.f32 %v1187_v33, %v1186_v60  ;;  %v1197_v60 = vsel %vm1111_vm5, %v7848_v42, 0.0 }
 0x2d2   :  { %v1190_v7 = vadd.f32 %v1189_v29, %v1188_v10  ;;  %v1199_v10 = vsel %vm1111_vm5, %v7857_v24, 0.0  ;;  %v8031_v24 = vpop.f32.mrf.mxu3 }
 0x2d3   :  { %12310 = vst [vmem:[#allocation84_spill] sm:$0xff] %v8031_v24 }
 0x2d4   :  { %v1192_v56 = vadd.f32 %v1191_v32, %v1190_v7  ;;  %v1201_v7 = vsel %vm1111_vm5, %v7865_v11, 0.0 }
 0x2d6   :  { %v1194_v15 = vadd.f32 %v1193_v25, %v1192_v56  ;;  %v1203_v56 = vsel %vm1111_vm5, %v7874_v27, 0.0 }
 0x2d8   :  { %v1196_v9 = vadd.f32 %v1195_v55, %v1194_v15  ;;  %v1205_v15 = vsel %vm1111_vm5, %v7881_v49, 0.0 }
 0x2da   :  { %v1198_v33 = vadd.f32 %v1197_v60, %v1196_v9  ;;  %v1207_v9 = vsel %vm1111_vm5, %v7885_v21, 0.0 }
 0x2dc   :  { %v1200_v29 = vadd.f32 %v1199_v10, %v1198_v33  ;;  %v1209_v33 = vsel %vm1111_vm5, %v7889_v4, 0.0  ;;  %v8043_v4 = vpop.f32.mrf.mxu3 }
 0x2de   :  { %v1202_v32 = vadd.f32 %v1201_v7, %v1200_v29  ;;  %v1211_v29 = vsel %vm1111_vm5, %v7893_v26, 0.0 }
 0x2e0   :  { %v1204_v25 = vadd.f32 %v1203_v56, %v1202_v32  ;;  %v1213_v32 = vsel %vm1111_vm5, %v7911_v1, 0.0 }
 0x2e2   :  { %v1206_v55 = vadd.f32 %v1205_v15, %v1204_v25  ;;  %v1215_v25 = vsel %vm1111_vm5, %v7925_v14, 0.0 }
 0x2e4   :  { %v1208_v60 = vadd.f32 %v1207_v9, %v1206_v55  ;;  %v1217_v55 = vsel %vm1111_vm5, %v7939_v12, 0.0 }
 0x2e6   :  { %v1210_v10 = vadd.f32 %v1209_v33, %v1208_v60  ;;  %v1219_v60 = vsel %vm1111_vm5, %v7953_v8, 0.0  ;;  %v8055_v8 = vpop.f32.mrf.mxu3 }
 0x2e8   :  { %v1212_v7 = vadd.f32 %v1211_v29, %v1210_v10  ;;  %v1221_v10 = vsel %vm1111_vm5, %v7969_v5, 0.0 }
 0x2ea   :  { %v1214_v56 = vadd.f32 %v1213_v32, %v1212_v7  ;;  %v1223_v7 = vsel %vm1111_vm5, %v7983_v63, 0.0 }
 0x2ec   :  { %v1216_v15 = vadd.f32 %v1215_v25, %v1214_v56  ;;  %v1225_v56 = vsel %vm1111_vm5, %v7995_v17, 0.0 }
 0x2ee   :  { %v1218_v9 = vadd.f32 %v1217_v55, %v1216_v15  ;;  %v1227_v15 = vsel %vm1111_vm5, %v8007_v45, 0.0  ;;  %v8061_v17 = vpop.f32.mrf.mxu3 }
 0x2f0   :  { %v1220_v33 = vadd.f32 %v1219_v60, %v1218_v9  ;;  %v1229_v9 = vsel %vm1111_vm5, %v8019_v47, 0.0 }
 0x2f2   :  { %v1222_v29 = vadd.f32 %v1221_v10, %v1220_v33  ;;  %v1231_v33 = vsel %vm1111_vm5, %v8031_v24, 0.0 }
 0x2f4   :  { %v1224_v32 = vadd.f32 %v1223_v7, %v1222_v29  ;;  %v1233_v29 = vsel %vm1111_vm5, %v8043_v4, 0.0 }
 0x2f6   :  { %v1226_v25 = vadd.f32 %v1225_v56, %v1224_v32  ;;  %v1235_v32 = vsel %vm1111_vm5, %v8055_v8, 0.0 }
 0x2f8   :  { %v1228_v55 = vadd.f32 %v1227_v15, %v1226_v25  ;;  %v1237_v25 = vsel %vm1111_vm5, %v8061_v17, 0.0 }
 0x2fa   :  { %v1230_v60 = vadd.f32 %v1229_v9, %v1228_v55 }
 0x2fc   :  { %v1232_v10 = vadd.f32 %v1231_v33, %v1230_v60 }
 0x2fe   :  { %v1234_v7 = vadd.f32 %v1233_v29, %v1232_v10 }
 0x300   :  { %v1236_v56 = vadd.f32 %v1235_v32, %v1234_v7 }
 0x302   :  { %v1238_v15 = vadd.f32 %v1237_v25, %v1236_v56 }
 0x304   :  { %v1239_v55 = vrot.slane %v1238_v15, 4 }
 0x306   :  { %v1240_v9 = vadd.f32 %v1239_v55, %v1238_v15 }
 0x308   :  { %v1241_v47 = vrot.slane %v1240_v9, 2 }
 0x30a   :  { %v1242_v45 = vadd.f32 %v1241_v47, %v1240_v9 }
 0x30c   :  { %v1243_v24 = vrot.slane %v1242_v45, 1 }
 0x30e   :  { %v1244_v60 = vadd.f32 %v1243_v24, %v1242_v45 }
 0x310   :  { %v8068_v33 = vmul.f32 %v1244_v60, %v6803_v0 }
 0x312   :  { %v8072_v10 = vsub.f32 %v7435_v39, %v8068_v33  ;;  %v8076_v29 = vsub.f32 %v7463_v43, %v8068_v33  ;;  %v8080_v7 = vsub.f32 %v7489_v51, %v8068_v33  ;;  %v8084_v47 = vsub.f32 %v7515_v58, %v8068_v33 }
 0x313   :  { %v8092_v39 = vsub.f32 %v7541_v48, %v8068_v33  ;;  %v8098_v51 = vsub.f32 %v7567_v52, %v8068_v33  ;;  %v8106_v15 = vsub.f32 %v7593_v57, %v8068_v33  ;;  %v8113_v52 = vsub.f32 %v7619_v61, %v8068_v33 }
 0x314   :  { %v1310_v45 = vmul.f32 %v8072_v10, %v8072_v10  ;;  %v1311_v24 = vmul.f32 %v8076_v29, %v8076_v29  ;;  %v1312_v43 = vmul.f32 %v8080_v7, %v8080_v7  ;;  %v1313_v58 = vmul.f32 %v8084_v47, %v8084_v47 }
 0x315   :  { %v1314_v48 = vmul.f32 %v8092_v39, %v8092_v39  ;;  %v1315_v60 = vmul.f32 %v8098_v51, %v8098_v51  ;;  %v8120_v57 = vsub.f32 %v7647_v20, %v8068_v33  ;;  %v8127_v61 = vsub.f32 %v7675_v54, %v8068_v33 }
 0x316   :  { %v1374_v32 = vsel %vm1111_vm5, %v1310_v45, 0.0  ;;  %v1375_v56 = vsel %vm1111_vm5, %v1311_v24, 0.0  ;;  %v1377_v55 = vsel %vm1111_vm5, %v1312_v43, 0.0  ;;  %v1379_v45 = vsel %vm1111_vm5, %v1313_v58, 0.0 }
 0x317   :  { %v1376_v25 = vadd.f32 %v1375_v56, %v1374_v32  ;;  %v1316_v32 = vmul.f32 %v8106_v15, %v8106_v15  ;;  %v1381_v43 = vsel %vm1111_vm5, %v1314_v48, 0.0  ;;  %v1383_v58 = vsel %vm1111_vm5, %v1315_v60, 0.0 }
 0x318   :  { %v8134_v20 = vsub.f32 %v7703_v44, %v8068_v33  ;;  %v8141_v54 = vsub.f32 %v7731_v59, %v8068_v33  ;;  %v8148_v44 = vsub.f32 %v7759_v30, %v8068_v33  ;;  %v8155_v59 = vsub.f32 %v7787_v38, %v8068_v33 }
 0x319   :  { %v1378_v9 = vadd.f32 %v1377_v55, %v1376_v25  ;;  %v1317_v25 = vmul.f32 %v8113_v52, %v8113_v52  ;;  %v1385_v48 = vsel %vm1111_vm5, %v1316_v32, 0.0  ;;  %v8162_v30 = vsub.f32 %v7815_v53, %v8068_v33 }
 0x31a   :  { %12311 = vst [vmem:[#allocation75_spill] sm:$0xff] %v8155_v59  ;;  %v8169_v38 = vsub.f32 %v7829_v23, %v8068_v33  ;;  %v8176_v53 = vsub.f32 %v7841_v18, %v8068_v33  ;;  %v8183_v23 = vsub.f32 %v7851_v34, %v8068_v33  ;;  %v8190_v18 = vsub.f32 %v7860_v19, %v8068_v33 }
 0x31b   :  { %v1380_v24 = vadd.f32 %v1379_v45, %v1378_v9  ;;  %v1318_v9 = vmul.f32 %v8120_v57, %v8120_v57  ;;  %v1387_v60 = vsel %vm1111_vm5, %v1317_v25, 0.0  ;;  %12312 = vst [vmem:[#allocation85_spill] sm:$0xff] %v8162_v30  ;;  %v8197_v34 = vsub.f32 %v7868_v22, %v8068_v33 }
 0x31c   :  { %12313 = vst [vmem:[#allocation76_spill] sm:$0xff] %v8169_v38 }
 0x31d   :  { %v1382_v56 = vadd.f32 %v1381_v43, %v1380_v24  ;;  %v1319_v24 = vmul.f32 %v8127_v61, %v8127_v61  ;;  %v1389_v32 = vsel %vm1111_vm5, %v1318_v9, 0.0  ;;  %12314 = vst [vmem:[#allocation86_spill] sm:$0xff] %v8176_v53 }
 0x31e   :  { %12315 = vst [vmem:[#allocation87_spill] sm:$0xff] %v8183_v23 }
 0x31f   :  { %v1384_v55 = vadd.f32 %v1383_v58, %v1382_v56  ;;  %v1320_v56 = vmul.f32 %v8134_v20, %v8134_v20  ;;  %v1391_v25 = vsel %vm1111_vm5, %v1319_v24, 0.0  ;;  %12316 = vst [vmem:[#allocation88_spill] sm:$0xff] %v8190_v18 }
 0x320   :  { %12317 = vst [vmem:[#allocation89_spill] sm:$0xff] %v8197_v34 }
 0x321   :  { %v1386_v45 = vadd.f32 %v1385_v48, %v1384_v55  ;;  %v1321_v55 = vmul.f32 %v8141_v54, %v8141_v54  ;;  %v1393_v9 = vsel %vm1111_vm5, %v1320_v56, 0.0 }
 0x323   :  { %v1388_v43 = vadd.f32 %v1387_v60, %v1386_v45  ;;  %v1322_v45 = vmul.f32 %v8148_v44, %v8148_v44  ;;  %v1395_v24 = vsel %vm1111_vm5, %v1321_v55, 0.0 }
 0x325   :  { %v1390_v58 = vadd.f32 %v1389_v32, %v1388_v43  ;;  %v1323_v43 = vmul.f32 %v8155_v59, %v8155_v59  ;;  %v1397_v56 = vsel %vm1111_vm5, %v1322_v45, 0.0 }
 0x327   :  { %v1392_v48 = vadd.f32 %v1391_v25, %v1390_v58  ;;  %v1324_v58 = vmul.f32 %v8162_v30, %v8162_v30  ;;  %v1399_v55 = vsel %vm1111_vm5, %v1323_v43, 0.0 }
 0x329   :  { %v1394_v60 = vadd.f32 %v1393_v9, %v1392_v48  ;;  %v1325_v48 = vmul.f32 %v8169_v38, %v8169_v38  ;;  %v1401_v45 = vsel %vm1111_vm5, %v1324_v58, 0.0 }
 0x32b   :  { %v1396_v32 = vadd.f32 %v1395_v24, %v1394_v60  ;;  %v1326_v60 = vmul.f32 %v8176_v53, %v8176_v53  ;;  %v1403_v43 = vsel %vm1111_vm5, %v1325_v48, 0.0 }
 0x32d   :  { %v1398_v25 = vadd.f32 %v1397_v56, %v1396_v32  ;;  %v1327_v32 = vmul.f32 %v8183_v23, %v8183_v23  ;;  %v1405_v58 = vsel %vm1111_vm5, %v1326_v60, 0.0  ;;  %v1329_v23 = vmul.f32 %v8197_v34, %v8197_v34 }
 0x32f   :  { %v1400_v9 = vadd.f32 %v1399_v55, %v1398_v25  ;;  %v12318_v25 = vld [vmem:[#allocation69_spill] sm:$0xff]  ;;  %v1328_v55 = vmul.f32 %v8190_v18, %v8190_v18  ;;  %v1407_v48 = vsel %vm1111_vm5, %v1327_v32, 0.0  ;;  %v1411_v32 = vsel %vm1111_vm5, %v1329_v23, 0.0 }
 0x330   :  { %v8204_v19 = vsub.f32 %v12318_v25, %v8068_v33 }
 0x331   :  { %v1402_v24 = vadd.f32 %v1401_v45, %v1400_v9  ;;  %v12320_v45 = vld [vmem:[#allocation79_spill] sm:$0xff]  ;;  %v1409_v60 = vsel %vm1111_vm5, %v1328_v55, 0.0 }
 0x332   :  { %12319 = vst [vmem:[#allocation69_spill] sm:$0xff] %v8204_v19  ;;  %v8211_v22 = vsub.f32 %v12320_v45, %v8068_v33  ;;  %v1330_v25 = vmul.f32 %v8204_v19, %v8204_v19 }
 0x333   :  { %v1404_v56 = vadd.f32 %v1403_v43, %v1402_v24  ;;  %v8218_v43 = vsub.f32 %v7883_v28, %v8068_v33 }
 0x334   :  { %12321 = vst [vmem:[#allocation79_spill] sm:$0xff] %v8211_v22  ;;  %v1331_v45 = vmul.f32 %v8211_v22, %v8211_v22  ;;  %v1413_v55 = vsel %vm1111_vm5, %v1330_v25, 0.0 }
 0x335   :  { %v1406_v9 = vadd.f32 %v1405_v58, %v1404_v56  ;;  %12322 = vst [vmem:[#allocation90_spill] sm:$0xff] %v8218_v43  ;;  %v8225_v58 = vsub.f32 %v7887_v35, %v8068_v33  ;;  %v1332_v19 = vmul.f32 %v8218_v43, %v8218_v43 }
 0x336   :  { %v1415_v23 = vsel %vm1111_vm5, %v1331_v45, 0.0 }
 0x337   :  { %v1408_v24 = vadd.f32 %v1407_v48, %v1406_v9  ;;  %12323 = vst [vmem:[#allocation91_spill] sm:$0xff] %v8225_v58  ;;  %v12324_v48 = vld [vmem:[#allocation80_spill] sm:$0xff]  ;;  %v1333_v22 = vmul.f32 %v8225_v58, %v8225_v58  ;;  %v1417_v25 = vsel %vm1111_vm5, %v1332_v19, 0.0 }
 0x338   :  { %v8232_v28 = vsub.f32 %v12324_v48, %v8068_v33 }
 0x339   :  { %v1410_v56 = vadd.f32 %v1409_v60, %v1408_v24  ;;  %v12326_v60 = vld [vmem:[#allocation71_spill] sm:$0xff]  ;;  %v1419_v45 = vsel %vm1111_vm5, %v1333_v22, 0.0 }
 0x33a   :  { %12325 = vst [vmem:[#allocation80_spill] sm:$0xff] %v8232_v28  ;;  %v8239_v35 = vsub.f32 %v12326_v60, %v8068_v33  ;;  %v1334_v43 = vmul.f32 %v8232_v28, %v8232_v28 }
 0x33b   :  { %v1412_v9 = vadd.f32 %v1411_v32, %v1410_v56  ;;  %v12328_v32 = vld [vmem:[#allocation81_spill] sm:$0xff] }
 0x33c   :  { %12327 = vst [vmem:[#allocation71_spill] sm:$0xff] %v8239_v35  ;;  %v8246_v48 = vsub.f32 %v12328_v32, %v8068_v33  ;;  %v1335_v60 = vmul.f32 %v8239_v35, %v8239_v35  ;;  %v1421_v19 = vsel %vm1111_vm5, %v1334_v43, 0.0 }
 0x33d   :  { %v1414_v24 = vadd.f32 %v1413_v55, %v1412_v9  ;;  %v8253_v55 = vsub.f32 %v7921_v37, %v8068_v33  ;;  %v8267_v37 = vsub.f32 %v7945_v41, %v8068_v33  ;;  %v8281_v41 = vsub.f32 %v7967_v16, %v8068_v33 }
 0x33e   :  { %12329 = vst [vmem:[#allocation81_spill] sm:$0xff] %v8246_v48  ;;  %v1336_v32 = vmul.f32 %v8246_v48, %v8246_v48  ;;  %v1423_v22 = vsel %vm1111_vm5, %v1335_v60, 0.0  ;;  %v8295_v16 = vsub.f32 %v7989_v13, %v8068_v33  ;;  %v8309_v13 = vsub.f32 %v7662_v36, %v8068_v33 }
 0x33f   :  { %v1416_v56 = vadd.f32 %v1415_v23, %v1414_v24  ;;  %12330 = vst [vmem:[#allocation92_spill] sm:$0xff] %v8253_v55  ;;  %v8260_v23 = vsub.f32 %v7933_v31, %v8068_v33  ;;  %v8323_v36 = vsub.f32 %v7718_v3, %v8068_v33 }
 0x340   :  { %12332 = vst [vmem:[#allocation94_spill] sm:$0xff] %v8267_v37  ;;  %v1425_v43 = vsel %vm1111_vm5, %v1336_v32, 0.0 }
 0x341   :  { %v1418_v9 = vadd.f32 %v1417_v25, %v1416_v56  ;;  %12331 = vst [vmem:[#allocation93_spill] sm:$0xff] %v8260_v23  ;;  %v1337_v25 = vmul.f32 %v8253_v55, %v8253_v55  ;;  %v1338_v48 = vmul.f32 %v8260_v23, %v8260_v23 }
 0x342   :  { %12335 = vst [vmem:[#allocation95_spill] sm:$0xff] %v8281_v41 }
 0x343   :  { %v1420_v24 = vadd.f32 %v1419_v45, %v1418_v9  ;;  %v12333_v45 = vld [vmem:[#allocation82_spill] sm:$0xff]  ;;  %v1427_v60 = vsel %vm1111_vm5, %v1337_v25, 0.0  ;;  %v1429_v32 = vsel %vm1111_vm5, %v1338_v48, 0.0  ;;  %12337 = vst [vmem:[#allocation97_spill] sm:$0xff] %v8295_v16 }
 0x344   :  { %v8274_v31 = vsub.f32 %v12333_v45, %v8068_v33 }
 0x345   :  { %v1422_v56 = vadd.f32 %v1421_v19, %v1420_v24  ;;  %v1339_v19 = vmul.f32 %v8267_v37, %v8267_v37 }
 0x346   :  { %12334 = vst [vmem:[#allocation82_spill] sm:$0xff] %v8274_v31  ;;  %v1340_v45 = vmul.f32 %v8274_v31, %v8274_v31 }
 0x347   :  { %v1424_v9 = vadd.f32 %v1423_v22, %v1422_v56  ;;  %v8288_v22 = vsub.f32 %v7979_v62, %v8068_v33  ;;  %v1431_v25 = vsel %vm1111_vm5, %v1339_v19, 0.0 }
 0x348   :  { %v1433_v48 = vsel %vm1111_vm5, %v1340_v45, 0.0 }
 0x349   :  { %v1426_v24 = vadd.f32 %v1425_v43, %v1424_v9  ;;  %12336 = vst [vmem:[#allocation96_spill] sm:$0xff] %v8288_v22  ;;  %v1341_v43 = vmul.f32 %v8281_v41, %v8281_v41  ;;  %v1342_v31 = vmul.f32 %v8288_v22, %v8288_v22 }
 0x34b   :  { %v1428_v56 = vadd.f32 %v1427_v60, %v1426_v24  ;;  %v12338_v60 = vld [vmem:[#allocation77_spill] sm:$0xff]  ;;  %v1435_v19 = vsel %vm1111_vm5, %v1341_v43, 0.0  ;;  %v1437_v45 = vsel %vm1111_vm5, %v1342_v31, 0.0 }
 0x34c   :  { %v8302_v62 = vsub.f32 %v12338_v60, %v8068_v33 }
 0x34d   :  { %v1430_v9 = vadd.f32 %v1429_v32, %v1428_v56  ;;  %v1343_v32 = vmul.f32 %v8295_v16, %v8295_v16  ;;  %v1347_v16 = vmul.f32 %v8323_v36, %v8323_v36 }
 0x34e   :  { %v1344_v60 = vmul.f32 %v8302_v62, %v8302_v62 }
 0x34f   :  { %v1432_v24 = vadd.f32 %v1431_v25, %v1430_v9  ;;  %v8316_v25 = vsub.f32 %v7690_v2, %v8068_v33  ;;  %v1439_v43 = vsel %vm1111_vm5, %v1343_v32, 0.0  ;;  %v8330_v2 = vsub.f32 %v7746_v6, %v8068_v33 }
 0x350   :  { %v1441_v31 = vsel %vm1111_vm5, %v1344_v60, 0.0  ;;  %v8344_v6 = vsub.f32 %v7802_v46, %v8068_v33  ;;  %v8358_v46 = vsub.f32 %v7836_v40, %v8068_v33 }
 0x351   :  { %v1434_v56 = vadd.f32 %v1433_v48, %v1432_v24  ;;  %v1345_v48 = vmul.f32 %v8309_v13, %v8309_v13 }
 0x352   :  { %v1352_v22 = vmul.f32 %v8358_v46, %v8358_v46 }
 0x353   :  { %v1436_v9 = vadd.f32 %v1435_v19, %v1434_v56  ;;  %v1346_v19 = vmul.f32 %v8316_v25, %v8316_v25  ;;  %v1443_v32 = vsel %vm1111_vm5, %v1345_v48, 0.0  ;;  %v1447_v48 = vsel %vm1111_vm5, %v1347_v16, 0.0 }
 0x355   :  { %v1438_v24 = vadd.f32 %v1437_v45, %v1436_v9  ;;  %v12339_v45 = vld [vmem:[#allocation68_spill] sm:$0xff]  ;;  %v1445_v60 = vsel %vm1111_vm5, %v1346_v19, 0.0 }
 0x356   :  { %v8337_v3 = vsub.f32 %v12339_v45, %v8068_v33 }
 0x357   :  { %v1440_v56 = vadd.f32 %v1439_v43, %v1438_v24  ;;  %v1348_v43 = vmul.f32 %v8330_v2, %v8330_v2 }
 0x358   :  { %v1349_v45 = vmul.f32 %v8337_v3, %v8337_v3 }
 0x359   :  { %v1442_v9 = vadd.f32 %v1441_v31, %v1440_v56  ;;  %v8351_v31 = vsub.f32 %v7824_v50, %v8068_v33  ;;  %v1449_v19 = vsel %vm1111_vm5, %v1348_v43, 0.0  ;;  %v8365_v50 = vsub.f32 %v7848_v42, %v8068_v33 }
 0x35a   :  { %v1451_v16 = vsel %vm1111_vm5, %v1349_v45, 0.0  ;;  %v8379_v42 = vsub.f32 %v7865_v11, %v8068_v33  ;;  %v8393_v11 = vsub.f32 %v7881_v49, %v8068_v33 }
 0x35b   :  { %v1444_v24 = vadd.f32 %v1443_v32, %v1442_v9  ;;  %v1350_v32 = vmul.f32 %v8344_v6, %v8344_v6 }
 0x35c   :  { %v1357_v41 = vmul.f32 %v8393_v11, %v8393_v11 }
 0x35d   :  { %v1446_v56 = vadd.f32 %v1445_v60, %v1444_v24  ;;  %v1351_v60 = vmul.f32 %v8351_v31, %v8351_v31  ;;  %v1453_v43 = vsel %vm1111_vm5, %v1350_v32, 0.0  ;;  %v1457_v32 = vsel %vm1111_vm5, %v1352_v22, 0.0 }
 0x35f   :  { %v1448_v9 = vadd.f32 %v1447_v48, %v1446_v56  ;;  %v12340_v48 = vld [vmem:[#allocation78_spill] sm:$0xff]  ;;  %v1455_v45 = vsel %vm1111_vm5, %v1351_v60, 0.0 }
 0x360   :  { %v8372_v40 = vsub.f32 %v12340_v48, %v8068_v33 }
 0x361   :  { %v1450_v24 = vadd.f32 %v1449_v19, %v1448_v9  ;;  %v1353_v19 = vmul.f32 %v8365_v50, %v8365_v50 }
 0x362   :  { %v1354_v48 = vmul.f32 %v8372_v40, %v8372_v40 }
 0x363   :  { %v1452_v56 = vadd.f32 %v1451_v16, %v1450_v24  ;;  %v8386_v16 = vsub.f32 %v7874_v27, %v8068_v33  ;;  %v1459_v60 = vsel %vm1111_vm5, %v1353_v19, 0.0  ;;  %v8400_v27 = vsub.f32 %v7885_v21, %v8068_v33 }
 0x364   :  { %v1461_v22 = vsel %vm1111_vm5, %v1354_v48, 0.0  ;;  %v8414_v21 = vsub.f32 %v7893_v26, %v8068_v33  ;;  %v8428_v26 = vsub.f32 %v7925_v14, %v8068_v33 }
 0x365   :  { %v1454_v9 = vadd.f32 %v1453_v43, %v1452_v56  ;;  %v1355_v43 = vmul.f32 %v8379_v42, %v8379_v42 }
 0x366   :  { %v1362_v37 = vmul.f32 %v8428_v26, %v8428_v26 }
 0x367   :  { %v1456_v24 = vadd.f32 %v1455_v45, %v1454_v9  ;;  %v1356_v45 = vmul.f32 %v8386_v16, %v8386_v16  ;;  %v1463_v19 = vsel %vm1111_vm5, %v1355_v43, 0.0  ;;  %v1467_v43 = vsel %vm1111_vm5, %v1357_v41, 0.0 }
 0x369   :  { %v1458_v56 = vadd.f32 %v1457_v32, %v1456_v24  ;;  %v12341_v32 = vld [vmem:[#allocation70_spill] sm:$0xff]  ;;  %v1465_v48 = vsel %vm1111_vm5, %v1356_v45, 0.0 }
 0x36a   :  { %v8407_v49 = vsub.f32 %v12341_v32, %v8068_v33 }
 0x36b   :  { %v1460_v9 = vadd.f32 %v1459_v60, %v1458_v56  ;;  %v1358_v60 = vmul.f32 %v8400_v27, %v8400_v27 }
 0x36c   :  { %v1359_v32 = vmul.f32 %v8407_v49, %v8407_v49 }
 0x36d   :  { %v1462_v24 = vadd.f32 %v1461_v22, %v1460_v9  ;;  %v8421_v22 = vsub.f32 %v7911_v1, %v8068_v33  ;;  %v1469_v45 = vsel %vm1111_vm5, %v1358_v60, 0.0  ;;  %v8435_v1 = vsub.f32 %v7939_v12, %v8068_v33 }
 0x36e   :  { %v1471_v41 = vsel %vm1111_vm5, %v1359_v32, 0.0  ;;  %v8449_v12 = vsub.f32 %v7969_v5, %v8068_v33 }
 0x36f   :  { %v1464_v56 = vadd.f32 %v1463_v19, %v1462_v24  ;;  %v1360_v19 = vmul.f32 %v8414_v21, %v8414_v21 }
 0x370   :  { %v1365_v23 = vmul.f32 %v8449_v12, %v8449_v12 }
 0x371   :  { %v1466_v9 = vadd.f32 %v1465_v48, %v1464_v56  ;;  %v1361_v48 = vmul.f32 %v8421_v22, %v8421_v22  ;;  %v1473_v60 = vsel %vm1111_vm5, %v1360_v19, 0.0  ;;  %v1477_v19 = vsel %vm1111_vm5, %v1362_v37, 0.0 }
 0x373   :  { %v1468_v24 = vadd.f32 %v1467_v43, %v1466_v9  ;;  %v12342_v43 = vld [vmem:[#allocation72_spill] sm:$0xff]  ;;  %v1475_v32 = vsel %vm1111_vm5, %v1361_v48, 0.0 }
 0x374   :  { %v8442_v14 = vsub.f32 %v12342_v43, %v8068_v33 }
 0x375   :  { %v1470_v56 = vadd.f32 %v1469_v45, %v1468_v24  ;;  %v1363_v45 = vmul.f32 %v8435_v1, %v8435_v1 }
 0x376   :  { %v1364_v43 = vmul.f32 %v8442_v14, %v8442_v14 }
 0x377   :  { %v1472_v9 = vadd.f32 %v1471_v41, %v1470_v56  ;;  %v8456_v41 = vsub.f32 %v7983_v63, %v8068_v33  ;;  %v1479_v48 = vsel %vm1111_vm5, %v1363_v45, 0.0  ;;  %v1483_v45 = vsel %vm1111_vm5, %v1365_v23, 0.0 }
 0x378   :  { %v1481_v37 = vsel %vm1111_vm5, %v1364_v43, 0.0 }
 0x379   :  { %v1474_v24 = vadd.f32 %v1473_v60, %v1472_v9  ;;  %v12343_v60 = vld [vmem:[#allocation73_spill] sm:$0xff]  ;;  %v1366_v55 = vmul.f32 %v8456_v41, %v8456_v41 }
 0x37a   :  { %v8463_v5 = vsub.f32 %v12343_v60, %v8068_v33 }
 0x37b   :  { %v1476_v56 = vadd.f32 %v1475_v32, %v1474_v24  ;;  %v12344_v32 = vld [vmem:[#allocation83_spill] sm:$0xff]  ;;  %v1485_v43 = vsel %vm1111_vm5, %v1366_v55, 0.0 }
 0x37c   :  { %v8470_v63 = vsub.f32 %v12344_v32, %v8068_v33  ;;  %v1367_v35 = vmul.f32 %v8463_v5, %v8463_v5 }
 0x37d   :  { %v1478_v9 = vadd.f32 %v1477_v19, %v1476_v56  ;;  %v12345_v19 = vld [vmem:[#allocation74_spill] sm:$0xff] }
 0x37e   :  { %v8477_v60 = vsub.f32 %v12345_v19, %v8068_v33  ;;  %v1368_v28 = vmul.f32 %v8470_v63, %v8470_v63  ;;  %v1487_v23 = vsel %vm1111_vm5, %v1367_v35, 0.0 }
 0x37f   :  { %v1480_v24 = vadd.f32 %v1479_v48, %v1478_v9  ;;  %v12346_v48 = vld [vmem:[#allocation84_spill] sm:$0xff] }
 0x380   :  { %v8484_v32 = vsub.f32 %v12346_v48, %v8068_v33  ;;  %v1369_v19 = vmul.f32 %v8477_v60, %v8477_v60  ;;  %v1489_v55 = vsel %vm1111_vm5, %v1368_v28, 0.0 }
 0x381   :  { %v1482_v56 = vadd.f32 %v1481_v37, %v1480_v24  ;;  %v8491_v37 = vsub.f32 %v8043_v4, %v8068_v33  ;;  %v1309_v4 = vsub.f32 %v8061_v17, %v8068_v33 }
 0x382   :  { %v1370_v48 = vmul.f32 %v8484_v32, %v8484_v32  ;;  %v1491_v58 = vsel %vm1111_vm5, %v1369_v19, 0.0 }
 0x383   :  { %v1484_v9 = vadd.f32 %v1483_v45, %v1482_v56  ;;  %v8498_v45 = vsub.f32 %v8055_v8, %v8068_v33  ;;  %v1373_v34 = vmul.f32 %v1309_v4, %v1309_v4 }
 0x384   :  { %v1493_v8 = vsel %vm1111_vm5, %v1370_v48, 0.0 }
 0x385   :  { %v1486_v24 = vadd.f32 %v1485_v43, %v1484_v9  ;;  %v1371_v43 = vmul.f32 %v8491_v37, %v8491_v37  ;;  %v1499_v17 = vsel %vm1111_vm5, %v1373_v34, 0.0 }
 0x387   :  { %v1488_v56 = vadd.f32 %v1487_v23, %v1486_v24  ;;  %v1372_v24 = vmul.f32 %v8498_v45, %v8498_v45  ;;  %v1495_v18 = vsel %vm1111_vm5, %v1371_v43, 0.0 }
 0x389   :  { %v1490_v9 = vadd.f32 %v1489_v55, %v1488_v56  ;;  %v1497_v56 = vsel %vm1111_vm5, %v1372_v24, 0.0 }
 0x38b   :  { %v1492_v35 = vadd.f32 %v1491_v58, %v1490_v9 }
 0x38d   :  { %v1494_v23 = vadd.f32 %v1493_v8, %v1492_v35  ;;  %v2089_v35 = vld [vmem:[#allocation2 + $0x248] sm:$0xff] }
 0x38e   :  { %2249 = vrot.lane.b32.xlu0 %v2089_v35, %s6301_s1 }
 0x38f   :  { %v1496_v28 = vadd.f32 %v1495_v18, %v1494_v23 }
 0x391   :  { %v1498_v55 = vadd.f32 %v1497_v56, %v1496_v28  ;;  %v2090_v56 = vld [vmem:[#allocation2 + $0x250] sm:$0xff] }
 0x393   :  { %v1500_v33 = vadd.f32 %v1499_v17, %v1498_v55 }
 0x395   :  { %v1501_v53 = vrot.slane %v1500_v33, 4 }
 0x396   :  { %2251 = vrot.lane.b32.xlu0 %v2090_v56, %s6301_s1 }
 0x397   :  { %v1502_v38 = vadd.f32 %v1501_v53, %v1500_v33 }
 0x399   :  { %v1503_v19 = vrot.slane %v1502_v38, 2 }
 0x39b   :  { %v1504_v58 = vadd.f32 %v1503_v19, %v1502_v38  ;;  %v1508_v38 = vld [vmem:[%s12006_s4] sm:$0x1] }
 0x39d   :  { %v1505_v9 = vrot.slane %v1504_v58, 1 }
 0x39f   :  { %v1506_v30 = vadd.f32 %v1505_v9, %v1504_v58 }
 0x3a1   :  { %v1507_v59 = vmul.f32 %v1506_v30, %v6803_v0  ;;  %v8522_v30 = vld [vmem:[%s12005_s5] ss:$0 sm:$0xff] }
 0x3a3   :  { %v1509_v48 = vadd.f32 1e-05, %v1507_v59 }
 0x3a5   :  { %6291 = vrsqrt.f32 %v1509_v48  ;;  %vm1516_vm7 = vweird.f32 %v1509_v48 }
 0x3ab   :  { %v6292_v8 = vpop.eup %6291 }
 0x3ac   :  { %v1511_v18 = vmul.f32 %v6292_v8, %v1509_v48  ;;  %vm1517_vm6 = vweird.f32 %v6292_v8 }
 0x3ad   :  { %vm1518_vm8 = vmor %vm1516_vm7, %vm1517_vm6 }
 0x3ae   :  { %v1512_v43 = vmul.f32 %v6292_v8, %v1511_v18 }
 0x3b0   :  { %v1513_v24 = vmul.f32 0.5, %v1512_v43 }
 0x3b2   :  { %v1514_v34 = vsub.f32 1.5, %v1513_v24 }
 0x3b4   :  { %v1515_v53 = vmul.f32 %v6292_v8, %v1514_v34 }
 0x3b6   :  { %v1519_v0 = vsel %vm1518_vm8, %v6292_v8, %v1515_v53 }
 0x3b7   :  { %v1520_v59 = vmul.f32 %v1519_v0, %v1508_v38 }
 0x3b9   :  { %v8524_v23 = vperm.slane %v1520_v59, 0 }
 0x3bb   :  { %v1587_v28 = vmul.f32 %v8524_v23, %v1309_v4  ;;  %v1524_v33 = vmul.f32 %v8524_v23, %v8072_v10  ;;  %v1525_v19 = vmul.f32 %v8524_v23, %v8076_v29  ;;  %v1526_v58 = vmul.f32 %v8524_v23, %v8080_v7 }
 0x3bc   :  { %v1527_v4 = vmul.f32 %v8524_v23, %v8084_v47  ;;  %v1528_v9 = vmul.f32 %v8524_v23, %v8092_v39  ;;  %v1529_v48 = vmul.f32 %v8524_v23, %v8098_v51  ;;  %v1530_v35 = vmul.f32 %v8524_v23, %v8106_v15 }
 0x3bd   :  { %v1655_v55 = vadd.f32 %v8522_v30, %v1587_v28  ;;  %v8546_v10 = vmul.f32 %v8524_v23, %v8113_v52  ;;  %v8550_v29 = vmul.f32 %v8524_v23, %v8120_v57  ;;  %v8554_v7 = vmul.f32 %v8524_v23, %v8127_v61 }
 0x3be   :  { %v8558_v47 = vmul.f32 %v8524_v23, %v8302_v62  ;;  %v1559_v39 = vmul.f32 %v8524_v23, %v8309_v13  ;;  %v1560_v51 = vmul.f32 %v8524_v23, %v8316_v25  ;;  %v1561_v15 = vmul.f32 %v8524_v23, %v8323_v36 }
 0x3bf   :  { %v1719_v17 = vmax.f32 %v1655_v55, 0.0  ;;  %v1562_v52 = vmul.f32 %v8524_v23, %v8330_v2  ;;  %v1563_v57 = vmul.f32 %v8524_v23, %v8337_v3  ;;  %v1564_v61 = vmul.f32 %v8524_v23, %v8344_v6 }
 0x3c0   :  { %v1565_v62 = vmul.f32 %v8524_v23, %v8351_v31  ;;  %v1566_v13 = vmul.f32 %v8524_v23, %v8358_v46  ;;  %v1567_v25 = vmul.f32 %v8524_v23, %v8365_v50  ;;  %v1568_v36 = vmul.f32 %v8524_v23, %v8372_v40 }
 0x3c1   :  { %1928 = vst.msk [vmem:[#allocation2 + $0x450] sm:$0xff] %vm1111_vm5, %v1719_v17  ;;  %v1569_v2 = vmul.f32 %v8524_v23, %v8379_v42  ;;  %v1570_v3 = vmul.f32 %v8524_v23, %v8386_v16  ;;  %v1571_v6 = vmul.f32 %v8524_v23, %v8393_v11  ;;  %v1572_v31 = vmul.f32 %v8524_v23, %v8400_v27 }
 0x3c2   :  { %v1573_v46 = vmul.f32 %v8524_v23, %v8407_v49  ;;  %v1574_v50 = vmul.f32 %v8524_v23, %v8414_v21  ;;  %v1575_v40 = vmul.f32 %v8524_v23, %v8421_v22  ;;  %v1576_v42 = vmul.f32 %v8524_v23, %v8428_v26 }
 0x3c3   :  { %v1577_v16 = vmul.f32 %v8524_v23, %v8435_v1  ;;  %v1578_v11 = vmul.f32 %v8524_v23, %v8442_v14  ;;  %v1579_v27 = vmul.f32 %v8524_v23, %v8449_v12  ;;  %v1580_v49 = vmul.f32 %v8524_v23, %v8456_v41 }
 0x3c4   :  { %v1581_v21 = vmul.f32 %v8524_v23, %v8463_v5  ;;  %v1582_v22 = vmul.f32 %v8524_v23, %v8470_v63  ;;  %v1583_v26 = vmul.f32 %v8524_v23, %v8477_v60  ;;  %v1584_v1 = vmul.f32 %v8524_v23, %v8484_v32 }
 0x3c5   :  { %v1585_v14 = vmul.f32 %v8524_v23, %v8491_v37  ;;  %v1586_v12 = vmul.f32 %v8524_v23, %v8498_v45  ;;  %v1592_v41 = vadd.f32 %v8522_v30, %v1524_v33  ;;  %v1593_v8 = vadd.f32 %v8522_v30, %v1525_v19 }
 0x3c6   :  { %v1594_v5 = vadd.f32 %v8522_v30, %v1526_v58  ;;  %v1595_v63 = vadd.f32 %v8522_v30, %v1527_v4  ;;  %v1596_v18 = vadd.f32 %v8522_v30, %v1528_v9  ;;  %v1597_v60 = vadd.f32 %v8522_v30, %v1529_v48 }
 0x3c7   :  { %v8623_v32 = vadd.f32 %v8522_v30, %v1530_v35  ;;  %v8626_v37 = vadd.f32 %v8522_v30, %v1559_v39  ;;  %v8629_v45 = vadd.f32 %v8522_v30, %v1560_v51  ;;  %v8632_v43 = vadd.f32 %v8522_v30, %v1561_v15 }
 0x3c8   :  { %v8635_v24 = vadd.f32 %v8522_v30, %v1562_v52  ;;  %v8638_v34 = vadd.f32 %v8522_v30, %v1563_v57  ;;  %v8641_v38 = vadd.f32 %v8522_v30, %v1564_v61  ;;  %v8644_v53 = vadd.f32 %v8522_v30, %v1565_v62 }
 0x3c9   :  { %v8647_v0 = vadd.f32 %v8522_v30, %v1566_v13  ;;  %v8650_v59 = vadd.f32 %v8522_v30, %v1567_v25  ;;  %v8653_v28 = vadd.f32 %v8522_v30, %v1568_v36  ;;  %v8656_v56 = vadd.f32 %v8522_v30, %v1569_v2 }
 0x3ca   :  { %v8659_v55 = vadd.f32 %v8522_v30, %v1570_v3  ;;  %v8662_v17 = vadd.f32 %v8522_v30, %v1571_v6  ;;  %v8665_v33 = vadd.f32 %v8522_v30, %v1572_v31  ;;  %v8668_v19 = vadd.f32 %v8522_v30, %v1573_v46 }
 0x3cb   :  { %v8671_v58 = vadd.f32 %v8522_v30, %v1574_v50  ;;  %v8674_v4 = vadd.f32 %v8522_v30, %v1575_v40  ;;  %v8677_v9 = vadd.f32 %v8522_v30, %v1576_v42  ;;  %v8680_v48 = vadd.f32 %v8522_v30, %v1577_v16 }
 0x3cc   :  { %v8683_v35 = vadd.f32 %v8522_v30, %v1578_v11  ;;  %v8686_v39 = vadd.f32 %v8522_v30, %v1579_v27  ;;  %v8689_v51 = vadd.f32 %v8522_v30, %v1580_v49  ;;  %v8692_v15 = vadd.f32 %v8522_v30, %v1581_v21 }
 0x3cd   :  { %v8695_v52 = vadd.f32 %v8522_v30, %v1582_v22  ;;  %v8698_v57 = vadd.f32 %v8522_v30, %v1583_v26  ;;  %v8701_v61 = vadd.f32 %v8522_v30, %v1584_v1  ;;  %v8704_v62 = vadd.f32 %v8522_v30, %v1585_v14  ;;  %v12349_v22 = vld [vmem:[#allocation76_spill] sm:$0xff] }
 0x3ce   :  { %v8707_v13 = vadd.f32 %v8522_v30, %v1586_v12  ;;  %v1656_v25 = vmax.f32 %v1592_v41, 0.0  ;;  %v1657_v36 = vmax.f32 %v1593_v8, 0.0  ;;  %v1658_v2 = vmax.f32 %v1594_v5, 0.0  ;;  %v12351_v41 = vld [vmem:[#allocation87_spill] sm:$0xff] }
 0x3cf   :  { %v1534_v3 = vmul.f32 %v8524_v23, %v8134_v20  ;;  %v1599_v6 = vadd.f32 %v8522_v30, %v8546_v10  ;;  %v1659_v31 = vmax.f32 %v1595_v63, 0.0  ;;  %v1535_v46 = vmul.f32 %v8524_v23, %v8141_v54  ;;  %v12347_v20 = vld [vmem:[#allocation75_spill] sm:$0xff] }
 0x3d0   :  { %v1660_v50 = vmax.f32 %v1596_v18, 0.0  ;;  %1865 = vst.msk [vmem:[#allocation2 + $0x28] sm:$0xff] %vm1111_vm5, %v1656_v25  ;;  %v1536_v40 = vmul.f32 %v8524_v23, %v8148_v44  ;;  %v1600_v42 = vadd.f32 %v8522_v30, %v8550_v29  ;;  %v1661_v16 = vmax.f32 %v1597_v60, 0.0  ;;  %v12348_v44 = vld [vmem:[#allocation85_spill] sm:$0xff]  ;;  %v12352_v60 = vld [vmem:[#allocation88_spill] sm:$0xff] }
 0x3d1   :  { %1866 = vst.msk [vmem:[#allocation2 + $0x30] sm:$0xff] %vm1111_vm5, %v1657_v36  ;;  %v1537_v11 = vmul.f32 %v8524_v23, %v12347_v20  ;;  %v1601_v10 = vadd.f32 %v8522_v30, %v8554_v7  ;;  %v1626_v54 = vadd.f32 %v8522_v30, %v8558_v47  ;;  %v1662_v27 = vmax.f32 %v8623_v32, 0.0  ;;  %v12350_v47 = vld [vmem:[#allocation86_spill] sm:$0xff] }
 0x3d2   :  { %1867 = vst.msk [vmem:[#allocation2 + $0x48] sm:$0xff] %vm1111_vm5, %v1658_v2  ;;  %v1538_v49 = vmul.f32 %v8524_v23, %v12348_v44  ;;  %v1602_v29 = vadd.f32 %v8522_v30, %v1534_v3  ;;  %v1663_v21 = vmax.f32 %v1599_v6, 0.0  ;;  %v1539_v26 = vmul.f32 %v8524_v23, %v12349_v22  ;;  %v12353_v2 = vld [vmem:[#allocation89_spill] sm:$0xff] }
 0x3d3   :  { %1868 = vst.msk [vmem:[#allocation2 + $0x50] sm:$0xff] %vm1111_vm5, %v1659_v31  ;;  %v1603_v7 = vadd.f32 %v8522_v30, %v1535_v46  ;;  %v1540_v1 = vmul.f32 %v8524_v23, %v12350_v47  ;;  %v1604_v14 = vadd.f32 %v8522_v30, %v1536_v40  ;;  %v1664_v12 = vmax.f32 %v1600_v42, 0.0  ;;  %v12354_v46 = vld [vmem:[#allocation69_spill] sm:$0xff] }
 0x3d4   :  { %1869 = vst.msk [vmem:[#allocation2 + $0x68] sm:$0xff] %vm1111_vm5, %v1660_v50  ;;  %v1541_v8 = vmul.f32 %v8524_v23, %v12351_v41  ;;  %v1605_v5 = vadd.f32 %v8522_v30, %v1537_v11  ;;  %v1665_v63 = vmax.f32 %v1601_v10, 0.0  ;;  %v1690_v18 = vmax.f32 %v1626_v54, 0.0  ;;  %v12356_v54 = vld [vmem:[#allocation90_spill] sm:$0xff] }
 0x3d5   :  { %1870 = vst.msk [vmem:[#allocation2 + $0x70] sm:$0xff] %vm1111_vm5, %v1661_v16  ;;  %v1542_v32 = vmul.f32 %v8524_v23, %v12352_v60  ;;  %v1606_v25 = vadd.f32 %v8522_v30, %v1538_v49  ;;  %v1666_v36 = vmax.f32 %v1602_v29, 0.0  ;;  %v1543_v3 = vmul.f32 %v8524_v23, %v12353_v2  ;;  %v12355_v16 = vld [vmem:[#allocation79_spill] sm:$0xff] }
 0x3d6   :  { %1871 = vst.msk [vmem:[#allocation2 + $0x88] sm:$0xff] %vm1111_vm5, %v1662_v27  ;;  %v1607_v6 = vadd.f32 %v8522_v30, %v1539_v26  ;;  %v1667_v31 = vmax.f32 %v1603_v7, 0.0  ;;  %v1544_v50 = vmul.f32 %v8524_v23, %v12354_v46  ;;  %v1608_v40 = vadd.f32 %v8522_v30, %v1540_v1  ;;  %v12357_v29 = vld [vmem:[#allocation91_spill] sm:$0xff]  ;;  %v12358_v7 = vld [vmem:[#allocation80_spill] sm:$0xff] }
 0x3d7   :  { %1872 = vst.msk [vmem:[#allocation2 + $0x90] sm:$0xff] %vm1111_vm5, %v1663_v21  ;;  %v1668_v42 = vmax.f32 %v1604_v14, 0.0  ;;  %v1545_v20 = vmul.f32 %v8524_v23, %v12355_v16  ;;  %v1609_v11 = vadd.f32 %v8522_v30, %v1541_v8  ;;  %v1669_v10 = vmax.f32 %v1605_v5, 0.0 }
 0x3d8   :  { %1899 = vst.msk [vmem:[#allocation2 + $0x288] sm:$0xff] %vm1111_vm5, %v1690_v18  ;;  %v1546_v27 = vmul.f32 %v8524_v23, %v12356_v54  ;;  %v1610_v44 = vadd.f32 %v8522_v30, %v1542_v32  ;;  %v1670_v49 = vmax.f32 %v1606_v25, 0.0  ;;  %v1547_v21 = vmul.f32 %v8524_v23, %v12357_v29 }
 0x3d9   :  { %1873 = vst.msk [vmem:[#allocation2 + $0xa8] sm:$0xff] %vm1111_vm5, %v1664_v12  ;;  %v1611_v22 = vadd.f32 %v8522_v30, %v1543_v3  ;;  %v1671_v26 = vmax.f32 %v1607_v6, 0.0  ;;  %v1548_v47 = vmul.f32 %v8524_v23, %v12358_v7  ;;  %v1612_v1 = vadd.f32 %v8522_v30, %v1544_v50  ;;  %v12359_v12 = vld [vmem:[#allocation71_spill] sm:$0xff] }
 0x3da   :  { %1874 = vst.msk [vmem:[#allocation2 + $0xb0] sm:$0xff] %vm1111_vm5, %v1665_v63  ;;  %v1672_v14 = vmax.f32 %v1608_v40, 0.0  ;;  %v1549_v41 = vmul.f32 %v8524_v23, %v12359_v12  ;;  %v1613_v8 = vadd.f32 %v8522_v30, %v1545_v20  ;;  %v1673_v5 = vmax.f32 %v1609_v11, 0.0  ;;  %v12360_v63 = vld [vmem:[#allocation81_spill] sm:$0xff] }
 0x3db   :  { %1875 = vst.msk [vmem:[#allocation2 + $0xc8] sm:$0xff] %vm1111_vm5, %v1666_v36  ;;  %v1550_v18 = vmul.f32 %v8524_v23, %v12360_v63  ;;  %v1614_v60 = vadd.f32 %v8522_v30, %v1546_v27  ;;  %v1674_v32 = vmax.f32 %v1610_v44, 0.0  ;;  %v12361_v36 = vld [vmem:[#allocation92_spill] sm:$0xff]  ;;  %v1615_v3 = vadd.f32 %v8522_v30, %v1547_v21 }
 0x3dc   :  { %1876 = vst.msk [vmem:[#allocation2 + $0xd0] sm:$0xff] %vm1111_vm5, %v1667_v31  ;;  %v1551_v2 = vmul.f32 %v8524_v23, %v12361_v36  ;;  %v1675_v6 = vmax.f32 %v1611_v22, 0.0  ;;  %v12362_v31 = vld [vmem:[#allocation93_spill] sm:$0xff]  ;;  %v1616_v50 = vadd.f32 %v8522_v30, %v1548_v47  ;;  %v1676_v40 = vmax.f32 %v1612_v1, 0.0 }
 0x3dd   :  { %1877 = vst.msk [vmem:[#allocation2 + $0xe8] sm:$0xff] %vm1111_vm5, %v1668_v42  ;;  %v1552_v46 = vmul.f32 %v8524_v23, %v12362_v31  ;;  %v12363_v42 = vld [vmem:[#allocation94_spill] sm:$0xff]  ;;  %v1617_v20 = vadd.f32 %v8522_v30, %v1549_v41  ;;  %v1677_v11 = vmax.f32 %v1613_v8, 0.0  ;;  %v1618_v27 = vadd.f32 %v8522_v30, %v1550_v18 }
 0x3de   :  { %1878 = vst.msk [vmem:[#allocation2 + $0xf0] sm:$0xff] %vm1111_vm5, %v1669_v10  ;;  %v1553_v16 = vmul.f32 %v8524_v23, %v12363_v42  ;;  %v12364_v10 = vld [vmem:[#allocation82_spill] sm:$0xff]  ;;  %v1678_v44 = vmax.f32 %v1614_v60, 0.0  ;;  %v1619_v21 = vadd.f32 %v8522_v30, %v1551_v2  ;;  %v1679_v22 = vmax.f32 %v1615_v3, 0.0 }
 0x3df   :  { %v2093_v25 = vld [vmem:[#allocation2 + $0x288] sm:$0xff]  ;;  %1879 = vst.msk [vmem:[#allocation2 + $0x108] sm:$0xff] %vm1111_vm5, %v1670_v49  ;;  %v1554_v54 = vmul.f32 %v8524_v23, %v12364_v10  ;;  %v12365_v49 = vld [vmem:[#allocation95_spill] sm:$0xff]  ;;  %v1620_v47 = vadd.f32 %v8522_v30, %v1552_v46  ;;  %v1680_v1 = vmax.f32 %v1616_v50, 0.0  ;;  %v1681_v8 = vmax.f32 %v1617_v20, 0.0  ;;  %v2060_v46 = vld [vmem:[#allocation2 + $0x30] sm:$0xff] }
 0x3e0   :  { %2257 = vrot.lane.b32.xlu0 %v2093_v25, %s6301_s1  ;;  %1880 = vst.msk [vmem:[#allocation2 + $0x110] sm:$0xff] %vm1111_vm5, %v1671_v26  ;;  %v1555_v29 = vmul.f32 %v8524_v23, %v12365_v49  ;;  %v12366_v26 = vld [vmem:[#allocation96_spill] sm:$0xff]  ;;  %v1621_v41 = vadd.f32 %v8522_v30, %v1553_v16  ;;  %v1682_v63 = vmax.f32 %v1618_v27, 0.0  ;;  %v1683_v60 = vmax.f32 %v1619_v21, 0.0  ;;  %v2057_v10 = vld [vmem:[#allocation2 + $0x8] sm:$0xff] }
 0x3e1   :  { %1881 = vst.msk [vmem:[#allocation2 + $0x128] sm:$0xff] %vm1111_vm5, %v1672_v14  ;;  %v1556_v7 = vmul.f32 %v8524_v23, %v12366_v26  ;;  %v12367_v14 = vld [vmem:[#allocation97_spill] sm:$0xff]  ;;  %v1684_v25 = vmax.f32 %v1620_v47, 0.0  ;;  %v1691_v50 = vmax.f32 %v8626_v37, 0.0  ;;  %v1694_v42 = vmax.f32 %v8635_v24, 0.0 }
 0x3e2   :  { %1882 = vst.msk [vmem:[#allocation2 + $0x130] sm:$0xff] %vm1111_vm5, %v1673_v5  ;;  %v1557_v12 = vmul.f32 %v8524_v23, %v12367_v14  ;;  %v1622_v5 = vadd.f32 %v8522_v30, %v1554_v54  ;;  %v1623_v18 = vadd.f32 %v8522_v30, %v1555_v29  ;;  %v1685_v36 = vmax.f32 %v1621_v41, 0.0  ;;  %v2058_v54 = vld [vmem:[#allocation2 + $0x10] sm:$0xff]  ;;  %v2063_v27 = vld [vmem:[#allocation2 + $0x68] sm:$0xff] }
 0x3e3   :  { %1883 = vst.msk [vmem:[#allocation2 + $0x148] sm:$0xff] %vm1111_vm5, %v1674_v32  ;;  %v1624_v32 = vadd.f32 %v8522_v30, %v1556_v7  ;;  %v1695_v16 = vmax.f32 %v8638_v34, 0.0  ;;  %v1696_v37 = vmax.f32 %v8641_v38, 0.0  ;;  %v1699_v24 = vmax.f32 %v8650_v59, 0.0  ;;  %v1965_v29 = vld [vmem:[#allocation2 + $0x287] sm:$0xff]  ;;  %v8900_v47 = vld [vmem:[#allocation2 + $0x2f] sm:$0xff] }
 0x3e4   :  { %1884 = vst.msk [vmem:[#allocation2 + $0x150] sm:$0xff] %vm1111_vm5, %v1675_v6  ;;  %v1625_v23 = vadd.f32 %v8522_v30, %v1557_v12  ;;  %v1686_v2 = vmax.f32 %v1622_v5, 0.0  ;;  %v1687_v3 = vmax.f32 %v1623_v18, 0.0  ;;  %v1692_v30 = vmax.f32 %v8629_v45, 0.0  ;;  %v2061_v26 = vld [vmem:[#allocation2 + $0x48] sm:$0xff] }
 0x3e5   :  { %1885 = vst.msk [vmem:[#allocation2 + $0x168] sm:$0xff] %vm1111_vm5, %v1676_v40  ;;  %v1688_v6 = vmax.f32 %v1624_v32, 0.0  ;;  %v1693_v40 = vmax.f32 %v8632_v43, 0.0  ;;  %v1697_v45 = vmax.f32 %v8644_v53, 0.0  ;;  %v1698_v43 = vmax.f32 %v8647_v0, 0.0  ;;  %v8910_v41 = vld [vmem:[#allocation2 + $0x27] sm:$0xff] }
 0x3e6   :  { %1886 = vst.msk [vmem:[#allocation2 + $0x170] sm:$0xff] %vm1111_vm5, %v1677_v11  ;;  %v1689_v31 = vmax.f32 %v1625_v23, 0.0  ;;  %v1700_v34 = vmax.f32 %v8653_v28, 0.0  ;;  %v1701_v38 = vmax.f32 %v8656_v56, 0.0  ;;  %v1702_v0 = vmax.f32 %v8659_v55, 0.0  ;;  %v8917_v5 = vld [vmem:[#allocation2 + $0x67] sm:$0xff] }
 0x3e7   :  { %1887 = vst.msk [vmem:[#allocation2 + $0x188] sm:$0xff] %vm1111_vm5, %v1678_v44  ;;  %v1703_v59 = vmax.f32 %v8662_v17, 0.0  ;;  %v1704_v28 = vmax.f32 %v8665_v33, 0.0  ;;  %v1705_v11 = vmax.f32 %v8668_v19, 0.0  ;;  %v1706_v55 = vmax.f32 %v8671_v58, 0.0  ;;  %v8924_v32 = vld [vmem:[#allocation2 + $0xaf] sm:$0xff] }
 0x3e8   :  { %1888 = vst.msk [vmem:[#allocation2 + $0x190] sm:$0xff] %vm1111_vm5, %v1679_v22  ;;  %2191 = vrot.lane.b32.xlu0 %v2060_v46, %s6301_s1  ;;  %v1707_v17 = vmax.f32 %v8674_v4, 0.0  ;;  %v1708_v33 = vmax.f32 %v8677_v9, 0.0  ;;  %v1709_v19 = vmax.f32 %v8680_v48, 0.0  ;;  %v1710_v58 = vmax.f32 %v8683_v35, 0.0  ;;  %v8894_v22 = vld [vmem:[#allocation2 + $0x47] sm:$0xff] }
 0x3e9   :  { %1889 = vst.msk [vmem:[#allocation2 + $0x1a8] sm:$0xff] %vm1111_vm5, %v1680_v1  ;;  %v1711_v4 = vmax.f32 %v8686_v39, 0.0  ;;  %v1712_v9 = vmax.f32 %v8689_v51, 0.0  ;;  %v1713_v48 = vmax.f32 %v8692_v15, 0.0  ;;  %v1714_v35 = vmax.f32 %v8695_v52, 0.0  ;;  %v2059_v51 = vld [vmem:[#allocation2 + $0x28] sm:$0xff] }
 0x3ea   :  { %1890 = vst.msk [vmem:[#allocation2 + $0x1b0] sm:$0xff] %vm1111_vm5, %v1681_v8  ;;  %v1715_v44 = vmax.f32 %v8698_v57, 0.0  ;;  %v1716_v39 = vmax.f32 %v8701_v61, 0.0  ;;  %v1717_v49 = vmax.f32 %v8704_v62, 0.0  ;;  %v1718_v52 = vmax.f32 %v8707_v13, 0.0  ;;  %v8904_v1 = vld [vmem:[#allocation2 + $0x6f] sm:$0xff] }
 0x3eb   :  { %1891 = vst.msk [vmem:[#allocation2 + $0x1c8] sm:$0xff] %vm1111_vm5, %v1682_v63  ;;  %v8914_v8 = vld [vmem:[#allocation2 + $0x8f] sm:$0xff] }
 0x3ec   :  { %1892 = vst.msk [vmem:[#allocation2 + $0x1d0] sm:$0xff] %vm1111_vm5, %v1683_v60  ;;  %v2062_v63 = vld [vmem:[#allocation2 + $0x50] sm:$0xff] }
 0x3ed   :  { %1893 = vst.msk [vmem:[#allocation2 + $0x1e8] sm:$0xff] %vm1111_vm5, %v1684_v25  ;;  %v8930_v23 = vld [vmem:[#allocation2 + $0x4f] sm:$0xff] }
 0x3ee   :  { %1894 = vst.msk [vmem:[#allocation2 + $0x1f0] sm:$0xff] %vm1111_vm5, %v1685_v36 }
 0x3ef   :  { %1895 = vst.msk [vmem:[#allocation2 + $0x208] sm:$0xff] %vm1111_vm5, %v1686_v2 }
 0x3f0   :  { %1896 = vst.msk [vmem:[#allocation2 + $0x210] sm:$0xff] %vm1111_vm5, %v1687_v3 }
 0x3f1   :  { %1897 = vst.msk [vmem:[#allocation2 + $0x268] sm:$0xff] %vm1111_vm5, %v1688_v6 }
 0x3f2   :  { %1898 = vst.msk [vmem:[#allocation2 + $0x270] sm:$0xff] %vm1111_vm5, %v1689_v31 }
 0x3f3   :  { %1900 = vst.msk [vmem:[#allocation2 + $0x290] sm:$0xff] %vm1111_vm5, %v1691_v50 }
 0x3f4   :  { %1901 = vst.msk [vmem:[#allocation2 + $0x2a8] sm:$0xff] %vm1111_vm5, %v1692_v30  ;;  %v2064_v30 = vld [vmem:[#allocation2 + $0x70] sm:$0xff] }
 0x3f5   :  { %1902 = vst.msk [vmem:[#allocation2 + $0x2b0] sm:$0xff] %vm1111_vm5, %v1693_v40  ;;  %v8942_v40 = vld [vmem:[#allocation2 + $0x87] sm:$0xff] }
 0x3f6   :  { %1903 = vst.msk [vmem:[#allocation2 + $0x2c8] sm:$0xff] %vm1111_vm5, %v1694_v42  ;;  %v4442_v42 = vld [vmem:[%s12007_s6 + $0x78] sm:$0xff] }
 0x3f7   :  { %1904 = vst.msk [vmem:[#allocation2 + $0x2d0] sm:$0xff] %vm1111_vm5, %v1695_v16  ;;  %v4441_v16 = vld [vmem:[%s12007_s6 + $0x70] sm:$0xff]  ;;  %6257 = vmatpush.msra.mxu2 %v4442_v42  ;;  %4691 = vmatpush.msra.mxu1 %v4442_v42  ;;  %v2071_v42 = vld [vmem:[#allocation2 + $0xe8] sm:$0xff] }
 0x3f8   :  { %1905 = vst.msk [vmem:[#allocation2 + $0x2e8] sm:$0xff] %vm1111_vm5, %v1696_v37  ;;  %v2091_v20 = vld [vmem:[#allocation2 + $0x268] sm:$0xff] }
 0x3f9   :  { %1906 = vst.msk [vmem:[#allocation2 + $0x2f0] sm:$0xff] %vm1111_vm5, %v1697_v45  ;;  %v2092_v53 = vld [vmem:[#allocation2 + $0x270] sm:$0xff]  ;;  %2253 = vrot.lane.b32.xlu1 %v2091_v20, %s6301_s1  ;;  %v1963_v13 = vld [vmem:[#allocation2 + $0x267] sm:$0xff]  ;;  %6258 = vmatpush.msra.mxu2 %v4441_v16 }
 0x3fa   :  { %1907 = vst.msk [vmem:[#allocation2 + $0x308] sm:$0xff] %vm1111_vm5, %v1698_v43  ;;  %2255 = vrot.lane.b32.xlu2 %v2092_v53, %s6301_s1  ;;  %v2094_v15 = vld [vmem:[#allocation2 + $0x290] sm:$0xff]  ;;  %v8964_v20 = vld [vmem:[#allocation2 + $0x127] sm:$0xff]  ;;  %4692 = vmatpush.msra.mxu1 %v4441_v16 }
 0x3fb   :  { %1908 = vst.msk [vmem:[#allocation2 + $0x310] sm:$0xff] %vm1111_vm5, %v1699_v24  ;;  %v1964_v61 = vld [vmem:[#allocation2 + $0x26f] sm:$0xff]  ;;  %v1967_v18 = vld [vmem:[#allocation2 + $0x2a7] sm:$0xff] }
 0x3fc   :  { %1909 = vst.msk [vmem:[#allocation2 + $0x328] sm:$0xff] %vm1111_vm5, %v1700_v34  ;;  %v2096_v56 = vld [vmem:[#allocation2 + $0x2b0] sm:$0xff]  ;;  %v2095_v21 = vld [vmem:[#allocation2 + $0x2a8] sm:$0xff] }
 0x3fd   :  { %1910 = vst.msk [vmem:[#allocation2 + $0x330] sm:$0xff] %vm1111_vm5, %v1701_v38  ;;  %2263 = vrot.lane.b32.xlu0 %v2096_v56, %s6301_s1  ;;  %v1966_v62 = vld [vmem:[#allocation2 + $0x28f] sm:$0xff]  ;;  %v1969_v7 = vld [vmem:[#allocation2 + $0x2c7] sm:$0xff] }
 0x3fe   :  { %1911 = vst.msk [vmem:[#allocation2 + $0x348] sm:$0xff] %vm1111_vm5, %v1702_v0  ;;  %v1968_v12 = vld [vmem:[#allocation2 + $0x2af] sm:$0xff]  ;;  %v8960_v34 = vld [vmem:[#allocation2 + $0xa7] sm:$0xff] }
 0x3ff   :  { %1912 = vst.msk [vmem:[#allocation2 + $0x350] sm:$0xff] %vm1111_vm5, %v1703_v59  ;;  %v2099_v57 = vld [vmem:[#allocation2 + $0x2e8] sm:$0xff]  ;;  %v2098_v46 = vld [vmem:[#allocation2 + $0x2d0] sm:$0xff] }
 0x400   :  { %1913 = vst.msk [vmem:[#allocation2 + $0x368] sm:$0xff] %vm1111_vm5, %v1704_v28  ;;  %v2100_v14 = vld [vmem:[#allocation2 + $0x2f0] sm:$0xff]  ;;  %v2097_v60 = vld [vmem:[#allocation2 + $0x2c8] sm:$0xff] }
 0x401   :  { %1914 = vst.msk [vmem:[#allocation2 + $0x370] sm:$0xff] %vm1111_vm5, %v1705_v11  ;;  %2185 = vrot.lane.b32.xlu1 %v2057_v10, %s6301_s1  ;;  %v1971_v25 = vld [vmem:[#allocation2 + $0x2e7] sm:$0xff]  ;;  %v1972_v3 = vld [vmem:[#allocation2 + $0x2ef] sm:$0xff] }
 0x402   :  { %1915 = vst.msk [vmem:[#allocation2 + $0x388] sm:$0xff] %vm1111_vm5, %v1706_v55  ;;  %2187 = vrot.lane.b32.xlu2 %v2058_v54, %s6301_s1  ;;  %v2101_v36 = vld [vmem:[#allocation2 + $0x308] sm:$0xff]  ;;  %v2070_v43 = vld [vmem:[#allocation2 + $0xd0] sm:$0xff]  ;;  %v4439_v11 = vld [vmem:[%s12007_s6 + $0x60] sm:$0xff] }
 0x403   :  { %1916 = vst.msk [vmem:[#allocation2 + $0x390] sm:$0xff] %vm1111_vm5, %v1707_v17  ;;  %v1974_v2 = vld [vmem:[#allocation2 + $0x30f] sm:$0xff]  ;;  %v1975_v31 = vld [vmem:[#allocation2 + $0x327] sm:$0xff]  ;;  %v4438_v55 = vld [vmem:[%s12007_s6 + $0x58] sm:$0xff] }
 0x404   :  { %1917 = vst.msk [vmem:[#allocation2 + $0x3a8] sm:$0xff] %vm1111_vm5, %v1708_v33  ;;  %v1970_v6 = vld [vmem:[#allocation2 + $0x2cf] sm:$0xff]  ;;  %v1973_v50 = vld [vmem:[#allocation2 + $0x307] sm:$0xff] }
 0x405   :  { %1918 = vst.msk [vmem:[#allocation2 + $0x3b0] sm:$0xff] %vm1111_vm5, %v1709_v19  ;;  %2197 = vrot.lane.b32.xlu0 %v2063_v27, %s6301_s1  ;;  %v1976_v37 = vld [vmem:[#allocation2 + $0x32f] sm:$0xff]  ;;  %v8972_v53 = vld [vmem:[#allocation2 + $0xc7] sm:$0xff] }
 0x406   :  { %1919 = vst.msk [vmem:[#allocation2 + $0x3c8] sm:$0xff] %vm1111_vm5, %v1710_v58  ;;  %v8953_v45 = vld [vmem:[#allocation2 + $0xcf] sm:$0xff]  ;;  %v8976_v59 = vld [vmem:[#allocation2 + $0x147] sm:$0xff] }
 0x407   :  { %1920 = vst.msk [vmem:[#allocation2 + $0x3d0] sm:$0xff] %vm1111_vm5, %v1711_v4  ;;  %v4440_v24 = vld [vmem:[%s12007_s6 + $0x68] sm:$0xff]  ;;  %v2066_v28 = vld [vmem:[#allocation2 + $0x90] sm:$0xff] }
 0x408   :  { %1921 = vst.msk [vmem:[#allocation2 + $0x3e8] sm:$0xff] %vm1111_vm5, %v1712_v9  ;;  %v8968_v38 = vld [vmem:[#allocation2 + $0xef] sm:$0xff]  ;;  %6259 = vmatpush.msra.mxu2 %v4440_v24  ;;  %4693 = vmatpush.msra.mxu1 %v4440_v24  ;;  %v8992_v10 = vld [vmem:[#allocation2 + $0xe7] sm:$0xff] }
 0x409   :  { %1922 = vst.msk [vmem:[#allocation2 + $0x3f0] sm:$0xff] %vm1111_vm5, %v1713_v48  ;;  %2189 = vrot.lane.b32.xlu1 %v2059_v51, %s6301_s1  ;;  %v2065_v0 = vld [vmem:[#allocation2 + $0x88] sm:$0xff]  ;;  %v2072_v54 = vld [vmem:[#allocation2 + $0xf0] sm:$0xff]  ;;  %v4435_v51 = vld [vmem:[%s12007_s6 + $0x40] sm:$0xff] }
 0x40a   :  { %1923 = vst.msk [vmem:[#allocation2 + $0x408] sm:$0xff] %vm1111_vm5, %v1714_v35  ;;  %2259 = vrot.lane.b32.xlu2 %v2094_v15, %s6301_s1  ;;  %v8981_v56 = vld [vmem:[#allocation2 + $0x10f] sm:$0xff]  ;;  %6260 = vmatpush.msra.mxu2 %v4439_v11  ;;  %v8996_v17 = vld [vmem:[#allocation2 + $0x167] sm:$0xff] }
 0x40b   :  { %1924 = vst.msk [vmem:[#allocation2 + $0x410] sm:$0xff] %vm1111_vm5, %v1715_v44  ;;  %4694 = vmatpush.msra.mxu1 %v4439_v11  ;;  %v4437_v33 = vld [vmem:[%s12007_s6 + $0x50] sm:$0xff]  ;;  %v9008_v58 = vld [vmem:[#allocation2 + $0x107] sm:$0xff] }
 0x40c   :  { %1925 = vst.msk [vmem:[#allocation2 + $0x428] sm:$0xff] %vm1111_vm5, %v1716_v39  ;;  %v9003_v19 = vld [vmem:[#allocation2 + $0x12f] sm:$0xff]  ;;  %6261 = vmatpush.msra.mxu2 %v4438_v55  ;;  %v9015_v9 = vld [vmem:[#allocation2 + $0x187] sm:$0xff] }
 0x40d   :  { %1926 = vst.msk [vmem:[#allocation2 + $0x430] sm:$0xff] %vm1111_vm5, %v1717_v49  ;;  %2269 = vrot.lane.b32.xlu0 %v2099_v57, %s6301_s1  ;;  %v4436_v4 = vld [vmem:[%s12007_s6 + $0x48] sm:$0xff]  ;;  %4695 = vmatpush.msra.mxu1 %v4438_v55  ;;  %v2068_v44 = vld [vmem:[#allocation2 + $0xb0] sm:$0xff] }
 0x40e   :  { %1927 = vst.msk [vmem:[#allocation2 + $0x448] sm:$0xff] %vm1111_vm5, %v1718_v52  ;;  %6262 = vmatpush.msra.mxu2 %v4437_v33  ;;  %v9019_v27 = vld [vmem:[#allocation2 + $0x14f] sm:$0xff]  ;;  %v1977_v35 = vld [vmem:[#allocation2 + $0x347] sm:$0xff] }
 0x40f   :  { %2028 = vst.msk [vmem:[#allocation3 + $0x578] sm:$0xff] %vm1111_vm5, %v1964_v61  ;;  %v2067_v48 = vld [vmem:[#allocation2 + $0xa8] sm:$0xff]  ;;  %4696 = vmatpush.msra.mxu1 %v4437_v33  ;;  %v2074_v52 = vld [vmem:[#allocation2 + $0x110] sm:$0xff]  ;;  %v4434_v61 = vld [vmem:[%s12007_s6 + $0x38] sm:$0xff] }
 0x410   :  { %2030 = vst.msk [vmem:[#allocation3 + $0x5c8] sm:$0xff] %vm1111_vm5, %v1966_v62  ;;  %6263 = vmatpush.msra.mxu2 %v4436_v4  ;;  %v9026_v39 = vld [vmem:[#allocation2 + $0x1a7] sm:$0xff]  ;;  %v1980_v49 = vld [vmem:[#allocation2 + $0x36f] sm:$0xff] }
 0x411   :  { %2261 = vrot.lane.b32.xlu1 %v2095_v21, %s6301_s1  ;;  %2029 = vst.msk [vmem:[#allocation3 + $0x5a0] sm:$0xff] %vm1111_vm5, %v1965_v29  ;;  %4697 = vmatpush.msra.mxu1 %v4436_v4  ;;  %v1978_v15 = vld [vmem:[#allocation2 + $0x34f] sm:$0xff]  ;;  %v1983_v57 = vld [vmem:[#allocation2 + $0x3a7] sm:$0xff]  ;;  %v4458_v4 = vld [vmem:[%s12007_s6 + $0xf8] sm:$0xff] }
 0x412   :  { %2193 = vrot.lane.b32.xlu2 %v2061_v26, %s6301_s1  ;;  %2027 = vst.msk [vmem:[#allocation3 + $0x550] sm:$0xff] %vm1111_vm5, %v1963_v13  ;;  %6264 = vmatpush.msra.mxu2 %v4435_v51  ;;  %v4433_v62 = vld [vmem:[%s12007_s6 + $0x30] sm:$0xff]  ;;  %v1981_v29 = vld [vmem:[#allocation2 + $0x387] sm:$0xff] }
 0x413   :  { %1997 = vst.msk [vmem:[#allocation3 + $0xa0] sm:$0xff] %vm1111_vm5, %v8894_v22  ;;  %4698 = vmatpush.msra.mxu1 %v4435_v51  ;;  %v1979_v13 = vld [vmem:[#allocation2 + $0x367] sm:$0xff]  ;;  %v1984_v26 = vld [vmem:[#allocation2 + $0x3af] sm:$0xff] }
 0x414   :  { %2033 = vst.msk [vmem:[#allocation3 + $0x640] sm:$0xff] %vm1111_vm5, %v1969_v7  ;;  %6265 = vmatpush.msra.mxu2 %v4434_v61  ;;  %v4432_v21 = vld [vmem:[%s12007_s6 + $0x28] sm:$0xff]  ;;  %v2078_v55 = vld [vmem:[#allocation2 + $0x150] sm:$0xff] }
 0x415   :  { %2271 = vrot.lane.b32.xlu0 %v2100_v14, %s6301_s1  ;;  %1996 = vst.msk [vmem:[#allocation3 + $0x78] sm:$0xff] %vm1111_vm5, %v8900_v47  ;;  %4699 = vmatpush.msra.mxu1 %v4434_v61  ;;  %v2069_v7 = vld [vmem:[#allocation2 + $0xc8] sm:$0xff]  ;;  %v2102_v14 = vld [vmem:[#allocation2 + $0x310] sm:$0xff] }
 0x416   :  { %2000 = vst.msk [vmem:[#allocation3 + $0x118] sm:$0xff] %vm1111_vm5, %v8904_v1  ;;  %6266 = vmatpush.msra.mxu2 %v4433_v62  ;;  %v2103_v16 = vld [vmem:[#allocation2 + $0x328] sm:$0xff] }
 0x417   :  { %2032 = vst.msk [vmem:[#allocation3 + $0x618] sm:$0xff] %vm1111_vm5, %v1968_v12  ;;  %4700 = vmatpush.msra.mxu1 %v4433_v62  ;;  %v2250_v12 = vpop.permute.xlu0 %2249  ;;  %v9094_v11 = vld [vmem:[#allocation2 + $0x1e7] sm:$0xff]  ;;  %v2108_v62 = vld [vmem:[#allocation2 + $0x370] sm:$0xff] }
 0x418   :  { %1995 = vst.msk [vmem:[#allocation3 + $0x50] sm:$0xff] %vm1111_vm5, %v8910_v41  ;;  %6267 = vmatpush.msra.mxu2 %v4432_v21  ;;  %v2073_v51 = vld [vmem:[#allocation2 + $0x108] sm:$0xff] }
 0x419   :  { %2195 = vrot.lane.b32.xlu1 %v2062_v63, %s6301_s1  ;;  %2002 = vst.msk [vmem:[#allocation3 + $0x168] sm:$0xff] %vm1111_vm5, %v8914_v8  ;;  %v1961_v63 = vld [vmem:[#allocation2 + $0x247] sm:$0xff]  ;;  %4701 = vmatpush.msra.mxu1 %v4432_v21 }
 0x41a   :  { %2265 = vrot.lane.b32.xlu2 %v2097_v60, %s6301_s1  ;;  %1999 = vst.msk [vmem:[#allocation3 + $0xf0] sm:$0xff] %vm1111_vm5, %v8917_v5  ;;  %v1930_v60 = vld [vmem:[#allocation2 + $0xf] sm:$0xff] }
 0x41b   :  { %2031 = vst.msk [vmem:[#allocation3 + $0x5f0] sm:$0xff] %vm1111_vm5, %v1967_v18  ;;  %v4431_v18 = vld [vmem:[%s12007_s6 + $0x20] sm:$0xff]  ;;  %v9118_v61 = vld [vmem:[#allocation2 + $0x49] sm:$0xff] }
 0x41c   :  { %2004 = vst.msk [vmem:[#allocation3 + $0x1b8] sm:$0xff] %vm1111_vm5, %v8924_v32  ;;  %6268 = vmatpush.msra.mxu2 %v4431_v18  ;;  %4702 = vmatpush.msra.mxu1 %v4431_v18  ;;  %v9124_v21 = vld [vmem:[#allocation2 + $0x29] sm:$0xff] }
 0x41d   :  { %2273 = vrot.lane.b32.xlu0 %v2101_v36, %s6301_s1  ;;  %2035 = vst.msk [vmem:[#allocation3 + $0x690] sm:$0xff] %vm1111_vm5, %v1971_v25  ;;  %v1982_v25 = vld [vmem:[#allocation2 + $0x38f] sm:$0xff] }
 0x41e   :  { %1998 = vst.msk [vmem:[#allocation3 + $0xc8] sm:$0xff] %vm1111_vm5, %v8930_v23  ;;  %v2076_v36 = vld [vmem:[#allocation2 + $0x130] sm:$0xff] }
 0x41f   :  { %2038 = vst.msk [vmem:[#allocation3 + $0x708] sm:$0xff] %vm1111_vm5, %v1974_v2  ;;  %v9060_v2 = vld [vmem:[#allocation2 + $0x16f] sm:$0xff]  ;;  %v2252_v24 = vpop.permute.xlu0 %2251 }
 0x420   :  { %2036 = vst.msk [vmem:[#allocation3 + $0x6b8] sm:$0xff] %vm1111_vm5, %v1972_v3  ;;  %v4430_v3 = vld [vmem:[%s12007_s6 + $0x18] sm:$0xff]  ;;  %v4489_v18 = vld [vmem:[%s12007_s6 + $0x1f0] sm:$0xff] }
 0x421   :  { %2267 = vrot.lane.b32.xlu1 %v2098_v46, %s6301_s1  ;;  %2034 = vst.msk [vmem:[#allocation3 + $0x668] sm:$0xff] %vm1111_vm5, %v1970_v6  ;;  %v4429_v6 = vld [vmem:[%s12007_s6 + $0x10] sm:$0xff]  ;;  %6269 = vmatpush.msra.mxu2 %v4430_v3  ;;  %v9071_v46 = vld [vmem:[#allocation2 + $0x1c7] sm:$0xff] }
 0x422   :  { %2199 = vrot.lane.b32.xlu2 %v2064_v30, %s6301_s1  ;;  %2039 = vst.msk [vmem:[#allocation3 + $0x730] sm:$0xff] %vm1111_vm5, %v1975_v31  ;;  %v1985_v31 = vld [vmem:[#allocation2 + $0x3c7] sm:$0xff]  ;;  %4703 = vmatpush.msra.mxu1 %v4430_v3  ;;  %v9078_v30 = vld [vmem:[#allocation2 + $0x18f] sm:$0xff] }
 0x423   :  { %2037 = vst.msk [vmem:[#allocation3 + $0x6e0] sm:$0xff] %vm1111_vm5, %v1973_v50  ;;  %v4428_v50 = vld [vmem:[%s12007_s6 + $0x8] sm:$0xff]  ;;  %6270 = vmatpush.msra.mxu2 %v4429_v6 }
 0x424   :  { %2001 = vst.msk [vmem:[#allocation3 + $0x140] sm:$0xff] %vm1111_vm5, %v8942_v40  ;;  %4704 = vmatpush.msra.mxu1 %v4429_v6  ;;  %v2109_v3 = vld [vmem:[#allocation2 + $0x388] sm:$0xff] }
 0x425   :  { %2211 = vrot.lane.b32.xlu0 %v2070_v43, %s6301_s1  ;;  %2040 = vst.msk [vmem:[#allocation3 + $0x758] sm:$0xff] %vm1111_vm5, %v1976_v37  ;;  %v1988_v37 = vld [vmem:[#allocation2 + $0x3ef] sm:$0xff]  ;;  %6271 = vmatpush.msra.mxu2 %v4428_v50  ;;  %v4490_v43 = vld [vmem:[%s12007_s6 + $0x1f8] sm:$0xff] }
 0x426   :  { %2006 = vst.msk [vmem:[#allocation3 + $0x208] sm:$0xff] %vm1111_vm5, %v8953_v45  ;;  %5318 = vmatpush.msrb.mxu0 %v4490_v43  ;;  %4705 = vmatpush.msra.mxu1 %v4428_v50  ;;  %v9146_v6 = vld [vmem:[#allocation2 + $0xa9] sm:$0xff] }
 0x427   :  { %2003 = vst.msk [vmem:[#allocation3 + $0x190] sm:$0xff] %vm1111_vm5, %v8960_v34  ;;  %v4457_v50 = vld [vmem:[%s12007_s6 + $0xf0] sm:$0xff] }
 0x428   :  { %2011 = vst.msk [vmem:[#allocation3 + $0x2d0] sm:$0xff] %vm1111_vm5, %v8964_v20  ;;  %5319 = vmatpush.msrb.mxu0 %v4489_v18  ;;  %v2106_v43 = vld [vmem:[#allocation2 + $0x350] sm:$0xff]  ;;  %v4488_v18 = vld [vmem:[%s12007_s6 + $0x1e8] sm:$0xff] }
 0x429   :  { %2201 = vrot.lane.b32.xlu1 %v2065_v0, %s6301_s1  ;;  %2008 = vst.msk [vmem:[#allocation3 + $0x258] sm:$0xff] %vm1111_vm5, %v8968_v38  ;;  %v1962_v0 = vld [vmem:[#allocation2 + $0x24f] sm:$0xff] }
 0x42a   :  { %2203 = vrot.lane.b32.xlu2 %v2066_v28, %s6301_s1  ;;  %2005 = vst.msk [vmem:[#allocation3 + $0x1e0] sm:$0xff] %vm1111_vm5, %v8972_v53  ;;  %v4427_v28 = vld [vmem:[%s12007_s6] sm:$0xff]  ;;  %5320 = vmatpush.msrb.mxu0 %v4488_v18 }
 0x42b   :  { %2013 = vst.msk [vmem:[#allocation3 + $0x320] sm:$0xff] %vm1111_vm5, %v8976_v59  ;;  %6272 = vmatpush.msra.mxu2 %v4427_v28  ;;  %4706 = vmatpush.msra.mxu1 %v4427_v28  ;;  %v3467_v28 = vld [vmem:[#allocation2 + $0x47] sm:$0xff] }
 0x42c   :  { %2010 = vst.msk [vmem:[#allocation3 + $0x2a8] sm:$0xff] %vm1111_vm5, %v8981_v56 }
 0x42d   :  { %2215 = vrot.lane.b32.xlu0 %v2072_v54, %s6301_s1  ;;  %2007 = vst.msk [vmem:[#allocation3 + $0x230] sm:$0xff] %vm1111_vm5, %v8992_v10  ;;  %v9097_v54 = vld [vmem:[#allocation2 + $0x1af] sm:$0xff]  ;;  %4900 = vmatpush.msrb.mxu2 %v4458_v4 }
 0x42e   :  { %2015 = vst.msk [vmem:[#allocation3 + $0x370] sm:$0xff] %vm1111_vm5, %v8996_v17  ;;  %v2110_v4 = vld [vmem:[#allocation2 + $0x390] sm:$0xff] }
 0x42f   :  { %2012 = vst.msk [vmem:[#allocation3 + $0x2f8] sm:$0xff] %vm1111_vm5, %v9003_v19  ;;  %4901 = vmatpush.msrb.mxu2 %v4457_v50  ;;  %v2958_v50 = vld [vmem:[#allocation2 + $0x68] sm:$0xff] }
 0x430   :  { %2009 = vst.msk [vmem:[#allocation3 + $0x280] sm:$0xff] %vm1111_vm5, %v9008_v58 }
 0x431   :  { %2205 = vrot.lane.b32.xlu1 %v2067_v48, %s6301_s1  ;;  %2017 = vst.msk [vmem:[#allocation3 + $0x3c0] sm:$0xff] %vm1111_vm5, %v9015_v9  ;;  %v1991_v48 = vld [vmem:[#allocation2 + $0x427] sm:$0xff] }
 0x432   :  { %2207 = vrot.lane.b32.xlu2 %v2068_v44, %s6301_s1  ;;  %2014 = vst.msk [vmem:[#allocation3 + $0x348] sm:$0xff] %vm1111_vm5, %v9019_v27  ;;  %v9108_v44 = vld [vmem:[#allocation2 + $0x1cf] sm:$0xff] }
 0x433   :  { %2041 = vst.msk [vmem:[#allocation3 + $0x780] sm:$0xff] %vm1111_vm5, %v1977_v35  ;;  %v1986_v35 = vld [vmem:[#allocation2 + $0x3cf] sm:$0xff] }
 0x434   :  { %2019 = vst.msk [vmem:[#allocation3 + $0x410] sm:$0xff] %vm1111_vm5, %v9026_v39 }
 0x435   :  { %2219 = vrot.lane.b32.xlu0 %v2074_v52, %s6301_s1  ;;  %2044 = vst.msk [vmem:[#allocation3 + $0x7f8] sm:$0xff] %vm1111_vm5, %v1980_v49  ;;  %v1989_v49 = vld [vmem:[#allocation2 + $0x407] sm:$0xff]  ;;  %v9113_v52 = vld [vmem:[#allocation2 + $0x1ef] sm:$0xff] }
 0x436   :  { %2042 = vst.msk [vmem:[#allocation3 + $0x7a8] sm:$0xff] %vm1111_vm5, %v1978_v15  ;;  %v2104_v15 = vld [vmem:[#allocation2 + $0x330] sm:$0xff] }
 0x437   :  { %2047 = vst.msk [vmem:[#allocation3 + $0x870] sm:$0xff] %vm1111_vm5, %v1983_v57  ;;  %v1992_v57 = vld [vmem:[#allocation2 + $0x42f] sm:$0xff] }
 0x438   :  { %2045 = vst.msk [vmem:[#allocation3 + $0x820] sm:$0xff] %vm1111_vm5, %v1981_v29  ;;  %v1987_v29 = vld [vmem:[#allocation2 + $0x3e7] sm:$0xff] }
 0x439   :  { %2209 = vrot.lane.b32.xlu1 %v2069_v7, %s6301_s1  ;;  %2043 = vst.msk [vmem:[#allocation3 + $0x7d0] sm:$0xff] %vm1111_vm5, %v1979_v13  ;;  %v1990_v7 = vld [vmem:[#allocation2 + $0x40f] sm:$0xff] }
 0x43a   :  { %2275 = vrot.lane.b32.xlu2 %v2102_v14, %s6301_s1  ;;  %2048 = vst.msk [vmem:[#allocation3 + $0x898] sm:$0xff] %vm1111_vm5, %v1984_v26  ;;  %v9127_v26 = vld [vmem:[#allocation2 + $0x71] sm:$0xff]  ;;  %v2105_v14 = vld [vmem:[#allocation2 + $0x348] sm:$0xff] }
 0x43b   :  { %2025 = vst.msk [vmem:[#allocation3 + $0x500] sm:$0xff] %vm1111_vm5, %v1961_v63 }
 0x43c   :  { %2410 = vst.msk [vmem:[#allocation3 + $0x500] sm:$0xff] %vm2377_vm9, %v2250_v12  ;;  %v2075_v12 = vld [vmem:[#allocation2 + $0x128] sm:$0xff] }
 0x43d   :  { %2223 = vrot.lane.b32.xlu0 %v2076_v36, %s6301_s1  ;;  %1994 = vst.msk [vmem:[#allocation3 + $0x28] sm:$0xff] %vm1111_vm5, %v1930_v60  ;;  %v1929_v60 = vld [vmem:[#allocation2 + $0x7] sm:$0xff] }
 0x43e   :  { %2046 = vst.msk [vmem:[#allocation3 + $0x848] sm:$0xff] %vm1111_vm5, %v1982_v25  ;;  %v9143_v25 = vld [vmem:[#allocation2 + $0x51] sm:$0xff] }
 0x43f   :  { %2016 = vst.msk [vmem:[#allocation3 + $0x398] sm:$0xff] %vm1111_vm5, %v9060_v2 }
 0x440   :  { %2049 = vst.msk [vmem:[#allocation3 + $0x8c0] sm:$0xff] %vm1111_vm5, %v1985_v31  ;;  %v4474_v31 = vld [vmem:[%s12007_s6 + $0x178] sm:$0xff] }
 0x441   :  { %2213 = vrot.lane.b32.xlu1 %v2071_v42, %s6301_s1  ;;  %2021 = vst.msk [vmem:[#allocation3 + $0x460] sm:$0xff] %vm1111_vm5, %v9071_v46  ;;  %v9156_v42 = vld [vmem:[#allocation2 + $0x89] sm:$0xff]  ;;  %5109 = vmatpush.msrb.mxu3 %v4474_v31 }
 0x442   :  { %2277 = vrot.lane.b32.xlu2 %v2103_v16, %s6301_s1  ;;  %2018 = vst.msk [vmem:[#allocation3 + $0x3e8] sm:$0xff] %vm1111_vm5, %v9078_v30  ;;  %v9158_v16 = vld [vmem:[#allocation2 + $0xc9] sm:$0xff] }
 0x443   :  { %2026 = vst.msk [vmem:[#allocation3 + $0x528] sm:$0xff] %vm1111_vm5, %v1962_v0  ;;  %v4267_v33 = vld [vmem:[#allocation3 + $0x500] sm:$0xff]  ;;  %v2077_v0 = vld [vmem:[#allocation2 + $0x148] sm:$0xff]  ;;  %v2955_v31 = vld [vmem:[#allocation2 + $0x30] sm:$0xff] }
 0x444   :  { %12368 = vst [vmem:[#allocation77_spill] sm:$0xff] %v9094_v11  ;;  %4803 = vmatmul.f32.vlgmr.msra.gmra.mxu2 %v4267_v33 }
 0x445   :  { %2411 = vst.msk [vmem:[#allocation3 + $0x528] sm:$0xff] %vm2377_vm9, %v2252_v24  ;;  %2227 = vrot.lane.b32.xlu0 %v2078_v55, %s6301_s1  ;;  %v9166_v24 = vld [vmem:[#allocation2 + $0xb1] sm:$0xff]  ;;  %v9176_v55 = vld [vmem:[#allocation2 + $0x69] sm:$0xff] }
 0x446   :  { %12369 = vst [vmem:[#allocation68_spill] sm:$0xff] %v9097_v54 }
 0x447   :  { %2052 = vst.msk [vmem:[#allocation3 + $0x938] sm:$0xff] %vm1111_vm5, %v1988_v37  ;;  %v9162_v37 = vld [vmem:[#allocation2 + $0x31] sm:$0xff] }
 0x448   :  { %2023 = vst.msk [vmem:[#allocation3 + $0x4b0] sm:$0xff] %vm1111_vm5, %v9094_v11 }
 0x449   :  { %2020 = vst.msk [vmem:[#allocation3 + $0x438] sm:$0xff] %vm1111_vm5, %v9097_v54  ;;  %2217 = vrot.lane.b32.xlu1 %v2073_v51, %s6301_s1  ;;  %v3468_v51 = vld [vmem:[#allocation2 + $0x4f] sm:$0xff] }
 0x44a   :  { %12370 = vst [vmem:[#allocation78_spill] sm:$0xff] %v9108_v44  ;;  %2279 = vrot.lane.b32.xlu2 %v2104_v15, %s6301_s1  ;;  %v2107_v15 = vld [vmem:[#allocation2 + $0x368] sm:$0xff] }
 0x44b   :  { %2055 = vst.msk [vmem:[#allocation3 + $0x9b0] sm:$0xff] %vm1111_vm5, %v1991_v48  ;;  %v9180_v48 = vld [vmem:[#allocation2 + $0xd1] sm:$0xff] }
 0x44c   :  { %2050 = vst.msk [vmem:[#allocation3 + $0x8e8] sm:$0xff] %vm1111_vm5, %v1986_v35  ;;  %v4272_v13 = vld [vmem:[#allocation3 + $0x528] sm:$0xff]  ;;  %v4498_v35 = vld [vmem:[%s12007_s6 + $0x238] sm:$0xff] }
 0x44d   :  { %12371 = vst [vmem:[#allocation70_spill] sm:$0xff] %v9113_v52  ;;  %2287 = vrot.lane.b32.xlu0 %v2108_v62, %s6301_s1  ;;  %4806 = vmatmul.f32.gmra.mxu2 %v4272_v13  ;;  %v2079_v62 = vld [vmem:[#allocation2 + $0x168] sm:$0xff] }
 0x44e   :  { %2022 = vst.msk [vmem:[#allocation3 + $0x488] sm:$0xff] %vm1111_vm5, %v9108_v44  ;;  %5535 = vmatpush.msrb.mxu1 %v4498_v35  ;;  %v3469_v13 = vld [vmem:[#allocation2 + $0x67] sm:$0xff] }
 0x44f   :  { %2053 = vst.msk [vmem:[#allocation3 + $0x960] sm:$0xff] %vm1111_vm5, %v1989_v49  ;;  %v9188_v49 = vld [vmem:[#allocation2 + $0x91] sm:$0xff]  ;;  %v9361_v44 = vld [vmem:[#allocation2 + $0x108] sm:$0xff] }
 0x450   :  { %2024 = vst.msk [vmem:[#allocation3 + $0x4d8] sm:$0xff] %vm1111_vm5, %v9113_v52 }
 0x451   :  { %2056 = vst.msk [vmem:[#allocation3 + $0x9d8] sm:$0xff] %vm1111_vm5, %v1992_v57  ;;  %2281 = vrot.lane.b32.xlu1 %v2105_v14, %s6301_s1  ;;  %v9194_v57 = vld [vmem:[#allocation2 + $0xe9] sm:$0xff] }
 0x452   :  { %2510 = vst.msk [vmem:[#allocation3 + $0xa8] sm:$0xff] %vm1111_vm5, %v9118_v61  ;;  %2221 = vrot.lane.b32.xlu2 %v2075_v12, %s6301_s1  ;;  %v2258_v63 = vpop.permute.xlu0 %2257  ;;  %v2085_v12 = vld [vmem:[#allocation2 + $0x1c8] sm:$0xff] }
 0x453   :  { %2051 = vst.msk [vmem:[#allocation3 + $0x910] sm:$0xff] %vm1111_vm5, %v1987_v29 }
 0x454   :  { %2508 = vst.msk [vmem:[#allocation3 + $0x58] sm:$0xff] %vm1111_vm5, %v9124_v21  ;;  %v2256_v36 = vpop.permute.xlu2 %2255 }
 0x455   :  { %2513 = vst.msk [vmem:[#allocation3 + $0x120] sm:$0xff] %vm1111_vm5, %v9127_v26  ;;  %2289 = vrot.lane.b32.xlu0 %v2109_v3, %s6301_s1  ;;  %v4456_v3 = vld [vmem:[%s12007_s6 + $0xe8] sm:$0xff] }
 0x456   :  { %2054 = vst.msk [vmem:[#allocation3 + $0x988] sm:$0xff] %vm1111_vm5, %v1990_v7  ;;  %v2954_v7 = vld [vmem:[#allocation2 + $0x28] sm:$0xff]  ;;  %4902 = vmatpush.msrb.mxu2 %v4456_v3 }
 0x457   :  { %2414 = vst.msk [vmem:[#allocation3 + $0x5a0] sm:$0xff] %vm2377_vm9, %v2258_v63  ;;  %v2957_v63 = vld [vmem:[#allocation2 + $0x50] sm:$0xff] }
 0x458   :  { %1993 = vst.msk [vmem:[#allocation3] sm:$0xff] %vm1111_vm5, %v1929_v60  ;;  %v9210_v60 = vld [vmem:[#allocation2 + $0x109] sm:$0xff] }
 0x459   :  { %2413 = vst.msk [vmem:[#allocation3 + $0x578] sm:$0xff] %vm2377_vm9, %v2256_v36  ;;  %2283 = vrot.lane.b32.xlu1 %v2106_v43, %s6301_s1  ;;  %v4473_v36 = vld [vmem:[%s12007_s6 + $0x170] sm:$0xff] }
 0x45a   :  { %2511 = vst.msk [vmem:[#allocation3 + $0xd0] sm:$0xff] %vm1111_vm5, %v9143_v25  ;;  %2225 = vrot.lane.b32.xlu2 %v2077_v0, %s6301_s1  ;;  %v2192_v29 = vpop.permute.xlu0 %2191  ;;  %5110 = vmatpush.msrb.mxu3 %v4473_v36  ;;  %v2080_v43 = vld [vmem:[#allocation2 + $0x170] sm:$0xff]  ;;  %v9220_v0 = vld [vmem:[#allocation2 + $0x88] sm:$0xff] }
 0x45b   :  { %2516 = vst.msk [vmem:[#allocation3 + $0x198] sm:$0xff] %vm1111_vm5, %v9146_v6  ;;  %v9248_v36 = vld [vmem:[#allocation2 + $0xa8] sm:$0xff] }
 0x45c   :  { %2514 = vst.msk [vmem:[#allocation3 + $0x148] sm:$0xff] %vm1111_vm5, %v9156_v42  ;;  %v2188_v33 = vpop.permute.xlu2 %2187 }
 0x45d   :  { %2518 = vst.msk [vmem:[#allocation3 + $0x1e8] sm:$0xff] %vm1111_vm5, %v9158_v16  ;;  %2291 = vrot.lane.b32.xlu0 %v2110_v4, %s6301_s1  ;;  %v2956_v4 = vld [vmem:[#allocation2 + $0x48] sm:$0xff] }
 0x45e   :  { %2509 = vst.msk [vmem:[#allocation3 + $0x80] sm:$0xff] %vm1111_vm5, %v9162_v37 }
 0x45f   :  { %2517 = vst.msk [vmem:[#allocation3 + $0x1c0] sm:$0xff] %vm1111_vm5, %v9166_v24 }
 0x460   :  { %3531 = vst.msk [vmem:[#allocation3 + $0x18] sm:$0xff] %vm1111_vm5, %v3467_v28  ;;  %v2081_v28 = vld [vmem:[#allocation2 + $0x188] sm:$0xff] }
 0x461   :  { %2379 = vst.msk [vmem:[#allocation3 + $0x28] sm:$0xff] %vm2377_vm9, %v2188_v33  ;;  %2285 = vrot.lane.b32.xlu1 %v2107_v15, %s6301_s1  ;;  %v2959_v15 = vld [vmem:[#allocation2 + $0x70] sm:$0xff] }
 0x462   :  { %2512 = vst.msk [vmem:[#allocation3 + $0xf8] sm:$0xff] %vm1111_vm5, %v9176_v55  ;;  %2229 = vrot.lane.b32.xlu2 %v2079_v62, %s6301_s1  ;;  %v9233_v62 = vld [vmem:[#allocation2 + $0x90] sm:$0xff] }
 0x463   :  { %2519 = vst.msk [vmem:[#allocation3 + $0x210] sm:$0xff] %vm1111_vm5, %v9180_v48 }
 0x464   :  { %3532 = vst.msk [vmem:[#allocation3 + $0x40] sm:$0xff] %vm1111_vm5, %v3468_v51  ;;  %v2260_v14 = vpop.permute.xlu2 %2259  ;;  %v2087_v51 = vld [vmem:[#allocation2 + $0x1e8] sm:$0xff] }
 0x465   :  { %2515 = vst.msk [vmem:[#allocation3 + $0x170] sm:$0xff] %vm1111_vm5, %v9188_v49  ;;  %2241 = vrot.lane.b32.xlu0 %v2085_v12, %s6301_s1  ;;  %v2083_v12 = vld [vmem:[#allocation2 + $0x1a8] sm:$0xff] }
 0x466   :  { %2381 = vst.msk [vmem:[#allocation3 + $0x78] sm:$0xff] %vm2377_vm9, %v2192_v29 }
 0x467   :  { %2520 = vst.msk [vmem:[#allocation3 + $0x238] sm:$0xff] %vm1111_vm5, %v9194_v57 }
 0x468   :  { %3533 = vst.msk [vmem:[#allocation3 + $0x68] sm:$0xff] %vm1111_vm5, %v3469_v13  ;;  %v9236_v13 = vld [vmem:[#allocation2 + $0xf1] sm:$0xff] }
 0x469   :  { %2415 = vst.msk [vmem:[#allocation3 + $0x5c8] sm:$0xff] %vm2377_vm9, %v2260_v14  ;;  %2231 = vrot.lane.b32.xlu1 %v2080_v43, %s6301_s1  ;;  %v9240_v14 = vld [vmem:[#allocation2 + $0x111] sm:$0xff]  ;;  %v4472_v43 = vld [vmem:[%s12007_s6 + $0x168] sm:$0xff] }
 0x46a   :  { %3018 = vst.msk [vmem:[#allocation3 + $0x10] sm:$0xff] %vm1111_vm5, %v2954_v7  ;;  %2233 = vrot.lane.b32.xlu2 %v2081_v28, %s6301_s1  ;;  %v2082_v7 = vld [vmem:[#allocation2 + $0x190] sm:$0xff]  ;;  %v4487_v28 = vld [vmem:[%s12007_s6 + $0x1e0] sm:$0xff]  ;;  %5111 = vmatpush.msrb.mxu3 %v4472_v43 }
 0x46b   :  { %3021 = vst.msk [vmem:[#allocation3 + $0x88] sm:$0xff] %vm1111_vm5, %v2957_v63  ;;  %v2254_v33 = vpop.permute.xlu1 %2253  ;;  %5321 = vmatpush.msrb.mxu0 %v4487_v28  ;;  %v3476_v43 = vld [vmem:[#allocation2 + $0xcf] sm:$0xff] }
 0x46c   :  { %2522 = vst.msk [vmem:[#allocation3 + $0x288] sm:$0xff] %vm1111_vm5, %v9210_v60  ;;  %v2194_v35 = vpop.permute.xlu2 %2193  ;;  %v4497_v28 = vld [vmem:[%s12007_s6 + $0x230] sm:$0xff] }
 0x46d   :  { %3019 = vst.msk [vmem:[#allocation3 + $0x38] sm:$0xff] %vm1111_vm5, %v2955_v31  ;;  %2245 = vrot.lane.b32.xlu0 %v2087_v51, %s6301_s1  ;;  %v2114_v31 = vld [vmem:[#allocation2 + $0x3d0] sm:$0xff]  ;;  %5536 = vmatpush.msrb.mxu1 %v4497_v28 }
 0x46e   :  { %3022 = vst.msk [vmem:[#allocation3 + $0xb0] sm:$0xff] %vm1111_vm5, %v2958_v50  ;;  %v3470_v50 = vld [vmem:[#allocation2 + $0x6f] sm:$0xff] }
 0x46f   :  { %3024 = vst.msk [vmem:[#allocation3 + $0x100] sm:$0xff] %vm1111_vm5, %v9220_v0  ;;  %v2264_v29 = vpop.permute.xlu0 %2263  ;;  %v9266_v51 = vld [vmem:[#allocation2 + $0x131] sm:$0xff]  ;;  %v9296_v28 = vld [vmem:[#allocation2 + $0x149] sm:$0xff] }
 0x470   :  { %2412 = vst.msk [vmem:[#allocation3 + $0x550] sm:$0xff] %vm2377_vm9, %v2254_v33  ;;  %v4455_v33 = vld [vmem:[%s12007_s6 + $0xe0] sm:$0xff] }
 0x471   :  { %2382 = vst.msk [vmem:[#allocation3 + $0xa0] sm:$0xff] %vm2377_vm9, %v2194_v35  ;;  %2235 = vrot.lane.b32.xlu1 %v2082_v7, %s6301_s1  ;;  %4903 = vmatpush.msrb.mxu2 %v4455_v33  ;;  %v2111_v7 = vld [vmem:[#allocation2 + $0x3a8] sm:$0xff] }
 0x472   :  { %3020 = vst.msk [vmem:[#allocation3 + $0x60] sm:$0xff] %vm1111_vm5, %v2956_v4  ;;  %2237 = vrot.lane.b32.xlu2 %v2083_v12, %s6301_s1  ;;  %v3473_v4 = vld [vmem:[#allocation2 + $0xa7] sm:$0xff]  ;;  %v3472_v33 = vld [vmem:[#allocation2 + $0x8f] sm:$0xff] }
 0x473   :  { %3023 = vst.msk [vmem:[#allocation3 + $0xd8] sm:$0xff] %vm1111_vm5, %v2959_v15  ;;  %v2186_v63 = vpop.permute.xlu1 %2185  ;;  %v2084_v15 = vld [vmem:[#allocation2 + $0x1b0] sm:$0xff] }
 0x474   :  { %2417 = vst.msk [vmem:[#allocation3 + $0x618] sm:$0xff] %vm2377_vm9, %v2264_v29  ;;  %v2266_v3 = vpop.permute.xlu2 %2265  ;;  %v3471_v29 = vld [vmem:[#allocation2 + $0x87] sm:$0xff] }
 0x475   :  { %3025 = vst.msk [vmem:[#allocation3 + $0x128] sm:$0xff] %vm1111_vm5, %v9233_v62  ;;  %2299 = vrot.lane.b32.xlu0 %v2114_v31, %s6301_s1 }
 0x476   :  { %2521 = vst.msk [vmem:[#allocation3 + $0x260] sm:$0xff] %vm1111_vm5, %v9236_v13 }
 0x477   :  { %v4277_v18 = vld [vmem:[#allocation3 + $0x550] sm:$0xff]  ;;  %2523 = vst.msk [vmem:[#allocation3 + $0x2b0] sm:$0xff] %vm1111_vm5, %v9240_v14  ;;  %v2198_v35 = vpop.permute.xlu0 %2197 }
 0x478   :  { %2378 = vst.msk [vmem:[#allocation3] sm:$0xff] %vm2377_vm9, %v2186_v63  ;;  %4809 = vmatmul.f32.gmra.mxu2 %v4277_v18  ;;  %v4282_v18 = vld [vmem:[#allocation3 + $0x578] sm:$0xff] }
 0x479   :  { %2418 = vst.msk [vmem:[#allocation3 + $0x640] sm:$0xff] %vm2377_vm9, %v2266_v3  ;;  %2239 = vrot.lane.b32.xlu1 %v2084_v15, %s6301_s1  ;;  %v3474_v3 = vld [vmem:[#allocation2 + $0xaf] sm:$0xff] }
 0x47a   :  { %3026 = vst.msk [vmem:[#allocation3 + $0x150] sm:$0xff] %vm1111_vm5, %v9248_v36  ;;  %2293 = vrot.lane.b32.xlu2 %v2111_v7, %s6301_s1  ;;  %v2086_v15 = vld [vmem:[#allocation2 + $0x1d0] sm:$0xff] }
 0x47b   :  { %3534 = vst.msk [vmem:[#allocation3 + $0x90] sm:$0xff] %vm1111_vm5, %v3470_v50  ;;  %v2190_v12 = vpop.permute.xlu1 %2189  ;;  %v2117_v50 = vld [vmem:[#allocation2 + $0x408] sm:$0xff]  ;;  %v2112_v7 = vld [vmem:[#allocation2 + $0x3b0] sm:$0xff]  ;;  %v4302_v52 = vld [vmem:[#allocation3 + $0x618] sm:$0xff] }
 0x47c   :  { %2384 = vst.msk [vmem:[#allocation3 + $0xf0] sm:$0xff] %vm2377_vm9, %v2198_v35  ;;  %v2200_v31 = vpop.permute.xlu2 %2199  ;;  %v3475_v35 = vld [vmem:[#allocation2 + $0xc7] sm:$0xff] }
 0x47d   :  { %3537 = vst.msk [vmem:[#allocation3 + $0x108] sm:$0xff] %vm1111_vm5, %v3473_v4  ;;  %2305 = vrot.lane.b32.xlu0 %v2117_v50, %s6301_s1 }
 0x47e   :  { %2525 = vst.msk [vmem:[#allocation3 + $0x300] sm:$0xff] %vm1111_vm5, %v9266_v51 }
 0x47f   :  { %v4107_v63 = vld [vmem:[#allocation3] sm:$0xff]  ;;  %3535 = vst.msk [vmem:[#allocation3 + $0xb8] sm:$0xff] %vm1111_vm5, %v3471_v29  ;;  %v2270_v4 = vpop.permute.xlu0 %2269 }
 0x480   :  { %2380 = vst.msk [vmem:[#allocation3 + $0x50] sm:$0xff] %vm2377_vm9, %v2190_v12  ;;  %4707 = vmatmul.f32.vlgmr.msra.gmra.mxu1 %v4107_v63  ;;  %4812 = vmatmul.f32.gmra.mxu2 %v4282_v18  ;;  %v3477_v29 = vld [vmem:[#allocation2 + $0xe7] sm:$0xff] }
 0x481   :  { %2385 = vst.msk [vmem:[#allocation3 + $0x118] sm:$0xff] %vm2377_vm9, %v2200_v31  ;;  %2243 = vrot.lane.b32.xlu1 %v2086_v15, %s6301_s1  ;;  %v4112_v12 = vld [vmem:[#allocation3 + $0x28] sm:$0xff]  ;;  %v4471_v63 = vld [vmem:[%s12007_s6 + $0x160] sm:$0xff] }
 0x482   :  { %3538 = vst.msk [vmem:[#allocation3 + $0x130] sm:$0xff] %vm1111_vm5, %v3474_v3  ;;  %2295 = vrot.lane.b32.xlu2 %v2112_v7, %s6301_s1  ;;  %v4287_v3 = vld [vmem:[#allocation3 + $0x5a0] sm:$0xff]  ;;  %5112 = vmatpush.msrb.mxu3 %v4471_v63  ;;  %v9292_v31 = vld [vmem:[#allocation2 + $0x129] sm:$0xff] }
 0x483   :  { %3540 = vst.msk [vmem:[#allocation3 + $0x180] sm:$0xff] %vm1111_vm5, %v3476_v43  ;;  %v2262_v18 = vpop.permute.xlu1 %2261  ;;  %v2120_v43 = vld [vmem:[#allocation2 + $0x430] sm:$0xff]  ;;  %v2113_v63 = vld [vmem:[#allocation2 + $0x3c8] sm:$0xff] }
 0x484   :  { %2420 = vst.msk [vmem:[#allocation3 + $0x690] sm:$0xff] %vm2377_vm9, %v2270_v4  ;;  %v2204_v50 = vpop.permute.xlu2 %2203  ;;  %v4454_v4 = vld [vmem:[%s12007_s6 + $0xd8] sm:$0xff]  ;;  %v2088_v7 = vld [vmem:[#allocation2 + $0x1f0] sm:$0xff] }
 0x485   :  { %3536 = vst.msk [vmem:[#allocation3 + $0xe0] sm:$0xff] %vm1111_vm5, %v3472_v33  ;;  %2311 = vrot.lane.b32.xlu0 %v2120_v43, %s6301_s1  ;;  %v4486_v33 = vld [vmem:[%s12007_s6 + $0x1d8] sm:$0xff]  ;;  %4904 = vmatpush.msrb.mxu2 %v4454_v4  ;;  %v9320_v43 = vld [vmem:[#allocation2 + $0x169] sm:$0xff] }
 0x486   :  { %3539 = vst.msk [vmem:[#allocation3 + $0x158] sm:$0xff] %vm1111_vm5, %v3475_v35  ;;  %5322 = vmatpush.msrb.mxu0 %v4486_v33  ;;  %v3478_v35 = vld [vmem:[#allocation2 + $0xef] sm:$0xff] }
 0x487   :  { %3541 = vst.msk [vmem:[#allocation3 + $0x1a8] sm:$0xff] %vm1111_vm5, %v3477_v29  ;;  %v2272_v15 = vpop.permute.xlu0 %2271  ;;  %v9308_v29 = vld [vmem:[#allocation2 + $0xb0] sm:$0xff]  ;;  %v9325_v4 = vld [vmem:[#allocation2 + $0xc8] sm:$0xff] }
 0x488   :  { %2416 = vst.msk [vmem:[#allocation3 + $0x5f0] sm:$0xff] %vm2377_vm9, %v2262_v18  ;;  %4710 = vmatmul.f32.gmra.mxu1 %v4112_v12  ;;  %4815 = vmatmul.f32.gmra.mxu2 %v4287_v3  ;;  %v9313_v12 = vld [vmem:[#allocation2 + $0xe8] sm:$0xff]  ;;  %v4117_v3 = vld [vmem:[#allocation3 + $0x50] sm:$0xff] }
 0x489   :  { %2387 = vst.msk [vmem:[#allocation3 + $0x168] sm:$0xff] %vm2377_vm9, %v2204_v50  ;;  %2247 = vrot.lane.b32.xlu1 %v2088_v7, %s6301_s1  ;;  %v4292_v50 = vld [vmem:[#allocation3 + $0x5c8] sm:$0xff]  ;;  %v9332_v7 = vld [vmem:[#allocation2 + $0xf0] sm:$0xff] }
 0x48a   :  { %2524 = vst.msk [vmem:[#allocation3 + $0x2d8] sm:$0xff] %vm1111_vm5, %v9292_v31  ;;  %2297 = vrot.lane.b32.xlu2 %v2113_v63, %s6301_s1  ;;  %v2115_v63 = vld [vmem:[#allocation2 + $0x3e8] sm:$0xff] }
 0x48b   :  { %2526 = vst.msk [vmem:[#allocation3 + $0x328] sm:$0xff] %vm1111_vm5, %v9296_v28  ;;  %v2196_v18 = vpop.permute.xlu1 %2195 }
 0x48c   :  { %2421 = vst.msk [vmem:[#allocation3 + $0x6b8] sm:$0xff] %vm2377_vm9, %v2272_v15  ;;  %v2208_v33 = vpop.permute.xlu2 %2207 }
 0x48d   :  { %3542 = vst.msk [vmem:[#allocation3 + $0x1d0] sm:$0xff] %vm1111_vm5, %v3478_v35  ;;  %2702 = vrot.lane.b32.xlu0 %v8894_v22, %s6301_s1  ;;  %v3979_v35 = vld [vmem:[#allocation2 + $0x49] sm:$0xff]  ;;  %v4470_v22 = vld [vmem:[%s12007_s6 + $0x158] sm:$0xff] }
 0x48e   :  { %3027 = vst.msk [vmem:[#allocation3 + $0x178] sm:$0xff] %vm1111_vm5, %v9308_v29  ;;  %5113 = vmatpush.msrb.mxu3 %v4470_v22  ;;  %v4453_v22 = vld [vmem:[%s12007_s6 + $0xd0] sm:$0xff] }
 0x48f   :  { %12372 = vst [vmem:[#allocation72_spill] sm:$0xff] %v9320_v43  ;;  %v2274_v15 = vpop.permute.xlu0 %2273  ;;  %v4297_v11 = vld [vmem:[#allocation3 + $0x5f0] sm:$0xff]  ;;  %4905 = vmatpush.msrb.mxu2 %v4453_v22  ;;  %v4127_v22 = vld [vmem:[#allocation3 + $0xa0] sm:$0xff] }
 0x490   :  { %3030 = vst.msk [vmem:[#allocation3 + $0x1f0] sm:$0xff] %vm1111_vm5, %v9313_v12  ;;  %4713 = vmatmul.f32.gmra.mxu1 %v4117_v3  ;;  %4818 = vmatmul.f32.gmra.mxu2 %v4292_v50  ;;  %v2116_v3 = vld [vmem:[#allocation2 + $0x3f0] sm:$0xff] }
 0x491   :  { %2383 = vst.msk [vmem:[#allocation3 + $0xc8] sm:$0xff] %vm2377_vm9, %v2196_v18  ;;  %v9337_v18 = vld [vmem:[#allocation2 + $0x110] sm:$0xff]  ;;  %2301 = vrot.lane.b32.xlu1 %v2115_v63, %s6301_s1 }
 0x492   :  { %2389 = vst.msk [vmem:[#allocation3 + $0x1b8] sm:$0xff] %vm2377_vm9, %v2208_v33  ;;  %2303 = vrot.lane.b32.xlu2 %v2116_v3, %s6301_s1  ;;  %v4122_v33 = vld [vmem:[#allocation3 + $0x78] sm:$0xff]  ;;  %v4485_v3 = vld [vmem:[%s12007_s6 + $0x1d0] sm:$0xff] }
 0x493   :  { %2528 = vst.msk [vmem:[#allocation3 + $0x378] sm:$0xff] %vm1111_vm5, %v9320_v43  ;;  %v2268_v50 = vpop.permute.xlu1 %2267  ;;  %5323 = vmatpush.msrb.mxu0 %v4485_v3  ;;  %v4469_v43 = vld [vmem:[%s12007_s6 + $0x150] sm:$0xff] }
 0x494   :  { %3028 = vst.msk [vmem:[#allocation3 + $0x1a0] sm:$0xff] %vm1111_vm5, %v9325_v4  ;;  %v2276_v63 = vpop.permute.xlu2 %2275  ;;  %5114 = vmatpush.msrb.mxu3 %v4469_v43 }
 0x495   :  { %2422 = vst.msk [vmem:[#allocation3 + $0x6e0] sm:$0xff] %vm2377_vm9, %v2274_v15  ;;  %v9347_v15 = vld [vmem:[#allocation2 + $0xd0] sm:$0xff]  ;;  %2708 = vrot.lane.b32.xlu0 %v8904_v1, %s6301_s1 }
 0x496   :  { %4043 = vst.msk [vmem:[#allocation3 + $0x20] sm:$0xff] %vm1111_vm5, %v3979_v35  ;;  %v3980_v35 = vld [vmem:[#allocation2 + $0x51] sm:$0xff] }
 0x497   :  { %3031 = vst.msk [vmem:[#allocation3 + $0x218] sm:$0xff] %vm1111_vm5, %v9332_v7  ;;  %v2118_v1 = vld [vmem:[#allocation2 + $0x410] sm:$0xff] }
 0x498   :  { %3033 = vst.msk [vmem:[#allocation3 + $0x268] sm:$0xff] %vm1111_vm5, %v9337_v18  ;;  %4716 = vmatmul.f32.gmra.mxu1 %v4122_v33  ;;  %4821 = vmatmul.f32.gmra.mxu2 %v4297_v11  ;;  %v2212_v11 = vpop.permute.xlu0 %2211  ;;  %v9369_v33 = vld [vmem:[#allocation2 + $0x151] sm:$0xff] }
 0x499   :  { %2419 = vst.msk [vmem:[#allocation3 + $0x668] sm:$0xff] %vm2377_vm9, %v2268_v50  ;;  %v9365_v50 = vld [vmem:[#allocation2 + $0x128] sm:$0xff]  ;;  %2307 = vrot.lane.b32.xlu1 %v2118_v1, %s6301_s1  ;;  %v9380_v1 = vld [vmem:[#allocation2 + $0x171] sm:$0xff] }
 0x49a   :  { %2423 = vst.msk [vmem:[#allocation3 + $0x708] sm:$0xff] %vm2377_vm9, %v2276_v63  ;;  %v2119_v63 = vld [vmem:[#allocation2 + $0x428] sm:$0xff] }
 0x49b   :  { %3029 = vst.msk [vmem:[#allocation3 + $0x1c8] sm:$0xff] %vm1111_vm5, %v9347_v15  ;;  %2309 = vrot.lane.b32.xlu2 %v2119_v63, %s6301_s1  ;;  %v2202_v3 = vpop.permute.xlu1 %2201  ;;  %v9388_v63 = vld [vmem:[%s12007_s6 + $0x228] sm:$0xff] }
 0x49c   :  { %4044 = vst.msk [vmem:[#allocation3 + $0x48] sm:$0xff] %vm1111_vm5, %v3980_v35  ;;  %v3981_v35 = vld [vmem:[#allocation2 + $0x69] sm:$0xff]  ;;  %5537 = vmatpush.msrb.mxu1 %v9388_v63 }
 0x49d   :  { %2391 = vst.msk [vmem:[#allocation3 + $0x208] sm:$0xff] %vm2377_vm9, %v2212_v11  ;;  %v2278_v11 = vpop.permute.xlu2 %2277  ;;  %2714 = vrot.lane.b32.xlu0 %v8960_v34, %s6301_s1  ;;  %v3479_v34 = vld [vmem:[#allocation2 + $0x107] sm:$0xff] }
 0x49e   :  { %12373 = vst [vmem:[#allocation73_spill] sm:$0xff] %v9369_v33 }
 0x49f   :  { %3032 = vst.msk [vmem:[#allocation3 + $0x240] sm:$0xff] %vm1111_vm5, %v9361_v44 }
 0x4a0   :  { %3034 = vst.msk [vmem:[#allocation3 + $0x290] sm:$0xff] %vm1111_vm5, %v9365_v50  ;;  %4719 = vmatmul.f32.gmra.mxu1 %v4127_v22  ;;  %4824 = vmatmul.f32.gmra.mxu2 %v4302_v52  ;;  %v9394_v52 = vld [vmem:[#allocation2 + $0x130] sm:$0xff] }
 0x4a1   :  { %2527 = vst.msk [vmem:[#allocation3 + $0x350] sm:$0xff] %vm1111_vm5, %v9369_v33  ;;  %v3982_v22 = vld [vmem:[#allocation2 + $0x71] sm:$0xff]  ;;  %2698 = vrot.lane.b32.xlu1 %v8910_v41, %s6301_s1 }
 0x4a2   :  { %2386 = vst.msk [vmem:[#allocation3 + $0x140] sm:$0xff] %vm2377_vm9, %v2202_v3  ;;  %v2216_v3 = vpop.permute.xlu0 %2215  ;;  %v3482_v33 = vld [vmem:[#allocation2 + $0x12f] sm:$0xff] }
 0x4a3   :  { %2424 = vst.msk [vmem:[#allocation3 + $0x730] sm:$0xff] %vm2377_vm9, %v2278_v11  ;;  %2700 = vrot.lane.b32.xlu2 %v8900_v47, %s6301_s1  ;;  %v2206_v43 = vpop.permute.xlu1 %2205  ;;  %v4307_v11 = vld [vmem:[#allocation3 + $0x640] sm:$0xff]  ;;  %v9409_v41 = vld [vmem:[#allocation2 + $0x191] sm:$0xff]  ;;  %v4452_v47 = vld [vmem:[%s12007_s6 + $0xc8] sm:$0xff] }
 0x4a4   :  { %4045 = vst.msk [vmem:[#allocation3 + $0x70] sm:$0xff] %vm1111_vm5, %v3981_v35  ;;  %v4132_v35 = vld [vmem:[#allocation3 + $0xc8] sm:$0xff]  ;;  %4906 = vmatpush.msrb.mxu2 %v4452_v47 }
 0x4a5   :  { %2529 = vst.msk [vmem:[#allocation3 + $0x3a0] sm:$0xff] %vm1111_vm5, %v9380_v1  ;;  %v2280_v54 = vpop.permute.xlu2 %2279  ;;  %2720 = vrot.lane.b32.xlu0 %v8953_v45, %s6301_s1  ;;  %v3483_v45 = vld [vmem:[#allocation2 + $0x147] sm:$0xff] }
 0x4a6   :  { %2393 = vst.msk [vmem:[#allocation3 + $0x258] sm:$0xff] %vm2377_vm9, %v2216_v3  ;;  %v4484_v3 = vld [vmem:[%s12007_s6 + $0x1c8] sm:$0xff] }
 0x4a7   :  { %3035 = vst.msk [vmem:[#allocation3 + $0x2b8] sm:$0xff] %vm1111_vm5, %v9394_v52  ;;  %5324 = vmatpush.msrb.mxu0 %v4484_v3  ;;  %v3481_v3 = vld [vmem:[#allocation2 + $0x127] sm:$0xff] }
 0x4a8   :  { %3543 = vst.msk [vmem:[#allocation3 + $0x1f8] sm:$0xff] %vm1111_vm5, %v3479_v34  ;;  %4722 = vmatmul.f32.gmra.mxu1 %v4132_v35  ;;  %4827 = vmatmul.f32.gmra.mxu2 %v4307_v11  ;;  %v3480_v34 = vld [vmem:[#allocation2 + $0x10f] sm:$0xff]  ;;  %v3485_v11 = vld [vmem:[#allocation2 + $0x167] sm:$0xff] }
 0x4a9   :  { %4046 = vst.msk [vmem:[#allocation3 + $0x98] sm:$0xff] %vm1111_vm5, %v3982_v22  ;;  %2704 = vrot.lane.b32.xlu1 %v8930_v23, %s6301_s1  ;;  %v4312_v35 = vld [vmem:[#allocation3 + $0x668] sm:$0xff]  ;;  %v3984_v23 = vld [vmem:[#allocation2 + $0x91] sm:$0xff] }
 0x4aa   :  { %2388 = vst.msk [vmem:[#allocation3 + $0x190] sm:$0xff] %vm2377_vm9, %v2206_v43  ;;  %v2220_v22 = vpop.permute.xlu0 %2219  ;;  %v4137_v43 = vld [vmem:[#allocation3 + $0xf0] sm:$0xff] }
 0x4ab   :  { %2425 = vst.msk [vmem:[#allocation3 + $0x758] sm:$0xff] %vm2377_vm9, %v2280_v54  ;;  %v3983_v54 = vld [vmem:[#allocation2 + $0x89] sm:$0xff]  ;;  %2706 = vrot.lane.b32.xlu2 %v8917_v5, %s6301_s1 }
 0x4ac   :  { %3546 = vst.msk [vmem:[#allocation3 + $0x270] sm:$0xff] %vm1111_vm5, %v3482_v33  ;;  %v2210_v33 = vpop.permute.xlu1 %2209  ;;  %v4468_v5 = vld [vmem:[%s12007_s6 + $0x148] sm:$0xff] }
 0x4ad   :  { %2531 = vst.msk [vmem:[#allocation3 + $0x3f0] sm:$0xff] %vm1111_vm5, %v9409_v41  ;;  %v2222_v47 = vpop.permute.xlu2 %2221  ;;  %2724 = vrot.lane.b32.xlu0 %v8968_v38, %s6301_s1  ;;  %5115 = vmatpush.msrb.mxu3 %v4468_v5  ;;  %v3487_v5 = vld [vmem:[#allocation2 + $0x187] sm:$0xff] }
 0x4ae   :  { %2395 = vst.msk [vmem:[#allocation3 + $0x2a8] sm:$0xff] %vm2377_vm9, %v2220_v22  ;;  %v3484_v22 = vld [vmem:[#allocation2 + $0x14f] sm:$0xff] }
 0x4af   :  { %3544 = vst.msk [vmem:[#allocation3 + $0x220] sm:$0xff] %vm1111_vm5, %v3480_v34 }
 0x4b0   :  { %4047 = vst.msk [vmem:[#allocation3 + $0xc0] sm:$0xff] %vm1111_vm5, %v3983_v54  ;;  %4725 = vmatmul.f32.gmra.mxu1 %v4137_v43  ;;  %4830 = vmatmul.f32.gmra.mxu2 %v4312_v35  ;;  %v3486_v54 = vld [vmem:[#allocation2 + $0x16f] sm:$0xff] }
 0x4b1   :  { %3547 = vst.msk [vmem:[#allocation3 + $0x298] sm:$0xff] %vm1111_vm5, %v3483_v45  ;;  %2710 = vrot.lane.b32.xlu1 %v8942_v40, %s6301_s1  ;;  %v4142_v45 = vld [vmem:[#allocation3 + $0x118] sm:$0xff]  ;;  %v9447_v43 = vld [vmem:[#allocation2 + $0x189] sm:$0xff] }
 0x4b2   :  { %2390 = vst.msk [vmem:[#allocation3 + $0x1e0] sm:$0xff] %vm2377_vm9, %v2210_v33  ;;  %v2224_v34 = vpop.permute.xlu0 %2223  ;;  %v4317_v33 = vld [vmem:[#allocation3 + $0x690] sm:$0xff] }
 0x4b3   :  { %2396 = vst.msk [vmem:[#allocation3 + $0x2d0] sm:$0xff] %vm2377_vm9, %v2222_v47  ;;  %2712 = vrot.lane.b32.xlu2 %v8914_v8, %s6301_s1  ;;  %v3985_v40 = vld [vmem:[#allocation2 + $0xa9] sm:$0xff]  ;;  %v4451_v8 = vld [vmem:[%s12007_s6 + $0xc0] sm:$0xff] }
 0x4b4   :  { %3549 = vst.msk [vmem:[#allocation3 + $0x2e8] sm:$0xff] %vm1111_vm5, %v3485_v11  ;;  %v2214_v38 = vpop.permute.xlu1 %2213  ;;  %v4483_v11 = vld [vmem:[%s12007_s6 + $0x1c0] sm:$0xff]  ;;  %4907 = vmatpush.msrb.mxu2 %v4451_v8  ;;  %v9460_v47 = vld [vmem:[#allocation2 + $0x1a9] sm:$0xff] }
 0x4b5   :  { %3545 = vst.msk [vmem:[#allocation3 + $0x248] sm:$0xff] %vm1111_vm5, %v3481_v3  ;;  %v2226_v35 = vpop.permute.xlu2 %2225  ;;  %2726 = vrot.lane.b32.xlu0 %v9008_v58, %s6301_s1  ;;  %5325 = vmatpush.msrb.mxu0 %v4483_v11  ;;  %v9466_v58 = vld [vmem:[#allocation2 + $0x148] sm:$0xff] }
 0x4b6   :  { %2397 = vst.msk [vmem:[#allocation3 + $0x2f8] sm:$0xff] %vm2377_vm9, %v2224_v34  ;;  %v4147_v34 = vld [vmem:[#allocation3 + $0x140] sm:$0xff]  ;;  %v4152_v11 = vld [vmem:[#allocation3 + $0x168] sm:$0xff] }
 0x4b7   :  { %4048 = vst.msk [vmem:[#allocation3 + $0xe8] sm:$0xff] %vm1111_vm5, %v3984_v23 }
 0x4b8   :  { %3548 = vst.msk [vmem:[#allocation3 + $0x2c0] sm:$0xff] %vm1111_vm5, %v3484_v22  ;;  %4728 = vmatmul.f32.gmra.mxu1 %v4142_v45  ;;  %4833 = vmatmul.f32.gmra.mxu2 %v4317_v33  ;;  %v4322_v22 = vld [vmem:[#allocation3 + $0x6b8] sm:$0xff]  ;;  %v4467_v45 = vld [vmem:[%s12007_s6 + $0x140] sm:$0xff]  ;;  %v9492_v33 = vld [vmem:[#allocation2 + $0x1c9] sm:$0xff] }
 0x4b9   :  { %3550 = vst.msk [vmem:[#allocation3 + $0x310] sm:$0xff] %vm1111_vm5, %v3486_v54  ;;  %2716 = vrot.lane.b32.xlu1 %v8924_v32, %s6301_s1  ;;  %v3986_v54 = vld [vmem:[#allocation2 + $0xb1] sm:$0xff]  ;;  %5116 = vmatpush.msrb.mxu3 %v4467_v45 }
 0x4ba   :  { %2392 = vst.msk [vmem:[#allocation3 + $0x230] sm:$0xff] %vm2377_vm9, %v2214_v38  ;;  %v2228_v3 = vpop.permute.xlu0 %2227  ;;  %v9478_v32 = vld [vmem:[#allocation2 + $0x170] sm:$0xff]  ;;  %v4482_v45 = vld [vmem:[%s12007_s6 + $0x1b8] sm:$0xff] }
 0x4bb   :  { %2398 = vst.msk [vmem:[#allocation3 + $0x320] sm:$0xff] %vm2377_vm9, %v2226_v35  ;;  %2718 = vrot.lane.b32.xlu2 %v8972_v53, %s6301_s1  ;;  %v9486_v53 = vld [vmem:[%s12007_s6 + $0x220] sm:$0xff]  ;;  %5326 = vmatpush.msrb.mxu0 %v4482_v45 }
 0x4bc   :  { %2530 = vst.msk [vmem:[#allocation3 + $0x3c8] sm:$0xff] %vm1111_vm5, %v9447_v43  ;;  %v2218_v23 = vpop.permute.xlu1 %2217  ;;  %5538 = vmatpush.msrb.mxu1 %v9486_v53 }
 0x4bd   :  { %4049 = vst.msk [vmem:[#allocation3 + $0x110] sm:$0xff] %vm1111_vm5, %v3985_v40  ;;  %v2230_v38 = vpop.permute.xlu2 %2229  ;;  %3216 = vrot.lane.b32.xlu0 %v9143_v25, %s6301_s1  ;;  %v9495_v40 = vld [vmem:[#allocation2 + $0x150] sm:$0xff] }
 0x4be   :  { %2399 = vst.msk [vmem:[#allocation3 + $0x348] sm:$0xff] %vm2377_vm9, %v2228_v3  ;;  %v3987_v25 = vld [vmem:[#allocation2 + $0xc9] sm:$0xff]  ;;  %v4327_v3 = vld [vmem:[#allocation3 + $0x6e0] sm:$0xff] }
 0x4bf   :  { %2532 = vst.msk [vmem:[#allocation3 + $0x418] sm:$0xff] %vm1111_vm5, %v9460_v47 }
 0x4c0   :  { %3551 = vst.msk [vmem:[#allocation3 + $0x338] sm:$0xff] %vm1111_vm5, %v3487_v5  ;;  %4731 = vmatmul.f32.gmra.mxu1 %v4147_v34  ;;  %4836 = vmatmul.f32.gmra.mxu2 %v4322_v22  ;;  %v9508_v5 = vld [vmem:[#allocation2 + $0x188] sm:$0xff] }
 0x4c1   :  { %3036 = vst.msk [vmem:[#allocation3 + $0x2e0] sm:$0xff] %vm1111_vm5, %v9466_v58  ;;  %3210 = vrot.lane.b32.xlu1 %v9124_v21, %s6301_s1  ;;  %v9512_v21 = vld [vmem:[#allocation2 + $0x1a8] sm:$0xff] }
 0x4c2   :  { %2394 = vst.msk [vmem:[#allocation3 + $0x280] sm:$0xff] %vm2377_vm9, %v2218_v23  ;;  %v2288_v35 = vpop.permute.xlu0 %2287  ;;  %v9520_v34 = vld [vmem:[#allocation2 + $0x168] sm:$0xff] }
 0x4c3   :  { %2400 = vst.msk [vmem:[#allocation3 + $0x370] sm:$0xff] %vm2377_vm9, %v2230_v38  ;;  %2722 = vrot.lane.b32.xlu2 %v8992_v10, %s6301_s1  ;;  %v4450_v10 = vld [vmem:[%s12007_s6 + $0xb8] sm:$0xff]  ;;  %v9527_v38 = vld [vmem:[#allocation2 + $0x190] sm:$0xff] }
 0x4c4   :  { %4050 = vst.msk [vmem:[#allocation3 + $0x138] sm:$0xff] %vm1111_vm5, %v3986_v54  ;;  %v2282_v8 = vpop.permute.xlu1 %2281  ;;  %4908 = vmatpush.msrb.mxu2 %v4450_v10  ;;  %v3988_v54 = vld [vmem:[#allocation2 + $0xd1] sm:$0xff]  ;;  %v3989_v10 = vld [vmem:[#allocation2 + $0xe9] sm:$0xff] }
 0x4c5   :  { %3039 = vst.msk [vmem:[#allocation3 + $0x358] sm:$0xff] %vm1111_vm5, %v9478_v32  ;;  %v2234_v23 = vpop.permute.xlu2 %2233  ;;  %3218 = vrot.lane.b32.xlu0 %v9176_v55, %s6301_s1  ;;  %v6293_v55 = vld [vmem:[#allocation2 + $0x48] sm:$0xff] }
 0x4c6   :  { %2429 = vst.msk [vmem:[#allocation3 + $0x7f8] sm:$0xff] %vm2377_vm9, %v2288_v35 }
 0x4c7   :  { %2534 = vst.msk [vmem:[#allocation3 + $0x468] sm:$0xff] %vm1111_vm5, %v9492_v33 }
 0x4c8   :  { %3037 = vst.msk [vmem:[#allocation3 + $0x308] sm:$0xff] %vm1111_vm5, %v9495_v40  ;;  %4734 = vmatmul.f32.gmra.mxu1 %v4152_v11  ;;  %4839 = vmatmul.f32.gmra.mxu2 %v4327_v3  ;;  %v9538_v11 = vld [vmem:[#allocation2 + $0x1b0] sm:$0xff] }
 0x4c9   :  { %4051 = vst.msk [vmem:[#allocation3 + $0x160] sm:$0xff] %vm1111_vm5, %v3987_v25  ;;  %3212 = vrot.lane.b32.xlu1 %v9162_v37, %s6301_s1  ;;  %v4157_v25 = vld [vmem:[#allocation3 + $0x190] sm:$0xff] }
 0x4ca   :  { %2426 = vst.msk [vmem:[#allocation3 + $0x780] sm:$0xff] %vm2377_vm9, %v2282_v8  ;;  %v2290_v22 = vpop.permute.xlu0 %2289  ;;  %v4332_v8 = vld [vmem:[#allocation3 + $0x708] sm:$0xff]  ;;  %v9543_v3 = vld [vmem:[#allocation2 + $0x1b1] sm:$0xff] }
 0x4cb   :  { %2402 = vst.msk [vmem:[#allocation3 + $0x3c0] sm:$0xff] %vm2377_vm9, %v2234_v23  ;;  %3723 = vrot.lane.b32.xlu2 %v6293_v55, %s6301_s1  ;;  %v4466_v23 = vld [vmem:[%s12007_s6 + $0x138] sm:$0xff]  ;;  %v9558_v55 = vld [vmem:[#allocation2 + $0x1c8] sm:$0xff] }
 0x4cc   :  { %3040 = vst.msk [vmem:[#allocation3 + $0x380] sm:$0xff] %vm1111_vm5, %v9508_v5  ;;  %v2284_v35 = vpop.permute.xlu1 %2283  ;;  %5117 = vmatpush.msrb.mxu3 %v4466_v23  ;;  %v3491_v23 = vld [vmem:[#allocation2 + $0x1c7] sm:$0xff] }
 0x4cd   :  { %3042 = vst.msk [vmem:[#allocation3 + $0x3d0] sm:$0xff] %vm1111_vm5, %v9512_v21  ;;  %v2238_v37 = vpop.permute.xlu2 %2237  ;;  %3220 = vrot.lane.b32.xlu0 %v9127_v26, %s6301_s1  ;;  %v6294_v26 = vld [vmem:[#allocation2 + $0x50] sm:$0xff] }
 0x4ce   :  { %2430 = vst.msk [vmem:[#allocation3 + $0x820] sm:$0xff] %vm2377_vm9, %v2290_v22 }
 0x4cf   :  { %3038 = vst.msk [vmem:[#allocation3 + $0x330] sm:$0xff] %vm1111_vm5, %v9520_v34 }
 0x4d0   :  { %4052 = vst.msk [vmem:[#allocation3 + $0x188] sm:$0xff] %vm1111_vm5, %v3988_v54  ;;  %4737 = vmatmul.f32.gmra.mxu1 %v4157_v25  ;;  %4842 = vmatmul.f32.gmra.mxu2 %v4332_v8  ;;  %v9553_v54 = vld [vmem:[#allocation2 + $0x1d1] sm:$0xff] }
 0x4d1   :  { %3041 = vst.msk [vmem:[#allocation3 + $0x3a8] sm:$0xff] %vm1111_vm5, %v9527_v38  ;;  %3214 = vrot.lane.b32.xlu1 %v9118_v61, %s6301_s1  ;;  %v4337_v25 = vld [vmem:[#allocation3 + $0x730] sm:$0xff] }
 0x4d2   :  { %2427 = vst.msk [vmem:[#allocation3 + $0x7a8] sm:$0xff] %vm2377_vm9, %v2284_v35  ;;  %v2292_v22 = vpop.permute.xlu0 %2291  ;;  %v4162_v35 = vld [vmem:[#allocation3 + $0x1b8] sm:$0xff]  ;;  %v3488_v8 = vld [vmem:[#allocation2 + $0x18f] sm:$0xff] }
 0x4d3   :  { %2404 = vst.msk [vmem:[#allocation3 + $0x410] sm:$0xff] %vm2377_vm9, %v2238_v37  ;;  %3725 = vrot.lane.b32.xlu2 %v6294_v26, %s6301_s1  ;;  %v3990_v61 = vld [vmem:[#allocation2 + $0xf1] sm:$0xff] }
 0x4d4   :  { %3043 = vst.msk [vmem:[#allocation3 + $0x3f8] sm:$0xff] %vm1111_vm5, %v9538_v11  ;;  %v2286_v45 = vpop.permute.xlu1 %2285  ;;  %v9576_v26 = vld [vmem:[#allocation2 + $0x1f1] sm:$0xff] }
 0x4d5   :  { %2533 = vst.msk [vmem:[#allocation3 + $0x440] sm:$0xff] %vm1111_vm5, %v9543_v3  ;;  %v2294_v37 = vpop.permute.xlu2 %2293  ;;  %2732 = vrot.lane.b32.xlu0 %v9003_v19, %s6301_s1  ;;  %v6295_v19 = vld [vmem:[#allocation2 + $0x68] sm:$0xff] }
 0x4d6   :  { %2431 = vst.msk [vmem:[#allocation3 + $0x848] sm:$0xff] %vm2377_vm9, %v2292_v22  ;;  %v4449_v22 = vld [vmem:[%s12007_s6 + $0xb0] sm:$0xff] }
 0x4d7   :  { %4053 = vst.msk [vmem:[#allocation3 + $0x1b0] sm:$0xff] %vm1111_vm5, %v3989_v10  ;;  %4909 = vmatpush.msrb.mxu2 %v4449_v22  ;;  %v4465_v22 = vld [vmem:[%s12007_s6 + $0x130] sm:$0xff] }
 0x4d8   :  { %2535 = vst.msk [vmem:[#allocation3 + $0x490] sm:$0xff] %vm1111_vm5, %v9553_v54  ;;  %4740 = vmatmul.f32.gmra.mxu1 %v4162_v35  ;;  %4845 = vmatmul.f32.gmra.mxu2 %v4337_v25  ;;  %v2443_v35 = vld [vmem:[#allocation2 + $0x11] sm:$0xff] }
 0x4d9   :  { %3044 = vst.msk [vmem:[#allocation3 + $0x420] sm:$0xff] %vm1111_vm5, %v9558_v55  ;;  %2728 = vrot.lane.b32.xlu1 %v8981_v56, %s6301_s1  ;;  %v3489_v56 = vld [vmem:[#allocation2 + $0x1a7] sm:$0xff]  ;;  %5118 = vmatpush.msrb.mxu3 %v4465_v22 }
 0x4da   :  { %2428 = vst.msk [vmem:[#allocation3 + $0x7d0] sm:$0xff] %vm2377_vm9, %v2286_v45  ;;  %v2242_v10 = vpop.permute.xlu0 %2241  ;;  %v4481_v45 = vld [vmem:[%s12007_s6 + $0x1b0] sm:$0xff] }
 0x4db   :  { %2432 = vst.msk [vmem:[#allocation3 + $0x870] sm:$0xff] %vm2377_vm9, %v2294_v37  ;;  %3727 = vrot.lane.b32.xlu2 %v6295_v19, %s6301_s1  ;;  %v4342_v37 = vld [vmem:[#allocation3 + $0x758] sm:$0xff]  ;;  %5327 = vmatpush.msrb.mxu0 %v4481_v45  ;;  %v3492_v19 = vld [vmem:[#allocation2 + $0x1cf] sm:$0xff] }
 0x4dc   :  { %3552 = vst.msk [vmem:[#allocation3 + $0x360] sm:$0xff] %vm1111_vm5, %v3488_v8  ;;  %v2232_v25 = vpop.permute.xlu1 %2231  ;;  %v4167_v8 = vld [vmem:[#allocation3 + $0x1e0] sm:$0xff] }
 0x4dd   :  { %4054 = vst.msk [vmem:[#allocation3 + $0x1d8] sm:$0xff] %vm1111_vm5, %v3990_v61  ;;  %v2296_v61 = vpop.permute.xlu2 %2295  ;;  %3735 = vrot.lane.b32.xlu0 %v9248_v36, %s6301_s1  ;;  %v3490_v36 = vld [vmem:[#allocation2 + $0x1af] sm:$0xff] }
 0x4de   :  { %2406 = vst.msk [vmem:[#allocation3 + $0x460] sm:$0xff] %vm2377_vm9, %v2242_v10  ;;  %v9597_v10 = vld [vmem:[%s12007_s6 + $0x218] sm:$0xff] }
 0x4df   :  { %3555 = vst.msk [vmem:[#allocation3 + $0x3d8] sm:$0xff] %vm1111_vm5, %v3491_v23  ;;  %v3991_v23 = vld [vmem:[#allocation2 + $0x109] sm:$0xff]  ;;  %5539 = vmatpush.msrb.mxu1 %v9597_v10 }
 0x4e0   :  { %2537 = vst.msk [vmem:[#allocation3 + $0x4e0] sm:$0xff] %vm1111_vm5, %v9576_v26  ;;  %4743 = vmatmul.f32.gmra.mxu1 %v4167_v8  ;;  %4848 = vmatmul.f32.gmra.mxu2 %v4342_v37  ;;  %v4172_v37 = vld [vmem:[#allocation3 + $0x208] sm:$0xff] }
 0x4e1   :  { %2507 = vst.msk [vmem:[#allocation3 + $0x30] sm:$0xff] %vm1111_vm5, %v2443_v35  ;;  %v3494_v35 = vld [vmem:[#allocation2 + $0x1ef] sm:$0xff] }
 0x4e2   :  { %2401 = vst.msk [vmem:[#allocation3 + $0x398] sm:$0xff] %vm2377_vm9, %v2232_v25  ;;  %v2246_v45 = vpop.permute.xlu0 %2245  ;;  %v6296_v25 = vld [vmem:[#allocation2 + $0x70] sm:$0xff] }
 0x4e3   :  { %2433 = vst.msk [vmem:[#allocation3 + $0x898] sm:$0xff] %vm2377_vm9, %v2296_v61  ;;  %3729 = vrot.lane.b32.xlu1 %v6296_v25, %s6301_s1  ;;  %2730 = vrot.lane.b32.xlu2 %v8964_v20, %s6301_s1  ;;  %v9611_v61 = vpop.f32.mrf.mxu2  ;;  %v9618_v20 = vld [vmem:[#allocation2 + $0x207] sm:$0xff] }
 0x4e4   :  { %3553 = vst.msk [vmem:[#allocation3 + $0x388] sm:$0xff] %vm1111_vm5, %v3489_v56  ;;  %v2236_v8 = vpop.permute.xlu1 %2235  ;;  %v4347_v56 = vld [vmem:[#allocation3 + $0x780] sm:$0xff]  ;;  %v3993_v25 = vld [vmem:[#allocation2 + $0x129] sm:$0xff] }
 0x4e5   :  { %4055 = vst.msk [vmem:[#allocation3 + $0x200] sm:$0xff] %vm1111_vm5, %v3991_v23  ;;  %v3992_v23 = vld [vmem:[#allocation2 + $0x111] sm:$0xff]  ;;  %v2298_v22 = vpop.permute.xlu2 %2297  ;;  %3737 = vrot.lane.b32.xlu0 %v9308_v29, %s6301_s1 }
 0x4e6   :  { %2408 = vst.msk [vmem:[#allocation3 + $0x4b0] sm:$0xff] %vm2377_vm9, %v2246_v45  ;;  %v3493_v45 = vld [vmem:[#allocation2 + $0x1e7] sm:$0xff] }
 0x4e7   :  { %3556 = vst.msk [vmem:[#allocation3 + $0x400] sm:$0xff] %vm1111_vm5, %v3492_v19 }
 0x4e8   :  { %3558 = vst.msk [vmem:[#allocation3 + $0x450] sm:$0xff] %vm1111_vm5, %v3494_v35  ;;  %4746 = vmatmul.f32.gmra.mxu1 %v4172_v37  ;;  %4851 = vmatmul.f32.gmra.mxu2 %v4347_v56  ;;  %v4448_v35 = vld [vmem:[%s12007_s6 + $0xa8] sm:$0xff] }
 0x4e9   :  { %12374 = vst [vmem:[#allocation83_spill] sm:$0xff] %v9611_v61  ;;  %4910 = vmatpush.msrb.mxu2 %v4448_v35  ;;  %v4352_v37 = vld [vmem:[#allocation3 + $0x7a8] sm:$0xff] }
 0x4ea   :  { %3554 = vst.msk [vmem:[#allocation3 + $0x3b0] sm:$0xff] %vm1111_vm5, %v3490_v36  ;;  %v2300_v19 = vpop.permute.xlu0 %2299  ;;  %v9624_v36 = vld [vmem:[#allocation2 + $0x1e9] sm:$0xff] }
 0x4eb   :  { %2403 = vst.msk [vmem:[#allocation3 + $0x3e8] sm:$0xff] %vm2377_vm9, %v2236_v8  ;;  %3731 = vrot.lane.b32.xlu1 %v9220_v0, %s6301_s1  ;;  %3222 = vrot.lane.b32.xlu2 %v9156_v42, %s6301_s1  ;;  %v4177_v8 = vld [vmem:[#allocation3 + $0x230] sm:$0xff]  ;;  %v4464_v42 = vld [vmem:[%s12007_s6 + $0x128] sm:$0xff] }
 0x4ec   :  { %2434 = vst.msk [vmem:[#allocation3 + $0x8c0] sm:$0xff] %vm2377_vm9, %v2298_v22  ;;  %v2240_v29 = vpop.permute.xlu1 %2239  ;;  %v9636_v56 = vld [vmem:[#allocation2 + $0x20f] sm:$0xff]  ;;  %v9641_v22 = vpop.f32.mrf.mxu2  ;;  %5119 = vmatpush.msrb.mxu3 %v4464_v42  ;;  %v9840_v61 = vld [vmem:[#allocation2 + $0x2e7] sm:$0xff] }
 0x4ed   :  { %4056 = vst.msk [vmem:[#allocation3 + $0x228] sm:$0xff] %vm1111_vm5, %v3992_v23  ;;  %v2304_v23 = vpop.permute.xlu2 %2303  ;;  %v2981_v0 = vld [vmem:[#allocation2 + $0x1d0] sm:$0xff]  ;;  %3739 = vrot.lane.b32.xlu0 %v9325_v4, %s6301_s1 }
 0x4ee   :  { %3557 = vst.msk [vmem:[#allocation3 + $0x428] sm:$0xff] %vm1111_vm5, %v3493_v45  ;;  %v4480_v45 = vld [vmem:[%s12007_s6 + $0x1a8] sm:$0xff] }
 0x4ef   :  { %2435 = vst.msk [vmem:[#allocation3 + $0x8e8] sm:$0xff] %vm2377_vm9, %v2300_v19  ;;  %5328 = vmatpush.msrb.mxu0 %v4480_v45  ;;  %v3994_v19 = vld [vmem:[#allocation2 + $0x131] sm:$0xff]  ;;  %v9657_v4 = vld [vmem:[#allocation2 + $0x269] sm:$0xff] }
 0x4f0   :  { %3559 = vst.msk [vmem:[#allocation3 + $0x478] sm:$0xff] %vm1111_vm5, %v9618_v20  ;;  %4749 = vmatmul.f32.gmra.mxu1 %v4177_v8  ;;  %4854 = vmatmul.f32.gmra.mxu2 %v4352_v37  ;;  %v4182_v8 = vld [vmem:[#allocation3 + $0x258] sm:$0xff]  ;;  %v4357_v37 = vld [vmem:[#allocation3 + $0x7d0] sm:$0xff] }
 0x4f1   :  { %2536 = vst.msk [vmem:[#allocation3 + $0x4b8] sm:$0xff] %vm1111_vm5, %v9624_v36 }
 0x4f2   :  { %4057 = vst.msk [vmem:[#allocation3 + $0x250] sm:$0xff] %vm1111_vm5, %v3993_v25  ;;  %v2306_v35 = vpop.permute.xlu0 %2305  ;;  %v9653_v25 = vld [vmem:[#allocation2 + $0x208] sm:$0xff] }
 0x4f3   :  { %2405 = vst.msk [vmem:[#allocation3 + $0x438] sm:$0xff] %vm2377_vm9, %v2240_v29  ;;  %3733 = vrot.lane.b32.xlu1 %v9233_v62, %s6301_s1  ;;  %3224 = vrot.lane.b32.xlu2 %v9188_v49, %s6301_s1  ;;  %v2982_v62 = vld [vmem:[#allocation2 + $0x1e8] sm:$0xff] }
 0x4f4   :  { %2437 = vst.msk [vmem:[#allocation3 + $0x938] sm:$0xff] %vm2377_vm9, %v2304_v23  ;;  %v2244_v29 = vpop.permute.xlu1 %2243  ;;  %v2442_v49 = vld [vmem:[#allocation2 + $0x9] sm:$0xff] }
 0x4f5   :  { %12375 = vst [vmem:[#allocation74_spill] sm:$0xff] %v9641_v22  ;;  %v2310_v23 = vpop.permute.xlu2 %2309  ;;  %2738 = vrot.lane.b32.xlu0 %v8996_v17, %s6301_s1 }
 0x4f6   :  { %3560 = vst.msk [vmem:[#allocation3 + $0x4a0] sm:$0xff] %vm1111_vm5, %v9636_v56 }
 0x4f7   :  { %3045 = vst.msk [vmem:[#allocation3 + $0x448] sm:$0xff] %vm1111_vm5, %v2981_v0  ;;  %v3995_v0 = vld [vmem:[#allocation2 + $0x149] sm:$0xff] }
 0x4f8   :  { %2438 = vst.msk [vmem:[#allocation3 + $0x960] sm:$0xff] %vm2377_vm9, %v2306_v35  ;;  %4752 = vmatmul.f32.gmra.mxu1 %v4182_v8  ;;  %4857 = vmatmul.f32.gmra.mxu2 %v4357_v37  ;;  %v9678_v35 = vld [vmem:[#allocation2 + $0x210] sm:$0xff]  ;;  %v4463_v8 = vld [vmem:[%s12007_s6 + $0x120] sm:$0xff] }
 0x4f9   :  { %4058 = vst.msk [vmem:[#allocation3 + $0x278] sm:$0xff] %vm1111_vm5, %v3994_v19  ;;  %v4447_v19 = vld [vmem:[%s12007_s6 + $0xa0] sm:$0xff]  ;;  %5120 = vmatpush.msrb.mxu3 %v4463_v8 }
 0x4fa   :  { %3048 = vst.msk [vmem:[#allocation3 + $0x4c0] sm:$0xff] %vm1111_vm5, %v9653_v25  ;;  %v2312_v45 = vpop.permute.xlu0 %2311  ;;  %4911 = vmatpush.msrb.mxu2 %v4447_v19  ;;  %v2986_v19 = vld [vmem:[#allocation2 + $0x268] sm:$0xff] }
 0x4fb   :  { %2540 = vst.msk [vmem:[#allocation3 + $0x558] sm:$0xff] %vm1111_vm5, %v9657_v4  ;;  %v9673_v42 = vpop.f32.mrf.mxu2  ;;  %2734 = vrot.lane.b32.xlu1 %v8976_v59, %s6301_s1  ;;  %3226 = vrot.lane.b32.xlu2 %v9146_v6, %s6301_s1  ;;  %v3996_v6 = vld [vmem:[#allocation2 + $0x151] sm:$0xff] }
 0x4fc   :  { %2407 = vst.msk [vmem:[#allocation3 + $0x488] sm:$0xff] %vm2377_vm9, %v2244_v29  ;;  %v2987_v29 = vld [vmem:[#allocation2 + $0x270] sm:$0xff]  ;;  %v2248_v37 = vpop.permute.xlu1 %2247 }
 0x4fd   :  { %2440 = vst.msk [vmem:[#allocation3 + $0x9b0] sm:$0xff] %vm2377_vm9, %v2310_v23  ;;  %v9682_v17 = vpop.f32.mrf.mxu1  ;;  %v4187_v23 = vld [vmem:[#allocation3 + $0x280] sm:$0xff]  ;;  %v2701_v59 = vpop.permute.xlu2 %2700  ;;  %3234 = vrot.lane.b32.xlu0 %v9194_v57, %s6301_s1  ;;  %v9714_v57 = vld [vmem:[#allocation2 + $0x288] sm:$0xff] }
 0x4fe   :  { %2506 = vst.msk [vmem:[#allocation3 + $0x8] sm:$0xff] %vm1111_vm5, %v2442_v49  ;;  %v9694_v49 = vld [vmem:[#allocation2 + $0x1f0] sm:$0xff] }
 0x4ff   :  { %12376 = vst [vmem:[#allocation84_spill] sm:$0xff] %v9673_v42  ;;  %v9782_v42 = vld [vmem:[#allocation2 + $0x2c7] sm:$0xff] }
 0x500   :  { %3046 = vst.msk [vmem:[#allocation3 + $0x470] sm:$0xff] %vm1111_vm5, %v2982_v62  ;;  %v4362_v62 = vld [vmem:[#allocation3 + $0x7f8] sm:$0xff]  ;;  %4755 = vmatmul.f32.gmra.mxu1 %v4187_v23 }
 0x501   :  { %2441 = vst.msk [vmem:[#allocation3 + $0x9d8] sm:$0xff] %vm2377_vm9, %v2312_v45  ;;  %4860 = vmatmul.f32.gmra.mxu2 %v4362_v62  ;;  %v4479_v45 = vld [vmem:[%s12007_s6 + $0x1a0] sm:$0xff] }
 0x502   :  { %4059 = vst.msk [vmem:[#allocation3 + $0x2a0] sm:$0xff] %vm1111_vm5, %v3995_v0  ;;  %v9704_v0 = vld [vmem:[%s12007_s6 + $0x210] sm:$0xff]  ;;  %5329 = vmatpush.msrb.mxu0 %v4479_v45  ;;  %v2703_v8 = vpop.permute.xlu0 %2702  ;;  %v4367_v45 = vld [vmem:[#allocation3 + $0x820] sm:$0xff] }
 0x503   :  { %3049 = vst.msk [vmem:[#allocation3 + $0x4e8] sm:$0xff] %vm1111_vm5, %v9678_v35  ;;  %5540 = vmatpush.msrb.mxu1 %v9704_v0  ;;  %3228 = vrot.lane.b32.xlu1 %v9166_v24, %s6301_s1  ;;  %v9731_v24 = vld [vmem:[#allocation2 + $0x290] sm:$0xff] }
 0x504   :  { %3051 = vst.msk [vmem:[#allocation3 + $0x538] sm:$0xff] %vm1111_vm5, %v2987_v29  ;;  %v9712_v29 = vpop.f32.mrf.mxu2  ;;  %2736 = vrot.lane.b32.xlu2 %v9019_v27, %s6301_s1  ;;  %v2302_v62 = vpop.permute.xlu1 %2301  ;;  %v4478_v27 = vld [vmem:[%s12007_s6 + $0x198] sm:$0xff] }
 0x505   :  { %2409 = vst.msk [vmem:[#allocation3 + $0x4d8] sm:$0xff] %vm2377_vm9, %v2248_v37  ;;  %v3997_v37 = vld [vmem:[#allocation2 + $0x169] sm:$0xff]  ;;  %v9718_v23 = vpop.f32.mrf.mxu1  ;;  %3236 = vrot.lane.b32.xlu0 %v9236_v13, %s6301_s1  ;;  %5330 = vmatpush.msrb.mxu0 %v4478_v27  ;;  %v4446_v13 = vld [vmem:[%s12007_s6 + $0x98] sm:$0xff] }
 0x506   :  { %2891 = vst.msk [vmem:[#allocation3 + $0x30] sm:$0xff] %vm2377_vm9, %v2701_v59  ;;  %v4192_v59 = vld [vmem:[#allocation3 + $0x2a8] sm:$0xff]  ;;  %4912 = vmatpush.msrb.mxu2 %v4446_v13  ;;  %v9757_v27 = vld [vmem:[#allocation2 + $0x291] sm:$0xff] }
 0x507   :  { %3047 = vst.msk [vmem:[#allocation3 + $0x498] sm:$0xff] %vm1111_vm5, %v9694_v49  ;;  %v4372_v13 = vld [vmem:[#allocation3 + $0x848] sm:$0xff] }
 0x508   :  { %12377 = vst [vmem:[#allocation75_spill] sm:$0xff] %v9712_v29  ;;  %4758 = vmatmul.f32.gmra.mxu1 %v4192_v59  ;;  %v4462_v29 = vld [vmem:[%s12007_s6 + $0x118] sm:$0xff] }
 0x509   :  { %4060 = vst.msk [vmem:[#allocation3 + $0x2c8] sm:$0xff] %vm1111_vm5, %v3996_v6  ;;  %v9727_v6 = vld [vmem:[#allocation2 + $0x271] sm:$0xff]  ;;  %4863 = vmatmul.f32.gmra.mxu2 %v4367_v45  ;;  %5121 = vmatpush.msrb.mxu3 %v4462_v29 }
 0x50a   :  { %2892 = vst.msk [vmem:[#allocation3 + $0x58] sm:$0xff] %vm2377_vm9, %v2703_v8  ;;  %v2707_v8 = vpop.permute.xlu2 %2706  ;;  %v2709_v59 = vpop.permute.xlu0 %2708  ;;  %v4477_v45 = vld [vmem:[%s12007_s6 + $0x190] sm:$0xff] }
 0x50b   :  { %3050 = vst.msk [vmem:[#allocation3 + $0x510] sm:$0xff] %vm1111_vm5, %v2986_v19  ;;  %v9739_v19 = vld [vmem:[#allocation2 + $0x28f] sm:$0xff]  ;;  %5331 = vmatpush.msrb.mxu0 %v4477_v45  ;;  %3230 = vrot.lane.b32.xlu1 %v9158_v16, %s6301_s1 }
 0x50c   :  { %3052 = vst.msk [vmem:[#allocation3 + $0x560] sm:$0xff] %vm1111_vm5, %v9714_v57  ;;  %3741 = vrot.lane.b32.xlu2 %v9347_v15, %s6301_s1  ;;  %v2308_v16 = vpop.permute.xlu1 %2307  ;;  %v4197_v45 = vld [vmem:[#allocation3 + $0x2d0] sm:$0xff] }
 0x50d   :  { %4061 = vst.msk [vmem:[#allocation3 + $0x2f0] sm:$0xff] %vm1111_vm5, %v3997_v37  ;;  %v3998_v37 = vld [vmem:[#allocation2 + $0x171] sm:$0xff]  ;;  %v3999_v15 = vld [vmem:[#allocation2 + $0x189] sm:$0xff]  ;;  %3238 = vrot.lane.b32.xlu0 %v9210_v60, %s6301_s1 }
 0x50e   :  { %2436 = vst.msk [vmem:[#allocation3 + $0x910] sm:$0xff] %vm2377_vm9, %v2302_v62  ;;  %v9743_v62 = vpop.f32.mrf.mxu2 }
 0x50f   :  { %2894 = vst.msk [vmem:[#allocation3 + $0xa8] sm:$0xff] %vm2377_vm9, %v2707_v8  ;;  %v4476_v8 = vld [vmem:[%s12007_s6 + $0x188] sm:$0xff] }
 0x510   :  { %2541 = vst.msk [vmem:[#allocation3 + $0x580] sm:$0xff] %vm1111_vm5, %v9727_v6  ;;  %5332 = vmatpush.msrb.mxu0 %v4476_v8  ;;  %4761 = vmatmul.f32.gmra.mxu1 %v4197_v45  ;;  %v9777_v8 = vld [vmem:[#allocation2 + $0x2a7] sm:$0xff]  ;;  %v4000_v45 = vld [vmem:[#allocation2 + $0x191] sm:$0xff] }
 0x511   :  { %12378 = vst [vmem:[#allocation85_spill] sm:$0xff] %v9743_v62  ;;  %v9761_v62 = vpop.f32.mrf.mxu1  ;;  %4866 = vmatmul.f32.gmra.mxu2 %v4372_v13 }
 0x512   :  { %3053 = vst.msk [vmem:[#allocation3 + $0x588] sm:$0xff] %vm1111_vm5, %v9731_v24  ;;  %v2715_v22 = vpop.permute.xlu0 %2714 }
 0x513   :  { %2895 = vst.msk [vmem:[#allocation3 + $0xd0] sm:$0xff] %vm2377_vm9, %v2709_v59  ;;  %v4475_v59 = vld [vmem:[%s12007_s6 + $0x180] sm:$0xff]  ;;  %3232 = vrot.lane.b32.xlu1 %v9180_v48, %s6301_s1  ;;  %v9803_v48 = vld [vmem:[#allocation2 + $0x2cf] sm:$0xff] }
 0x514   :  { %4062 = vst.msk [vmem:[#allocation3 + $0x318] sm:$0xff] %vm1111_vm5, %v3998_v37  ;;  %v2713_v37 = vpop.permute.xlu2 %2712  ;;  %5333 = vmatpush.msrb.mxu0 %v4475_v59  ;;  %3743 = vrot.lane.b32.xlu2 %v9313_v12, %s6301_s1  ;;  %v2699_v60 = vpop.permute.xlu1 %2698  ;;  %v4202_v59 = vld [vmem:[#allocation3 + $0x2f8] sm:$0xff]  ;;  %v9810_v12 = vld [vmem:[#allocation2 + $0x289] sm:$0xff] }
 0x515   :  { %3564 = vst.msk [vmem:[#allocation3 + $0x540] sm:$0xff] %vm1111_vm5, %v9739_v19  ;;  %2744 = vrot.lane.b32.xlu0 %v9078_v30, %s6301_s1  ;;  %v4460_v30 = vld [vmem:[%s12007_s6 + $0x108] sm:$0xff] }
 0x516   :  { %2543 = vst.msk [vmem:[#allocation3 + $0x5d0] sm:$0xff] %vm1111_vm5, %v9757_v27  ;;  %v9785_v29 = vpop.f32.mrf.mxu2 }
 0x517   :  { %2439 = vst.msk [vmem:[#allocation3 + $0x988] sm:$0xff] %vm2377_vm9, %v2308_v16  ;;  %v3499_v16 = vld [vmem:[#allocation2 + $0x287] sm:$0xff] }
 0x518   :  { %2897 = vst.msk [vmem:[#allocation3 + $0x120] sm:$0xff] %vm2377_vm9, %v2713_v37  ;;  %v9799_v37 = vld [vmem:[#allocation2 + $0x2af] sm:$0xff]  ;;  %4764 = vmatmul.f32.gmra.mxu1 %v4202_v59 }
 0x519   :  { %4063 = vst.msk [vmem:[#allocation3 + $0x340] sm:$0xff] %vm1111_vm5, %v3999_v15  ;;  %v9792_v13 = vpop.f32.mrf.mxu1  ;;  %v4377_v15 = vld [vmem:[#allocation3 + $0x870] sm:$0xff] }
 0x51a   :  { %12379 = vst [vmem:[#allocation76_spill] sm:$0xff] %v9785_v29  ;;  %4869 = vmatmul.f32.gmra.mxu2 %v4377_v15  ;;  %v4445_v59 = vld [vmem:[%s12007_s6 + $0x90] sm:$0xff] }
 0x51b   :  { %3565 = vst.msk [vmem:[#allocation3 + $0x568] sm:$0xff] %vm1111_vm5, %v9777_v8  ;;  %4913 = vmatpush.msrb.mxu2 %v4445_v59  ;;  %v9826_v15 = vld [vmem:[#allocation2 + $0x2a9] sm:$0xff]  ;;  %2740 = vrot.lane.b32.xlu1 %v9060_v2, %s6301_s1  ;;  %v4207_v59 = vld [vmem:[#allocation3 + $0x320] sm:$0xff] }
 0x51c   :  { %2898 = vst.msk [vmem:[#allocation3 + $0x148] sm:$0xff] %vm2377_vm9, %v2715_v22  ;;  %v2719_v22 = vpop.permute.xlu2 %2718  ;;  %3745 = vrot.lane.b32.xlu2 %v9332_v7, %s6301_s1  ;;  %v2990_v7 = vld [vmem:[#allocation2 + $0x2a8] sm:$0xff] }
 0x51d   :  { %3567 = vst.msk [vmem:[#allocation3 + $0x5b8] sm:$0xff] %vm1111_vm5, %v9782_v42  ;;  %3753 = vrot.lane.b32.xlu0 %v9394_v52, %s6301_s1  ;;  %v6298_v52 = vld [vmem:[%s12007_s6 + $0x230] sm:$0xff] }
 0x51e   :  { %3563 = vst.msk [vmem:[#allocation3 + $0x518] sm:$0xff] %vm1111_vm5, %v3499_v16  ;;  %v4001_v16 = vld [vmem:[#allocation2 + $0x1a9] sm:$0xff]  ;;  %v9812_v29 = vpop.f32.mrf.mxu2 }
 0x51f   :  { %4064 = vst.msk [vmem:[#allocation3 + $0x368] sm:$0xff] %vm1111_vm5, %v4000_v45  ;;  %v2721_v45 = vpop.permute.xlu0 %2720 }
 0x520   :  { %2890 = vst.msk [vmem:[#allocation3 + $0x8] sm:$0xff] %vm2377_vm9, %v2699_v60  ;;  %v4461_v60 = vld [vmem:[%s12007_s6 + $0x110] sm:$0xff]  ;;  %4767 = vmatmul.f32.gmra.mxu1 %v4207_v59 }
 0x521   :  { %2900 = vst.msk [vmem:[#allocation3 + $0x198] sm:$0xff] %vm2377_vm9, %v2719_v22  ;;  %5122 = vmatpush.msrb.mxu3 %v4461_v60  ;;  %v9830_v22 = vpop.f32.mrf.mxu1  ;;  %v2705_v60 = vpop.permute.xlu1 %2704 }
 0x522   :  { %3566 = vst.msk [vmem:[#allocation3 + $0x590] sm:$0xff] %vm1111_vm5, %v9799_v37 }
 0x523   :  { %12380 = vst [vmem:[#allocation86_spill] sm:$0xff] %v9812_v29  ;;  %5123 = vmatpush.msrb.mxu3 %v4460_v30  ;;  %v4382_v29 = vld [vmem:[#allocation3 + $0x898] sm:$0xff]  ;;  %3747 = vrot.lane.b32.xlu1 %v9361_v44, %s6301_s1 }
 0x524   :  { %3568 = vst.msk [vmem:[#allocation3 + $0x5e0] sm:$0xff] %vm1111_vm5, %v9803_v48  ;;  %v2723_v2 = vpop.permute.xlu2 %2722  ;;  %4872 = vmatmul.f32.gmra.mxu2 %v4382_v29  ;;  %v6297_v30 = vld [vmem:[%s12007_s6 + $0x238] sm:$0xff]  ;;  %2742 = vrot.lane.b32.xlu2 %v9015_v9, %s6301_s1  ;;  %v9884_v9 = vld [vmem:[#allocation2 + $0x2e8] sm:$0xff] }
 0x525   :  { %2901 = vst.msk [vmem:[#allocation3 + $0x1c0] sm:$0xff] %vm2377_vm9, %v2721_v45  ;;  %v4459_v45 = vld [vmem:[%s12007_s6 + $0x100] sm:$0xff]  ;;  %v4002_v29 = vld [vmem:[#allocation2 + $0x1b1] sm:$0xff]  ;;  %3755 = vrot.lane.b32.xlu0 %v9466_v58, %s6301_s1  ;;  %v2992_v58 = vld [vmem:[#allocation2 + $0x2c8] sm:$0xff] }
 0x526   :  { %2542 = vst.msk [vmem:[#allocation3 + $0x5a8] sm:$0xff] %vm1111_vm5, %v9810_v12  ;;  %5124 = vmatpush.msrb.mxu3 %v4459_v45  ;;  %v9865_v45 = vld [vmem:[#allocation2 + $0x2ef] sm:$0xff] }
 0x527   :  { %4065 = vst.msk [vmem:[#allocation3 + $0x390] sm:$0xff] %vm1111_vm5, %v4001_v16  ;;  %v4492_v16 = vld [vmem:[%s12007_s6 + $0x208] sm:$0xff]  ;;  %v2725_v59 = vpop.permute.xlu0 %2724 }
 0x528   :  { %2544 = vst.msk [vmem:[#allocation3 + $0x5f8] sm:$0xff] %vm1111_vm5, %v9826_v15  ;;  %5541 = vmatpush.msrb.mxu1 %v4492_v16  ;;  %6273 = vmatpush.msra.mxu3 %v6297_v30 }
 0x529   :  { %2893 = vst.msk [vmem:[#allocation3 + $0x80] sm:$0xff] %vm2377_vm9, %v2705_v60  ;;  %v9856_v60 = vpop.f32.mrf.mxu2  ;;  %v9869_v30 = vpop.f32.mrf.mxu1 }
 0x52a   :  { %2902 = vst.msk [vmem:[#allocation3 + $0x1e8] sm:$0xff] %vm2377_vm9, %v2723_v2  ;;  %v9858_v2 = vld [vmem:[#allocation2 + $0x2d0] sm:$0xff]  ;;  %6274 = vmatpush.msra.mxu3 %v6298_v52  ;;  %v4387_v52 = vld [vmem:[#allocation3 + $0x8c0] sm:$0xff] }
 0x52b   :  { %3569 = vst.msk [vmem:[#allocation3 + $0x608] sm:$0xff] %vm1111_vm5, %v9840_v61  ;;  %3749 = vrot.lane.b32.xlu1 %v9337_v18, %s6301_s1 }
 0x52c   :  { %12381 = vst [vmem:[#allocation87_spill] sm:$0xff] %v9856_v60  ;;  %6275 = vmatpush.msra.mxu3 %v9388_v63  ;;  %v2991_v60 = vld [vmem:[#allocation2 + $0x2b0] sm:$0xff]  ;;  %v3724_v44 = vpop.permute.xlu2 %3723  ;;  %4875 = vmatmul.f32.gmra.mxu2 %v4387_v52 }
 0x52d   :  { %3054 = vst.msk [vmem:[#allocation3 + $0x5b0] sm:$0xff] %vm1111_vm5, %v2990_v7  ;;  %v2711_v7 = vpop.permute.xlu1 %2710  ;;  %3240 = vrot.lane.b32.xlu2 %v9240_v14, %s6301_s1  ;;  %v4004_v52 = vld [vmem:[#allocation2 + $0x1d1] sm:$0xff]  ;;  %3757 = vrot.lane.b32.xlu0 %v9495_v40, %s6301_s1 }
 0x52e   :  { %2903 = vst.msk [vmem:[#allocation3 + $0x210] sm:$0xff] %vm2377_vm9, %v2725_v59  ;;  %v4212_v59 = vld [vmem:[#allocation3 + $0x348] sm:$0xff]  ;;  %6276 = vmatpush.msra.mxu3 %v9486_v53 }
 0x52f   :  { %12382 = vst [vmem:[#allocation88_spill] sm:$0xff] %v9869_v30  ;;  %4770 = vmatmul.f32.gmra.mxu1 %v4212_v59  ;;  %v2727_v30 = vpop.permute.xlu0 %2726  ;;  %v9892_v59 = vld [vmem:[#allocation2 + $0x307] sm:$0xff]  ;;  %v9915_v14 = vld [vmem:[#allocation2 + $0x30f] sm:$0xff] }
 0x530   :  { %4066 = vst.msk [vmem:[#allocation3 + $0x3b8] sm:$0xff] %vm1111_vm5, %v4002_v29  ;;  %v4003_v29 = vld [vmem:[#allocation2 + $0x1c9] sm:$0xff]  ;;  %6277 = vmatpush.msra.mxu3 %v9597_v10 }
 0x531   :  { %3057 = vst.msk [vmem:[#allocation3 + $0x628] sm:$0xff] %vm1111_vm5, %v9858_v2  ;;  %v9887_v63 = vpop.f32.mrf.mxu2  ;;  %v9899_v53 = vpop.f32.mrf.mxu1 }
 0x532   :  { %3570 = vst.msk [vmem:[#allocation3 + $0x630] sm:$0xff] %vm1111_vm5, %v9865_v45  ;;  %6278 = vmatpush.msra.mxu3 %v9704_v0  ;;  %v9910_v0 = vld [vmem:[#allocation2 + $0x2f0] sm:$0xff] }
 0x533   :  { %2896 = vst.msk [vmem:[#allocation3 + $0xf8] sm:$0xff] %vm2377_vm9, %v2711_v7  ;;  %v4444_v7 = vld [vmem:[%s12007_s6 + $0x88] sm:$0xff]  ;;  %3751 = vrot.lane.b32.xlu1 %v9365_v50, %s6301_s1 }
 0x534   :  { %3915 = vst.msk [vmem:[#allocation3 + $0x18] sm:$0xff] %vm2377_vm9, %v3724_v44  ;;  %4914 = vmatpush.msrb.mxu2 %v4444_v7  ;;  %6279 = vmatpush.msra.mxu3 %v4492_v16  ;;  %v3726_v18 = vpop.permute.xlu2 %3725  ;;  %v9922_v7 = vld [vmem:[#allocation2 + $0x2b1] sm:$0xff] }
 0x535   :  { %3055 = vst.msk [vmem:[#allocation3 + $0x5d8] sm:$0xff] %vm1111_vm5, %v2991_v60  ;;  %v2717_v10 = vpop.permute.xlu1 %2716  ;;  %v4217_v60 = vld [vmem:[#allocation3 + $0x370] sm:$0xff]  ;;  %3242 = vrot.lane.b32.xlu2 %v9292_v31, %s6301_s1  ;;  %2750 = vrot.lane.b32.xlu0 %v9071_v46, %s6301_s1 }
 0x536   :  { %12383 = vst [vmem:[#allocation89_spill] sm:$0xff] %v9887_v63  ;;  %v9946_v31 = vld [vmem:[#allocation2 + $0x2c9] sm:$0xff]  ;;  %v9972_v63 = vld [vmem:[#allocation2 + $0x2d1] sm:$0xff] }
 0x537   :  { %4067 = vst.msk [vmem:[#allocation3 + $0x3e0] sm:$0xff] %vm1111_vm5, %v4003_v29  ;;  %4773 = vmatmul.f32.gmra.mxu1 %v4217_v60  ;;  %v3217_v16 = vpop.permute.xlu0 %3216  ;;  %v4222_v60 = vld [vmem:[#allocation3 + $0x398] sm:$0xff]  ;;  %v9956_v46 = vld [vmem:[#allocation2 + $0x310] sm:$0xff] }
 0x538   :  { %2904 = vst.msk [vmem:[#allocation3 + $0x238] sm:$0xff] %vm2377_vm9, %v2727_v30  ;;  %v4392_v30 = vld [vmem:[#allocation3 + $0x8e8] sm:$0xff] }
 0x539   :  { %12384 = vst [vmem:[#allocation69_spill] sm:$0xff] %v9899_v53  ;;  %4878 = vmatmul.f32.gmra.mxu2 %v4392_v30  ;;  %v9918_v29 = vpop.f32.mrf.mxu2  ;;  %v4397_v30 = vld [vmem:[#allocation3 + $0x910] sm:$0xff] }
 0x53a   :  { %3058 = vst.msk [vmem:[#allocation3 + $0x650] sm:$0xff] %vm1111_vm5, %v9884_v9  ;;  %v10014_v53 = vld [vmem:[#allocation2 + $0x34f] sm:$0xff] }
 0x53b   :  { %3571 = vst.msk [vmem:[#allocation3 + $0x658] sm:$0xff] %vm1111_vm5, %v9892_v59  ;;  %v4110_v44 = vld [vmem:[#allocation3 + $0x18] sm:$0xff]  ;;  %2746 = vrot.lane.b32.xlu1 %v9026_v39, %s6301_s1 }
 0x53c   :  { %3056 = vst.msk [vmem:[#allocation3 + $0x600] sm:$0xff] %vm1111_vm5, %v2992_v58  ;;  %5334 = vmatmul.f32.vlgmr.msrb.gmra.mxu0 %v4110_v44  ;;  %v4005_v58 = vld [vmem:[#allocation2 + $0x1e9] sm:$0xff] }
 0x53d   :  { %2899 = vst.msk [vmem:[#allocation3 + $0x170] sm:$0xff] %vm2377_vm9, %v2717_v10  ;;  %v9927_v10 = vpop.f32.mrf.mxu1  ;;  %v3211_v40 = vpop.permute.xlu1 %3210  ;;  %v9939_v44 = vld [vmem:[#allocation2 + $0x327] sm:$0xff]  ;;  %3244 = vrot.lane.b32.xlu2 %v9266_v51, %s6301_s1  ;;  %3252 = vrot.lane.b32.xlu0 %v9380_v1, %s6301_s1 }
 0x53e   :  { %3916 = vst.msk [vmem:[#allocation3 + $0x40] sm:$0xff] %vm2377_vm9, %v3726_v18  ;;  %v3728_v18 = vpop.permute.xlu2 %3727  ;;  %v4491_v51 = vld [vmem:[%s12007_s6 + $0x200] sm:$0xff] }
 0x53f   :  { %4068 = vst.msk [vmem:[#allocation3 + $0x408] sm:$0xff] %vm1111_vm5, %v4004_v52  ;;  %v9935_v52 = vld [vmem:[#allocation2 + $0x308] sm:$0xff]  ;;  %4776 = vmatmul.f32.gmra.mxu1 %v4222_v60  ;;  %v4006_v60 = vld [vmem:[#allocation2 + $0x1f1] sm:$0xff]  ;;  %6280 = vmatpush.msra.mxu3 %v4491_v51 }
 0x540   :  { %12385 = vst [vmem:[#allocation79_spill] sm:$0xff] %v9918_v29  ;;  %5542 = vmatpush.msrb.mxu1 %v4491_v51 }
 0x541   :  { %3059 = vst.msk [vmem:[#allocation3 + $0x678] sm:$0xff] %vm1111_vm5, %v9910_v0  ;;  %4881 = vmatmul.f32.gmra.mxu2 %v4397_v30 }
 0x542   :  { %3405 = vst.msk [vmem:[#allocation3 + $0x88] sm:$0xff] %vm2377_vm9, %v3217_v16  ;;  %v9948_v16 = vpop.f32.mrf.mxu2 }
 0x543   :  { %12386 = vst [vmem:[#allocation90_spill] sm:$0xff] %v9927_v10  ;;  %3246 = vrot.lane.b32.xlu1 %v9296_v28, %s6301_s1 }
 0x544   :  { %3572 = vst.msk [vmem:[#allocation3 + $0x680] sm:$0xff] %vm1111_vm5, %v9915_v14 }
 0x545   :  { %2545 = vst.msk [vmem:[#allocation3 + $0x620] sm:$0xff] %vm1111_vm5, %v9922_v7  ;;  %v4115_v50 = vld [vmem:[#allocation3 + $0x40] sm:$0xff]  ;;  %v9960_v30 = vpop.f32.mrf.mxu1  ;;  %3254 = vrot.lane.b32.xlu0 %v9447_v43, %s6301_s1 }
 0x546   :  { %4069 = vst.msk [vmem:[#allocation3 + $0x430] sm:$0xff] %vm1111_vm5, %v4005_v58  ;;  %5337 = vmatmul.f32.gmra.mxu0 %v4115_v50  ;;  %v3219_v58 = vpop.permute.xlu0 %3218  ;;  %v3213_v50 = vpop.permute.xlu1 %3212 }
 0x547   :  { %3402 = vst.msk [vmem:[#allocation3 + $0x10] sm:$0xff] %vm2377_vm9, %v3211_v40  ;;  %v4443_v40 = vld [vmem:[%s12007_s6 + $0x80] sm:$0xff]  ;;  %v2731_v39 = vpop.permute.xlu2 %2730 }
 0x548   :  { %3917 = vst.msk [vmem:[#allocation3 + $0x68] sm:$0xff] %vm2377_vm9, %v3728_v18  ;;  %4915 = vmatpush.msrb.mxu2 %v4443_v40  ;;  %v9966_v18 = vld [vmem:[#allocation2 + $0x32f] sm:$0xff]  ;;  %v4402_v40 = vld [vmem:[#allocation3 + $0x938] sm:$0xff] }
 0x549   :  { %3060 = vst.msk [vmem:[#allocation3 + $0x6a0] sm:$0xff] %vm1111_vm5, %v9935_v52  ;;  %4884 = vmatmul.f32.gmra.mxu2 %v4402_v40  ;;  %v9984_v40 = vld [vmem:[#allocation2 + $0x328] sm:$0xff] }
 0x54a   :  { %12387 = vst [vmem:[#allocation91_spill] sm:$0xff] %v9948_v16 }
 0x54b   :  { %3573 = vst.msk [vmem:[#allocation3 + $0x6a8] sm:$0xff] %vm1111_vm5, %v9939_v44 }
 0x54c   :  { %3406 = vst.msk [vmem:[#allocation3 + $0xb0] sm:$0xff] %vm2377_vm9, %v3219_v58  ;;  %v4227_v58 = vld [vmem:[#allocation3 + $0x3c0] sm:$0xff] }
 0x54d   :  { %12388 = vst [vmem:[#allocation80_spill] sm:$0xff] %v9960_v30  ;;  %4779 = vmatmul.f32.gmra.mxu1 %v4227_v58  ;;  %v9993_v1 = vpop.f32.mrf.mxu1  ;;  %3256 = vrot.lane.b32.xlu0 %v9409_v41, %s6301_s1 }
 0x54e   :  { %2546 = vst.msk [vmem:[#allocation3 + $0x648] sm:$0xff] %vm1111_vm5, %v9946_v31  ;;  %v4109_v16 = vld [vmem:[#allocation3 + $0x10] sm:$0xff]  ;;  %v3221_v58 = vpop.permute.xlu0 %3220  ;;  %v3215_v51 = vpop.permute.xlu1 %3214 }
 0x54f   :  { %4070 = vst.msk [vmem:[#allocation3 + $0x458] sm:$0xff] %vm1111_vm5, %v4006_v60  ;;  %v4120_v29 = vld [vmem:[#allocation3 + $0x68] sm:$0xff]  ;;  %5125 = vmatmul.f32.vlgmr.msrb.gmra.mxu3 %v4109_v16  ;;  %v12392_v16 = vld [vmem:[#allocation68_spill] sm:$0xff]  ;;  %v3223_v28 = vpop.permute.xlu2 %3222 }
 0x550   :  { %3061 = vst.msk [vmem:[#allocation3 + $0x6c8] sm:$0xff] %vm1111_vm5, %v9956_v46  ;;  %5340 = vmatmul.f32.gmra.mxu0 %v4120_v29  ;;  %v4007_v60 = vld [vmem:[#allocation2 + $0x209] sm:$0xff]  ;;  %2748 = vrot.lane.b32.xlu2 %v12392_v16, %s6301_s1 }
 0x551   :  { %3403 = vst.msk [vmem:[#allocation3 + $0x38] sm:$0xff] %vm2377_vm9, %v3213_v50  ;;  %v9982_v50 = vpop.f32.mrf.mxu2  ;;  %v9989_v29 = vld [vmem:[#allocation2 + $0x347] sm:$0xff]  ;;  %v10008_v16 = vld [vmem:[#allocation2 + $0x330] sm:$0xff] }
 0x552   :  { %2906 = vst.msk [vmem:[#allocation3 + $0x288] sm:$0xff] %vm2377_vm9, %v2731_v39  ;;  %v10000_v39 = vld [vmem:[#allocation2 + $0x2e9] sm:$0xff] }
 0x553   :  { %3574 = vst.msk [vmem:[#allocation3 + $0x6d0] sm:$0xff] %vm1111_vm5, %v9966_v18 }
 0x554   :  { %12389 = vst [vmem:[#allocation71_spill] sm:$0xff] %v9982_v50  ;;  %v4232_v50 = vld [vmem:[#allocation3 + $0x3e8] sm:$0xff] }
 0x555   :  { %2547 = vst.msk [vmem:[#allocation3 + $0x670] sm:$0xff] %vm1111_vm5, %v9972_v63  ;;  %4782 = vmatmul.f32.gmra.mxu1 %v4232_v50  ;;  %v10018_v50 = vld [vmem:[#allocation2 + $0x2f1] sm:$0xff]  ;;  %v10022_v43 = vpop.f32.mrf.mxu1 }
 0x556   :  { %3407 = vst.msk [vmem:[#allocation3 + $0xd8] sm:$0xff] %vm2377_vm9, %v3221_v58  ;;  %v4407_v58 = vld [vmem:[#allocation3 + $0x960] sm:$0xff]  ;;  %v2733_v10 = vpop.permute.xlu0 %2732 }
 0x557   :  { %12390 = vst [vmem:[#allocation81_spill] sm:$0xff] %v9989_v29  ;;  %4887 = vmatmul.f32.gmra.mxu2 %v4407_v58  ;;  %v2729_v58 = vpop.permute.xlu1 %2728 }
 0x558   :  { %12391 = vst [vmem:[#allocation92_spill] sm:$0xff] %v9993_v1  ;;  %v4114_v30 = vld [vmem:[#allocation3 + $0x38] sm:$0xff]  ;;  %3759 = vrot.lane.b32.xlu2 %v9520_v34, %s6301_s1  ;;  %v10042_v34 = vld [vmem:[#allocation2 + $0x309] sm:$0xff] }
 0x559   :  { %4071 = vst.msk [vmem:[#allocation3 + $0x480] sm:$0xff] %vm1111_vm5, %v4007_v60  ;;  %v4008_v60 = vld [vmem:[#allocation2 + $0x211] sm:$0xff]  ;;  %5128 = vmatmul.f32.gmra.mxu3 %v4114_v30  ;;  %v10012_v1 = vpop.f32.mrf.mxu2  ;;  %v12395_v30 = vld [vmem:[#allocation73_spill] sm:$0xff] }
 0x55a   :  { %3062 = vst.msk [vmem:[#allocation3 + $0x6f0] sm:$0xff] %vm1111_vm5, %v9984_v40  ;;  %3248 = vrot.lane.b32.xlu1 %v12395_v30, %s6301_s1  ;;  %v3225_v30 = vpop.permute.xlu2 %3224 }
 0x55b   :  { %3575 = vst.msk [vmem:[#allocation3 + $0x6f8] sm:$0xff] %vm1111_vm5, %v9989_v29  ;;  %v10046_v29 = vld [vmem:[#allocation2 + $0x350] sm:$0xff] }
 0x55c   :  { %3404 = vst.msk [vmem:[#allocation3 + $0x60] sm:$0xff] %vm2377_vm9, %v3215_v51  ;;  %v10028_v51 = vld [vmem:[#allocation2 + $0x348] sm:$0xff] }
 0x55d   :  { %3408 = vst.msk [vmem:[#allocation3 + $0x100] sm:$0xff] %vm2377_vm9, %v3223_v28  ;;  %v4412_v28 = vld [vmem:[#allocation3 + $0x988] sm:$0xff]  ;;  %v10055_v41 = vpop.f32.mrf.mxu1 }
 0x55e   :  { %2548 = vst.msk [vmem:[#allocation3 + $0x698] sm:$0xff] %vm1111_vm5, %v10000_v39 }
 0x55f   :  { %12393 = vst [vmem:[#allocation93_spill] sm:$0xff] %v10012_v1  ;;  %4890 = vmatmul.f32.gmra.mxu2 %v4412_v28  ;;  %v10035_v1 = vld [vmem:[#allocation2 + $0x367] sm:$0xff]  ;;  %v3730_v28 = vpop.permute.xlu1 %3729 }
 0x560   :  { %12394 = vst [vmem:[#allocation94_spill] sm:$0xff] %v10014_v53  ;;  %3761 = vrot.lane.b32.xlu2 %v9478_v32, %s6301_s1  ;;  %v12403_v32 = vld [vmem:[#allocation70_spill] sm:$0xff] }
 0x561   :  { %4072 = vst.msk [vmem:[#allocation3 + $0x4a8] sm:$0xff] %vm1111_vm5, %v4008_v60  ;;  %2756 = vrot.lane.b32.xlu0 %v12403_v32, %s6301_s1 }
 0x562   :  { %2907 = vst.msk [vmem:[#allocation3 + $0x2b0] sm:$0xff] %vm2377_vm9, %v2733_v10  ;;  %v4237_v10 = vld [vmem:[#allocation3 + $0x410] sm:$0xff] }
 0x563   :  { %12396 = vst [vmem:[#allocation82_spill] sm:$0xff] %v10022_v43  ;;  %v4119_v60 = vld [vmem:[#allocation3 + $0x60] sm:$0xff]  ;;  %4785 = vmatmul.f32.gmra.mxu1 %v4237_v10  ;;  %v10044_v43 = vpop.f32.mrf.mxu2 }
 0x564   :  { %3063 = vst.msk [vmem:[#allocation3 + $0x718] sm:$0xff] %vm1111_vm5, %v10008_v16  ;;  %5131 = vmatmul.f32.gmra.mxu3 %v4119_v60  ;;  %v12401_v10 = vld [vmem:[#allocation72_spill] sm:$0xff]  ;;  %v4242_v60 = vld [vmem:[#allocation3 + $0x438] sm:$0xff] }
 0x565   :  { %3576 = vst.msk [vmem:[#allocation3 + $0x720] sm:$0xff] %vm1111_vm5, %v10014_v53  ;;  %v3736_v53 = vpop.permute.xlu0 %3735  ;;  %3250 = vrot.lane.b32.xlu1 %v12401_v10, %s6301_s1  ;;  %v3227_v10 = vpop.permute.xlu2 %3226 }
 0x566   :  { %2549 = vst.msk [vmem:[#allocation3 + $0x6c0] sm:$0xff] %vm1111_vm5, %v10018_v50 }
 0x567   :  { %2905 = vst.msk [vmem:[#allocation3 + $0x260] sm:$0xff] %vm2377_vm9, %v2729_v58  ;;  %v10051_v58 = vld [vmem:[#allocation2 + $0x36f] sm:$0xff] }
 0x568   :  { %12397 = vst [vmem:[#allocation95_spill] sm:$0xff] %v10035_v1  ;;  %3763 = vrot.lane.b32.xlu2 %v9508_v5, %s6301_s1  ;;  %v10102_v5 = vld [vmem:[#allocation2 + $0x38f] sm:$0xff] }
 0x569   :  { %3409 = vst.msk [vmem:[#allocation3 + $0x128] sm:$0xff] %vm2377_vm9, %v3225_v30  ;;  %v4417_v30 = vld [vmem:[#allocation3 + $0x9b0] sm:$0xff]  ;;  %3771 = vrot.lane.b32.xlu0 %v9558_v55, %s6301_s1  ;;  %v12412_v55 = vld [vmem:[#allocation77_spill] sm:$0xff] }
 0x56a   :  { %3064 = vst.msk [vmem:[#allocation3 + $0x740] sm:$0xff] %vm1111_vm5, %v10028_v51  ;;  %4893 = vmatmul.f32.gmra.mxu2 %v4417_v30  ;;  %v4012_v30 = vld [vmem:[#allocation2 + $0x291] sm:$0xff] }
 0x56b   :  { %12398 = vst [vmem:[#allocation96_spill] sm:$0xff] %v10044_v43  ;;  %4788 = vmatmul.f32.gmra.mxu1 %v4242_v60  ;;  %v4124_v43 = vld [vmem:[#allocation3 + $0x88] sm:$0xff]  ;;  %v10086_v60 = vpop.f32.mrf.mxu1 }
 0x56c   :  { %12399 = vst [vmem:[#allocation97_spill] sm:$0xff] %v10046_v29  ;;  %5134 = vmatmul.f32.gmra.mxu3 %v4124_v43  ;;  %v12407_v43 = vld [vmem:[#allocation78_spill] sm:$0xff] }
 0x56d   :  { %3577 = vst.msk [vmem:[#allocation3 + $0x748] sm:$0xff] %vm1111_vm5, %v10035_v1  ;;  %v3738_v1 = vpop.permute.xlu0 %3737  ;;  %2752 = vrot.lane.b32.xlu1 %v12407_v43, %s6301_s1  ;;  %v2737_v43 = vpop.permute.xlu2 %2736 }
 0x56e   :  { %3921 = vst.msk [vmem:[#allocation3 + $0x108] sm:$0xff] %vm2377_vm9, %v3736_v53  ;;  %v10065_v53 = vld [vmem:[#allocation2 + $0x311] sm:$0xff] }
 0x56f   :  { %12400 = vst [vmem:[#allocation68_spill] sm:$0xff] %v10051_v58 }
 0x570   :  { %12402 = vst [vmem:[#allocation73_spill] sm:$0xff] %v10055_v41  ;;  %v10071_v41 = vld [vmem:[#allocation2 + $0x368] sm:$0xff]  ;;  %2754 = vrot.lane.b32.xlu2 %v12412_v55, %s6301_s1  ;;  %v3620_v55 = vld [vmem:[#allocation2 + $0x1d0] sm:$0xff] }
 0x571   :  { %2550 = vst.msk [vmem:[#allocation3 + $0x6e8] sm:$0xff] %vm1111_vm5, %v10042_v34  ;;  %3773 = vrot.lane.b32.xlu0 %v3620_v55, %s6301_s1  ;;  %v4113_v55 = vld [vmem:[#allocation3 + $0x30] sm:$0xff] }
 0x572   :  { %3065 = vst.msk [vmem:[#allocation3 + $0x768] sm:$0xff] %vm1111_vm5, %v10046_v29  ;;  %v10077_v29 = vld [vmem:[#allocation2 + $0x387] sm:$0xff] }
 0x573   :  { %3578 = vst.msk [vmem:[#allocation3 + $0x770] sm:$0xff] %vm1111_vm5, %v10051_v58  ;;  %v10075_v58 = vpop.f32.mrf.mxu2 }
 0x574   :  { %3918 = vst.msk [vmem:[#allocation3 + $0x90] sm:$0xff] %vm2377_vm9, %v3730_v28  ;;  %v10082_v28 = vld [vmem:[#allocation2 + $0x329] sm:$0xff] }
 0x575   :  { %3410 = vst.msk [vmem:[#allocation3 + $0x150] sm:$0xff] %vm2377_vm9, %v3227_v10  ;;  %v4247_v10 = vld [vmem:[#allocation3 + $0x460] sm:$0xff]  ;;  %3765 = vrot.lane.b32.xlu1 %v9527_v38, %s6301_s1  ;;  %v3742_v38 = vpop.permute.xlu2 %3741 }
 0x576   :  { %12404 = vst [vmem:[#allocation72_spill] sm:$0xff] %v10071_v41  ;;  %4791 = vmatmul.f32.gmra.mxu1 %v4247_v10  ;;  %v4013_v10 = vld [vmem:[#allocation2 + $0x2a9] sm:$0xff] }
 0x577   :  { %2551 = vst.msk [vmem:[#allocation3 + $0x710] sm:$0xff] %vm1111_vm5, %v10065_v53 }
 0x578   :  { %12405 = vst [vmem:[#allocation70_spill] sm:$0xff] %v10075_v58  ;;  %v4129_v58 = vld [vmem:[#allocation3 + $0xb0] sm:$0xff]  ;;  %3258 = vrot.lane.b32.xlu2 %v9460_v47, %s6301_s1  ;;  %v3621_v47 = vld [vmem:[#allocation2 + $0x1e8] sm:$0xff] }
 0x579   :  { %12406 = vst [vmem:[#allocation98_spill] sm:$0xff] %v10077_v29  ;;  %5137 = vmatmul.f32.gmra.mxu3 %v4129_v58  ;;  %v10114_v58 = vpop.f32.mrf.mxu1  ;;  %3775 = vrot.lane.b32.xlu0 %v3621_v47, %s6301_s1  ;;  %v10188_v47 = vld [vmem:[#allocation2 + $0x3b0] sm:$0xff] }
 0x57a   :  { %4075 = vst.msk [vmem:[#allocation3 + $0x520] sm:$0xff] %vm1111_vm5, %v9810_v12  ;;  %v3732_v12 = vpop.permute.xlu1 %3731 }
 0x57b   :  { %3922 = vst.msk [vmem:[#allocation3 + $0x130] sm:$0xff] %vm2377_vm9, %v3738_v1  ;;  %v4422_v1 = vld [vmem:[#allocation3 + $0x9d8] sm:$0xff]  ;;  %v4125_v32 = vld [vmem:[#allocation3 + $0x90] sm:$0xff] }
 0x57c   :  { %12408 = vst [vmem:[#allocation78_spill] sm:$0xff] %v10086_v60  ;;  %4896 = vmatmul.f32.gmra.mxu2 %v4422_v1  ;;  %v10097_v60 = vld [vmem:[#allocation2 + $0x370] sm:$0xff]  ;;  %5343 = vmatmul.f32.gmra.mxu0 %v4125_v32  ;;  %v4252_v32 = vld [vmem:[#allocation3 + $0x488] sm:$0xff] }
 0x57d   :  { %3066 = vst.msk [vmem:[#allocation3 + $0x790] sm:$0xff] %vm1111_vm5, %v10071_v41  ;;  %v3740_v41 = vpop.permute.xlu0 %3739  ;;  %3767 = vrot.lane.b32.xlu1 %v9512_v21, %s6301_s1  ;;  %v3744_v21 = vpop.permute.xlu2 %3743 }
 0x57e   :  { %3579 = vst.msk [vmem:[#allocation3 + $0x798] sm:$0xff] %vm1111_vm5, %v10077_v29  ;;  %v10105_v29 = vpop.f32.mrf.mxu2  ;;  %4794 = vmatmul.f32.gmra.mxu1 %v4252_v32  ;;  %v10139_v32 = vld [vmem:[#allocation2 + $0x390] sm:$0xff] }
 0x57f   :  { %2552 = vst.msk [vmem:[#allocation3 + $0x738] sm:$0xff] %vm1111_vm5, %v10082_v28 }
 0x580   :  { %3919 = vst.msk [vmem:[#allocation3 + $0xb8] sm:$0xff] %vm2377_vm9, %v3732_v12  ;;  %v10109_v12 = vld [vmem:[#allocation2 + $0x331] sm:$0xff]  ;;  %3260 = vrot.lane.b32.xlu2 %v9543_v3, %s6301_s1  ;;  %v2602_v3 = vld [vmem:[#allocation2 + $0x267] sm:$0xff] }
 0x581   :  { %2909 = vst.msk [vmem:[#allocation3 + $0x300] sm:$0xff] %vm2377_vm9, %v2737_v43  ;;  %2762 = vrot.lane.b32.xlu0 %v2602_v3, %s6301_s1  ;;  %v10215_v3 = vld [vmem:[#allocation2 + $0x3c8] sm:$0xff] }
 0x582   :  { %12409 = vst [vmem:[#allocation99_spill] sm:$0xff] %v10102_v5  ;;  %v3734_v1 = vpop.permute.xlu1 %3733 }
 0x583   :  { %4076 = vst.msk [vmem:[#allocation3 + $0x548] sm:$0xff] %vm1111_vm5, %v4012_v30  ;;  %v10120_v30 = vld [vmem:[#allocation2 + $0x388] sm:$0xff] }
 0x584   :  { %12410 = vst [vmem:[#allocation100_spill] sm:$0xff] %v10105_v29  ;;  %v4134_v29 = vld [vmem:[#allocation3 + $0xd8] sm:$0xff] }
 0x585   :  { %3067 = vst.msk [vmem:[#allocation3 + $0x7b8] sm:$0xff] %vm1111_vm5, %v10097_v60  ;;  %5140 = vmatmul.f32.gmra.mxu3 %v4134_v29  ;;  %v10143_v29 = vpop.f32.mrf.mxu1  ;;  %3769 = vrot.lane.b32.xlu1 %v9538_v11, %s6301_s1  ;;  %v3746_v11 = vpop.permute.xlu2 %3745 }
 0x586   :  { %3923 = vst.msk [vmem:[#allocation3 + $0x158] sm:$0xff] %vm2377_vm9, %v3740_v41  ;;  %v4108_v41 = vld [vmem:[#allocation3 + $0x8] sm:$0xff] }
 0x587   :  { %12411 = vst [vmem:[#allocation101_spill] sm:$0xff] %v10114_v58  ;;  %v4130_v43 = vld [vmem:[#allocation3 + $0xb8] sm:$0xff]  ;;  %4916 = vmatmul.f32.vlgmr.msrb.gmra.mxu2 %v4108_v41  ;;  %v10126_v58 = vld [vmem:[#allocation2 + $0x3a7] sm:$0xff]  ;;  %v10149_v41 = vld [vmem:[#allocation2 + $0x3af] sm:$0xff] }
 0x588   :  { %3580 = vst.msk [vmem:[#allocation3 + $0x7c0] sm:$0xff] %vm1111_vm5, %v10102_v5  ;;  %5346 = vmatmul.f32.gmra.mxu0 %v4130_v43  ;;  %v10132_v5 = vld [vmem:[#allocation2 + $0x349] sm:$0xff]  ;;  %3262 = vrot.lane.b32.xlu2 %v9492_v33, %s6301_s1 }
 0x589   :  { %2553 = vst.msk [vmem:[#allocation3 + $0x760] sm:$0xff] %vm1111_vm5, %v10109_v12  ;;  %v3112_v33 = vld [vmem:[#allocation2 + $0x209] sm:$0xff] }
 0x58a   :  { %4077 = vst.msk [vmem:[#allocation3 + $0x570] sm:$0xff] %vm1111_vm5, %v4013_v10  ;;  %v10134_v10 = vpop.f32.mrf.mxu2  ;;  %v2735_v43 = vpop.permute.xlu1 %2734  ;;  %3270 = vrot.lane.b32.xlu0 %v3112_v33, %s6301_s1  ;;  %v10240_v33 = vld [vmem:[#allocation2 + $0x3d0] sm:$0xff] }
 0x58b   :  { %3920 = vst.msk [vmem:[#allocation3 + $0xe0] sm:$0xff] %vm2377_vm9, %v3734_v1  ;;  %v2739_v1 = vpop.permute.xlu0 %2738 }
 0x58c   :  { %12413 = vst [vmem:[#allocation77_spill] sm:$0xff] %v10126_v58 }
 0x58d   :  { %3924 = vst.msk [vmem:[#allocation3 + $0x180] sm:$0xff] %vm2377_vm9, %v3742_v38  ;;  %v4257_v38 = vld [vmem:[#allocation3 + $0x4b0] sm:$0xff]  ;;  %2758 = vrot.lane.b32.xlu1 %v9618_v20, %s6301_s1 }
 0x58e   :  { %3068 = vst.msk [vmem:[#allocation3 + $0x7e0] sm:$0xff] %vm1111_vm5, %v10120_v30  ;;  %4797 = vmatmul.f32.gmra.mxu1 %v4257_v38  ;;  %v4149_v20 = vld [vmem:[#allocation3 + $0x150] sm:$0xff] }
 0x58f   :  { %12414 = vst [vmem:[#allocation102_spill] sm:$0xff] %v10134_v10  ;;  %4919 = vmatmul.f32.gmra.mxu2 %v4113_v55  ;;  %v4139_v10 = vld [vmem:[#allocation3 + $0x100] sm:$0xff]  ;;  %v4262_v55 = vld [vmem:[#allocation3 + $0x4d8] sm:$0xff] }
 0x590   :  { %3581 = vst.msk [vmem:[#allocation3 + $0x7e8] sm:$0xff] %vm1111_vm5, %v10126_v58  ;;  %5143 = vmatmul.f32.gmra.mxu3 %v4139_v10  ;;  %v10173_v10 = vpop.f32.mrf.mxu1  ;;  %2760 = vrot.lane.b32.xlu2 %v9636_v56, %s6301_s1  ;;  %v10246_v56 = vld [vmem:[#allocation2 + $0x3ef] sm:$0xff] }
 0x591   :  { %2910 = vst.msk [vmem:[#allocation3 + $0x328] sm:$0xff] %vm2377_vm9, %v2739_v1 }
 0x592   :  { %12415 = vst [vmem:[#allocation103_spill] sm:$0xff] %v10139_v32  ;;  %v4135_v1 = vld [vmem:[#allocation3 + $0xe0] sm:$0xff]  ;;  %v3229_v38 = vpop.permute.xlu1 %3228 }
 0x593   :  { %12416 = vst [vmem:[#allocation104_spill] sm:$0xff] %v10143_v29  ;;  %v10156_v29 = vld [vmem:[#allocation2 + $0x351] sm:$0xff]  ;;  %5349 = vmatmul.f32.gmra.mxu0 %v4135_v1  ;;  %v3235_v58 = vpop.permute.xlu0 %3234 }
 0x594   :  { %2554 = vst.msk [vmem:[#allocation3 + $0x788] sm:$0xff] %vm1111_vm5, %v10132_v5  ;;  %v4118_v1 = vld [vmem:[#allocation3 + $0x58] sm:$0xff] }
 0x595   :  { %4078 = vst.msk [vmem:[#allocation3 + $0x598] sm:$0xff] %vm1111_vm5, %v9922_v7  ;;  %v10162_v7 = vpop.f32.mrf.mxu2  ;;  %3264 = vrot.lane.b32.xlu1 %v9553_v54, %s6301_s1 }
 0x596   :  { %3069 = vst.msk [vmem:[#allocation3 + $0x808] sm:$0xff] %vm1111_vm5, %v10139_v32  ;;  %v10164_v32 = vld [vmem:[#allocation2 + $0x3a8] sm:$0xff]  ;;  %4800 = vmatmul.f32.gmra.mxu1 %v4262_v55  ;;  %v10199_v55 = vld [vmem:[#allocation2 + $0x371] sm:$0xff] }
 0x597   :  { %2908 = vst.msk [vmem:[#allocation3 + $0x2d8] sm:$0xff] %vm2377_vm9, %v2735_v43  ;;  %v10169_v43 = vld [vmem:[#allocation2 + $0x3c7] sm:$0xff]  ;;  %4922 = vmatmul.f32.gmra.mxu2 %v4118_v1 }
 0x598   :  { %3925 = vst.msk [vmem:[#allocation3 + $0x1a8] sm:$0xff] %vm2377_vm9, %v3744_v21  ;;  %v4140_v21 = vld [vmem:[#allocation3 + $0x108] sm:$0xff]  ;;  %v10203_v1 = vpop.f32.mrf.mxu1  ;;  %3777 = vrot.lane.b32.xlu2 %v9694_v49, %s6301_s1 }
 0x599   :  { %3582 = vst.msk [vmem:[#allocation3 + $0x810] sm:$0xff] %vm1111_vm5, %v10149_v41  ;;  %v10277_v49 = vld [vmem:[#allocation2 + $0x3a9] sm:$0xff] }
 0x59a   :  { %12417 = vst [vmem:[#allocation105_spill] sm:$0xff] %v10162_v7 }
 0x59b   :  { %2555 = vst.msk [vmem:[#allocation3 + $0x7b0] sm:$0xff] %vm1111_vm5, %v10156_v29  ;;  %5352 = vmatmul.f32.gmra.mxu0 %v4140_v21  ;;  %v4145_v21 = vld [vmem:[#allocation3 + $0x130] sm:$0xff] }
 0x59c   :  { %3414 = vst.msk [vmem:[#allocation3 + $0x1f0] sm:$0xff] %vm2377_vm9, %v3235_v58  ;;  %v10183_v58 = vld [vmem:[#allocation2 + $0x369] sm:$0xff] }
 0x59d   :  { %12418 = vst [vmem:[#allocation106_spill] sm:$0xff] %v10173_v10  ;;  %v10192_v7 = vpop.f32.mrf.mxu2  ;;  %v3237_v10 = vpop.permute.xlu0 %3236  ;;  %3266 = vrot.lane.b32.xlu1 %v9624_v36, %s6301_s1 }
 0x59e   :  { %4079 = vst.msk [vmem:[#allocation3 + $0x5c0] sm:$0xff] %vm1111_vm5, %v9946_v31  ;;  %v4144_v31 = vld [vmem:[#allocation3 + $0x128] sm:$0xff] }
 0x59f   :  { %3070 = vst.msk [vmem:[#allocation3 + $0x830] sm:$0xff] %vm1111_vm5, %v10164_v32  ;;  %5146 = vmatmul.f32.gmra.mxu3 %v4144_v31  ;;  %v4111_v31 = vld [vmem:[#allocation3 + $0x20] sm:$0xff] }
 0x5a0   :  { %3583 = vst.msk [vmem:[#allocation3 + $0x838] sm:$0xff] %vm1111_vm5, %v10169_v43  ;;  %6189 = vmatmul.msk.f32.vlgmr.msrb.gmra.mxu1 %vm1111_vm5, %v4111_v31  ;;  %v10227_v31 = vld [vmem:[#allocation2 + $0x389] sm:$0xff]  ;;  %3779 = vrot.lane.b32.xlu2 %v9653_v25, %s6301_s1 }
 0x5a1   :  { %3411 = vst.msk [vmem:[#allocation3 + $0x178] sm:$0xff] %vm2377_vm9, %v3229_v38  ;;  %v10194_v38 = vld [vmem:[#allocation2 + $0x3cf] sm:$0xff] }
 0x5a2   :  { %3926 = vst.msk [vmem:[#allocation3 + $0x1d0] sm:$0xff] %vm2377_vm9, %v3746_v11  ;;  %v3231_v11 = vpop.permute.xlu1 %3230  ;;  %v10312_v25 = vld [vmem:[#allocation2 + $0x408] sm:$0xff] }
 0x5a3   :  { %2556 = vst.msk [vmem:[#allocation3 + $0x7d8] sm:$0xff] %vm1111_vm5, %v10183_v58  ;;  %5355 = vmatmul.f32.gmra.mxu0 %v4145_v21  ;;  %v4116_v21 = vld [vmem:[#allocation3 + $0x48] sm:$0xff] }
 0x5a4   :  { %12419 = vst [vmem:[#allocation107_spill] sm:$0xff] %v10192_v7  ;;  %v10219_v7 = vld [vmem:[#allocation2 + $0x3e7] sm:$0xff] }
 0x5a5   :  { %4080 = vst.msk [vmem:[#allocation3 + $0x5e8] sm:$0xff] %vm1111_vm5, %v9972_v63  ;;  %v4123_v63 = vld [vmem:[#allocation3 + $0x80] sm:$0xff]  ;;  %3268 = vrot.lane.b32.xlu1 %v9576_v26, %s6301_s1 }
 0x5a6   :  { %3415 = vst.msk [vmem:[#allocation3 + $0x218] sm:$0xff] %vm2377_vm9, %v3237_v10  ;;  %v2743_v10 = vpop.permute.xlu2 %2742  ;;  %4925 = vmatmul.f32.gmra.mxu2 %v4123_v63  ;;  %v3239_v63 = vpop.permute.xlu0 %3238 }
 0x5a7   :  { %3071 = vst.msk [vmem:[#allocation3 + $0x858] sm:$0xff] %vm1111_vm5, %v10188_v47  ;;  %5149 = vmatmul.f32.gmra.mxu3 %v4149_v20  ;;  %v4128_v20 = vld [vmem:[#allocation3 + $0xa8] sm:$0xff] }
 0x5a8   :  { %3584 = vst.msk [vmem:[#allocation3 + $0x860] sm:$0xff] %vm1111_vm5, %v10194_v38  ;;  %6190 = vmatmul.msk.f32.gmra.mxu1 %vm1111_vm5, %v4116_v21  ;;  %v10259_v21 = vld [vmem:[#allocation2 + $0x3e8] sm:$0xff]  ;;  %3781 = vrot.lane.b32.xlu2 %v9678_v35, %s6301_s1 }
 0x5a9   :  { %2557 = vst.msk [vmem:[#allocation3 + $0x800] sm:$0xff] %vm1111_vm5, %v10199_v55  ;;  %v3625_v35 = vld [vmem:[#allocation2 + $0x228] sm:$0xff] }
 0x5aa   :  { %3412 = vst.msk [vmem:[#allocation3 + $0x1a0] sm:$0xff] %vm2377_vm9, %v3231_v11  ;;  %v10223_v11 = vpop.f32.mrf.mxu2 }
 0x5ab   :  { %2912 = vst.msk [vmem:[#allocation3 + $0x378] sm:$0xff] %vm2377_vm9, %v2743_v10  ;;  %v10232_v10 = vpop.f32.mrf.mxu1 }
 0x5ac   :  { %4081 = vst.msk [vmem:[#allocation3 + $0x610] sm:$0xff] %vm1111_vm5, %v10000_v39  ;;  %v3233_v39 = vpop.permute.xlu1 %3232 }
 0x5ad   :  { %12420 = vst [vmem:[#allocation108_spill] sm:$0xff] %v10223_v11  ;;  %v4150_v11 = vld [vmem:[#allocation3 + $0x158] sm:$0xff] }
 0x5ae   :  { %3072 = vst.msk [vmem:[#allocation3 + $0x880] sm:$0xff] %vm1111_vm5, %v10215_v3  ;;  %v3241_v54 = vpop.permute.xlu2 %3240  ;;  %4928 = vmatmul.f32.gmra.mxu2 %v4128_v20  ;;  %5358 = vmatmul.f32.gmra.mxu0 %v4150_v11  ;;  %v2745_v20 = vpop.permute.xlu0 %2744 }
 0x5af   :  { %3416 = vst.msk [vmem:[#allocation3 + $0x240] sm:$0xff] %vm2377_vm9, %v3239_v63  ;;  %v4154_v63 = vld [vmem:[#allocation3 + $0x178] sm:$0xff] }
 0x5b0   :  { %12421 = vst [vmem:[#allocation109_spill] sm:$0xff] %v10232_v10  ;;  %5152 = vmatmul.f32.gmra.mxu3 %v4154_v63  ;;  %v3113_v10 = vld [vmem:[#allocation2 + $0x211] sm:$0xff] }
 0x5b1   :  { %3585 = vst.msk [vmem:[#allocation3 + $0x888] sm:$0xff] %vm1111_vm5, %v10219_v7  ;;  %3272 = vrot.lane.b32.xlu0 %v3113_v10, %s6301_s1  ;;  %v4121_v63 = vld [vmem:[#allocation3 + $0x70] sm:$0xff] }
 0x5b2   :  { %2558 = vst.msk [vmem:[#allocation3 + $0x828] sm:$0xff] %vm1111_vm5, %v10227_v31  ;;  %6191 = vmatmul.msk.f32.gmra.mxu1 %vm1111_vm5, %v4121_v63  ;;  %v10291_v63 = vld [vmem:[#allocation2 + $0x40f] sm:$0xff] }
 0x5b3   :  { %4082 = vst.msk [vmem:[#allocation3 + $0x638] sm:$0xff] %vm1111_vm5, %v10018_v50  ;;  %v10252_v50 = vld [vmem:[#allocation2 + $0x391] sm:$0xff]  ;;  %v10263_v11 = vpop.f32.mrf.mxu1 }
 0x5b4   :  { %3413 = vst.msk [vmem:[#allocation3 + $0x1c8] sm:$0xff] %vm2377_vm9, %v3233_v39  ;;  %v10254_v39 = vpop.f32.mrf.mxu2  ;;  %v2741_v10 = vpop.permute.xlu1 %2740 }
 0x5b5   :  { %3417 = vst.msk [vmem:[#allocation3 + $0x268] sm:$0xff] %vm2377_vm9, %v3241_v54  ;;  %v4133_v54 = vld [vmem:[#allocation3 + $0xd0] sm:$0xff] }
 0x5b6   :  { %3073 = vst.msk [vmem:[#allocation3 + $0x8a8] sm:$0xff] %vm1111_vm5, %v10240_v33  ;;  %v3243_v36 = vpop.permute.xlu2 %3242  ;;  %4931 = vmatmul.f32.gmra.mxu2 %v4133_v54  ;;  %v10286_v54 = vld [vmem:[#allocation2 + $0x3f0] sm:$0xff] }
 0x5b7   :  { %12422 = vst [vmem:[#allocation110_spill] sm:$0xff] %v10254_v39  ;;  %v4159_v39 = vld [vmem:[#allocation3 + $0x1a0] sm:$0xff] }
 0x5b8   :  { %3586 = vst.msk [vmem:[#allocation3 + $0x8b0] sm:$0xff] %vm1111_vm5, %v10246_v56  ;;  %5155 = vmatmul.f32.gmra.mxu3 %v4159_v39 }
 0x5b9   :  { %2913 = vst.msk [vmem:[#allocation3 + $0x3a0] sm:$0xff] %vm2377_vm9, %v2745_v20  ;;  %v10271_v20 = vld [vmem:[#allocation2 + $0x407] sm:$0xff]  ;;  %3274 = vrot.lane.b32.xlu0 %v9657_v4, %s6301_s1 }
 0x5ba   :  { %12423 = vst [vmem:[#allocation111_spill] sm:$0xff] %v10263_v11  ;;  %v4155_v11 = vld [vmem:[#allocation3 + $0x180] sm:$0xff] }
 0x5bb   :  { %2559 = vst.msk [vmem:[#allocation3 + $0x850] sm:$0xff] %vm1111_vm5, %v10252_v50  ;;  %5361 = vmatmul.f32.gmra.mxu0 %v4155_v11  ;;  %v10295_v39 = vpop.f32.mrf.mxu1  ;;  %v4138_v11 = vld [vmem:[#allocation3 + $0xf8] sm:$0xff] }
 0x5bc   :  { %4083 = vst.msk [vmem:[#allocation3 + $0x660] sm:$0xff] %vm1111_vm5, %v10042_v34  ;;  %v10284_v34 = vpop.f32.mrf.mxu2  ;;  %v3748_v4 = vpop.permute.xlu1 %3747 }
 0x5bd   :  { %3074 = vst.msk [vmem:[#allocation3 + $0x8d0] sm:$0xff] %vm1111_vm5, %v10259_v21 }
 0x5be   :  { %2911 = vst.msk [vmem:[#allocation3 + $0x350] sm:$0xff] %vm2377_vm9, %v2741_v10  ;;  %v3754_v10 = vpop.permute.xlu0 %3753  ;;  %v3245_v26 = vpop.permute.xlu2 %3244  ;;  %4934 = vmatmul.f32.gmra.mxu2 %v4138_v11  ;;  %v10318_v11 = vld [vmem:[#allocation2 + $0x427] sm:$0xff] }
 0x5bf   :  { %3418 = vst.msk [vmem:[#allocation3 + $0x290] sm:$0xff] %vm2377_vm9, %v3243_v36  ;;  %v4126_v36 = vld [vmem:[#allocation3 + $0x98] sm:$0xff] }
 0x5c0   :  { %3587 = vst.msk [vmem:[#allocation3 + $0x8d8] sm:$0xff] %vm1111_vm5, %v10271_v20  ;;  %6192 = vmatmul.msk.f32.gmra.mxu1 %vm1111_vm5, %v4126_v36  ;;  %v2603_v36 = vld [vmem:[#allocation2 + $0x26f] sm:$0xff] }
 0x5c1   :  { %12424 = vst [vmem:[#allocation112_spill] sm:$0xff] %v10284_v34  ;;  %v4164_v34 = vld [vmem:[#allocation3 + $0x1c8] sm:$0xff]  ;;  %2768 = vrot.lane.b32.xlu0 %v9739_v19, %s6301_s1  ;;  %2764 = vrot.lane.b32.xlu1 %v2603_v36, %s6301_s1  ;;  %v4169_v36 = vld [vmem:[#allocation3 + $0x1f0] sm:$0xff] }
 0x5c2   :  { %2560 = vst.msk [vmem:[#allocation3 + $0x878] sm:$0xff] %vm1111_vm5, %v10277_v49  ;;  %5158 = vmatmul.f32.gmra.mxu3 %v4164_v34  ;;  %v10323_v34 = vld [vmem:[#allocation2 + $0x3c9] sm:$0xff] }
 0x5c3   :  { %3930 = vst.msk [vmem:[#allocation3 + $0x270] sm:$0xff] %vm2377_vm9, %v3754_v10  ;;  %v10305_v10 = vld [vmem:[#allocation2 + $0x3b1] sm:$0xff]  ;;  %v10326_v19 = vpop.f32.mrf.mxu1 }
 0x5c4   :  { %12425 = vst [vmem:[#allocation113_spill] sm:$0xff] %v10291_v63 }
 0x5c5   :  { %12426 = vst [vmem:[#allocation114_spill] sm:$0xff] %v10295_v39  ;;  %v10316_v39 = vpop.f32.mrf.mxu2 }
 0x5c6   :  { %4084 = vst.msk [vmem:[#allocation3 + $0x688] sm:$0xff] %vm1111_vm5, %v10065_v53  ;;  %v4160_v53 = vld [vmem:[#allocation3 + $0x1a8] sm:$0xff] }
 0x5c7   :  { %3075 = vst.msk [vmem:[#allocation3 + $0x8f8] sm:$0xff] %vm1111_vm5, %v10286_v54  ;;  %5364 = vmatmul.f32.gmra.mxu0 %v4160_v53  ;;  %v4131_v53 = vld [vmem:[#allocation3 + $0xc0] sm:$0xff] }
 0x5c8   :  { %3588 = vst.msk [vmem:[#allocation3 + $0x900] sm:$0xff] %vm1111_vm5, %v10291_v63  ;;  %6193 = vmatmul.msk.f32.gmra.mxu1 %vm1111_vm5, %v4131_v53  ;;  %v10351_v53 = vld [vmem:[#allocation2 + $0x3d1] sm:$0xff] }
 0x5c9   :  { %3927 = vst.msk [vmem:[#allocation3 + $0x1f8] sm:$0xff] %vm2377_vm9, %v3748_v4  ;;  %v3756_v4 = vpop.permute.xlu0 %3755  ;;  %3789 = vrot.lane.b32.xlu0 %v9731_v24, %s6301_s1  ;;  %3783 = vrot.lane.b32.xlu1 %v3625_v35, %s6301_s1  ;;  %v4174_v35 = vld [vmem:[#allocation3 + $0x218] sm:$0xff]  ;;  %v3626_v63 = vld [vmem:[#allocation2 + $0x230] sm:$0xff] }
 0x5ca   :  { %3419 = vst.msk [vmem:[#allocation3 + $0x2b8] sm:$0xff] %vm2377_vm9, %v3245_v26  ;;  %v3750_v26 = vpop.permute.xlu1 %3749  ;;  %5161 = vmatmul.f32.gmra.mxu3 %v4169_v36  ;;  %v4136_v36 = vld [vmem:[#allocation3 + $0xe8] sm:$0xff] }
 0x5cb   :  { %2561 = vst.msk [vmem:[#allocation3 + $0x8a0] sm:$0xff] %vm1111_vm5, %v10305_v10 }
 0x5cc   :  { %12427 = vst [vmem:[#allocation115_spill] sm:$0xff] %v10316_v39  ;;  %v4165_v39 = vld [vmem:[#allocation3 + $0x1d0] sm:$0xff] }
 0x5cd   :  { %12428 = vst [vmem:[#allocation116_spill] sm:$0xff] %v10318_v11 }
 0x5ce   :  { %4085 = vst.msk [vmem:[#allocation3 + $0x6b0] sm:$0xff] %vm1111_vm5, %v10082_v28  ;;  %v4143_v28 = vld [vmem:[#allocation3 + $0x120] sm:$0xff] }
 0x5cf   :  { %3931 = vst.msk [vmem:[#allocation3 + $0x298] sm:$0xff] %vm2377_vm9, %v3756_v4  ;;  %v2749_v4 = vpop.permute.xlu2 %2748  ;;  %4937 = vmatmul.f32.gmra.mxu2 %v4143_v28  ;;  %5367 = vmatmul.f32.gmra.mxu0 %v4165_v39  ;;  %v2604_v39 = vld [vmem:[#allocation2 + $0x287] sm:$0xff] }
 0x5d0   :  { %12429 = vst [vmem:[#allocation117_spill] sm:$0xff] %v10326_v19  ;;  %v10338_v19 = vld [vmem:[#allocation2 + $0x410] sm:$0xff]  ;;  %2766 = vrot.lane.b32.xlu2 %v2604_v39, %s6301_s1  ;;  %6194 = vmatmul.msk.f32.gmra.mxu1 %vm1111_vm5, %v4136_v36  ;;  %v10368_v39 = vld [vmem:[#allocation2 + $0x447] sm:$0xff] }
 0x5d1   :  { %3076 = vst.msk [vmem:[#allocation3 + $0x920] sm:$0xff] %vm1111_vm5, %v10312_v25  ;;  %v3758_v28 = vpop.permute.xlu0 %3757  ;;  %v10381_v36 = vld [vmem:[#allocation2 + $0x430] sm:$0xff]  ;;  %3785 = vrot.lane.b32.xlu1 %v3626_v63, %s6301_s1 }
 0x5d2   :  { %3589 = vst.msk [vmem:[#allocation3 + $0x928] sm:$0xff] %vm1111_vm5, %v10318_v11  ;;  %v10343_v11 = vld [vmem:[#allocation2 + $0x42f] sm:$0xff]  ;;  %v3752_v24 = vpop.permute.xlu1 %3751  ;;  %5164 = vmatmul.f32.gmra.mxu3 %v4174_v35 }
 0x5d3   :  { %2562 = vst.msk [vmem:[#allocation3 + $0x8c8] sm:$0xff] %vm1111_vm5, %v10323_v34  ;;  %v4141_v35 = vld [vmem:[#allocation3 + $0x110] sm:$0xff] }
 0x5d4   :  { %3928 = vst.msk [vmem:[#allocation3 + $0x220] sm:$0xff] %vm2377_vm9, %v3750_v26  ;;  %v10347_v26 = vpop.f32.mrf.mxu2 }
 0x5d5   :  { %2915 = vst.msk [vmem:[#allocation3 + $0x3f0] sm:$0xff] %vm2377_vm9, %v2749_v4  ;;  %v10355_v4 = vpop.f32.mrf.mxu1 }
 0x5d6   :  { %12430 = vst [vmem:[#allocation118_spill] sm:$0xff] %v10343_v11 }
 0x5d7   :  { %4086 = vst.msk [vmem:[#allocation3 + $0x6d8] sm:$0xff] %vm1111_vm5, %v10109_v12  ;;  %v4148_v12 = vld [vmem:[#allocation3 + $0x148] sm:$0xff] }
 0x5d8   :  { %12431 = vst [vmem:[#allocation119_spill] sm:$0xff] %v10347_v26  ;;  %v10362_v26 = vld [vmem:[#allocation2 + $0x428] sm:$0xff]  ;;  %4940 = vmatmul.f32.gmra.mxu2 %v4148_v12  ;;  %3276 = vrot.lane.b32.xlu2 %v9727_v6, %s6301_s1  ;;  %v10398_v6 = vld [vmem:[#allocation2 + $0x3f1] sm:$0xff] }
 0x5d9   :  { %3077 = vst.msk [vmem:[#allocation3 + $0x948] sm:$0xff] %vm1111_vm5, %v10338_v19  ;;  %v2751_v12 = vpop.permute.xlu0 %2750  ;;  %6195 = vmatmul.msk.f32.gmra.mxu1 %vm1111_vm5, %v4141_v35  ;;  %v10412_v35 = vld [vmem:[#allocation2 + $0x409] sm:$0xff]  ;;  %3787 = vrot.lane.b32.xlu1 %v9714_v57, %s6301_s1 }
 0x5da   :  { %3932 = vst.msk [vmem:[#allocation3 + $0x2c0] sm:$0xff] %vm2377_vm9, %v3758_v28  ;;  %v3760_v28 = vpop.permute.xlu2 %3759  ;;  %v4184_v57 = vld [vmem:[#allocation3 + $0x268] sm:$0xff] }
 0x5db   :  { %12432 = vst [vmem:[#allocation120_spill] sm:$0xff] %v10355_v4  ;;  %v4170_v4 = vld [vmem:[#allocation3 + $0x1f8] sm:$0xff] }
 0x5dc   :  { %3590 = vst.msk [vmem:[#allocation3 + $0x950] sm:$0xff] %vm1111_vm5, %v10343_v11  ;;  %5370 = vmatmul.f32.gmra.mxu0 %v4170_v4  ;;  %v3629_v11 = vld [vmem:[#allocation2 + $0x2a8] sm:$0xff] }
 0x5dd   :  { %2563 = vst.msk [vmem:[#allocation3 + $0x8f0] sm:$0xff] %vm1111_vm5, %v10351_v53  ;;  %3791 = vrot.lane.b32.xlu0 %v3629_v11, %s6301_s1  ;;  %v10384_v4 = vpop.f32.mrf.mxu1  ;;  %v2747_v11 = vpop.permute.xlu1 %2746 }
 0x5de   :  { %4087 = vst.msk [vmem:[#allocation3 + $0x700] sm:$0xff] %vm1111_vm5, %v10132_v5  ;;  %v10374_v5 = vld [vmem:[#allocation2 + $0x3e9] sm:$0xff] }
 0x5df   :  { %3929 = vst.msk [vmem:[#allocation3 + $0x248] sm:$0xff] %vm2377_vm9, %v3752_v24  ;;  %v10376_v24 = vpop.f32.mrf.mxu2 }
 0x5e0   :  { %12433 = vst [vmem:[#allocation121_spill] sm:$0xff] %v10368_v39 }
 0x5e1   :  { %3933 = vst.msk [vmem:[#allocation3 + $0x2e8] sm:$0xff] %vm2377_vm9, %v3760_v28  ;;  %v4153_v28 = vld [vmem:[#allocation3 + $0x170] sm:$0xff]  ;;  %2770 = vrot.lane.b32.xlu1 %v9777_v8, %s6301_s1 }
 0x5e2   :  { %3078 = vst.msk [vmem:[#allocation3 + $0x970] sm:$0xff] %vm1111_vm5, %v10362_v26  ;;  %v3762_v63 = vpop.permute.xlu2 %3761  ;;  %4943 = vmatmul.f32.gmra.mxu2 %v4153_v28  ;;  %v3253_v28 = vpop.permute.xlu0 %3252  ;;  %v4189_v8 = vld [vmem:[#allocation3 + $0x290] sm:$0xff] }
 0x5e3   :  { %12434 = vst [vmem:[#allocation122_spill] sm:$0xff] %v10376_v24  ;;  %v10392_v24 = vld [vmem:[#allocation2 + $0x44f] sm:$0xff] }
 0x5e4   :  { %3591 = vst.msk [vmem:[#allocation3 + $0x978] sm:$0xff] %vm1111_vm5, %v10368_v39 }
 0x5e5   :  { %2916 = vst.msk [vmem:[#allocation3 + $0x418] sm:$0xff] %vm2377_vm9, %v2751_v12  ;;  %v4179_v12 = vld [vmem:[#allocation3 + $0x240] sm:$0xff] }
 0x5e6   :  { %12435 = vst [vmem:[#allocation123_spill] sm:$0xff] %v10384_v4  ;;  %v4175_v4 = vld [vmem:[#allocation3 + $0x220] sm:$0xff]  ;;  %5167 = vmatmul.f32.gmra.mxu3 %v4179_v12  ;;  %v3247_v12 = vpop.permute.xlu1 %3246 }
 0x5e7   :  { %2564 = vst.msk [vmem:[#allocation3 + $0x918] sm:$0xff] %vm1111_vm5, %v10374_v5  ;;  %5373 = vmatmul.f32.gmra.mxu0 %v4175_v4  ;;  %v10404_v39 = vpop.f32.mrf.mxu2  ;;  %v3116_v4 = vld [vmem:[#allocation2 + $0x289] sm:$0xff] }
 0x5e8   :  { %4088 = vst.msk [vmem:[#allocation3 + $0x728] sm:$0xff] %vm1111_vm5, %v10156_v29  ;;  %v3630_v29 = vld [vmem:[#allocation2 + $0x2b0] sm:$0xff]  ;;  %3278 = vrot.lane.b32.xlu2 %v3116_v4, %s6301_s1 }
 0x5e9   :  { %12436 = vst [vmem:[#allocation124_spill] sm:$0xff] %v10392_v24  ;;  %3793 = vrot.lane.b32.xlu0 %v3630_v29, %s6301_s1  ;;  %v4158_v29 = vld [vmem:[#allocation3 + $0x198] sm:$0xff]  ;;  %3282 = vrot.lane.b32.xlu1 %v9826_v15, %s6301_s1 }
 0x5ea   :  { %3079 = vst.msk [vmem:[#allocation3 + $0x998] sm:$0xff] %vm1111_vm5, %v10381_v36  ;;  %4946 = vmatmul.f32.gmra.mxu2 %v4158_v29  ;;  %v10429_v4 = vld [vmem:[#allocation2 + $0x411] sm:$0xff]  ;;  %v10441_v29 = vld [vmem:[#allocation2 + $0x429] sm:$0xff] }
 0x5eb   :  { %2914 = vst.msk [vmem:[#allocation3 + $0x3c8] sm:$0xff] %vm2377_vm9, %v2747_v11  ;;  %v10406_v11 = vld [vmem:[#allocation2 + $0x448] sm:$0xff]  ;;  %v4194_v15 = vld [vmem:[#allocation3 + $0x2b8] sm:$0xff] }
 0x5ec   :  { %3934 = vst.msk [vmem:[#allocation3 + $0x310] sm:$0xff] %vm2377_vm9, %v3762_v63  ;;  %v10416_v63 = vpop.f32.mrf.mxu1 }
 0x5ed   :  { %3592 = vst.msk [vmem:[#allocation3 + $0x9a0] sm:$0xff] %vm1111_vm5, %v10392_v24  ;;  %v4180_v24 = vld [vmem:[#allocation3 + $0x248] sm:$0xff] }
 0x5ee   :  { %12437 = vst [vmem:[#allocation125_spill] sm:$0xff] %v10404_v39  ;;  %v4146_v39 = vld [vmem:[#allocation3 + $0x138] sm:$0xff]  ;;  %5170 = vmatmul.f32.gmra.mxu3 %v4184_v57 }
 0x5ef   :  { %2565 = vst.msk [vmem:[#allocation3 + $0x940] sm:$0xff] %vm1111_vm5, %v10398_v6  ;;  %6196 = vmatmul.msk.f32.gmra.mxu1 %vm1111_vm5, %v4146_v39  ;;  %5376 = vmatmul.f32.gmra.mxu0 %v4180_v24  ;;  %v3255_v39 = vpop.permute.xlu0 %3254 }
 0x5f0   :  { %4089 = vst.msk [vmem:[#allocation3 + $0x750] sm:$0xff] %vm1111_vm5, %v10183_v58  ;;  %v3764_v58 = vpop.permute.xlu2 %3763  ;;  %3280 = vrot.lane.b32.xlu2 %v9757_v27, %s6301_s1  ;;  %v10458_v27 = vpop.f32.mrf.mxu0 }
 0x5f1   :  { %12438 = vst [vmem:[#allocation126_spill] sm:$0xff] %v10416_v63  ;;  %2774 = vrot.lane.b32.xlu0 %v9782_v42, %s6301_s1  ;;  %v3249_v42 = vpop.permute.xlu1 %3248 }
 0x5f2   :  { %3423 = vst.msk [vmem:[#allocation3 + $0x358] sm:$0xff] %vm2377_vm9, %v3253_v28  ;;  %v10426_v28 = vld [vmem:[#allocation2 + $0x450] sm:$0xff] }
 0x5f3   :  { %3080 = vst.msk [vmem:[#allocation3 + $0x9c0] sm:$0xff] %vm1111_vm5, %v10406_v11 }
 0x5f4   :  { %2566 = vst.msk [vmem:[#allocation3 + $0x968] sm:$0xff] %vm1111_vm5, %v10412_v35  ;;  %v10445_v24 = vpop.f32.mrf.mxu1 }
 0x5f5   :  { %3420 = vst.msk [vmem:[#allocation3 + $0x2e0] sm:$0xff] %vm2377_vm9, %v3247_v12  ;;  %v10435_v12 = vpop.f32.mrf.mxu2 }
 0x5f6   :  { %3935 = vst.msk [vmem:[#allocation3 + $0x338] sm:$0xff] %vm2377_vm9, %v3764_v58  ;;  %v4151_v58 = vld [vmem:[#allocation3 + $0x160] sm:$0xff]  ;;  %5173 = vmatmul.f32.gmra.mxu3 %v4189_v8  ;;  %v4156_v8 = vld [vmem:[#allocation3 + $0x188] sm:$0xff] }
 0x5f7   :  { %4090 = vst.msk [vmem:[#allocation3 + $0x778] sm:$0xff] %vm1111_vm5, %v10199_v55  ;;  %v4163_v55 = vld [vmem:[#allocation3 + $0x1c0] sm:$0xff]  ;;  %6197 = vmatmul.msk.f32.gmra.mxu1 %vm1111_vm5, %v4151_v58  ;;  %v3257_v58 = vpop.permute.xlu0 %3256 }
 0x5f8   :  { %12439 = vst [vmem:[#allocation127_spill] sm:$0xff] %v10435_v12  ;;  %v2755_v57 = vpop.permute.xlu2 %2754  ;;  %4949 = vmatmul.f32.gmra.mxu2 %v4163_v55  ;;  %v4185_v12 = vld [vmem:[#allocation3 + $0x270] sm:$0xff]  ;;  %v10468_v55 = vpop.f32.mrf.mxu3  ;;  %2772 = vrot.lane.b32.xlu2 %v9799_v37, %s6301_s1 }
 0x5f9   :  { %3081 = vst.msk [vmem:[#allocation3 + $0x9e8] sm:$0xff] %vm1111_vm5, %v10426_v28  ;;  %5379 = vmatmul.f32.gmra.mxu0 %v4185_v12  ;;  %v3122_v37 = vld [vmem:[#allocation2 + $0x2e9] sm:$0xff] }
 0x5fa   :  { %2567 = vst.msk [vmem:[#allocation3 + $0x990] sm:$0xff] %vm1111_vm5, %v10429_v4 }
 0x5fb   :  { %12440 = vst [vmem:[#allocation128_spill] sm:$0xff] %v10445_v24 }
 0x5fc   :  { %3424 = vst.msk [vmem:[#allocation3 + $0x380] sm:$0xff] %vm2377_vm9, %v3255_v39  ;;  %v10456_v39 = vld [vmem:[#allocation2 + $0x431] sm:$0xff]  ;;  %v10474_v12 = vpop.f32.mrf.mxu1 }
 0x5fd   :  { %4091 = vst.msk [vmem:[#allocation3 + $0x7a0] sm:$0xff] %vm1111_vm5, %v10227_v31  ;;  %v3121_v31 = vld [vmem:[#allocation2 + $0x2d1] sm:$0xff] }
 0x5fe   :  { %2568 = vst.msk [vmem:[#allocation3 + $0x9b8] sm:$0xff] %vm1111_vm5, %v10441_v29  ;;  %3288 = vrot.lane.b32.xlu0 %v3121_v31, %s6301_s1  ;;  %v4190_v31 = vld [vmem:[#allocation3 + $0x298] sm:$0xff]  ;;  %5176 = vmatmul.f32.gmra.mxu3 %v4194_v15  ;;  %v4161_v15 = vld [vmem:[#allocation3 + $0x1b0] sm:$0xff] }
 0x5ff   :  { %3421 = vst.msk [vmem:[#allocation3 + $0x308] sm:$0xff] %vm2377_vm9, %v3249_v42  ;;  %v10464_v42 = vpop.f32.mrf.mxu2  ;;  %6198 = vmatmul.msk.f32.gmra.mxu1 %vm1111_vm5, %v4156_v8  ;;  %v3631_v8 = vld [vmem:[#allocation2 + $0x2c8] sm:$0xff] }
 0x600   :  { %2918 = vst.msk [vmem:[#allocation3 + $0x468] sm:$0xff] %vm2377_vm9, %v2755_v57  ;;  %v4168_v57 = vld [vmem:[#allocation3 + $0x1e8] sm:$0xff]  ;;  %3795 = vrot.lane.b32.xlu2 %v3631_v8, %s6301_s1 }
 0x601   :  { %4092 = vst.msk [vmem:[#allocation3 + $0x7c8] sm:$0xff] %vm1111_vm5, %v10252_v50  ;;  %v3251_v50 = vpop.permute.xlu1 %3250  ;;  %4952 = vmatmul.f32.gmra.mxu2 %v4168_v57  ;;  %5382 = vmatmul.f32.gmra.mxu0 %v4190_v31  ;;  %v2757_v57 = vpop.permute.xlu0 %2756 }
 0x602   :  { %12441 = vst [vmem:[#allocation129_spill] sm:$0xff] %v10464_v42 }
 0x603   :  { %2569 = vst.msk [vmem:[#allocation3 + $0x9e0] sm:$0xff] %vm1111_vm5, %v10456_v39 }
 0x604   :  { %4093 = vst.msk [vmem:[#allocation3 + $0x7f0] sm:$0xff] %vm1111_vm5, %v10277_v49  ;;  %v3259_v49 = vpop.permute.xlu2 %3258 }
 0x605   :  { %12442 = vst [vmem:[#allocation130_spill] sm:$0xff] %v10474_v12 }
 0x606   :  { %3425 = vst.msk [vmem:[#allocation3 + $0x3a8] sm:$0xff] %vm2377_vm9, %v3257_v58  ;;  %3290 = vrot.lane.b32.xlu0 %v3122_v37, %s6301_s1  ;;  %v10495_v58 = vpop.f32.mrf.mxu3  ;;  %v4195_v37 = vld [vmem:[#allocation3 + $0x2c0] sm:$0xff] }
 0x607   :  { %4094 = vst.msk [vmem:[#allocation3 + $0x818] sm:$0xff] %vm1111_vm5, %v10305_v10  ;;  %v10489_v10 = vpop.f32.mrf.mxu0  ;;  %6199 = vmatmul.msk.f32.gmra.mxu1 %vm1111_vm5, %v4161_v15 }
 0x608   :  { %4095 = vst.msk [vmem:[#allocation3 + $0x840] sm:$0xff] %vm1111_vm5, %v10323_v34  ;;  %v10491_v34 = vpop.f32.mrf.mxu2  ;;  %3797 = vrot.lane.b32.xlu2 %v9858_v2, %s6301_s1  ;;  %v3124_v2 = vld [vmem:[#allocation2 + $0x309] sm:$0xff] }
 0x609   :  { %3422 = vst.msk [vmem:[#allocation3 + $0x330] sm:$0xff] %vm2377_vm9, %v3251_v50  ;;  %v3119_v50 = vld [vmem:[#allocation2 + $0x2b1] sm:$0xff]  ;;  %5385 = vmatmul.f32.gmra.mxu0 %v4195_v37 }
 0x60a   :  { %3426 = vst.msk [vmem:[#allocation3 + $0x3d0] sm:$0xff] %vm2377_vm9, %v3259_v49  ;;  %3284 = vrot.lane.b32.xlu1 %v3119_v50, %s6301_s1  ;;  %v10500_v49 = vpop.f32.mrf.mxu1  ;;  %v3123_v50 = vld [vmem:[#allocation2 + $0x2f1] sm:$0xff] }
 0x60b   :  { %4096 = vst.msk [vmem:[#allocation3 + $0x868] sm:$0xff] %vm1111_vm5, %v10351_v53  ;;  %v2753_v53 = vpop.permute.xlu1 %2752  ;;  %v4166_v37 = vld [vmem:[#allocation3 + $0x1d8] sm:$0xff] }
 0x60c   :  { %12443 = vst [vmem:[#allocation131_spill] sm:$0xff] %v10491_v34  ;;  %v3261_v31 = vpop.permute.xlu2 %3260 }
 0x60d   :  { %4097 = vst.msk [vmem:[#allocation3 + $0x890] sm:$0xff] %vm1111_vm5, %v10374_v5  ;;  %v4173_v5 = vld [vmem:[#allocation3 + $0x210] sm:$0xff] }
 0x60e   :  { %4098 = vst.msk [vmem:[#allocation3 + $0x8b8] sm:$0xff] %vm1111_vm5, %v10398_v6  ;;  %4955 = vmatmul.f32.gmra.mxu2 %v4173_v5  ;;  %v4199_v6 = vld [vmem:[#allocation3 + $0x2e0] sm:$0xff]  ;;  %3292 = vrot.lane.b32.xlu0 %v3123_v50, %s6301_s1  ;;  %v10518_v8 = vpop.f32.mrf.mxu3  ;;  %v3772_v5 = vpop.permute.xlu0 %3771 }
 0x60f   :  { %12444 = vst [vmem:[#allocation132_spill] sm:$0xff] %v10500_v49  ;;  %5179 = vmatmul.f32.gmra.mxu3 %v4199_v6  ;;  %v4178_v6 = vld [vmem:[#allocation3 + $0x238] sm:$0xff]  ;;  %6200 = vmatmul.msk.f32.gmra.mxu1 %vm1111_vm5, %v4166_v37 }
 0x610   :  { %2919 = vst.msk [vmem:[#allocation3 + $0x490] sm:$0xff] %vm2377_vm9, %v2757_v57  ;;  %v4040_v57 = vld [vmem:[#allocation2 + $0x451] sm:$0xff]  ;;  %3799 = vrot.lane.b32.xlu2 %v9884_v9, %s6301_s1 }
 0x611   :  { %4099 = vst.msk [vmem:[#allocation3 + $0x8e0] sm:$0xff] %vm1111_vm5, %v10412_v35  ;;  %v4039_v35 = vld [vmem:[#allocation2 + $0x449] sm:$0xff] }
 0x612   :  { %4100 = vst.msk [vmem:[#allocation3 + $0x908] sm:$0xff] %vm1111_vm5, %v10429_v4  ;;  %v10514_v4 = vpop.f32.mrf.mxu2  ;;  %v10522_v15 = vpop.f32.mrf.mxu1 }
 0x613   :  { %2917 = vst.msk [vmem:[#allocation3 + $0x440] sm:$0xff] %vm2377_vm9, %v2753_v53  ;;  %v3120_v53 = vld [vmem:[#allocation2 + $0x2c9] sm:$0xff] }
 0x614   :  { %3427 = vst.msk [vmem:[#allocation3 + $0x3f8] sm:$0xff] %vm2377_vm9, %v3261_v31  ;;  %3286 = vrot.lane.b32.xlu1 %v3120_v53, %s6301_s1  ;;  %v10525_v31 = vpop.f32.mrf.mxu0  ;;  %v3263_v50 = vpop.permute.xlu2 %3262  ;;  %v4200_v53 = vld [vmem:[#allocation3 + $0x2e8] sm:$0xff] }
 0x615   :  { %4101 = vst.msk [vmem:[#allocation3 + $0x930] sm:$0xff] %vm1111_vm5, %v10441_v29  ;;  %v2474_v29 = vld [vmem:[#allocation2 + $0x249] sm:$0xff]  ;;  %5388 = vmatmul.f32.gmra.mxu0 %v4200_v53 }
 0x616   :  { %12445 = vst [vmem:[#allocation133_spill] sm:$0xff] %v10514_v4  ;;  %4958 = vmatmul.f32.gmra.mxu2 %v4178_v6  ;;  %3294 = vrot.lane.b32.xlu0 %v3124_v2, %s6301_s1  ;;  %v4209_v2 = vld [vmem:[#allocation3 + $0x330] sm:$0xff] }
 0x617   :  { %4102 = vst.msk [vmem:[#allocation3 + $0x958] sm:$0xff] %vm1111_vm5, %v10456_v39  ;;  %v3766_v39 = vpop.permute.xlu1 %3765 }
 0x618   :  { %4103 = vst.msk [vmem:[#allocation3 + $0x980] sm:$0xff] %vm1111_vm5, %v4039_v35  ;;  %v4204_v35 = vld [vmem:[#allocation3 + $0x308] sm:$0xff]  ;;  %3801 = vrot.lane.b32.xlu2 %v9910_v0, %s6301_s1 }
 0x619   :  { %12446 = vst [vmem:[#allocation134_spill] sm:$0xff] %v10522_v15  ;;  %5182 = vmatmul.f32.gmra.mxu3 %v4204_v35  ;;  %v4171_v35 = vld [vmem:[#allocation3 + $0x200] sm:$0xff] }
 0x61a   :  { %3939 = vst.msk [vmem:[#allocation3 + $0x3d8] sm:$0xff] %vm2377_vm9, %v3772_v5  ;;  %v10537_v5 = vpop.f32.mrf.mxu3  ;;  %6201 = vmatmul.msk.f32.gmra.mxu1 %vm1111_vm5, %v4171_v35  ;;  %v4188_v35 = vld [vmem:[#allocation3 + $0x288] sm:$0xff] }
 0x61b   :  { %4104 = vst.msk [vmem:[#allocation3 + $0x9a8] sm:$0xff] %vm1111_vm5, %v4040_v57  ;;  %v10535_v57 = vpop.f32.mrf.mxu2 }
 0x61c   :  { %2538 = vst.msk [vmem:[#allocation3 + $0x508] sm:$0xff] %vm1111_vm5, %v2474_v29  ;;  %v3774_v29 = vpop.permute.xlu0 %3773  ;;  %2776 = vrot.lane.b32.xlu1 %v9803_v48, %s6301_s1  ;;  %v10546_v6 = vpop.f32.mrf.mxu0  ;;  %v3125_v48 = vld [vmem:[#allocation2 + $0x311] sm:$0xff] }
 0x61d   :  { %3936 = vst.msk [vmem:[#allocation3 + $0x360] sm:$0xff] %vm2377_vm9, %v3766_v39  ;;  %v10541_v39 = vpop.f32.mrf.mxu1  ;;  %v2761_v53 = vpop.permute.xlu2 %2760 }
 0x61e   :  { %3428 = vst.msk [vmem:[#allocation3 + $0x420] sm:$0xff] %vm2377_vm9, %v3263_v50  ;;  %v4183_v50 = vld [vmem:[#allocation3 + $0x260] sm:$0xff]  ;;  %3296 = vrot.lane.b32.xlu0 %v3125_v48, %s6301_s1  ;;  %v4214_v48 = vld [vmem:[#allocation3 + $0x358] sm:$0xff] }
 0x61f   :  { %12447 = vst [vmem:[#allocation135_spill] sm:$0xff] %v10535_v57  ;;  %v3768_v37 = vpop.permute.xlu1 %3767  ;;  %4961 = vmatmul.f32.gmra.mxu2 %v4183_v50  ;;  %v4205_v57 = vld [vmem:[#allocation3 + $0x310] sm:$0xff] }
 0x620   :  { %12448 = vst [vmem:[#allocation136_spill] sm:$0xff] %v10541_v39  ;;  %5391 = vmatmul.f32.gmra.mxu0 %v4205_v57  ;;  %3803 = vrot.lane.b32.xlu2 %v9935_v52, %s6301_s1 }
 0x621   :  { %3940 = vst.msk [vmem:[#allocation3 + $0x400] sm:$0xff] %vm2377_vm9, %v3774_v29  ;;  %5185 = vmatmul.f32.gmra.mxu3 %v4209_v2 }
 0x622   :  { %3937 = vst.msk [vmem:[#allocation3 + $0x388] sm:$0xff] %vm2377_vm9, %v3768_v37  ;;  %v10554_v29 = vpop.f32.mrf.mxu3 }
 0x623   :  { %2921 = vst.msk [vmem:[#allocation3 + $0x4e0] sm:$0xff] %vm2377_vm9, %v2761_v53  ;;  %v10552_v9 = vpop.f32.mrf.mxu2  ;;  %v4176_v53 = vld [vmem:[#allocation3 + $0x228] sm:$0xff] }
 0x624   :  { %12449 = vst [vmem:[#allocation137_spill] sm:$0xff] %v10552_v9  ;;  %v3776_v4 = vpop.permute.xlu0 %3775  ;;  %2778 = vrot.lane.b32.xlu1 %v9840_v61, %s6301_s1  ;;  %v10563_v50 = vpop.f32.mrf.mxu0  ;;  %v4210_v9 = vld [vmem:[#allocation3 + $0x338] sm:$0xff]  ;;  %6202 = vmatmul.msk.f32.gmra.mxu1 %vm1111_vm5, %v4176_v53  ;;  %v3126_v61 = vld [vmem:[#allocation2 + $0x329] sm:$0xff] }
 0x625   :  { %v10558_v37 = vpop.f32.mrf.mxu1  ;;  %3941 = vst.msk [vmem:[#allocation3 + $0x428] sm:$0xff] %vm2377_vm9, %v3776_v4  ;;  %v3778_v2 = vpop.permute.xlu2 %3777 }
 0x626   :  { %12450 = vst [vmem:[#allocation138_spill] sm:$0xff] %v10558_v37  ;;  %3298 = vrot.lane.b32.xlu0 %v3126_v61, %s6301_s1  ;;  %v4215_v61 = vld [vmem:[#allocation3 + $0x360] sm:$0xff] }
 0x627   :  { %v3770_v57 = vpop.permute.xlu1 %3769  ;;  %4964 = vmatmul.f32.gmra.mxu2 %v4188_v35  ;;  %3942 = vst.msk [vmem:[#allocation3 + $0x450] sm:$0xff] %vm2377_vm9, %v3778_v2  ;;  %v4181_v2 = vld [vmem:[#allocation3 + $0x250] sm:$0xff] }
 0x628   :  { %3938 = vst.msk [vmem:[#allocation3 + $0x3b0] sm:$0xff] %vm2377_vm9, %v3770_v57  ;;  %5394 = vmatmul.f32.gmra.mxu0 %v4210_v9  ;;  %3805 = vrot.lane.b32.xlu2 %v9956_v46, %s6301_s1 }
 0x629   :  { %5188 = vmatmul.f32.gmra.mxu3 %v4214_v48 }
 0x62a   :  { %v10570_v34 = vpop.f32.mrf.mxu3 }
 0x62b   :  { %v4917_v0 = vpop.f32.mrf.mxu2 }
 0x62c   :  { %v4918_v4 = vadd.f32 %v4917_v0, %v9682_v17  ;;  %v2763_v42 = vpop.permute.xlu0 %2762  ;;  %2780 = vrot.lane.b32.xlu1 %v9865_v45, %s6301_s1  ;;  %v10582_v9 = vpop.f32.mrf.mxu0  ;;  %v4193_v17 = vld [vmem:[#allocation3 + $0x2b0] sm:$0xff]  ;;  %v4219_v45 = vld [vmem:[#allocation3 + $0x380] sm:$0xff]  ;;  %6203 = vmatmul.msk.f32.gmra.mxu1 %vm1111_vm5, %v4181_v2 }
 0x62d   :  { %v10574_v57 = vpop.f32.mrf.mxu1  ;;  %2922 = vst.msk [vmem:[#allocation3 + $0x508] sm:$0xff] %vm2377_vm9, %v2763_v42  ;;  %v3780_v48 = vpop.permute.xlu2 %3779  ;;  %v3127_v42 = vld [vmem:[#allocation2 + $0x331] sm:$0xff] }
 0x62e   :  { %12451 = vst [vmem:[#allocation139_spill] sm:$0xff] %v10574_v57  ;;  %v10578_v35 = vadd.f32 %v10468_v55, %v4918_v4  ;;  %v2475_v55 = vld [vmem:[#allocation2 + $0x251] sm:$0xff]  ;;  %3300 = vrot.lane.b32.xlu0 %v3127_v42, %s6301_s1 }
 0x62f   :  { %v2759_v53 = vpop.permute.xlu1 %2758  ;;  %4967 = vmatmul.f32.gmra.mxu2 %v4193_v17  ;;  %3943 = vst.msk [vmem:[#allocation3 + $0x478] sm:$0xff] %vm2377_vm9, %v3780_v48 }
 0x630   :  { %2920 = vst.msk [vmem:[#allocation3 + $0x4b8] sm:$0xff] %vm2377_vm9, %v2759_v53  ;;  %5397 = vmatmul.f32.gmra.mxu0 %v4215_v61  ;;  %v4186_v61 = vld [vmem:[#allocation3 + $0x278] sm:$0xff]  ;;  %3807 = vrot.lane.b32.xlu2 %v9984_v40, %s6301_s1 }
 0x631   :  { %5191 = vmatmul.f32.gmra.mxu3 %v4219_v45  ;;  %2539 = vst.msk [vmem:[#allocation3 + $0x530] sm:$0xff] %vm1111_vm5, %v2475_v55  ;;  %v4220_v55 = vld [vmem:[#allocation3 + $0x388] sm:$0xff]  ;;  %v3129_v40 = vld [vmem:[#allocation2 + $0x351] sm:$0xff] }
 0x632   :  { %v10590_v4 = vpop.f32.mrf.mxu3 }
 0x633   :  { %v4920_v52 = vpop.f32.mrf.mxu2 }
 0x634   :  { %v4921_v0 = vadd.f32 %v4920_v52, %v9718_v23  ;;  %v3271_v53 = vpop.permute.xlu0 %3270  ;;  %2782 = vrot.lane.b32.xlu1 %v9892_v59, %s6301_s1  ;;  %v10602_v48 = vpop.f32.mrf.mxu0  ;;  %v4198_v23 = vld [vmem:[#allocation3 + $0x2d8] sm:$0xff]  ;;  %v4224_v59 = vld [vmem:[#allocation3 + $0x3a8] sm:$0xff]  ;;  %6204 = vmatmul.msk.f32.gmra.mxu1 %vm1111_vm5, %v4186_v61 }
 0x635   :  { %v10594_v17 = vpop.f32.mrf.mxu1  ;;  %3432 = vst.msk [vmem:[#allocation3 + $0x4c0] sm:$0xff] %vm2377_vm9, %v3271_v53  ;;  %v3782_v42 = vpop.permute.xlu2 %3781  ;;  %v3497_v52 = vld [vmem:[#allocation2 + $0x227] sm:$0xff] }
 0x636   :  { %12452 = vst [vmem:[#allocation140_spill] sm:$0xff] %v10594_v17  ;;  %v10598_v2 = vadd.f32 %v10495_v58, %v4921_v0  ;;  %v3128_v58 = vld [vmem:[#allocation2 + $0x349] sm:$0xff] }
 0x637   :  { %v3265_v45 = vpop.permute.xlu1 %3264  ;;  %4970 = vmatmul.f32.gmra.mxu2 %v4198_v23  ;;  %3944 = vst.msk [vmem:[#allocation3 + $0x4a0] sm:$0xff] %vm2377_vm9, %v3782_v42  ;;  %3302 = vrot.lane.b32.xlu0 %v3128_v58, %s6301_s1 }
 0x638   :  { %3429 = vst.msk [vmem:[#allocation3 + $0x448] sm:$0xff] %vm2377_vm9, %v3265_v45  ;;  %5400 = vmatmul.f32.gmra.mxu0 %v4220_v55  ;;  %v4203_v55 = vld [vmem:[#allocation3 + $0x300] sm:$0xff]  ;;  %3809 = vrot.lane.b32.xlu2 %v10008_v16, %s6301_s1  ;;  %v3130_v16 = vld [vmem:[#allocation2 + $0x369] sm:$0xff] }
 0x639   :  { %5194 = vmatmul.f32.gmra.mxu3 %v4224_v59  ;;  %3561 = vst.msk [vmem:[#allocation3 + $0x4c8] sm:$0xff] %vm1111_vm5, %v3497_v52  ;;  %v4229_v52 = vld [vmem:[#allocation3 + $0x3d0] sm:$0xff] }
 0x63a   :  { %v10610_v53 = vpop.f32.mrf.mxu3 }
 0x63b   :  { %v4923_v46 = vpop.f32.mrf.mxu2 }
 0x63c   :  { %v4924_v0 = vadd.f32 %v4923_v46, %v9761_v62  ;;  %v3273_v45 = vpop.permute.xlu0 %3272  ;;  %2784 = vrot.lane.b32.xlu1 %v9915_v14, %s6301_s1  ;;  %v10620_v42 = vpop.f32.mrf.mxu0  ;;  %v4191_v62 = vld [vmem:[#allocation3 + $0x2a0] sm:$0xff]  ;;  %v4225_v14 = vld [vmem:[#allocation3 + $0x3b0] sm:$0xff] }
 0x63d   :  { %v10614_v23 = vpop.f32.mrf.mxu1  ;;  %3433 = vst.msk [vmem:[#allocation3 + $0x4e8] sm:$0xff] %vm2377_vm9, %v3273_v45  ;;  %v2767_v58 = vpop.permute.xlu2 %2766  ;;  %6205 = vmatmul.msk.f32.gmra.mxu1 %vm1111_vm5, %v4191_v62 }
 0x63e   :  { %v5133_v61 = vadd.f32 %v10518_v8, %v4924_v0  ;;  %2924 = vst.msk [vmem:[#allocation3 + $0x558] sm:$0xff] %vm2377_vm9, %v2767_v58  ;;  %v3498_v8 = vld [vmem:[#allocation2 + $0x22f] sm:$0xff] }
 0x63f   :  { %v3267_v59 = vpop.permute.xlu1 %3266  ;;  %4973 = vmatmul.f32.gmra.mxu2 %v4203_v55  ;;  %3304 = vrot.lane.b32.xlu0 %v3129_v40, %s6301_s1  ;;  %3562 = vst.msk [vmem:[#allocation3 + $0x4f0] sm:$0xff] %vm1111_vm5, %v3498_v8  ;;  %v4234_v40 = vld [vmem:[#allocation3 + $0x3f8] sm:$0xff] }
 0x640   :  { %3430 = vst.msk [vmem:[#allocation3 + $0x470] sm:$0xff] %vm2377_vm9, %v3267_v59  ;;  %v10625_v46 = vadd.f32 %v10525_v31, %v5133_v61  ;;  %5403 = vmatmul.f32.gmra.mxu0 %v4225_v14  ;;  %3811 = vrot.lane.b32.xlu2 %v10028_v51, %s6301_s1  ;;  %v3131_v51 = vld [vmem:[#allocation2 + $0x371] sm:$0xff] }
 0x641   :  { %5197 = vmatmul.f32.gmra.mxu3 %v4229_v52  ;;  %v4208_v52 = vld [vmem:[#allocation3 + $0x328] sm:$0xff] }
 0x642   :  { %v10631_v59 = vpop.f32.mrf.mxu3 }
 0x643   :  { %v4926_v0 = vpop.f32.mrf.mxu2 }
 0x644   :  { %v4927_v45 = vadd.f32 %v4926_v0, %v9792_v13  ;;  %v3275_v55 = vpop.permute.xlu0 %3274  ;;  %2786 = vrot.lane.b32.xlu1 %v9939_v44, %s6301_s1  ;;  %v10641_v62 = vpop.f32.mrf.mxu0  ;;  %v4196_v13 = vld [vmem:[#allocation3 + $0x2c8] sm:$0xff]  ;;  %v4230_v44 = vld [vmem:[#allocation3 + $0x3d8] sm:$0xff] }
 0x645   :  { %v10635_v31 = vpop.f32.mrf.mxu1  ;;  %3434 = vst.msk [vmem:[#allocation3 + $0x510] sm:$0xff] %vm2377_vm9, %v3275_v55  ;;  %v3277_v14 = vpop.permute.xlu2 %3276  ;;  %6206 = vmatmul.msk.f32.gmra.mxu1 %vm1111_vm5, %v4196_v13  ;;  %v4213_v13 = vld [vmem:[#allocation3 + $0x350] sm:$0xff] }
 0x646   :  { %v5136_v61 = vadd.f32 %v10537_v5, %v4927_v45  ;;  %3435 = vst.msk [vmem:[#allocation3 + $0x538] sm:$0xff] %vm2377_vm9, %v3277_v14 }
 0x647   :  { %v3269_v58 = vpop.permute.xlu1 %3268  ;;  %4976 = vmatmul.f32.gmra.mxu2 %v4208_v52  ;;  %3306 = vrot.lane.b32.xlu0 %v3130_v16, %s6301_s1  ;;  %v12453_v16 = vld [vmem:[#allocation88_spill] sm:$0xff] }
 0x648   :  { %3431 = vst.msk [vmem:[#allocation3 + $0x498] sm:$0xff] %vm2377_vm9, %v3269_v58  ;;  %v10646_v8 = vadd.f32 %v10546_v6, %v5136_v61  ;;  %5406 = vmatmul.f32.gmra.mxu0 %v4230_v44 }
 0x649   :  { %5200 = vmatmul.f32.gmra.mxu3 %v4234_v40  ;;  %v4239_v40 = vld [vmem:[#allocation3 + $0x420] sm:$0xff] }
 0x64a   :  { %v10651_v45 = vpop.f32.mrf.mxu3 }
 0x64b   :  { %v4929_v5 = vpop.f32.mrf.mxu2 }
 0x64c   :  { %v4930_v0 = vadd.f32 %v4929_v5, %v9830_v22  ;;  %v2769_v55 = vpop.permute.xlu0 %2768  ;;  %2788 = vrot.lane.b32.xlu1 %v9966_v18, %s6301_s1  ;;  %v10661_v61 = vpop.f32.mrf.mxu0  ;;  %v4201_v22 = vld [vmem:[#allocation3 + $0x2f0] sm:$0xff]  ;;  %v4235_v18 = vld [vmem:[#allocation3 + $0x400] sm:$0xff] }
 0x64d   :  { %v10655_v58 = vpop.f32.mrf.mxu1  ;;  %2925 = vst.msk [vmem:[#allocation3 + $0x580] sm:$0xff] %vm2377_vm9, %v2769_v55  ;;  %v3279_v14 = vpop.permute.xlu2 %3278  ;;  %6207 = vmatmul.msk.f32.gmra.mxu1 %vm1111_vm5, %v4201_v22 }
 0x64e   :  { %v5139_v6 = vadd.f32 %v10554_v29, %v4930_v0  ;;  %3436 = vst.msk [vmem:[#allocation3 + $0x560] sm:$0xff] %vm2377_vm9, %v3279_v14 }
 0x64f   :  { %v2765_v52 = vpop.permute.xlu1 %2764  ;;  %4979 = vmatmul.f32.gmra.mxu2 %v4213_v13  ;;  %3308 = vrot.lane.b32.xlu0 %v3131_v51, %s6301_s1 }
 0x650   :  { %2923 = vst.msk [vmem:[#allocation3 + $0x530] sm:$0xff] %vm2377_vm9, %v2765_v52  ;;  %v10666_v44 = vadd.f32 %v10563_v50, %v5139_v6  ;;  %5409 = vmatmul.f32.gmra.mxu0 %v4235_v18  ;;  %v12454_v52 = vld [vmem:[#allocation81_spill] sm:$0xff]  ;;  %v4206_v18 = vld [vmem:[#allocation3 + $0x318] sm:$0xff] }
 0x651   :  { %5203 = vmatmul.f32.gmra.mxu3 %v4239_v40  ;;  %v12455_v6 = vld [vmem:[#allocation97_spill] sm:$0xff]  ;;  %v4218_v40 = vld [vmem:[#allocation3 + $0x378] sm:$0xff] }
 0x652   :  { %v10671_v0 = vpop.f32.mrf.mxu3  ;;  %3813 = vrot.lane.b32.xlu2 %v12455_v6, %s6301_s1 }
 0x653   :  { %v4932_v29 = vpop.f32.mrf.mxu2 }
 0x654   :  { %v4933_v5 = vadd.f32 %v4932_v29, %v12453_v16  ;;  %v3790_v55 = vpop.permute.xlu0 %3789  ;;  %2790 = vrot.lane.b32.xlu1 %v12454_v52, %s6301_s1  ;;  %v10681_v22 = vpop.f32.mrf.mxu0  ;;  %v4244_v29 = vld [vmem:[#allocation3 + $0x448] sm:$0xff] }
 0x655   :  { %v10675_v13 = vpop.f32.mrf.mxu1  ;;  %3948 = vst.msk [vmem:[#allocation3 + $0x540] sm:$0xff] %vm2377_vm9, %v3790_v55  ;;  %v3281_v51 = vpop.permute.xlu2 %3280  ;;  %v4240_v16 = vld [vmem:[#allocation3 + $0x428] sm:$0xff]  ;;  %6208 = vmatmul.msk.f32.gmra.mxu1 %vm1111_vm5, %v4206_v18 }
 0x656   :  { %v5142_v50 = vadd.f32 %v10570_v34, %v4933_v5  ;;  %3437 = vst.msk [vmem:[#allocation3 + $0x588] sm:$0xff] %vm2377_vm9, %v3281_v51  ;;  %v3132_v34 = vld [vmem:[#allocation2 + $0x389] sm:$0xff] }
 0x657   :  { %v3784_v14 = vpop.permute.xlu1 %3783  ;;  %4982 = vmatmul.f32.gmra.mxu2 %v4218_v40  ;;  %3310 = vrot.lane.b32.xlu0 %v3132_v34, %s6301_s1  ;;  %v12456_v52 = vld [vmem:[#allocation69_spill] sm:$0xff]  ;;  %v12457_v40 = vld [vmem:[#allocation94_spill] sm:$0xff]  ;;  %v4211_v34 = vld [vmem:[#allocation3 + $0x340] sm:$0xff] }
 0x658   :  { %3945 = vst.msk [vmem:[#allocation3 + $0x4c8] sm:$0xff] %vm2377_vm9, %v3784_v14  ;;  %v10686_v55 = vadd.f32 %v10582_v9, %v5142_v50  ;;  %5412 = vmatmul.f32.gmra.mxu0 %v4240_v16  ;;  %v12458_v50 = vld [vmem:[#allocation72_spill] sm:$0xff] }
 0x659   :  { %5206 = vmatmul.f32.gmra.mxu3 %v4244_v29  ;;  %v4223_v16 = vld [vmem:[#allocation3 + $0x3a0] sm:$0xff] }
 0x65a   :  { %v10691_v17 = vpop.f32.mrf.mxu3  ;;  %3815 = vrot.lane.b32.xlu2 %v12458_v50, %s6301_s1  ;;  %v12459_v50 = vld [vmem:[#allocation90_spill] sm:$0xff] }
 0x65b   :  { %v4935_v5 = vpop.f32.mrf.mxu2 }
 0x65c   :  { %v4936_v6 = vadd.f32 %v4935_v5, %v12456_v52  ;;  %v3792_v14 = vpop.permute.xlu0 %3791  ;;  %2792 = vrot.lane.b32.xlu1 %v12457_v40, %s6301_s1  ;;  %v10701_v51 = vpop.f32.mrf.mxu0  ;;  %v4249_v52 = vld [vmem:[#allocation3 + $0x470] sm:$0xff] }
 0x65d   :  { %v10695_v18 = vpop.f32.mrf.mxu1  ;;  %3949 = vst.msk [vmem:[#allocation3 + $0x568] sm:$0xff] %vm2377_vm9, %v3792_v14  ;;  %v2773_v5 = vpop.permute.xlu2 %2772  ;;  %v4245_v40 = vld [vmem:[#allocation3 + $0x450] sm:$0xff]  ;;  %6209 = vmatmul.msk.f32.gmra.mxu1 %vm1111_vm5, %v4211_v34 }
 0x65e   :  { %v5145_v9 = vadd.f32 %v10590_v4, %v4936_v6  ;;  %2927 = vst.msk [vmem:[#allocation3 + $0x5d0] sm:$0xff] %vm2377_vm9, %v2773_v5  ;;  %v3133_v4 = vld [vmem:[#allocation2 + $0x391] sm:$0xff] }
 0x65f   :  { %v3786_v29 = vpop.permute.xlu1 %3785  ;;  %4985 = vmatmul.f32.gmra.mxu2 %v4223_v16  ;;  %3312 = vrot.lane.b32.xlu0 %v3133_v4, %s6301_s1  ;;  %v12460_v16 = vld [vmem:[#allocation95_spill] sm:$0xff] }
 0x660   :  { %3946 = vst.msk [vmem:[#allocation3 + $0x4f0] sm:$0xff] %vm2377_vm9, %v3786_v29  ;;  %v10706_v14 = vadd.f32 %v10602_v48, %v5145_v9  ;;  %5415 = vmatmul.f32.gmra.mxu0 %v4245_v40  ;;  %v4216_v40 = vld [vmem:[#allocation3 + $0x368] sm:$0xff] }
 0x661   :  { %5209 = vmatmul.f32.gmra.mxu3 %v4249_v52  ;;  %v4228_v52 = vld [vmem:[#allocation3 + $0x3c8] sm:$0xff] }
 0x662   :  { %v10711_v39 = vpop.f32.mrf.mxu3  ;;  %3817 = vrot.lane.b32.xlu2 %v10097_v60, %s6301_s1  ;;  %v3134_v60 = vld [vmem:[#allocation2 + $0x3a9] sm:$0xff] }
 0x663   :  { %v4938_v6 = vpop.f32.mrf.mxu2 }
 0x664   :  { %v4939_v57 = vadd.f32 %v4938_v6, %v12459_v50  ;;  %v3794_v29 = vpop.permute.xlu0 %3793  ;;  %2794 = vrot.lane.b32.xlu1 %v12460_v16, %s6301_s1  ;;  %v10721_v9 = vpop.f32.mrf.mxu0  ;;  %v4254_v6 = vld [vmem:[#allocation3 + $0x498] sm:$0xff] }
 0x665   :  { %v10715_v34 = vpop.f32.mrf.mxu1  ;;  %3950 = vst.msk [vmem:[#allocation3 + $0x590] sm:$0xff] %vm2377_vm9, %v3794_v29  ;;  %v3796_v4 = vpop.permute.xlu2 %3795  ;;  %v4250_v50 = vld [vmem:[#allocation3 + $0x478] sm:$0xff]  ;;  %6210 = vmatmul.msk.f32.gmra.mxu1 %vm1111_vm5, %v4216_v40 }
 0x666   :  { %v5148_v48 = vadd.f32 %v10610_v53, %v4939_v57  ;;  %3951 = vst.msk [vmem:[#allocation3 + $0x5b8] sm:$0xff] %vm2377_vm9, %v3796_v4  ;;  %v12461_v53 = vld [vmem:[#allocation80_spill] sm:$0xff] }
 0x667   :  { %v3788_v5 = vpop.permute.xlu1 %3787  ;;  %4988 = vmatmul.f32.gmra.mxu2 %v4228_v52  ;;  %3314 = vrot.lane.b32.xlu0 %v3134_v60, %s6301_s1  ;;  %v12462_v52 = vld [vmem:[#allocation68_spill] sm:$0xff] }
 0x668   :  { %3947 = vst.msk [vmem:[#allocation3 + $0x518] sm:$0xff] %vm2377_vm9, %v3788_v5  ;;  %v10726_v29 = vadd.f32 %v10620_v42, %v5148_v48  ;;  %5418 = vmatmul.f32.gmra.mxu0 %v4250_v50  ;;  %v4221_v50 = vld [vmem:[#allocation3 + $0x390] sm:$0xff] }
 0x669   :  { %5212 = vmatmul.f32.gmra.mxu3 %v4254_v6  ;;  %v4233_v6 = vld [vmem:[#allocation3 + $0x3f0] sm:$0xff] }
 0x66a   :  { %v10731_v15 = vpop.f32.mrf.mxu3  ;;  %3819 = vrot.lane.b32.xlu2 %v10120_v30, %s6301_s1  ;;  %v3135_v30 = vld [vmem:[#allocation2 + $0x3b1] sm:$0xff] }
 0x66b   :  { %v4941_v57 = vpop.f32.mrf.mxu2 }
 0x66c   :  { %v4942_v16 = vadd.f32 %v4941_v57, %v12461_v53  ;;  %v2775_v5 = vpop.permute.xlu0 %2774  ;;  %2796 = vrot.lane.b32.xlu1 %v12462_v52, %s6301_s1  ;;  %v10741_v48 = vpop.f32.mrf.mxu0  ;;  %v4259_v57 = vld [vmem:[#allocation3 + $0x4c0] sm:$0xff] }
 0x66d   :  { %v10735_v40 = vpop.f32.mrf.mxu1  ;;  %2928 = vst.msk [vmem:[#allocation3 + $0x5f8] sm:$0xff] %vm2377_vm9, %v2775_v5  ;;  %v3798_v60 = vpop.permute.xlu2 %3797  ;;  %v4255_v53 = vld [vmem:[#allocation3 + $0x4a0] sm:$0xff]  ;;  %6211 = vmatmul.msk.f32.gmra.mxu1 %vm1111_vm5, %v4221_v50 }
 0x66e   :  { %v5151_v42 = vadd.f32 %v10631_v59, %v4942_v16  ;;  %3952 = vst.msk [vmem:[#allocation3 + $0x5e0] sm:$0xff] %vm2377_vm9, %v3798_v60  ;;  %v12463_v16 = vld [vmem:[#allocation92_spill] sm:$0xff] }
 0x66f   :  { %v2771_v4 = vpop.permute.xlu1 %2770  ;;  %4991 = vmatmul.f32.gmra.mxu2 %v4233_v6  ;;  %3316 = vrot.lane.b32.xlu0 %v3135_v30, %s6301_s1  ;;  %v12464_v6 = vld [vmem:[#allocation98_spill] sm:$0xff]  ;;  %v4238_v30 = vld [vmem:[#allocation3 + $0x418] sm:$0xff] }
 0x670   :  { %2926 = vst.msk [vmem:[#allocation3 + $0x5a8] sm:$0xff] %vm2377_vm9, %v2771_v4  ;;  %v10746_v5 = vadd.f32 %v10641_v62, %v5151_v42  ;;  %5421 = vmatmul.f32.gmra.mxu0 %v4255_v53  ;;  %v12465_v42 = vld [vmem:[#allocation103_spill] sm:$0xff] }
 0x671   :  { %5215 = vmatmul.f32.gmra.mxu3 %v4259_v57  ;;  %v4260_v57 = vld [vmem:[#allocation3 + $0x4c8] sm:$0xff] }
 0x672   :  { %v10751_v37 = vpop.f32.mrf.mxu3  ;;  %3821 = vrot.lane.b32.xlu2 %v12465_v42, %s6301_s1  ;;  %v12466_v42 = vld [vmem:[#allocation82_spill] sm:$0xff] }
 0x673   :  { %v4944_v59 = vpop.f32.mrf.mxu2 }
 0x674   :  { %v4945_v52 = vadd.f32 %v4944_v59, %v12463_v16  ;;  %v3289_v4 = vpop.permute.xlu0 %3288  ;;  %2798 = vrot.lane.b32.xlu1 %v12464_v6, %s6301_s1  ;;  %v10761_v60 = vpop.f32.mrf.mxu0  ;;  %v4226_v59 = vld [vmem:[#allocation3 + $0x3b8] sm:$0xff]  ;;  %v4264_v6 = vld [vmem:[#allocation3 + $0x4e8] sm:$0xff] }
 0x675   :  { %v10755_v50 = vpop.f32.mrf.mxu1  ;;  %3441 = vst.msk [vmem:[#allocation3 + $0x628] sm:$0xff] %vm2377_vm9, %v3289_v4  ;;  %v3800_v16 = vpop.permute.xlu2 %3799  ;;  %6212 = vmatmul.msk.f32.gmra.mxu1 %vm1111_vm5, %v4226_v59 }
 0x676   :  { %v5154_v62 = vadd.f32 %v10651_v45, %v4945_v52  ;;  %3953 = vst.msk [vmem:[#allocation3 + $0x608] sm:$0xff] %vm2377_vm9, %v3800_v16  ;;  %v3136_v45 = vld [vmem:[#allocation2 + $0x3c9] sm:$0xff] }
 0x677   :  { %v3283_v53 = vpop.permute.xlu1 %3282  ;;  %4994 = vmatmul.f32.gmra.mxu2 %v4238_v30  ;;  %3318 = vrot.lane.b32.xlu0 %v3136_v45, %s6301_s1  ;;  %v12467_v30 = vld [vmem:[#allocation99_spill] sm:$0xff]  ;;  %v4231_v45 = vld [vmem:[#allocation3 + $0x3e0] sm:$0xff] }
 0x678   :  { %3438 = vst.msk [vmem:[#allocation3 + $0x5b0] sm:$0xff] %vm2377_vm9, %v3283_v53  ;;  %v10766_v4 = vadd.f32 %v10661_v61, %v5154_v62  ;;  %5424 = vmatmul.f32.gmra.mxu0 %v4260_v57  ;;  %v4265_v57 = vld [vmem:[#allocation3 + $0x4f0] sm:$0xff] }
 0x679   :  { %5218 = vmatmul.f32.gmra.mxu3 %v4264_v6  ;;  %v4243_v6 = vld [vmem:[#allocation3 + $0x440] sm:$0xff] }
 0x67a   :  { %v10771_v24 = vpop.f32.mrf.mxu3  ;;  %3823 = vrot.lane.b32.xlu2 %v10164_v32, %s6301_s1  ;;  %v3137_v32 = vld [vmem:[#allocation2 + $0x3d1] sm:$0xff] }
 0x67b   :  { %v4947_v52 = vpop.f32.mrf.mxu2 }
 0x67c   :  { %v4948_v12 = vadd.f32 %v4947_v52, %v12466_v42  ;;  %v3291_v53 = vpop.permute.xlu0 %3290  ;;  %2800 = vrot.lane.b32.xlu1 %v12467_v30, %s6301_s1  ;;  %v10781_v62 = vpop.f32.mrf.mxu0  ;;  %v4269_v42 = vld [vmem:[#allocation3 + $0x510] sm:$0xff] }
 0x67d   :  { %v10775_v59 = vpop.f32.mrf.mxu1  ;;  %3442 = vst.msk [vmem:[#allocation3 + $0x650] sm:$0xff] %vm2377_vm9, %v3291_v53  ;;  %v3802_v52 = vpop.permute.xlu2 %3801  ;;  %6213 = vmatmul.msk.f32.gmra.mxu1 %vm1111_vm5, %v4231_v45 }
 0x67e   :  { %v5157_v61 = vadd.f32 %v10671_v0, %v4948_v12  ;;  %3954 = vst.msk [vmem:[#allocation3 + $0x630] sm:$0xff] %vm2377_vm9, %v3802_v52  ;;  %v12468_v0 = vld [vmem:[#allocation73_spill] sm:$0xff] }
 0x67f   :  { %v3285_v16 = vpop.permute.xlu1 %3284  ;;  %4997 = vmatmul.f32.gmra.mxu2 %v4243_v6  ;;  %3320 = vrot.lane.b32.xlu0 %v3137_v32, %s6301_s1  ;;  %v12469_v6 = vld [vmem:[#allocation77_spill] sm:$0xff] }
 0x680   :  { %3439 = vst.msk [vmem:[#allocation3 + $0x5d8] sm:$0xff] %vm2377_vm9, %v3285_v16  ;;  %v10786_v53 = vadd.f32 %v10681_v22, %v5157_v61  ;;  %5427 = vmatmul.f32.gmra.mxu0 %v4265_v57  ;;  %v4248_v52 = vld [vmem:[#allocation3 + $0x468] sm:$0xff] }
 0x681   :  { %5221 = vmatmul.f32.gmra.mxu3 %v4269_v42  ;;  %v4236_v42 = vld [vmem:[#allocation3 + $0x408] sm:$0xff] }
 0x682   :  { %v10791_v49 = vpop.f32.mrf.mxu3  ;;  %3825 = vrot.lane.b32.xlu2 %v10188_v47, %s6301_s1  ;;  %v3138_v47 = vld [vmem:[#allocation2 + $0x3e9] sm:$0xff] }
 0x683   :  { %v4950_v12 = vpop.f32.mrf.mxu2 }
 0x684   :  { %v4951_v30 = vadd.f32 %v4950_v12, %v12468_v0  ;;  %v3293_v16 = vpop.permute.xlu0 %3292  ;;  %2802 = vrot.lane.b32.xlu1 %v12469_v6, %s6301_s1  ;;  %v10801_v61 = vpop.f32.mrf.mxu0  ;;  %v4274_v12 = vld [vmem:[#allocation3 + $0x538] sm:$0xff] }
 0x685   :  { %v10795_v45 = vpop.f32.mrf.mxu1  ;;  %3443 = vst.msk [vmem:[#allocation3 + $0x678] sm:$0xff] %vm2377_vm9, %v3293_v16  ;;  %v3804_v32 = vpop.permute.xlu2 %3803  ;;  %v4270_v0 = vld [vmem:[#allocation3 + $0x518] sm:$0xff]  ;;  %6214 = vmatmul.msk.f32.gmra.mxu1 %vm1111_vm5, %v4236_v42 }
 0x686   :  { %v5160_v22 = vadd.f32 %v10691_v17, %v4951_v30  ;;  %3955 = vst.msk [vmem:[#allocation3 + $0x658] sm:$0xff] %vm2377_vm9, %v3804_v32  ;;  %v12470_v30 = vld [vmem:[#allocation78_spill] sm:$0xff] }
 0x687   :  { %v3287_v57 = vpop.permute.xlu1 %3286  ;;  %5000 = vmatmul.f32.gmra.mxu2 %v4248_v52  ;;  %3322 = vrot.lane.b32.xlu0 %v3138_v47, %s6301_s1  ;;  %v4253_v32 = vld [vmem:[#allocation3 + $0x490] sm:$0xff]  ;;  %v4279_v47 = vld [vmem:[#allocation3 + $0x560] sm:$0xff] }
 0x688   :  { %3440 = vst.msk [vmem:[#allocation3 + $0x600] sm:$0xff] %vm2377_vm9, %v3287_v57  ;;  %v10806_v16 = vadd.f32 %v10701_v51, %v5160_v22  ;;  %5430 = vmatmul.f32.gmra.mxu0 %v4270_v0 }
 0x689   :  { %5224 = vmatmul.f32.gmra.mxu3 %v4274_v12  ;;  %v4241_v12 = vld [vmem:[#allocation3 + $0x430] sm:$0xff] }
 0x68a   :  { %v10811_v63 = vpop.f32.mrf.mxu3  ;;  %3827 = vrot.lane.b32.xlu2 %v10215_v3, %s6301_s1  ;;  %v3139_v3 = vld [vmem:[#allocation2 + $0x3f1] sm:$0xff] }
 0x68b   :  { %v4953_v17 = vpop.f32.mrf.mxu2 }
 0x68c   :  { %v4954_v6 = vadd.f32 %v4953_v17, %v12470_v30  ;;  %v3295_v57 = vpop.permute.xlu0 %3294  ;;  %2804 = vrot.lane.b32.xlu1 %v10149_v41, %s6301_s1  ;;  %v10821_v22 = vpop.f32.mrf.mxu0  ;;  %v4275_v41 = vld [vmem:[#allocation3 + $0x540] sm:$0xff] }
 0x68d   :  { %v10815_v52 = vpop.f32.mrf.mxu1  ;;  %3444 = vst.msk [vmem:[#allocation3 + $0x6a0] sm:$0xff] %vm2377_vm9, %v3295_v57  ;;  %v3806_v0 = vpop.permute.xlu2 %3805  ;;  %6215 = vmatmul.msk.f32.gmra.mxu1 %vm1111_vm5, %v4241_v12 }
 0x68e   :  { %v5163_v51 = vadd.f32 %v10711_v39, %v4954_v6  ;;  %3956 = vst.msk [vmem:[#allocation3 + $0x680] sm:$0xff] %vm2377_vm9, %v3806_v0  ;;  %v4009_v39 = vld [vmem:[#allocation2 + $0x229] sm:$0xff] }
 0x68f   :  { %v2777_v42 = vpop.permute.xlu1 %2776  ;;  %5003 = vmatmul.f32.gmra.mxu2 %v4253_v32  ;;  %3324 = vrot.lane.b32.xlu0 %v3139_v3, %s6301_s1  ;;  %4073 = vst.msk [vmem:[#allocation3 + $0x4d0] sm:$0xff] %vm1111_vm5, %v4009_v39  ;;  %v12471_v6 = vld [vmem:[#allocation101_spill] sm:$0xff] }
 0x690   :  { %2929 = vst.msk [vmem:[#allocation3 + $0x620] sm:$0xff] %vm2377_vm9, %v2777_v42  ;;  %v10826_v17 = vadd.f32 %v10721_v9, %v5163_v51  ;;  %5433 = vmatmul.f32.gmra.mxu0 %v4275_v41  ;;  %v4246_v41 = vld [vmem:[#allocation3 + $0x458] sm:$0xff]  ;;  %v4284_v39 = vld [vmem:[#allocation3 + $0x588] sm:$0xff] }
 0x691   :  { %5227 = vmatmul.f32.gmra.mxu3 %v4279_v47  ;;  %v4258_v47 = vld [vmem:[#allocation3 + $0x4b8] sm:$0xff] }
 0x692   :  { %v10832_v42 = vpop.f32.mrf.mxu3  ;;  %3829 = vrot.lane.b32.xlu2 %v10240_v33, %s6301_s1  ;;  %v3140_v33 = vld [vmem:[#allocation2 + $0x409] sm:$0xff] }
 0x693   :  { %v4956_v30 = vpop.f32.mrf.mxu2 }
 0x694   :  { %v4957_v57 = vadd.f32 %v4956_v30, %v12471_v6  ;;  %v3297_v32 = vpop.permute.xlu0 %3296  ;;  %2806 = vrot.lane.b32.xlu1 %v10169_v43, %s6301_s1  ;;  %v10842_v12 = vpop.f32.mrf.mxu0  ;;  %v4280_v43 = vld [vmem:[#allocation3 + $0x568] sm:$0xff] }
 0x695   :  { %v10836_v9 = vpop.f32.mrf.mxu1  ;;  %3445 = vst.msk [vmem:[#allocation3 + $0x6c8] sm:$0xff] %vm2377_vm9, %v3297_v32  ;;  %v3808_v3 = vpop.permute.xlu2 %3807  ;;  %6216 = vmatmul.msk.f32.gmra.mxu1 %vm1111_vm5, %v4246_v41 }
 0x696   :  { %v5166_v51 = vadd.f32 %v10731_v15, %v4957_v57  ;;  %3957 = vst.msk [vmem:[#allocation3 + $0x6a8] sm:$0xff] %vm2377_vm9, %v3808_v3  ;;  %v4010_v15 = vld [vmem:[#allocation2 + $0x231] sm:$0xff]  ;;  %v12472_v57 = vld [vmem:[#allocation104_spill] sm:$0xff] }
 0x697   :  { %v2779_v0 = vpop.permute.xlu1 %2778  ;;  %5006 = vmatmul.f32.gmra.mxu2 %v4258_v47  ;;  %3326 = vrot.lane.b32.xlu0 %v3140_v33, %s6301_s1  ;;  %4074 = vst.msk [vmem:[#allocation3 + $0x4f8] sm:$0xff] %vm1111_vm5, %v4010_v15  ;;  %v4289_v15 = vld [vmem:[#allocation3 + $0x5b0] sm:$0xff] }
 0x698   :  { %2930 = vst.msk [vmem:[#allocation3 + $0x648] sm:$0xff] %vm2377_vm9, %v2779_v0  ;;  %v10847_v30 = vadd.f32 %v10741_v48, %v5166_v51  ;;  %5436 = vmatmul.f32.gmra.mxu0 %v4280_v43  ;;  %v4251_v43 = vld [vmem:[#allocation3 + $0x480] sm:$0xff] }
 0x699   :  { %5230 = vmatmul.f32.gmra.mxu3 %v4284_v39  ;;  %v4263_v39 = vld [vmem:[#allocation3 + $0x4e0] sm:$0xff] }
 0x69a   :  { %3831 = vrot.lane.b32.xlu2 %v10259_v21, %s6301_s1  ;;  %v3141_v21 = vld [vmem:[#allocation2 + $0x411] sm:$0xff] }
 0x69b   :  { %v4959_v6 = vpop.f32.mrf.mxu2 }
 0x69c   :  { %v4960_v32 = vadd.f32 %v4959_v6, %v12472_v57  ;;  %v10853_v0 = vpop.f32.mrf.mxu3  ;;  %v3299_v47 = vpop.permute.xlu0 %3298  ;;  %2808 = vrot.lane.b32.xlu1 %v10194_v38, %s6301_s1  ;;  %v4285_v38 = vld [vmem:[#allocation3 + $0x590] sm:$0xff] }
 0x69d   :  { %v10857_v48 = vpop.f32.mrf.mxu1  ;;  %3446 = vst.msk [vmem:[#allocation3 + $0x6f0] sm:$0xff] %vm2377_vm9, %v3299_v47  ;;  %v10863_v41 = vpop.f32.mrf.mxu0  ;;  %6217 = vmatmul.msk.f32.gmra.mxu1 %vm1111_vm5, %v4251_v43  ;;  %v12473_v57 = vld [vmem:[#allocation106_spill] sm:$0xff] }
 0x69e   :  { %v5169_v51 = vadd.f32 %v10751_v37, %v4960_v32  ;;  %v3810_v33 = vpop.permute.xlu2 %3809 }
 0x69f   :  { %v2781_v3 = vpop.permute.xlu1 %2780  ;;  %5009 = vmatmul.f32.gmra.mxu2 %v4263_v39  ;;  %3958 = vst.msk [vmem:[#allocation3 + $0x6d0] sm:$0xff] %vm2377_vm9, %v3810_v33  ;;  %3328 = vrot.lane.b32.xlu0 %v3141_v21, %s6301_s1  ;;  %v4268_v33 = vld [vmem:[#allocation3 + $0x508] sm:$0xff]  ;;  %v4294_v21 = vld [vmem:[#allocation3 + $0x5d8] sm:$0xff] }
 0x6a0   :  { %2931 = vst.msk [vmem:[#allocation3 + $0x670] sm:$0xff] %vm2377_vm9, %v2781_v3  ;;  %v5378_v6 = vadd.f32 %v10761_v60, %v5169_v51  ;;  %5439 = vmatmul.f32.gmra.mxu0 %v4285_v38 }
 0x6a1   :  { %5233 = vmatmul.f32.gmra.mxu3 %v4289_v15  ;;  %v4256_v15 = vld [vmem:[#allocation3 + $0x4a8] sm:$0xff] }
 0x6a2   :  { %3833 = vrot.lane.b32.xlu2 %v10286_v54, %s6301_s1  ;;  %v3142_v54 = vld [vmem:[#allocation2 + $0x429] sm:$0xff] }
 0x6a3   :  { %v4962_v37 = vpop.f32.mrf.mxu2 }
 0x6a4   :  { %v4963_v32 = vadd.f32 %v4962_v37, %v12473_v57  ;;  %v10871_v47 = vpop.f32.mrf.mxu3  ;;  %v3301_v3 = vpop.permute.xlu0 %3300  ;;  %2810 = vrot.lane.b32.xlu1 %v10219_v7, %s6301_s1  ;;  %v4290_v7 = vld [vmem:[#allocation3 + $0x5b8] sm:$0xff] }
 0x6a5   :  { %v10875_v39 = vpop.f32.mrf.mxu1  ;;  %3447 = vst.msk [vmem:[#allocation3 + $0x718] sm:$0xff] %vm2377_vm9, %v3301_v3  ;;  %v10881_v51 = vpop.f32.mrf.mxu0  ;;  %6218 = vmatmul.msk.f32.gmra.mxu1 %vm1111_vm5, %v4256_v15 }
 0x6a6   :  { %v5172_v60 = vadd.f32 %v10771_v24, %v4963_v32  ;;  %v3812_v38 = vpop.permute.xlu2 %3811 }
 0x6a7   :  { %v2783_v43 = vpop.permute.xlu1 %2782  ;;  %5012 = vmatmul.f32.gmra.mxu2 %v4268_v33  ;;  %3959 = vst.msk [vmem:[#allocation3 + $0x6f8] sm:$0xff] %vm2377_vm9, %v3812_v38  ;;  %3330 = vrot.lane.b32.xlu0 %v3142_v54, %s6301_s1  ;;  %v4261_v33 = vld [vmem:[#allocation3 + $0x4d0] sm:$0xff] }
 0x6a8   :  { %2932 = vst.msk [vmem:[#allocation3 + $0x698] sm:$0xff] %vm2377_vm9, %v2783_v43  ;;  %v10886_v37 = vadd.f32 %v10781_v62, %v5172_v60  ;;  %5442 = vmatmul.f32.gmra.mxu0 %v4290_v7  ;;  %v4273_v38 = vld [vmem:[#allocation3 + $0x530] sm:$0xff]  ;;  %v4295_v7 = vld [vmem:[#allocation3 + $0x5e0] sm:$0xff] }
 0x6a9   :  { %5236 = vmatmul.f32.gmra.mxu3 %v4294_v21 }
 0x6aa   :  { %3835 = vrot.lane.b32.xlu2 %v10312_v25, %s6301_s1  ;;  %v3143_v25 = vld [vmem:[#allocation2 + $0x431] sm:$0xff] }
 0x6ab   :  { %v4965_v24 = vpop.f32.mrf.mxu2 }
 0x6ac   :  { %v4966_v57 = vadd.f32 %v4965_v24, %v10203_v1  ;;  %v10891_v32 = vpop.f32.mrf.mxu3  ;;  %v3303_v3 = vpop.permute.xlu0 %3302  ;;  %2812 = vrot.lane.b32.xlu1 %v10246_v56, %s6301_s1  ;;  %v4299_v56 = vld [vmem:[#allocation3 + $0x600] sm:$0xff] }
 0x6ad   :  { %v5586_v43 = vpop.f32.mrf.mxu1  ;;  %3448 = vst.msk [vmem:[#allocation3 + $0x740] sm:$0xff] %vm2377_vm9, %v3303_v3  ;;  %v10899_v60 = vpop.f32.mrf.mxu0  ;;  %6219 = vmatmul.msk.f32.gmra.mxu1 %vm1111_vm5, %v4261_v33  ;;  %v4266_v3 = vld [vmem:[#allocation3 + $0x4f8] sm:$0xff] }
 0x6ae   :  { %v5175_v62 = vadd.f32 %v10791_v49, %v4966_v57  ;;  %v10901_v15 = vadd.f32 %v5586_v43, %v5378_v6  ;;  %v3814_v21 = vpop.permute.xlu2 %3813  ;;  %v4278_v33 = vld [vmem:[#allocation3 + $0x558] sm:$0xff] }
 0x6af   :  { %v2785_v1 = vpop.permute.xlu1 %2784  ;;  %5015 = vmatmul.f32.gmra.mxu2 %v4273_v38  ;;  %3960 = vst.msk [vmem:[#allocation3 + $0x720] sm:$0xff] %vm2377_vm9, %v3814_v21  ;;  %3332 = vrot.lane.b32.xlu0 %v3143_v25, %s6301_s1  ;;  %v4300_v38 = vld [vmem:[#allocation3 + $0x608] sm:$0xff]  ;;  %v12474_v21 = vld [vmem:[#allocation111_spill] sm:$0xff] }
 0x6b0   :  { %2933 = vst.msk [vmem:[#allocation3 + $0x6c0] sm:$0xff] %vm2377_vm9, %v2785_v1  ;;  %v10906_v54 = vadd.f32 %v10801_v61, %v5175_v62  ;;  %5445 = vmatmul.f32.gmra.mxu0 %v4295_v7  ;;  %v4304_v1 = vld [vmem:[#allocation3 + $0x628] sm:$0xff] }
 0x6b1   :  { %5239 = vmatmul.f32.gmra.mxu3 %v4299_v56 }
 0x6b2   :  { %3837 = vrot.lane.b32.xlu2 %v10338_v19, %s6301_s1 }
 0x6b3   :  { %v10910_v49 = vpop.f32.mrf.mxu2 }
 0x6b4   :  { %v10912_v6 = vpop.f32.mrf.mxu3  ;;  %v3305_v24 = vpop.permute.xlu0 %3304  ;;  %2814 = vrot.lane.b32.xlu1 %v10271_v20, %s6301_s1  ;;  %v3144_v20 = vld [vmem:[#allocation2 + $0x449] sm:$0xff] }
 0x6b5   :  { %v10916_v57 = vpop.f32.mrf.mxu1  ;;  %3449 = vst.msk [vmem:[#allocation3 + $0x768] sm:$0xff] %vm2377_vm9, %v3305_v24  ;;  %v10921_v61 = vpop.f32.mrf.mxu0  ;;  %6220 = vmatmul.msk.f32.gmra.mxu1 %vm1111_vm5, %v4266_v3  ;;  %v12475_v24 = vld [vmem:[#allocation113_spill] sm:$0xff] }
 0x6b6   :  { %v3816_v62 = vpop.permute.xlu2 %3815 }
 0x6b7   :  { %v2787_v43 = vpop.permute.xlu1 %2786  ;;  %5018 = vmatmul.f32.gmra.mxu2 %v4278_v33  ;;  %3961 = vst.msk [vmem:[#allocation3 + $0x748] sm:$0xff] %vm2377_vm9, %v3816_v62  ;;  %3334 = vrot.lane.b32.xlu0 %v3144_v20, %s6301_s1 }
 0x6b8   :  { %2934 = vst.msk [vmem:[#allocation3 + $0x6e8] sm:$0xff] %vm2377_vm9, %v2787_v43  ;;  %5448 = vmatmul.f32.gmra.mxu0 %v4300_v38  ;;  %v4271_v38 = vld [vmem:[#allocation3 + $0x520] sm:$0xff] }
 0x6b9   :  { %5242 = vmatmul.f32.gmra.mxu3 %v4304_v1  ;;  %v4283_v1 = vld [vmem:[#allocation3 + $0x580] sm:$0xff] }
 0x6ba   :  { %3839 = vrot.lane.b32.xlu2 %v10362_v26, %s6301_s1  ;;  %v3145_v26 = vld [vmem:[#allocation2 + $0x451] sm:$0xff] }
 0x6bb   :  { %v4971_v19 = vpop.f32.mrf.mxu2 }
 0x6bc   :  { %v4972_v56 = vadd.f32 %v4971_v19, %v12474_v21  ;;  %v10928_v7 = vpop.f32.mrf.mxu3  ;;  %v3307_v25 = vpop.permute.xlu0 %3306  ;;  %2816 = vrot.lane.b32.xlu1 %v12475_v24, %s6301_s1  ;;  %v4309_v19 = vld [vmem:[#allocation3 + $0x650] sm:$0xff]  ;;  %v12477_v24 = vld [vmem:[#allocation4_spill] sm:$0xff] }
 0x6bd   :  { %v10932_v43 = vpop.f32.mrf.mxu1  ;;  %3450 = vst.msk [vmem:[#allocation3 + $0x790] sm:$0xff] %vm2377_vm9, %v3307_v25  ;;  %v10938_v33 = vpop.f32.mrf.mxu0  ;;  %v4305_v21 = vld [vmem:[#allocation3 + $0x630] sm:$0xff]  ;;  %6221 = vmatmul.msk.f32.gmra.mxu1 %vm1111_vm5, %v4271_v38 }
 0x6be   :  { %v5181_v3 = vadd.f32 %v10832_v42, %v4972_v56  ;;  %v3818_v20 = vpop.permute.xlu2 %3817  ;;  %v12476_v42 = vld [vmem:[#allocation5_spill] sm:$0xff]  ;;  %5736 = vst.msk [vmem:[%s12008_s7] sm:$0xff] %vm90_vm0, %v12477_v24  ;;  %v12479_v38 = vld [vmem:[#allocation6_spill] sm:$0xff] }
 0x6bf   :  { %v2789_v62 = vpop.permute.xlu1 %2788  ;;  %5021 = vmatmul.f32.gmra.mxu2 %v4283_v1  ;;  %3962 = vst.msk [vmem:[#allocation3 + $0x770] sm:$0xff] %vm2377_vm9, %v3818_v20  ;;  %3336 = vrot.lane.b32.xlu0 %v3145_v26, %s6301_s1  ;;  %v12480_v20 = vld [vmem:[#allocation116_spill] sm:$0xff]  ;;  %v4288_v24 = vld [vmem:[#allocation3 + $0x5a8] sm:$0xff] }
 0x6c0   :  { %2935 = vst.msk [vmem:[#allocation3 + $0x710] sm:$0xff] %vm2377_vm9, %v2789_v62  ;;  %v5390_v25 = vadd.f32 %v10842_v12, %v5181_v3  ;;  %5451 = vmatmul.f32.gmra.mxu0 %v4305_v21  ;;  %v12478_v12 = vld [vmem:[#allocation114_spill] sm:$0xff] }
 0x6c1   :  { %5245 = vmatmul.f32.gmra.mxu3 %v4309_v19  ;;  %5737 = vst.msk [vmem:[%s12008_s7 + $0x8] sm:$0xff] %vm90_vm0, %v12476_v42  ;;  %v12481_v42 = vld [vmem:[#allocation7_spill] sm:$0xff] }
 0x6c2   :  { %5738 = vst.msk [vmem:[%s12008_s7 + $0x10] sm:$0xff] %vm90_vm0, %v12479_v38  ;;  %3841 = vrot.lane.b32.xlu2 %v10381_v36, %s6301_s1  ;;  %v3658_v38 = vld [vmem:[#allocation2 + $0x470] sm:$0xff]  ;;  %v4314_v36 = vld [vmem:[#allocation3 + $0x678] sm:$0xff] }
 0x6c3   :  { %v4974_v56 = vpop.f32.mrf.mxu2  ;;  %5739 = vst.msk [vmem:[%s12008_s7 + $0x18] sm:$0xff] %vm90_vm0, %v12481_v42  ;;  %v12483_v42 = vld [vmem:[#allocation9_spill] sm:$0xff] }
 0x6c4   :  { %v4975_v3 = vadd.f32 %v4974_v56, %v12478_v12  ;;  %v10956_v62 = vpop.f32.mrf.mxu3  ;;  %v3309_v1 = vpop.permute.xlu0 %3308  ;;  %2818 = vrot.lane.b32.xlu1 %v12480_v20, %s6301_s1  ;;  %v4276_v12 = vld [vmem:[#allocation3 + $0x548] sm:$0xff]  ;;  %v12482_v20 = vld [vmem:[#allocation8_spill] sm:$0xff]  ;;  %5741 = vst.msk [vmem:[%s12008_s7 + $0x28] sm:$0xff] %vm90_vm0, %v12483_v42 }
 0x6c5   :  { %v10965_v19 = vpop.f32.mrf.mxu1  ;;  %3451 = vst.msk [vmem:[#allocation3 + $0x7b8] sm:$0xff] %vm2377_vm9, %v3309_v1  ;;  %v10971_v26 = vpop.f32.mrf.mxu0  ;;  %6222 = vmatmul.msk.f32.gmra.mxu1 %vm1111_vm5, %v4276_v12  ;;  %v12485_v12 = vld [vmem:[#allocation11_spill] sm:$0xff] }
 0x6c6   :  { %v5184_v21 = vadd.f32 %v10853_v0, %v4975_v3  ;;  %5740 = vst.msk [vmem:[%s12008_s7 + $0x20] sm:$0xff] %vm90_vm0, %v12482_v20  ;;  %v3820_v0 = vpop.permute.xlu2 %3819  ;;  %v4310_v3 = vld [vmem:[#allocation3 + $0x658] sm:$0xff] }
 0x6c7   :  { %v2791_v56 = vpop.permute.xlu1 %2790  ;;  %5024 = vmatmul.f32.gmra.mxu2 %v4288_v24  ;;  %3963 = vst.msk [vmem:[#allocation3 + $0x798] sm:$0xff] %vm2377_vm9, %v3820_v0  ;;  %3849 = vrot.lane.b32.xlu0 %v3658_v38, %s6301_s1  ;;  %v12484_v24 = vld [vmem:[#allocation10_spill] sm:$0xff] }
 0x6c8   :  { %2936 = vst.msk [vmem:[#allocation3 + $0x738] sm:$0xff] %vm2377_vm9, %v2791_v56  ;;  %v10986_v1 = vadd.f32 %v10863_v41, %v5184_v21  ;;  %5454 = vmatmul.f32.gmra.mxu0 %v4310_v3  ;;  %v12486_v38 = vld [vmem:[#allocation118_spill] sm:$0xff]  ;;  %v12487_v3 = vld [vmem:[#allocation12_spill] sm:$0xff] }
 0x6c9   :  { %5248 = vmatmul.f32.gmra.mxu3 %v4314_v36  ;;  %5742 = vst.msk [vmem:[%s12008_s7 + $0x30] sm:$0xff] %vm90_vm0, %v12484_v24  ;;  %v4293_v24 = vld [vmem:[#allocation3 + $0x5d0] sm:$0xff] }
 0x6ca   :  { %5743 = vst.msk [vmem:[%s12008_s7 + $0x38] sm:$0xff] %vm90_vm0, %v12485_v12  ;;  %3843 = vrot.lane.b32.xlu2 %v10406_v11, %s6301_s1  ;;  %v4281_v12 = vld [vmem:[#allocation3 + $0x570] sm:$0xff]  ;;  %v5551_v11 = vadd.f32 %v10655_v58, %v10625_v46  ;;  %v12490_v58 = vld [vmem:[#allocation15_spill] sm:$0xff] }
 0x6cb   :  { %v10995_v56 = vpop.f32.mrf.mxu2  ;;  %5744 = vst.msk [vmem:[%s12008_s7 + $0x40] sm:$0xff] %vm90_vm0, %v12487_v3  ;;  %v12489_v3 = vld [vmem:[#allocation14_spill] sm:$0xff] }
 0x6cc   :  { %v11002_v41 = vpop.f32.mrf.mxu3  ;;  %v3311_v21 = vpop.permute.xlu0 %3310  ;;  %2820 = vrot.lane.b32.xlu1 %v12486_v38, %s6301_s1  ;;  %v12488_v38 = vld [vmem:[#allocation13_spill] sm:$0xff]  ;;  %5746 = vst.msk [vmem:[%s12008_s7 + $0x50] sm:$0xff] %vm90_vm0, %v12489_v3 }
 0x6cd   :  { %v5598_v20 = vpop.f32.mrf.mxu1  ;;  %3452 = vst.msk [vmem:[#allocation3 + $0x7e0] sm:$0xff] %vm2377_vm9, %v3311_v21  ;;  %v11014_v0 = vpop.f32.mrf.mxu0  ;;  %v4319_v21 = vld [vmem:[#allocation3 + $0x6a0] sm:$0xff]  ;;  %6223 = vmatmul.msk.f32.gmra.mxu1 %vm1111_vm5, %v4281_v12 }
 0x6ce   :  { %v11016_v36 = vadd.f32 %v5598_v20, %v5390_v25  ;;  %5745 = vst.msk [vmem:[%s12008_s7 + $0x48] sm:$0xff] %vm90_vm0, %v12488_v38  ;;  %v3822_v25 = vpop.permute.xlu2 %3821  ;;  %v4315_v20 = vld [vmem:[#allocation3 + $0x680] sm:$0xff] }
 0x6cf   :  { %v2793_v42 = vpop.permute.xlu1 %2792  ;;  %5027 = vmatmul.f32.gmra.mxu2 %v4293_v24  ;;  %3964 = vst.msk [vmem:[#allocation3 + $0x7c0] sm:$0xff] %vm2377_vm9, %v3822_v25  ;;  %5868 = vrot.lane.b32.xlu0 %v5551_v11, %s6302_s22  ;;  %v12492_v25 = vld [vmem:[#allocation16_spill] sm:$0xff]  ;;  %v12493_v11 = vld [vmem:[#allocation121_spill] sm:$0xff] }
 0x6d0   :  { %2937 = vst.msk [vmem:[#allocation3 + $0x760] sm:$0xff] %vm2377_vm9, %v2793_v42  ;;  %5457 = vmatmul.f32.gmra.mxu0 %v4315_v20  ;;  %v12491_v42 = vld [vmem:[#allocation120_spill] sm:$0xff] }
 0x6d1   :  { %5251 = vmatmul.f32.gmra.mxu3 %v4319_v21  ;;  %5747 = vst.msk [vmem:[%s12008_s7 + $0x58] sm:$0xff] %vm90_vm0, %v12490_v58 }
 0x6d2   :  { %5748 = vst.msk [vmem:[%s12008_s7 + $0x60] sm:$0xff] %vm90_vm0, %v12492_v25  ;;  %3845 = vrot.lane.b32.xlu2 %v10426_v28, %s6301_s1  ;;  %v4286_v25 = vld [vmem:[#allocation3 + $0x598] sm:$0xff]  ;;  %v5560_v28 = vadd.f32 %v10715_v34, %v10686_v55  ;;  %v3657_v34 = vld [vmem:[#allocation2 + $0x468] sm:$0xff] }
 0x6d3   :  { %v4980_v46 = vpop.f32.mrf.mxu2 }
 0x6d4   :  { %v4981_v24 = vadd.f32 %v4980_v46, %v12491_v42  ;;  %v11045_v12 = vpop.f32.mrf.mxu3  ;;  %v3313_v38 = vpop.permute.xlu0 %3312  ;;  %2822 = vrot.lane.b32.xlu1 %v12493_v11, %s6301_s1  ;;  %v12494_v46 = vld [vmem:[#allocation17_spill] sm:$0xff]  ;;  %v4298_v42 = vld [vmem:[#allocation3 + $0x5f8] sm:$0xff]  ;;  %v12495_v11 = vld [vmem:[#allocation18_spill] sm:$0xff] }
 0x6d5   :  { %v11054_v21 = vpop.f32.mrf.mxu1  ;;  %3453 = vst.msk [vmem:[#allocation3 + $0x808] sm:$0xff] %vm2377_vm9, %v3313_v38  ;;  %v11060_v3 = vpop.f32.mrf.mxu0  ;;  %v4320_v38 = vld [vmem:[#allocation3 + $0x6a8] sm:$0xff]  ;;  %6224 = vmatmul.msk.f32.gmra.mxu1 %vm1111_vm5, %v4286_v25  ;;  %v12499_v25 = vld [vmem:[#allocation124_spill] sm:$0xff] }
 0x6d6   :  { %v5190_v20 = vadd.f32 %v10891_v32, %v4981_v24  ;;  %5749 = vst.msk [vmem:[%s12008_s7 + $0x68] sm:$0xff] %vm90_vm0, %v12494_v46  ;;  %v3824_v32 = vpop.permute.xlu2 %3823  ;;  %v4324_v24 = vld [vmem:[#allocation3 + $0x6c8] sm:$0xff] }
 0x6d7   :  { %v2795_v58 = vpop.permute.xlu1 %2794  ;;  %5750 = vst.msk [vmem:[%s12008_s7 + $0x70] sm:$0xff] %vm90_vm0, %v12495_v11  ;;  %5030 = vmatmul.f32.gmra.mxu2 %v4298_v42  ;;  %5874 = vrot.lane.b32.xlu0 %v5560_v28, %s6302_s22  ;;  %v12496_v11 = vld [vmem:[#allocation19_spill] sm:$0xff]  ;;  %v12498_v42 = vld [vmem:[#allocation21_spill] sm:$0xff] }
 0x6d8   :  { %2938 = vst.msk [vmem:[#allocation3 + $0x788] sm:$0xff] %vm2377_vm9, %v2795_v58  ;;  %v11077_v46 = vadd.f32 %v10899_v60, %v5190_v20  ;;  %5460 = vmatmul.f32.gmra.mxu0 %v4320_v38  ;;  %v12497_v58 = vld [vmem:[#allocation20_spill] sm:$0xff] }
 0x6d9   :  { %3965 = vst.msk [vmem:[#allocation3 + $0x7e8] sm:$0xff] %vm2377_vm9, %v3824_v32  ;;  %5254 = vmatmul.f32.gmra.mxu3 %v4324_v24  ;;  %v12501_v24 = vld [vmem:[#allocation22_spill] sm:$0xff] }
 0x6da   :  { %5751 = vst.msk [vmem:[%s12008_s7 + $0x78] sm:$0xff] %vm90_vm0, %v12496_v11  ;;  %3847 = vrot.lane.b32.xlu2 %v3657_v34, %s6301_s1  ;;  %v4303_v11 = vld [vmem:[#allocation3 + $0x620] sm:$0xff]  ;;  %v5569_v34 = vadd.f32 %v10775_v59, %v10746_v5 }
 0x6db   :  { %v11086_v55 = vpop.f32.mrf.mxu2  ;;  %5752 = vst.msk [vmem:[%s12008_s7 + $0x80] sm:$0xff] %vm90_vm0, %v12497_v58  ;;  %v4291_v58 = vld [vmem:[#allocation3 + $0x5c0] sm:$0xff] }
 0x6dc   :  { %v11093_v60 = vpop.f32.mrf.mxu3  ;;  %v3315_v20 = vpop.permute.xlu0 %3314  ;;  %5753 = vst.msk [vmem:[%s12008_s7 + $0x88] sm:$0xff] %vm90_vm0, %v12498_v42  ;;  %2824 = vrot.lane.b32.xlu1 %v12499_v25, %s6301_s1  ;;  %v12502_v42 = vld [vmem:[#allocation23_spill] sm:$0xff]  ;;  %v4329_v25 = vld [vmem:[#allocation3 + $0x6f0] sm:$0xff]  ;;  %v12503_v5 = vld [vmem:[#allocation24_spill] sm:$0xff] }
 0x6dd   :  { %v11102_v28 = vpop.f32.mrf.mxu1  ;;  %3454 = vst.msk [vmem:[#allocation3 + $0x830] sm:$0xff] %vm2377_vm9, %v3315_v20  ;;  %v11106_v32 = vpop.f32.mrf.mxu0  ;;  %6225 = vmatmul.msk.f32.gmra.mxu1 %vm1111_vm5, %v4291_v58 }
 0x6de   :  { %12500 = vst [vmem:[#allocation88_spill] sm:$0xff] %v11106_v32  ;;  %v3826_v20 = vpop.permute.xlu2 %3825  ;;  %v4325_v32 = vld [vmem:[#allocation3 + $0x6d0] sm:$0xff] }
 0x6df   :  { %5754 = vst.msk [vmem:[%s12008_s7 + $0x90] sm:$0xff] %vm90_vm0, %v12501_v24  ;;  %v2797_v38 = vpop.permute.xlu1 %2796  ;;  %5033 = vmatmul.f32.gmra.mxu2 %v4303_v11  ;;  %v5336_v24 = vadd.f32 %v10458_v27, %v10578_v35  ;;  %5880 = vrot.lane.b32.xlu0 %v5569_v34, %s6302_s22  ;;  %v12504_v27 = vld [vmem:[#allocation25_spill] sm:$0xff] }
 0x6e0   :  { %5755 = vst.msk [vmem:[%s12008_s7 + $0x98] sm:$0xff] %vm90_vm0, %v12502_v42  ;;  %5463 = vmatmul.f32.gmra.mxu0 %v4325_v32  ;;  %v5339_v42 = vadd.f32 %v10489_v10, %v10598_v2  ;;  %v12505_v32 = vld [vmem:[#allocation26_spill] sm:$0xff]  ;;  %v4308_v34 = vld [vmem:[#allocation3 + $0x648] sm:$0xff] }
 0x6e1   :  { %2939 = vst.msk [vmem:[#allocation3 + $0x7b0] sm:$0xff] %vm2377_vm9, %v2797_v38  ;;  %5257 = vmatmul.f32.gmra.mxu3 %v4329_v25  ;;  %v5545_v59 = vadd.f32 %v10614_v23, %v5336_v24  ;;  %v12507_v25 = vld [vmem:[#allocation28_spill] sm:$0xff]  ;;  %v5578_v24 = vadd.f32 %v10836_v9, %v10806_v16  ;;  %v5554_v16 = vadd.f32 %v10675_v13, %v10646_v8  ;;  %v12511_v13 = vld [vmem:[#allocation109_spill] sm:$0xff] }
 0x6e2   :  { %3966 = vst.msk [vmem:[#allocation3 + $0x810] sm:$0xff] %vm2377_vm9, %v3826_v20  ;;  %v5548_v10 = vadd.f32 %v10635_v31, %v5339_v42  ;;  %v12506_v31 = vld [vmem:[#allocation27_spill] sm:$0xff]  ;;  %v4296_v20 = vld [vmem:[#allocation3 + $0x5e8] sm:$0xff] }
 0x6e3   :  { %5756 = vst.msk [vmem:[%s12008_s7 + $0xa0] sm:$0xff] %vm90_vm0, %v12503_v5  ;;  %v11134_v38 = vpop.f32.mrf.mxu2  ;;  %v4334_v5 = vld [vmem:[#allocation3 + $0x718] sm:$0xff] }
 0x6e4   :  { %5757 = vst.msk [vmem:[%s12008_s7 + $0xa8] sm:$0xff] %vm90_vm0, %v12504_v27  ;;  %v11142_v35 = vpop.f32.mrf.mxu3  ;;  %v3317_v2 = vpop.permute.xlu0 %3316  ;;  %5864 = vrot.lane.b32.xlu1 %v5545_v59, %s6302_s22  ;;  %5866 = vrot.lane.b32.xlu2 %v5548_v10, %s6302_s22  ;;  %v4330_v59 = vld [vmem:[#allocation3 + $0x6f8] sm:$0xff]  ;;  %v12508_v27 = vld [vmem:[#allocation29_spill] sm:$0xff]  ;;  %v12509_v10 = vld [vmem:[#allocation30_spill] sm:$0xff] }
 0x6e5   :  { %5758 = vst.msk [vmem:[%s12008_s7 + $0xb0] sm:$0xff] %vm90_vm0, %v12505_v32  ;;  %v11149_v23 = vpop.f32.mrf.mxu1  ;;  %v11153_v11 = vpop.f32.mrf.mxu0  ;;  %6226 = vmatmul.msk.f32.gmra.mxu1 %vm1111_vm5, %v4296_v20 }
 0x6e6   :  { %3455 = vst.msk [vmem:[#allocation3 + $0x858] sm:$0xff] %vm2377_vm9, %v3317_v2  ;;  %v3828_v42 = vpop.permute.xlu2 %3827  ;;  %v5557_v2 = vadd.f32 %v10695_v18, %v10666_v44  ;;  %v12512_v44 = vld [vmem:[#allocation32_spill] sm:$0xff] }
 0x6e7   :  { %5759 = vst.msk [vmem:[%s12008_s7 + $0xb8] sm:$0xff] %vm90_vm0, %v12506_v31  ;;  %v2799_v58 = vpop.permute.xlu1 %2798  ;;  %5036 = vmatmul.f32.gmra.mxu2 %v4308_v34  ;;  %5886 = vrot.lane.b32.xlu0 %v5578_v24, %s6302_s22  ;;  %v4969_v34 = vadd.f32 %v10910_v49, %v12511_v13  ;;  %v4301_v24 = vld [vmem:[#allocation3 + $0x610] sm:$0xff]  ;;  %v12516_v13 = vld [vmem:[#allocation36_spill] sm:$0xff] }
 0x6e8   :  { %5760 = vst.msk [vmem:[%s12008_s7 + $0xc0] sm:$0xff] %vm90_vm0, %v12507_v25  ;;  %5466 = vmatmul.f32.gmra.mxu0 %v4330_v59  ;;  %v4313_v25 = vld [vmem:[#allocation3 + $0x670] sm:$0xff]  ;;  %v4335_v59 = vld [vmem:[#allocation3 + $0x720] sm:$0xff] }
 0x6e9   :  { %2940 = vst.msk [vmem:[#allocation3 + $0x7d8] sm:$0xff] %vm2377_vm9, %v2799_v58  ;;  %5260 = vmatmul.f32.gmra.mxu3 %v4334_v5  ;;  %v12510_v58 = vld [vmem:[#allocation31_spill] sm:$0xff]  ;;  %v4339_v5 = vld [vmem:[#allocation3 + $0x740] sm:$0xff] }
 0x6ea   :  { %3967 = vst.msk [vmem:[#allocation3 + $0x838] sm:$0xff] %vm2377_vm9, %v3828_v42  ;;  %v12513_v42 = vld [vmem:[#allocation33_spill] sm:$0xff] }
 0x6eb   :  { %5761 = vst.msk [vmem:[%s12008_s7 + $0xc8] sm:$0xff] %vm90_vm0, %v12508_v27  ;;  %v11179_v9 = vpop.f32.mrf.mxu2  ;;  %v5178_v27 = vadd.f32 %v10811_v63, %v4969_v34  ;;  %v5566_v63 = vadd.f32 %v10755_v50, %v10726_v29  ;;  %v12517_v34 = vld [vmem:[#allocation117_spill] sm:$0xff] }
 0x6ec   :  { %5762 = vst.msk [vmem:[%s12008_s7 + $0xd0] sm:$0xff] %vm90_vm0, %v12509_v10  ;;  %v11188_v32 = vpop.f32.mrf.mxu3  ;;  %v3319_v31 = vpop.permute.xlu0 %3318  ;;  %5870 = vrot.lane.b32.xlu1 %v5554_v16, %s6302_s22  ;;  %5872 = vrot.lane.b32.xlu2 %v5557_v2, %s6302_s22  ;;  %v12514_v16 = vld [vmem:[#allocation34_spill] sm:$0xff]  ;;  %v5563_v10 = vadd.f32 %v10735_v40, %v10706_v14  ;;  %v4978_v29 = vadd.f32 %v10995_v56, %v12517_v34 }
 0x6ed   :  { %5763 = vst.msk [vmem:[%s12008_s7 + $0xd8] sm:$0xff] %vm90_vm0, %v12510_v58  ;;  %v11195_v8 = vpop.f32.mrf.mxu1  ;;  %v11201_v20 = vpop.f32.mrf.mxu0  ;;  %6227 = vmatmul.msk.f32.gmra.mxu1 %vm1111_vm5, %v4301_v24  ;;  %v5387_v40 = vadd.f32 %v10821_v22, %v5178_v27  ;;  %v4306_v24 = vld [vmem:[#allocation3 + $0x638] sm:$0xff] }
 0x6ee   :  { %3456 = vst.msk [vmem:[#allocation3 + $0x880] sm:$0xff] %vm2377_vm9, %v3319_v31  ;;  %v3830_v49 = vpop.permute.xlu2 %3829  ;;  %v12515_v31 = vld [vmem:[#allocation35_spill] sm:$0xff] }
 0x6ef   :  { %5764 = vst.msk [vmem:[%s12008_s7 + $0xe0] sm:$0xff] %vm90_vm0, %v12512_v44  ;;  %v2801_v18 = vpop.permute.xlu1 %2800  ;;  %5039 = vmatmul.f32.gmra.mxu2 %v4313_v25  ;;  %5892 = vrot.lane.b32.xlu0 %v10901_v15, %s6302_s22  ;;  %v12518_v44 = vld [vmem:[#allocation37_spill] sm:$0xff]  ;;  %v4318_v25 = vld [vmem:[#allocation3 + $0x698] sm:$0xff]  ;;  %v5596_v22 = vadd.f32 %v10965_v19, %v5387_v40  ;;  %v5572_v19 = vadd.f32 %v10795_v45, %v10766_v4  ;;  %v12524_v40 = vld [vmem:[#allocation42_spill] sm:$0xff] }
 0x6f0   :  { %5765 = vst.msk [vmem:[%s12008_s7 + $0xe8] sm:$0xff] %vm90_vm0, %v12513_v42  ;;  %5469 = vmatmul.f32.gmra.mxu0 %v4335_v59  ;;  %v12519_v42 = vld [vmem:[#allocation38_spill] sm:$0xff]  ;;  %v5187_v59 = vadd.f32 %v10871_v47, %v4978_v29  ;;  %v12520_v27 = vld [vmem:[#allocation39_spill] sm:$0xff]  ;;  %v5575_v47 = vadd.f32 %v10815_v52, %v10786_v53  ;;  %v4323_v29 = vld [vmem:[#allocation3 + $0x6c0] sm:$0xff] }
 0x6f1   :  { %2941 = vst.msk [vmem:[#allocation3 + $0x800] sm:$0xff] %vm2377_vm9, %v2801_v18  ;;  %5263 = vmatmul.f32.gmra.mxu3 %v4339_v5  ;;  %v4340_v5 = vld [vmem:[#allocation3 + $0x748] sm:$0xff] }
 0x6f2   :  { %3968 = vst.msk [vmem:[#allocation3 + $0x860] sm:$0xff] %vm2377_vm9, %v3830_v49  ;;  %v4344_v49 = vld [vmem:[#allocation3 + $0x768] sm:$0xff]  ;;  %v5396_v45 = vadd.f32 %v10881_v51, %v5187_v59 }
 0x6f3   :  { %5766 = vst.msk [vmem:[%s12008_s7 + $0xf0] sm:$0xff] %vm90_vm0, %v12514_v16  ;;  %v11227_v2 = vpop.f32.mrf.mxu2 }
 0x6f4   :  { %5767 = vst.msk [vmem:[%s12008_s7 + $0xf8] sm:$0xff] %vm90_vm0, %v12515_v31  ;;  %v11236_v15 = vpop.f32.mrf.mxu3  ;;  %v3321_v58 = vpop.permute.xlu0 %3320  ;;  %5876 = vrot.lane.b32.xlu1 %v5563_v10, %s6302_s22  ;;  %5878 = vrot.lane.b32.xlu2 %v5566_v63, %s6302_s22  ;;  %v12521_v10 = vld [vmem:[#allocation40_spill] sm:$0xff]  ;;  %v5605_v51 = vadd.f32 %v11102_v28, %v5396_v45  ;;  %v5581_v28 = vadd.f32 %v10857_v48, %v10826_v17 }
 0x6f5   :  { %5768 = vst.msk [vmem:[%s12008_s7 + $0x100] sm:$0xff] %vm90_vm0, %v12516_v13  ;;  %v11243_v14 = vpop.f32.mrf.mxu1  ;;  %v11250_v50 = vpop.f32.mrf.mxu0  ;;  %6228 = vmatmul.msk.f32.gmra.mxu1 %vm1111_vm5, %v4306_v24  ;;  %v12523_v13 = vld [vmem:[#allocation126_spill] sm:$0xff]  ;;  %v12531_v45 = vld [vmem:[#allocation48_spill] sm:$0xff] }
 0x6f6   :  { %3457 = vst.msk [vmem:[#allocation3 + $0x8a8] sm:$0xff] %vm2377_vm9, %v3321_v58  ;;  %v3832_v56 = vpop.permute.xlu2 %3831  ;;  %v12522_v58 = vld [vmem:[#allocation41_spill] sm:$0xff]  ;;  %v4987_v53 = vadd.f32 %v11134_v38, %v12523_v13  ;;  %v4345_v24 = vld [vmem:[#allocation3 + $0x770] sm:$0xff]  ;;  %v4354_v13 = vld [vmem:[#allocation3 + $0x7b8] sm:$0xff] }
 0x6f7   :  { %5769 = vst.msk [vmem:[%s12008_s7 + $0x108] sm:$0xff] %vm90_vm0, %v12518_v44  ;;  %v2803_v18 = vpop.permute.xlu1 %2802  ;;  %5042 = vmatmul.f32.gmra.mxu2 %v4318_v25  ;;  %5898 = vrot.lane.b32.xlu0 %v5596_v22, %s6302_s22  ;;  %v4311_v44 = vld [vmem:[#allocation3 + $0x660] sm:$0xff]  ;;  %v4349_v25 = vld [vmem:[#allocation3 + $0x790] sm:$0xff] }
 0x6f8   :  { %5770 = vst.msk [vmem:[%s12008_s7 + $0x110] sm:$0xff] %vm90_vm0, %v12519_v42  ;;  %5472 = vmatmul.f32.gmra.mxu0 %v4340_v5  ;;  %v5196_v42 = vadd.f32 %v10928_v7, %v4987_v53  ;;  %v12526_v22 = vld [vmem:[#allocation44_spill] sm:$0xff]  ;;  %v5584_v7 = vadd.f32 %v10875_v39, %v10847_v30  ;;  %v12530_v39 = vld [vmem:[#allocation47_spill] sm:$0xff] }
 0x6f9   :  { %2942 = vst.msk [vmem:[#allocation3 + $0x828] sm:$0xff] %vm2377_vm9, %v2803_v18  ;;  %5266 = vmatmul.f32.gmra.mxu3 %v4344_v49  ;;  %v12525_v18 = vld [vmem:[#allocation43_spill] sm:$0xff]  ;;  %v12527_v49 = vld [vmem:[#allocation45_spill] sm:$0xff] }
 0x6fa   :  { %3969 = vst.msk [vmem:[#allocation3 + $0x888] sm:$0xff] %vm2377_vm9, %v3832_v56  ;;  %v5405_v48 = vadd.f32 %v10938_v33, %v5196_v42  ;;  %v4350_v53 = vld [vmem:[#allocation3 + $0x798] sm:$0xff]  ;;  %v4321_v42 = vld [vmem:[#allocation3 + $0x6b0] sm:$0xff] }
 0x6fb   :  { %5771 = vst.msk [vmem:[%s12008_s7 + $0x118] sm:$0xff] %vm90_vm0, %v12520_v27  ;;  %v4995_v16 = vpop.f32.mrf.mxu2  ;;  %v12528_v27 = vld [vmem:[#allocation46_spill] sm:$0xff] }
 0x6fc   :  { %5772 = vst.msk [vmem:[%s12008_s7 + $0x120] sm:$0xff] %vm90_vm0, %v12521_v10  ;;  %v11283_v31 = vpop.f32.mrf.mxu3  ;;  %v3323_v63 = vpop.permute.xlu0 %3322  ;;  %5882 = vrot.lane.b32.xlu1 %v5572_v19, %s6302_s22  ;;  %5884 = vrot.lane.b32.xlu2 %v5575_v47, %s6302_s22  ;;  %v12529_v19 = vld [vmem:[#allocation132_spill] sm:$0xff]  ;;  %v5614_v33 = vadd.f32 %v11243_v14, %v5405_v48  ;;  %v5590_v14 = vadd.f32 %v10916_v57, %v10886_v37  ;;  %v12538_v48 = vld [vmem:[#allocation54_spill] sm:$0xff] }
 0x6fd   :  { %5773 = vst.msk [vmem:[%s12008_s7 + $0x128] sm:$0xff] %vm90_vm0, %v12522_v58  ;;  %v11290_v4 = vpop.f32.mrf.mxu1  ;;  %v11297_v52 = vpop.f32.mrf.mxu0  ;;  %6229 = vmatmul.msk.f32.gmra.mxu1 %vm1111_vm5, %v4311_v44  ;;  %v4996_v10 = vadd.f32 %v4995_v16, %v12529_v19  ;;  %v4316_v58 = vld [vmem:[#allocation3 + $0x688] sm:$0xff]  ;;  %v12533_v44 = vld [vmem:[#allocation50_spill] sm:$0xff] }
 0x6fe   :  { %3458 = vst.msk [vmem:[#allocation3 + $0x8d0] sm:$0xff] %vm2377_vm9, %v3323_v63  ;;  %v3834_v38 = vpop.permute.xlu2 %3833  ;;  %v4328_v63 = vld [vmem:[#allocation3 + $0x6e8] sm:$0xff] }
 0x6ff   :  { %5774 = vst.msk [vmem:[%s12008_s7 + $0x130] sm:$0xff] %vm90_vm0, %v12524_v40  ;;  %v2805_v34 = vpop.permute.xlu1 %2804  ;;  %5045 = vmatmul.f32.gmra.mxu2 %v4323_v29  ;;  %5904 = vrot.lane.b32.xlu0 %v5605_v51, %s6302_s22  ;;  %v5205_v40 = vadd.f32 %v11045_v12, %v4996_v10  ;;  %v5593_v12 = vadd.f32 %v10932_v43, %v10906_v54  ;;  %v12535_v54 = vld [vmem:[#allocation52_spill] sm:$0xff]  ;;  %v12539_v10 = vld [vmem:[#allocation55_spill] sm:$0xff] }
 0x700   :  { %5775 = vst.msk [vmem:[%s12008_s7 + $0x138] sm:$0xff] %vm90_vm0, %v12525_v18  ;;  %5475 = vmatmul.f32.gmra.mxu0 %v4345_v24  ;;  %v4333_v24 = vld [vmem:[#allocation3 + $0x710] sm:$0xff] }
 0x701   :  { %2943 = vst.msk [vmem:[#allocation3 + $0x850] sm:$0xff] %vm2377_vm9, %v2805_v34  ;;  %5269 = vmatmul.f32.gmra.mxu3 %v4349_v25  ;;  %v12532_v34 = vld [vmem:[#allocation49_spill] sm:$0xff]  ;;  %v5414_v25 = vadd.f32 %v11060_v3, %v5205_v40  ;;  %v4359_v3 = vld [vmem:[#allocation3 + $0x7e0] sm:$0xff] }
 0x702   :  { %3970 = vst.msk [vmem:[#allocation3 + $0x8b0] sm:$0xff] %vm2377_vm9, %v3834_v38  ;;  %v12534_v38 = vld [vmem:[#allocation51_spill] sm:$0xff]  ;;  %v4360_v40 = vld [vmem:[#allocation3 + $0x7e8] sm:$0xff] }
 0x703   :  { %5776 = vst.msk [vmem:[%s12008_s7 + $0x140] sm:$0xff] %vm90_vm0, %v12526_v22  ;;  %v11323_v56 = vpop.f32.mrf.mxu2  ;;  %v12536_v22 = vld [vmem:[#allocation53_spill] sm:$0xff] }
 0x704   :  { %5777 = vst.msk [vmem:[%s12008_s7 + $0x148] sm:$0xff] %vm90_vm0, %v12527_v49  ;;  %v11332_v5 = vpop.f32.mrf.mxu3  ;;  %v3325_v59 = vpop.permute.xlu0 %3324  ;;  %5888 = vrot.lane.b32.xlu1 %v5581_v28, %s6302_s22  ;;  %5890 = vrot.lane.b32.xlu2 %v5584_v7, %s6302_s22  ;;  %v4355_v7 = vld [vmem:[#allocation3 + $0x7c0] sm:$0xff] }
 0x705   :  { %5778 = vst.msk [vmem:[%s12008_s7 + $0x150] sm:$0xff] %vm90_vm0, %v12528_v27  ;;  %v11339_v17 = vpop.f32.mrf.mxu1  ;;  %v11345_v30 = vpop.f32.mrf.mxu0  ;;  %6230 = vmatmul.msk.f32.gmra.mxu1 %vm1111_vm5, %v4316_v58 }
 0x706   :  { %3459 = vst.msk [vmem:[#allocation3 + $0x8f8] sm:$0xff] %vm2377_vm9, %v3325_v59  ;;  %v3836_v16 = vpop.permute.xlu2 %3835  ;;  %v12537_v59 = vld [vmem:[#allocation123_spill] sm:$0xff] }
 0x707   :  { %5779 = vst.msk [vmem:[%s12008_s7 + $0x158] sm:$0xff] %vm90_vm0, %v12530_v39  ;;  %v2807_v47 = vpop.permute.xlu1 %2806  ;;  %5048 = vmatmul.f32.gmra.mxu2 %v4328_v63  ;;  %5910 = vrot.lane.b32.xlu0 %v5614_v33, %s6302_s22  ;;  %v4984_v27 = vadd.f32 %v11086_v55, %v12537_v59  ;;  %v5602_v39 = vadd.f32 %v11054_v21, %v10986_v1  ;;  %v12540_v63 = vld [vmem:[#allocation56_spill] sm:$0xff]  ;;  %v12541_v21 = vld [vmem:[#allocation57_spill] sm:$0xff] }
 0x708   :  { %5780 = vst.msk [vmem:[%s12008_s7 + $0x160] sm:$0xff] %vm90_vm0, %v12531_v45  ;;  %5478 = vmatmul.f32.gmra.mxu0 %v4350_v53  ;;  %v3529_v1 = vld [vmem:[#allocation2 + $0x467] sm:$0xff]  ;;  %v4326_v53 = vld [vmem:[#allocation3 + $0x6d8] sm:$0xff] }
 0x709   :  { %2944 = vst.msk [vmem:[#allocation3 + $0x878] sm:$0xff] %vm2377_vm9, %v2807_v47  ;;  %5272 = vmatmul.f32.gmra.mxu3 %v4354_v13  ;;  %v5193_v45 = vadd.f32 %v10912_v6, %v4984_v27  ;;  %v4338_v13 = vld [vmem:[#allocation3 + $0x738] sm:$0xff]  ;;  %v4364_v6 = vld [vmem:[#allocation3 + $0x808] sm:$0xff]  ;;  %v4369_v27 = vld [vmem:[#allocation3 + $0x830] sm:$0xff] }
 0x70a   :  { %3971 = vst.msk [vmem:[#allocation3 + $0x8d8] sm:$0xff] %vm2377_vm9, %v3836_v16 }
 0x70b   :  { %5781 = vst.msk [vmem:[%s12008_s7 + $0x168] sm:$0xff] %vm90_vm0, %v12532_v34  ;;  %v11371_v29 = vpop.f32.mrf.mxu2  ;;  %v12542_v34 = vld [vmem:[#allocation128_spill] sm:$0xff] }
 0x70c   :  { %5782 = vst.msk [vmem:[%s12008_s7 + $0x170] sm:$0xff] %vm90_vm0, %v12533_v44  ;;  %v11380_v18 = vpop.f32.mrf.mxu3  ;;  %v3327_v51 = vpop.permute.xlu0 %3326  ;;  %5894 = vrot.lane.b32.xlu1 %v5590_v14, %s6302_s22  ;;  %5896 = vrot.lane.b32.xlu2 %v5593_v12, %s6302_s22  ;;  %v4990_v14 = vadd.f32 %v11179_v9, %v12542_v34  ;;  %v5402_v44 = vadd.f32 %v10921_v61, %v5193_v45  ;;  %v12543_v12 = vld [vmem:[#allocation130_spill] sm:$0xff]  ;;  %v12545_v9 = vld [vmem:[#allocation59_spill] sm:$0xff]  ;;  %v4336_v34 = vld [vmem:[#allocation3 + $0x728] sm:$0xff] }
 0x70d   :  { %5783 = vst.msk [vmem:[%s12008_s7 + $0x178] sm:$0xff] %vm90_vm0, %v12534_v38  ;;  %v5622_v37 = vpop.f32.mrf.mxu1  ;;  %v11389_v57 = vpop.f32.mrf.mxu0  ;;  %6231 = vmatmul.msk.f32.gmra.mxu1 %vm1111_vm5, %v4321_v42  ;;  %v12544_v38 = vld [vmem:[#allocation58_spill] sm:$0xff]  ;;  %v12547_v42 = vld [vmem:[#allocation60_spill] sm:$0xff]  ;;  %v12552_v45 = vld [vmem:[#allocation63_spill] sm:$0xff] }
 0x70e   :  { %3460 = vst.msk [vmem:[#allocation3 + $0x920] sm:$0xff] %vm2377_vm9, %v3327_v51  ;;  %v5623_v28 = vadd.f32 %v5622_v37, %v5414_v25  ;;  %v3838_v49 = vpop.permute.xlu2 %3837  ;;  %v4993_v51 = vadd.f32 %v11227_v2, %v12543_v12  ;;  %v5608_v37 = vadd.f32 %v11149_v23, %v11077_v46  ;;  %v5611_v61 = vadd.f32 %v11195_v8, %v5402_v44  ;;  %v12546_v2 = vld [vmem:[#allocation138_spill] sm:$0xff]  ;;  %v4374_v12 = vld [vmem:[#allocation3 + $0x858] sm:$0xff] }
 0x70f   :  { %5784 = vst.msk [vmem:[%s12008_s7 + $0x180] sm:$0xff] %vm90_vm0, %v12535_v54  ;;  %v2809_v43 = vpop.permute.xlu1 %2808  ;;  %5051 = vmatmul.f32.gmra.mxu2 %v4333_v24  ;;  %v5199_v46 = vadd.f32 %v10956_v62, %v4990_v14  ;;  %v4343_v62 = vld [vmem:[#allocation3 + $0x760] sm:$0xff]  ;;  %v12556_v14 = vld [vmem:[#allocation67_spill] sm:$0xff] }
 0x710   :  { %5785 = vst.msk [vmem:[%s12008_s7 + $0x188] sm:$0xff] %vm90_vm0, %v12536_v22  ;;  %5481 = vmatmul.f32.gmra.mxu0 %v4355_v7  ;;  %5916 = vrot.lane.b32.xlu0 %v5623_v28, %s6302_s22  ;;  %v5202_v8 = vadd.f32 %v11002_v41, %v4993_v51  ;;  %v12548_v28 = vld [vmem:[#allocation61_spill] sm:$0xff]  ;;  %v12549_v7 = vld [vmem:[#allocation62_spill] sm:$0xff]  ;;  %v4370_v51 = vld [vmem:[#allocation3 + $0x838] sm:$0xff] }
 0x711   :  { %2945 = vst.msk [vmem:[#allocation3 + $0x8a0] sm:$0xff] %vm2377_vm9, %v2809_v43  ;;  %5275 = vmatmul.f32.gmra.mxu3 %v4359_v3  ;;  %v4331_v3 = vld [vmem:[#allocation3 + $0x700] sm:$0xff] }
 0x712   :  { %3972 = vst.msk [vmem:[#allocation3 + $0x900] sm:$0xff] %vm2377_vm9, %v3838_v49 }
 0x713   :  { %5786 = vst.msk [vmem:[%s12008_s7 + $0x190] sm:$0xff] %vm90_vm0, %v12538_v48  ;;  %v5004_v19 = vpop.f32.mrf.mxu2  ;;  %v4365_v48 = vld [vmem:[#allocation3 + $0x810] sm:$0xff] }
 0x714   :  { %5787 = vst.msk [vmem:[%s12008_s7 + $0x198] sm:$0xff] %vm90_vm0, %v12539_v10  ;;  %v11421_v47 = vpop.f32.mrf.mxu3  ;;  %v3329_v55 = vpop.permute.xlu0 %3328  ;;  %5900 = vrot.lane.b32.xlu1 %v11016_v36, %s6302_s22  ;;  %5902 = vrot.lane.b32.xlu2 %v5602_v39, %s6302_s22  ;;  %v5005_v54 = vadd.f32 %v5004_v19, %v12546_v2  ;;  %v5408_v19 = vadd.f32 %v10971_v26, %v5199_v46  ;;  %v12550_v10 = vld [vmem:[#allocation134_spill] sm:$0xff]  ;;  %v12559_v46 = vld [vmem:[#allocation140_spill] sm:$0xff] }
 0x715   :  { %5788 = vst.msk [vmem:[%s12008_s7 + $0x1a0] sm:$0xff] %vm90_vm0, %v12540_v63  ;;  %v11428_v58 = vpop.f32.mrf.mxu1  ;;  %v11434_v33 = vpop.f32.mrf.mxu0  ;;  %6232 = vmatmul.msk.f32.gmra.mxu1 %vm1111_vm5, %v4326_v53  ;;  %v4999_v39 = vadd.f32 %v11323_v56, %v12550_v10  ;;  %v12560_v10 = vld [vmem:[#allocation83_spill] sm:$0xff] }
 0x716   :  { %3461 = vst.msk [vmem:[#allocation3 + $0x948] sm:$0xff] %vm2377_vm9, %v3329_v55  ;;  %v3840_v36 = vpop.permute.xlu2 %3839  ;;  %v5214_v41 = vadd.f32 %v11188_v32, %v5005_v54  ;;  %v5411_v55 = vadd.f32 %v11014_v0, %v5202_v8  ;;  %v12551_v32 = vld [vmem:[#allocation136_spill] sm:$0xff]  ;;  %v5617_v26 = vadd.f32 %v11290_v4, %v5408_v19 }
 0x717   :  { %5789 = vst.msk [vmem:[%s12008_s7 + $0x1a8] sm:$0xff] %vm90_vm0, %v12541_v21  ;;  %v2811_v16 = vpop.permute.xlu1 %2810  ;;  %5054 = vmatmul.f32.gmra.mxu2 %v4338_v13  ;;  %v5002_v63 = vadd.f32 %v11371_v29, %v12551_v32  ;;  %v12553_v21 = vld [vmem:[#allocation64_spill] sm:$0xff]  ;;  %v12554_v13 = vld [vmem:[#allocation65_spill] sm:$0xff]  ;;  %v5208_v4 = vadd.f32 %v11093_v60, %v4999_v39 }
 0x718   :  { %3593 = vst.msk [vmem:[#allocation3 + $0x9c8] sm:$0xff] %vm1111_vm5, %v3529_v1  ;;  %5484 = vmatmul.f32.gmra.mxu0 %v4360_v40  ;;  %v5620_v0 = vadd.f32 %v11339_v17, %v5411_v55  ;;  %v5423_v29 = vadd.f32 %v11201_v20, %v5214_v41  ;;  %v12555_v20 = vld [vmem:[#allocation66_spill] sm:$0xff]  ;;  %v4348_v60 = vld [vmem:[#allocation3 + $0x788] sm:$0xff] }
 0x719   :  { %2946 = vst.msk [vmem:[#allocation3 + $0x8c8] sm:$0xff] %vm2377_vm9, %v2811_v16  ;;  %5278 = vmatmul.f32.gmra.mxu3 %v4364_v6  ;;  %v5211_v17 = vadd.f32 %v11142_v35, %v5002_v63  ;;  %v3530_v35 = vld [vmem:[#allocation2 + $0x46f] sm:$0xff] }
 0x71a   :  { %3973 = vst.msk [vmem:[#allocation3 + $0x928] sm:$0xff] %vm2377_vm9, %v3840_v36 }
 0x71b   :  { %5790 = vst.msk [vmem:[%s12008_s7 + $0x1b0] sm:$0xff] %vm90_vm0, %v12544_v38  ;;  %v11458_v25 = vpop.f32.mrf.mxu2  ;;  %v12557_v38 = vld [vmem:[#allocation88_spill] sm:$0xff]  ;;  %v5420_v2 = vadd.f32 %v11153_v11, %v5211_v17 }
 0x71c   :  { %5791 = vst.msk [vmem:[%s12008_s7 + $0x1b8] sm:$0xff] %vm90_vm0, %v12545_v9  ;;  %v11467_v43 = vpop.f32.mrf.mxu3  ;;  %v3331_v24 = vpop.permute.xlu0 %3330  ;;  %5906 = vrot.lane.b32.xlu1 %v5608_v37, %s6302_s22  ;;  %5908 = vrot.lane.b32.xlu2 %v5611_v61, %s6302_s22  ;;  %v5417_v37 = vadd.f32 %v12557_v38, %v5208_v4  ;;  %v12558_v9 = vld [vmem:[#allocation139_spill] sm:$0xff]  ;;  %v12561_v4 = vld [vmem:[#allocation74_spill] sm:$0xff] }
 0x71d   :  { %5792 = vst.msk [vmem:[%s12008_s7 + $0x1c0] sm:$0xff] %vm90_vm0, %v12547_v42  ;;  %v11475_v23 = vpop.f32.mrf.mxu1  ;;  %v11480_v22 = vpop.f32.mrf.mxu0  ;;  %6233 = vmatmul.msk.f32.gmra.mxu1 %vm1111_vm5, %v4331_v3  ;;  %v5008_v61 = vadd.f32 %v11458_v25, %v12558_v9  ;;  %v4353_v3 = vld [vmem:[#allocation3 + $0x7b0] sm:$0xff] }
 0x71e   :  { %3462 = vst.msk [vmem:[#allocation3 + $0x970] sm:$0xff] %vm2377_vm9, %v3331_v24  ;;  %v3842_v59 = vpop.permute.xlu2 %3841  ;;  %v5626_v54 = vadd.f32 %v11428_v58, %v5417_v37  ;;  %v5629_v42 = vadd.f32 %v11475_v23, %v5420_v2  ;;  %v4385_v38 = vld [vmem:[#allocation3 + $0x8b0] sm:$0xff]  ;;  %v12562_v37 = vld [vmem:[#allocation84_spill] sm:$0xff] }
 0x71f   :  { %5793 = vst.msk [vmem:[%s12008_s7 + $0x1c8] sm:$0xff] %vm90_vm0, %v12548_v28  ;;  %v2813_v49 = vpop.permute.xlu1 %2812  ;;  %5057 = vmatmul.f32.gmra.mxu2 %v4343_v62 }
 0x720   :  { %5794 = vst.msk [vmem:[%s12008_s7 + $0x1d0] sm:$0xff] %vm90_vm0, %v12549_v7  ;;  %5487 = vmatmul.f32.gmra.mxu0 %v4365_v48  ;;  %v4341_v7 = vld [vmem:[#allocation3 + $0x750] sm:$0xff] }
 0x721   :  { %2947 = vst.msk [vmem:[#allocation3 + $0x8f0] sm:$0xff] %vm2377_vm9, %v2813_v49  ;;  %5281 = vmatmul.f32.gmra.mxu3 %v4369_v27  ;;  %v5217_v49 = vadd.f32 %v11236_v15, %v5008_v61  ;;  %v4375_v15 = vld [vmem:[#allocation3 + $0x860] sm:$0xff] }
 0x722   :  { %3974 = vst.msk [vmem:[#allocation3 + $0x950] sm:$0xff] %vm2377_vm9, %v3842_v59  ;;  %v4379_v59 = vld [vmem:[#allocation3 + $0x880] sm:$0xff] }
 0x723   :  { %5795 = vst.msk [vmem:[%s12008_s7 + $0x1d8] sm:$0xff] %vm90_vm0, %v12552_v45  ;;  %v5010_v1 = vpop.f32.mrf.mxu2  ;;  %v5426_v27 = vadd.f32 %v11250_v50, %v5217_v49 }
 0x724   :  { %5796 = vst.msk [vmem:[%s12008_s7 + $0x1e0] sm:$0xff] %vm90_vm0, %v12553_v21  ;;  %v11515_v56 = vpop.f32.mrf.mxu3  ;;  %v3333_v16 = vpop.permute.xlu0 %3332  ;;  %5912 = vrot.lane.b32.xlu1 %v5617_v26, %s6302_s22  ;;  %5914 = vrot.lane.b32.xlu2 %v5620_v0, %s6302_s22  ;;  %v5011_v8 = vadd.f32 %v5010_v1, %v12559_v46  ;;  %v4358_v1 = vld [vmem:[#allocation3 + $0x7d8] sm:$0xff] }
 0x725   :  { %5797 = vst.msk [vmem:[%s12008_s7 + $0x1e8] sm:$0xff] %vm90_vm0, %v12554_v13  ;;  %v5631_v53 = vpop.f32.mrf.mxu1  ;;  %v11527_v36 = vpop.f32.mrf.mxu0  ;;  %6234 = vmatmul.msk.f32.gmra.mxu1 %vm1111_vm5, %v4336_v34  ;;  %v4346_v21 = vld [vmem:[#allocation3 + $0x778] sm:$0xff] }
 0x726   :  { %3463 = vst.msk [vmem:[#allocation3 + $0x998] sm:$0xff] %vm2377_vm9, %v3333_v16  ;;  %v5632_v6 = vadd.f32 %v5631_v53, %v5423_v29  ;;  %v3844_v44 = vpop.permute.xlu2 %3843  ;;  %v5220_v23 = vadd.f32 %v11283_v31, %v5011_v8  ;;  %v4384_v16 = vld [vmem:[#allocation3 + $0x8a8] sm:$0xff] }
 0x727   :  { %5798 = vst.msk [vmem:[%s12008_s7 + $0x1f0] sm:$0xff] %vm90_vm0, %v12555_v20  ;;  %v2815_v40 = vpop.permute.xlu1 %2814  ;;  %5060 = vmatmul.f32.gmra.mxu2 %v4348_v60  ;;  %v4368_v8 = vld [vmem:[#allocation3 + $0x828] sm:$0xff] }
 0x728   :  { %5799 = vst.msk [vmem:[%s12008_s7 + $0x1f8] sm:$0xff] %vm90_vm0, %v12556_v14  ;;  %5490 = vmatmul.f32.gmra.mxu0 %v4370_v51  ;;  %5922 = vrot.lane.b32.xlu0 %v5632_v6, %s6302_s22  ;;  %v5429_v31 = vadd.f32 %v11297_v52, %v5220_v23  ;;  %v4380_v52 = vld [vmem:[#allocation3 + $0x888] sm:$0xff]  ;;  %v4363_v14 = vld [vmem:[#allocation3 + $0x800] sm:$0xff]  ;;  %v4389_v51 = vld [vmem:[#allocation3 + $0x8d0] sm:$0xff] }
 0x729   :  { %2948 = vst.msk [vmem:[#allocation3 + $0x918] sm:$0xff] %vm2377_vm9, %v2815_v40  ;;  %5284 = vmatmul.f32.gmra.mxu3 %v4374_v12 }
 0x72a   :  { %3975 = vst.msk [vmem:[#allocation3 + $0x978] sm:$0xff] %vm2377_vm9, %v3844_v44 }
 0x72b   :  { %3594 = vst.msk [vmem:[#allocation3 + $0x9f0] sm:$0xff] %vm1111_vm5, %v3530_v35  ;;  %v5013_v24 = vpop.f32.mrf.mxu2  ;;  %v4351_v35 = vld [vmem:[#allocation3 + $0x7a0] sm:$0xff] }
 0x72c   :  { %v11552_v28 = vpop.f32.mrf.mxu3  ;;  %v3335_v25 = vpop.permute.xlu0 %3334  ;;  %5918 = vrot.lane.b32.xlu1 %v5626_v54, %s6302_s22  ;;  %5920 = vrot.lane.b32.xlu2 %v5629_v42, %s6302_s22  ;;  %v5014_v39 = vadd.f32 %v5013_v24, %v12560_v10  ;;  %v4373_v10 = vld [vmem:[#allocation3 + $0x850] sm:$0xff] }
 0x72d   :  { %v5634_v62 = vpop.f32.mrf.mxu1  ;;  %3464 = vst.msk [vmem:[#allocation3 + $0x9c0] sm:$0xff] %vm2377_vm9, %v3335_v25  ;;  %v11557_v11 = vpop.f32.mrf.mxu0  ;;  %6235 = vmatmul.msk.f32.gmra.mxu1 %vm1111_vm5, %v4341_v7  ;;  %v4356_v25 = vld [vmem:[#allocation3 + $0x7c8] sm:$0xff]  ;;  %v12563_v7 = vld [vmem:[#allocation75_spill] sm:$0xff] }
 0x72e   :  { %v3846_v41 = vpop.permute.xlu2 %3845  ;;  %v5635_v48 = vadd.f32 %v5634_v62, %v5426_v27  ;;  %v5223_v0 = vadd.f32 %v11332_v5, %v5014_v39  ;;  %v4361_v39 = vld [vmem:[#allocation3 + $0x7f0] sm:$0xff] }
 0x72f   :  { %v2817_v58 = vpop.permute.xlu1 %2816  ;;  %5063 = vmatmul.f32.gmra.mxu2 %v4353_v3  ;;  %3976 = vst.msk [vmem:[#allocation3 + $0x9a0] sm:$0xff] %vm2377_vm9, %v3846_v41 }
 0x730   :  { %2949 = vst.msk [vmem:[#allocation3 + $0x940] sm:$0xff] %vm2377_vm9, %v2817_v58  ;;  %5493 = vmatmul.f32.gmra.mxu0 %v4375_v15  ;;  %v5432_v5 = vadd.f32 %v11345_v30, %v5223_v0  ;;  %v4390_v58 = vld [vmem:[#allocation3 + $0x8d8] sm:$0xff] }
 0x731   :  { %5287 = vmatmul.f32.gmra.mxu3 %v4379_v59 }
 0x733   :  { %v5016_v19 = vpop.f32.mrf.mxu2 }
 0x734   :  { %v11566_v55 = vpop.f32.mrf.mxu3  ;;  %v3337_v32 = vpop.permute.xlu0 %3336  ;;  %5924 = vrot.lane.b32.xlu1 %v5635_v48, %s6302_s22  ;;  %v5017_v53 = vadd.f32 %v5016_v19, %v12561_v4  ;;  %v4378_v4 = vld [vmem:[#allocation3 + $0x878] sm:$0xff] }
 0x735   :  { %v5637_v63 = vpop.f32.mrf.mxu1  ;;  %3465 = vst.msk [vmem:[#allocation3 + $0x9e8] sm:$0xff] %vm2377_vm9, %v3337_v32  ;;  %v11571_v45 = vpop.f32.mrf.mxu0  ;;  %6236 = vmatmul.msk.f32.gmra.mxu1 %vm1111_vm5, %v4346_v21 }
 0x736   :  { %v5638_v50 = vadd.f32 %v5637_v63, %v5429_v31  ;;  %v3848_v29 = vpop.permute.xlu2 %3847  ;;  %v5226_v44 = vadd.f32 %v11380_v18, %v5017_v53  ;;  %v4395_v63 = vld [vmem:[#allocation3 + $0x900] sm:$0xff]  ;;  %v4366_v53 = vld [vmem:[#allocation3 + $0x818] sm:$0xff] }
 0x737   :  { %v2819_v26 = vpop.permute.xlu1 %2818  ;;  %5066 = vmatmul.f32.gmra.mxu2 %v4358_v1  ;;  %3977 = vst.msk [vmem:[#allocation3 + $0x9c8] sm:$0xff] %vm2377_vm9, %v3848_v29 }
 0x738   :  { %2950 = vst.msk [vmem:[#allocation3 + $0x968] sm:$0xff] %vm2377_vm9, %v2819_v26  ;;  %5496 = vmatmul.f32.gmra.mxu0 %v4380_v52  ;;  %5926 = vrot.lane.b32.xlu2 %v5638_v50, %s6302_s22  ;;  %v5435_v61 = vadd.f32 %v11389_v57, %v5226_v44  ;;  %v4394_v57 = vld [vmem:[#allocation3 + $0x8f8] sm:$0xff]  ;;  %v12564_v26 = vld [vmem:[#allocation85_spill] sm:$0xff] }
 0x739   :  { %5290 = vmatmul.f32.gmra.mxu3 %v4384_v16 }
 0x73b   :  { %v5019_v13 = vpop.f32.mrf.mxu2 }
 0x73c   :  { %v11579_v17 = vpop.f32.mrf.mxu3  ;;  %v3850_v6 = vpop.permute.xlu0 %3849  ;;  %v5020_v18 = vadd.f32 %v5019_v13, %v12562_v37  ;;  %v4383_v37 = vld [vmem:[#allocation3 + $0x8a0] sm:$0xff] }
 0x73d   :  { %v5640_v20 = vpop.f32.mrf.mxu1  ;;  %3978 = vst.msk [vmem:[#allocation3 + $0x9f0] sm:$0xff] %vm2377_vm9, %v3850_v6  ;;  %v11583_v40 = vpop.f32.mrf.mxu0  ;;  %6237 = vmatmul.msk.f32.gmra.mxu1 %vm1111_vm5, %v4351_v35 }
 0x73e   :  { %v5641_v60 = vadd.f32 %v5640_v20, %v5432_v5  ;;  %v5867_v12 = vpop.permute.xlu2 %5866  ;;  %v5229_v49 = vadd.f32 %v11421_v47, %v5020_v18  ;;  %v4400_v20 = vld [vmem:[#allocation3 + $0x928] sm:$0xff]  ;;  %v4371_v18 = vld [vmem:[#allocation3 + $0x840] sm:$0xff] }
 0x73f   :  { %v2821_v34 = vpop.permute.xlu1 %2820  ;;  %5069 = vmatmul.f32.gmra.mxu2 %v4363_v14  ;;  %6058 = vst.msk [vmem:[%s12008_s7 + $0x8] sm:$0xff] %vm6056_vm10, %v5867_v12 }
 0x740   :  { %2951 = vst.msk [vmem:[#allocation3 + $0x990] sm:$0xff] %vm2377_vm9, %v2821_v34  ;;  %5499 = vmatmul.f32.gmra.mxu0 %v4385_v38  ;;  %5928 = vrot.lane.b32.xlu0 %v5641_v60, %s6302_s22  ;;  %v5438_v41 = vadd.f32 %v11434_v33, %v5229_v49  ;;  %v4399_v33 = vld [vmem:[#allocation3 + $0x920] sm:$0xff] }
 0x741   :  { %5293 = vmatmul.f32.gmra.mxu3 %v4389_v51  ;;  %v12565_v60 = vld [vmem:[#allocation76_spill] sm:$0xff] }
 0x743   :  { %v5022_v30 = vpop.f32.mrf.mxu2 }
 0x744   :  { %v11594_v9 = vpop.f32.mrf.mxu3  ;;  %v5869_v2 = vpop.permute.xlu0 %5868  ;;  %v5023_v47 = vadd.f32 %v5022_v30, %v12563_v7  ;;  %v4376_v7 = vld [vmem:[#allocation3 + $0x868] sm:$0xff] }
 0x745   :  { %v5643_v54 = vpop.f32.mrf.mxu1  ;;  %6059 = vst.msk [vmem:[%s12008_s7 + $0x10] sm:$0xff] %vm6056_vm10, %v5869_v2  ;;  %v11601_v24 = vpop.f32.mrf.mxu0  ;;  %6238 = vmatmul.msk.f32.gmra.mxu1 %vm1111_vm5, %v4356_v25 }
 0x746   :  { %v5644_v42 = vadd.f32 %v5643_v54, %v5435_v61  ;;  %v5873_v62 = vpop.permute.xlu2 %5872  ;;  %v5232_v31 = vadd.f32 %v11467_v43, %v5023_v47  ;;  %v4405_v54 = vld [vmem:[#allocation3 + $0x950] sm:$0xff] }
 0x747   :  { %v2823_v46 = vpop.permute.xlu1 %2822  ;;  %5072 = vmatmul.f32.gmra.mxu2 %v4368_v8  ;;  %6061 = vst.msk [vmem:[%s12008_s7 + $0x20] sm:$0xff] %vm6056_vm10, %v5873_v62 }
 0x748   :  { %2952 = vst.msk [vmem:[#allocation3 + $0x9b8] sm:$0xff] %vm2377_vm9, %v2823_v46  ;;  %5502 = vmatmul.f32.gmra.mxu0 %v4390_v58  ;;  %5930 = vrot.lane.b32.xlu1 %v5644_v42, %s6302_s22  ;;  %v5441_v21 = vadd.f32 %v11480_v22, %v5232_v31  ;;  %v4404_v22 = vld [vmem:[#allocation3 + $0x948] sm:$0xff]  ;;  %v12566_v42 = vld [vmem:[#allocation86_spill] sm:$0xff] }
 0x749   :  { %5296 = vmatmul.f32.gmra.mxu3 %v4394_v57 }
 0x74b   :  { %v5025_v3 = vpop.f32.mrf.mxu2 }
 0x74c   :  { %v11612_v23 = vpop.f32.mrf.mxu3  ;;  %v5875_v59 = vpop.permute.xlu0 %5874  ;;  %v5026_v43 = vadd.f32 %v5025_v3, %v12564_v26  ;;  %v4388_v3 = vld [vmem:[#allocation3 + $0x8c8] sm:$0xff]  ;;  %v4381_v26 = vld [vmem:[#allocation3 + $0x890] sm:$0xff] }
 0x74d   :  { %v5646_v15 = vpop.f32.mrf.mxu1  ;;  %6062 = vst.msk [vmem:[%s12008_s7 + $0x28] sm:$0xff] %vm6056_vm10, %v5875_v59  ;;  %v11619_v27 = vpop.f32.mrf.mxu0  ;;  %6239 = vmatmul.msk.f32.gmra.mxu1 %vm1111_vm5, %v4361_v39 }
 0x74e   :  { %v5647_v48 = vadd.f32 %v5646_v15, %v5438_v41  ;;  %v5879_v32 = vpop.permute.xlu2 %5878  ;;  %v5235_v5 = vadd.f32 %v11515_v56, %v5026_v43  ;;  %v4410_v15 = vld [vmem:[#allocation3 + $0x978] sm:$0xff] }
 0x74f   :  { %v2825_v19 = vpop.permute.xlu1 %2824  ;;  %5075 = vmatmul.f32.gmra.mxu2 %v4373_v10  ;;  %6064 = vst.msk [vmem:[%s12008_s7 + $0x38] sm:$0xff] %vm6056_vm10, %v5879_v32 }
 0x750   :  { %2953 = vst.msk [vmem:[#allocation3 + $0x9e0] sm:$0xff] %vm2377_vm9, %v2825_v19  ;;  %5505 = vmatmul.f32.gmra.mxu0 %v4395_v63  ;;  %5932 = vrot.lane.b32.xlu2 %v5647_v48, %s6302_s22  ;;  %v5444_v35 = vadd.f32 %v11527_v36, %v5235_v5  ;;  %v4409_v36 = vld [vmem:[#allocation3 + $0x970] sm:$0xff]  ;;  %v12567_v48 = vld [vmem:[#allocation87_spill] sm:$0xff] }
 0x751   :  { %5299 = vmatmul.f32.gmra.mxu3 %v4399_v33 }
 0x753   :  { %v5028_v50 = vpop.f32.mrf.mxu2 }
 0x754   :  { %v11630_v1 = vpop.f32.mrf.mxu3  ;;  %v5881_v0 = vpop.permute.xlu0 %5880  ;;  %v5029_v34 = vadd.f32 %v5028_v50, %v12565_v60  ;;  %v4393_v50 = vld [vmem:[#allocation3 + $0x8f0] sm:$0xff]  ;;  %v4386_v60 = vld [vmem:[#allocation3 + $0x8b8] sm:$0xff] }
 0x755   :  { %v5649_v29 = vpop.f32.mrf.mxu1  ;;  %6065 = vst.msk [vmem:[%s12008_s7 + $0x40] sm:$0xff] %vm6056_vm10, %v5881_v0  ;;  %v11637_v16 = vpop.f32.mrf.mxu0  ;;  %6240 = vmatmul.msk.f32.gmra.mxu1 %vm1111_vm5, %v4366_v53  ;;  %v4415_v0 = vld [vmem:[#allocation3 + $0x9a0] sm:$0xff] }
 0x756   :  { %v5650_v52 = vadd.f32 %v5649_v29, %v5441_v21  ;;  %v5885_v6 = vpop.permute.xlu2 %5884  ;;  %v5238_v61 = vadd.f32 %v11552_v28, %v5029_v34 }
 0x757   :  { %v5865_v13 = vpop.permute.xlu1 %5864  ;;  %5078 = vmatmul.f32.gmra.mxu2 %v4378_v4  ;;  %6067 = vst.msk [vmem:[%s12008_s7 + $0x50] sm:$0xff] %vm6056_vm10, %v5885_v6 }
 0x758   :  { %6057 = vst.msk [vmem:[%s12008_s7] sm:$0xff] %vm6056_vm10, %v5865_v13  ;;  %5508 = vmatmul.f32.gmra.mxu0 %v4400_v20  ;;  %5934 = vrot.lane.b32.xlu0 %v5650_v52, %s6302_s22  ;;  %v5447_v25 = vadd.f32 %v11557_v11, %v5238_v61  ;;  %v4414_v11 = vld [vmem:[#allocation3 + $0x998] sm:$0xff]  ;;  %v12568_v52 = vld [vmem:[#allocation89_spill] sm:$0xff] }
 0x759   :  { %5302 = vmatmul.f32.gmra.mxu3 %v4404_v22 }
 0x75b   :  { %v5031_v56 = vpop.f32.mrf.mxu2 }
 0x75c   :  { %v11651_v14 = vpop.f32.mrf.mxu3  ;;  %v5887_v44 = vpop.permute.xlu0 %5886  ;;  %v5032_v46 = vadd.f32 %v5031_v56, %v12566_v42  ;;  %v4398_v56 = vld [vmem:[#allocation3 + $0x918] sm:$0xff] }
 0x75d   :  { %v5652_v12 = vpop.f32.mrf.mxu1  ;;  %6068 = vst.msk [vmem:[%s12008_s7 + $0x58] sm:$0xff] %vm6056_vm10, %v5887_v44  ;;  %v11658_v51 = vpop.f32.mrf.mxu0  ;;  %6241 = vmatmul.msk.f32.gmra.mxu1 %vm1111_vm5, %v4371_v18 }
 0x75e   :  { %v5653_v38 = vadd.f32 %v5652_v12, %v5444_v35  ;;  %v5891_v2 = vpop.permute.xlu2 %5890  ;;  %v5241_v47 = vadd.f32 %v11566_v55, %v5032_v46 }
 0x75f   :  { %v5871_v30 = vpop.permute.xlu1 %5870  ;;  %5081 = vmatmul.f32.gmra.mxu2 %v4383_v37  ;;  %6070 = vst.msk [vmem:[%s12008_s7 + $0x68] sm:$0xff] %vm6056_vm10, %v5891_v2 }
 0x760   :  { %6060 = vst.msk [vmem:[%s12008_s7 + $0x18] sm:$0xff] %vm6056_vm10, %v5871_v30  ;;  %5511 = vmatmul.f32.gmra.mxu0 %v4405_v54  ;;  %5936 = vrot.lane.b32.xlu1 %v5653_v38, %s6302_s22  ;;  %v5450_v39 = vadd.f32 %v11571_v45, %v5241_v47  ;;  %v4419_v45 = vld [vmem:[#allocation3 + $0x9c0] sm:$0xff]  ;;  %v4042_v47 = vld [vmem:[#allocation2 + $0x471] sm:$0xff] }
 0x761   :  { %5305 = vmatmul.f32.gmra.mxu3 %v4409_v36  ;;  %v4403_v54 = vld [vmem:[#allocation3 + $0x940] sm:$0xff]  ;;  %4106 = vst.msk [vmem:[#allocation3 + $0x9f8] sm:$0xff] %vm1111_vm5, %v4042_v47 }
 0x763   :  { %v5034_v28 = vpop.f32.mrf.mxu2 }
 0x764   :  { %v11672_v8 = vpop.f32.mrf.mxu3  ;;  %v5893_v49 = vpop.permute.xlu0 %5892  ;;  %v5035_v19 = vadd.f32 %v5034_v28, %v12567_v48  ;;  %v4391_v28 = vld [vmem:[#allocation3 + $0x8e0] sm:$0xff] }
 0x765   :  { %v5655_v62 = vpop.f32.mrf.mxu1  ;;  %6071 = vst.msk [vmem:[%s12008_s7 + $0x70] sm:$0xff] %vm6056_vm10, %v5893_v49  ;;  %v11680_v41 = vpop.f32.mrf.mxu0  ;;  %6242 = vmatmul.msk.f32.gmra.mxu1 %vm1111_vm5, %v4376_v7 }
 0x766   :  { %v5656_v57 = vadd.f32 %v5655_v62, %v5447_v25  ;;  %v5897_v59 = vpop.permute.xlu2 %5896  ;;  %v5244_v43 = vadd.f32 %v11579_v17, %v5035_v19 }
 0x767   :  { %v5877_v58 = vpop.permute.xlu1 %5876  ;;  %5084 = vmatmul.f32.gmra.mxu2 %v4388_v3  ;;  %6073 = vst.msk [vmem:[%s12008_s7 + $0x80] sm:$0xff] %vm6056_vm10, %v5897_v59 }
 0x768   :  { %6063 = vst.msk [vmem:[%s12008_s7 + $0x30] sm:$0xff] %vm6056_vm10, %v5877_v58  ;;  %5514 = vmatmul.f32.gmra.mxu0 %v4410_v15  ;;  %5938 = vrot.lane.b32.xlu2 %v5656_v57, %s6302_s22  ;;  %v5453_v4 = vadd.f32 %v11583_v40, %v5244_v43  ;;  %v4424_v40 = vld [vmem:[#allocation3 + $0x9e8] sm:$0xff] }
 0x769   :  { %5308 = vmatmul.f32.gmra.mxu3 %v4414_v11  ;;  %v4408_v11 = vld [vmem:[#allocation3 + $0x968] sm:$0xff] }
 0x76a   :  { %v4396_v15 = vld [vmem:[#allocation3 + $0x908] sm:$0xff] }
 0x76b   :  { %v5037_v55 = vpop.f32.mrf.mxu2 }
 0x76c   :  { %v11693_v10 = vpop.f32.mrf.mxu3  ;;  %v5899_v31 = vpop.permute.xlu0 %5898  ;;  %v5038_v13 = vadd.f32 %v5037_v55, %v12568_v52 }
 0x76d   :  { %v5658_v32 = vpop.f32.mrf.mxu1  ;;  %6074 = vst.msk [vmem:[%s12008_s7 + $0x88] sm:$0xff] %vm6056_vm10, %v5899_v31  ;;  %6243 = vmatmul.msk.f32.gmra.mxu1 %vm1111_vm5, %v4381_v26  ;;  %v11710_v29 = vpop.f32.mrf.mxu0  ;;  %v4041_v26 = vld [vmem:[#allocation2 + $0x469] sm:$0xff] }
 0x76e   :  { %v5659_v33 = vadd.f32 %v5658_v32, %v5450_v39  ;;  %v5903_v21 = vpop.permute.xlu2 %5902  ;;  %v5247_v34 = vadd.f32 %v11594_v9, %v5038_v13  ;;  %v12569_v9 = vld [vmem:[#allocation79_spill] sm:$0xff]  ;;  %4105 = vst.msk [vmem:[#allocation3 + $0x9d0] sm:$0xff] %vm1111_vm5, %v4041_v26  ;;  %v12572_v13 = vld [vmem:[#allocation93_spill] sm:$0xff] }
 0x76f   :  { %v5883_v63 = vpop.permute.xlu1 %5882  ;;  %5087 = vmatmul.f32.gmra.mxu2 %v4393_v50  ;;  %6076 = vst.msk [vmem:[%s12008_s7 + $0x98] sm:$0xff] %vm6056_vm10, %v5903_v21  ;;  %v12571_v39 = vld [vmem:[#allocation71_spill] sm:$0xff]  ;;  %v4413_v21 = vld [vmem:[#allocation3 + $0x990] sm:$0xff] }
 0x770   :  { %6066 = vst.msk [vmem:[%s12008_s7 + $0x48] sm:$0xff] %vm6056_vm10, %v5883_v63  ;;  %5517 = vmatmul.f32.gmra.mxu0 %v4415_v0  ;;  %5940 = vrot.lane.b32.xlu0 %v5659_v33, %s6302_s22  ;;  %v5456_v30 = vadd.f32 %v11601_v24, %v5247_v34  ;;  %v4420_v24 = vld [vmem:[#allocation3 + $0x9c8] sm:$0xff]  ;;  %v4426_v50 = vld [vmem:[#allocation3 + $0x9f8] sm:$0xff] }
 0x771   :  { %5311 = vmatmul.f32.gmra.mxu3 %v4419_v45  ;;  %v4401_v45 = vld [vmem:[#allocation3 + $0x930] sm:$0xff] }
 0x773   :  { %v5040_v17 = vpop.f32.mrf.mxu2 }
 0x774   :  { %v5905_v53 = vpop.permute.xlu0 %5904  ;;  %v11715_v5 = vpop.f32.mrf.mxu3  ;;  %v5041_v12 = vadd.f32 %v5040_v17, %v12569_v9 }
 0x775   :  { %v5661_v6 = vpop.f32.mrf.mxu1  ;;  %6077 = vst.msk [vmem:[%s12008_s7 + $0xa0] sm:$0xff] %vm6056_vm10, %v5905_v53  ;;  %6244 = vmatmul.msk.f32.gmra.mxu1 %vm1111_vm5, %v4386_v60  ;;  %v11733_v38 = vpop.f32.mrf.mxu0  ;;  %v4406_v60 = vld [vmem:[#allocation3 + $0x958] sm:$0xff] }
 0x776   :  { %v5662_v22 = vadd.f32 %v5661_v6, %v5453_v4  ;;  %v5909_v35 = vpop.permute.xlu2 %5908  ;;  %v5250_v42 = vadd.f32 %v11612_v23, %v5041_v12  ;;  %v12570_v23 = vld [vmem:[#allocation91_spill] sm:$0xff] }
 0x777   :  { %v5889_v20 = vpop.permute.xlu1 %5888  ;;  %5090 = vmatmul.f32.gmra.mxu2 %v4398_v56  ;;  %6079 = vst.msk [vmem:[%s12008_s7 + $0xb0] sm:$0xff] %vm6056_vm10, %v5909_v35  ;;  %v4418_v56 = vld [vmem:[#allocation3 + $0x9b8] sm:$0xff] }
 0x778   :  { %6069 = vst.msk [vmem:[%s12008_s7 + $0x60] sm:$0xff] %vm6056_vm10, %v5889_v20  ;;  %5942 = vrot.lane.b32.xlu1 %v5662_v22, %s6302_s22  ;;  %5520 = vmatmul.f32.gmra.mxu0 %v4420_v24  ;;  %v5459_v62 = vadd.f32 %v11619_v27, %v5250_v42  ;;  %v4425_v27 = vld [vmem:[#allocation3 + $0x9f0] sm:$0xff] }
 0x779   :  { %5314 = vmatmul.f32.gmra.mxu3 %v4424_v40  ;;  %v12573_v40 = vld [vmem:[#allocation96_spill] sm:$0xff]  ;;  %v12574_v42 = vld [vmem:[#allocation70_spill] sm:$0xff] }
 0x77b   :  { %v5043_v44 = vpop.f32.mrf.mxu2 }
 0x77c   :  { %v5911_v37 = vpop.permute.xlu0 %5910  ;;  %v11740_v2 = vpop.f32.mrf.mxu3  ;;  %v5044_v49 = vadd.f32 %v5043_v44, %v12570_v23 }
 0x77d   :  { %v5664_v18 = vpop.f32.mrf.mxu1  ;;  %6080 = vst.msk [vmem:[%s12008_s7 + $0xb8] sm:$0xff] %vm6056_vm10, %v5911_v37  ;;  %6245 = vmatmul.msk.f32.gmra.mxu1 %vm1111_vm5, %v4391_v28  ;;  %v11759_v3 = vpop.f32.mrf.mxu0 }
 0x77e   :  { %v5665_v61 = vadd.f32 %v5664_v18, %v5456_v30  ;;  %v5915_v46 = vpop.permute.xlu2 %5914  ;;  %v5253_v55 = vadd.f32 %v11630_v1, %v5044_v49 }
 0x77f   :  { %v5895_v36 = vpop.permute.xlu1 %5894  ;;  %5093 = vmatmul.f32.gmra.mxu2 %v4403_v54  ;;  %6082 = vst.msk [vmem:[%s12008_s7 + $0xc8] sm:$0xff] %vm6056_vm10, %v5915_v46 }
 0x780   :  { %6072 = vst.msk [vmem:[%s12008_s7 + $0x78] sm:$0xff] %vm6056_vm10, %v5895_v36  ;;  %5944 = vrot.lane.b32.xlu2 %v5665_v61, %s6302_s22  ;;  %5523 = vmatmul.f32.gmra.mxu0 %v4425_v27  ;;  %v5462_v32 = vadd.f32 %v11637_v16, %v5253_v55  ;;  %v4423_v61 = vld [vmem:[#allocation3 + $0x9e0] sm:$0xff] }
 0x781   :  { %6252 = vmatmul.msk.f32.vlgmr.msra.gmra.mxu3 %vm1111_vm5, %v4426_v50  ;;  %v4411_v36 = vld [vmem:[#allocation3 + $0x980] sm:$0xff] }
 0x783   :  { %v5046_v25 = vpop.f32.mrf.mxu2 }
 0x784   :  { %v5917_v57 = vpop.permute.xlu0 %5916  ;;  %v11768_v19 = vpop.f32.mrf.mxu3  ;;  %v5047_v31 = vadd.f32 %v5046_v25, %v12571_v39  ;;  %v12576_v39 = vld [vmem:[#allocation102_spill] sm:$0xff] }
 0x785   :  { %v5667_v58 = vpop.f32.mrf.mxu1  ;;  %6083 = vst.msk [vmem:[%s12008_s7 + $0xd0] sm:$0xff] %vm6056_vm10, %v5917_v57  ;;  %6246 = vmatmul.msk.f32.gmra.mxu1 %vm1111_vm5, %v4396_v15  ;;  %v11780_v17 = vpop.f32.mrf.mxu0 }
 0x786   :  { %v5668_v7 = vadd.f32 %v5667_v58, %v5459_v62  ;;  %v5921_v48 = vpop.permute.xlu2 %5920  ;;  %v5256_v0 = vadd.f32 %v11651_v14, %v5047_v31  ;;  %v4416_v62 = vld [vmem:[#allocation3 + $0x9a8] sm:$0xff] }
 0x787   :  { %v5901_v59 = vpop.permute.xlu1 %5900  ;;  %5096 = vmatmul.f32.gmra.mxu2 %v4408_v11  ;;  %6085 = vst.msk [vmem:[%s12008_s7 + $0xe0] sm:$0xff] %vm6056_vm10, %v5921_v48  ;;  %v4421_v11 = vld [vmem:[#allocation3 + $0x9d0] sm:$0xff] }
 0x788   :  { %6075 = vst.msk [vmem:[%s12008_s7 + $0x90] sm:$0xff] %vm6056_vm10, %v5901_v59  ;;  %5946 = vrot.lane.b32.xlu0 %v5668_v7, %s6302_s22  ;;  %v5465_v14 = vadd.f32 %v11658_v51, %v5256_v0  ;;  %v12575_v7 = vld [vmem:[#allocation100_spill] sm:$0xff] }
 0x78b   :  { %v5049_v1 = vpop.f32.mrf.mxu2 }
 0x78c   :  { %v11788_v16 = vpop.f32.mrf.mxu3  ;;  %v5050_v4 = vadd.f32 %v5049_v1, %v12572_v13 }
 0x78d   :  { %v5670_v33 = vpop.f32.mrf.mxu1  ;;  %6247 = vmatmul.msk.f32.gmra.mxu1 %vm1111_vm5, %v4401_v45  ;;  %v11803_v51 = vpop.f32.mrf.mxu0 }
 0x78e   :  { %v5671_v63 = vadd.f32 %v5670_v33, %v5462_v32  ;;  %v5259_v34 = vadd.f32 %v11672_v8, %v5050_v4 }
 0x78f   :  { %v5907_v43 = vpop.permute.xlu1 %5906  ;;  %5099 = vmatmul.f32.gmra.mxu2 %v4413_v21  ;;  %v12577_v21 = vld [vmem:[#allocation105_spill] sm:$0xff] }
 0x790   :  { %6078 = vst.msk [vmem:[%s12008_s7 + $0xa8] sm:$0xff] %vm6056_vm10, %v5907_v43  ;;  %5948 = vrot.lane.b32.xlu1 %v5671_v63, %s6302_s22  ;;  %v5468_v12 = vadd.f32 %v11680_v41, %v5259_v34 }
 0x792   :  { %v5927_v53 = vpop.permute.xlu2 %5926 }
 0x793   :  { %v5052_v52 = vpop.f32.mrf.mxu2  ;;  %6088 = vst.msk [vmem:[%s12008_s7 + $0xf8] sm:$0xff] %vm6056_vm10, %v5927_v53 }
 0x794   :  { %v5053_v44 = vadd.f32 %v5052_v52, %v12573_v40  ;;  %v11807_v30 = vpop.f32.mrf.mxu3  ;;  %v12579_v40 = vld [vmem:[#allocation108_spill] sm:$0xff] }
 0x795   :  { %v5673_v6 = vpop.f32.mrf.mxu1  ;;  %6248 = vmatmul.msk.f32.gmra.mxu1 %vm1111_vm5, %v4406_v60  ;;  %v5485_v28 = vpop.f32.mrf.mxu0 }
 0x796   :  { %v5674_v22 = vadd.f32 %v5673_v6, %v5465_v14  ;;  %v5262_v54 = vadd.f32 %v11693_v10, %v5053_v44  ;;  %v12578_v14 = vld [vmem:[#allocation107_spill] sm:$0xff] }
 0x797   :  { %v5913_v20 = vpop.permute.xlu1 %5912  ;;  %5102 = vmatmul.f32.gmra.mxu2 %v4418_v56 }
 0x798   :  { %6081 = vst.msk [vmem:[%s12008_s7 + $0xc0] sm:$0xff] %vm6056_vm10, %v5913_v20  ;;  %5950 = vrot.lane.b32.xlu2 %v5674_v22, %s6302_s22  ;;  %v5471_v24 = vadd.f32 %v11710_v29, %v5262_v54 }
 0x79a   :  { %v5923_v9 = vpop.permute.xlu0 %5922 }
 0x79b   :  { %v5055_v35 = vpop.f32.mrf.mxu2  ;;  %6086 = vst.msk [vmem:[%s12008_s7 + $0xe8] sm:$0xff] %vm6056_vm10, %v5923_v9 }
 0x79c   :  { %v5056_v46 = vadd.f32 %v5055_v35, %v12574_v42  ;;  %v5279_v49 = vpop.f32.mrf.mxu3 }
 0x79d   :  { %v5676_v8 = vpop.f32.mrf.mxu1  ;;  %6249 = vmatmul.msk.f32.gmra.mxu1 %vm1111_vm5, %v4411_v36  ;;  %v5488_v15 = vpop.f32.mrf.mxu0 }
 0x79e   :  { %v5677_v37 = vadd.f32 %v5676_v8, %v5468_v12  ;;  %v5265_v57 = vadd.f32 %v11715_v5, %v5056_v46 }
 0x79f   :  { %v5919_v18 = vpop.permute.xlu1 %5918  ;;  %5105 = vmatmul.f32.gmra.mxu2 %v4423_v61  ;;  %v12580_v61 = vld [vmem:[#allocation110_spill] sm:$0xff] }
 0x7a0   :  { %6084 = vst.msk [vmem:[%s12008_s7 + $0xd8] sm:$0xff] %vm6056_vm10, %v5919_v18  ;;  %5952 = vrot.lane.b32.xlu0 %v5677_v37, %s6302_s22  ;;  %v5474_v59 = vadd.f32 %v11733_v38, %v5265_v57 }
 0x7a3   :  { %v5058_v41 = vpop.f32.mrf.mxu2 }
 0x7a4   :  { %v5059_v47 = vadd.f32 %v5058_v41, %v12575_v7  ;;  %v5282_v27 = vpop.f32.mrf.mxu3 }
 0x7a5   :  { %v5679_v25 = vpop.f32.mrf.mxu1  ;;  %6250 = vmatmul.msk.f32.gmra.mxu1 %vm1111_vm5, %v4416_v62  ;;  %v5491_v50 = vpop.f32.mrf.mxu0 }
 0x7a6   :  { %v5680_v23 = vadd.f32 %v5679_v25, %v5471_v24  ;;  %v5268_v48 = vadd.f32 %v11740_v2, %v5059_v47 }
 0x7a7   :  { %v5925_v10 = vpop.permute.xlu1 %5924 }
 0x7a8   :  { %6087 = vst.msk [vmem:[%s12008_s7 + $0xf0] sm:$0xff] %vm6056_vm10, %v5925_v10  ;;  %5954 = vrot.lane.b32.xlu1 %v5680_v23, %s6302_s22  ;;  %v5477_v32 = vadd.f32 %v11759_v3, %v5268_v48  ;;  %v12581_v10 = vld [vmem:[#allocation112_spill] sm:$0xff] }
 0x7aa   :  { %v5933_v29 = vpop.permute.xlu2 %5932 }
 0x7ab   :  { %v5061_v58 = vpop.f32.mrf.mxu2  ;;  %6091 = vst.msk [vmem:[%s12008_s7 + $0x110] sm:$0xff] %vm6056_vm10, %v5933_v29 }
 0x7ac   :  { %v5062_v31 = vadd.f32 %v5061_v58, %v12576_v39  ;;  %v5285_v26 = vpop.f32.mrf.mxu3 }
 0x7ad   :  { %v5682_v5 = vpop.f32.mrf.mxu1  ;;  %6251 = vmatmul.msk.f32.gmra.mxu1 %vm1111_vm5, %v4421_v11  ;;  %v12582_v11 = vld [vmem:[#allocation115_spill] sm:$0xff] }
 0x7ae   :  { %v5683_v55 = vadd.f32 %v5682_v5, %v5474_v59  ;;  %v5271_v2 = vadd.f32 %v11768_v19, %v5062_v31  ;;  %v5494_v19 = vpop.f32.mrf.mxu0 }
 0x7b0   :  { %5956 = vrot.lane.b32.xlu2 %v5683_v55, %s6302_s22  ;;  %v5480_v52 = vadd.f32 %v11780_v17, %v5271_v2 }
 0x7b2   :  { %v5929_v38 = vpop.permute.xlu0 %5928 }
 0x7b3   :  { %v5064_v1 = vpop.f32.mrf.mxu2  ;;  %6089 = vst.msk [vmem:[%s12008_s7 + $0x100] sm:$0xff] %vm6056_vm10, %v5929_v38 }
 0x7b4   :  { %v5065_v45 = vadd.f32 %v5064_v1, %v12577_v21  ;;  %v5288_v56 = vpop.f32.mrf.mxu3 }
 0x7b5   :  { %v5685_v33 = vpop.f32.mrf.mxu1 }
 0x7b6   :  { %v5686_v63 = vadd.f32 %v5685_v33, %v5477_v32  ;;  %v5274_v4 = vadd.f32 %v11788_v16, %v5065_v45  ;;  %v5497_v35 = vpop.f32.mrf.mxu0  ;;  %v12583_v33 = vld [vmem:[#allocation119_spill] sm:$0xff] }
 0x7b8   :  { %5958 = vrot.lane.b32.xlu0 %v5686_v63, %s6302_s22  ;;  %v5483_v20 = vadd.f32 %v11803_v51, %v5274_v4 }
 0x7ba   :  { %v5931_v0 = vpop.permute.xlu1 %5930 }
 0x7bb   :  { %v5067_v43 = vpop.f32.mrf.mxu2  ;;  %6090 = vst.msk [vmem:[%s12008_s7 + $0x108] sm:$0xff] %vm6056_vm10, %v5931_v0 }
 0x7bc   :  { %v5068_v6 = vadd.f32 %v5067_v43, %v12578_v14  ;;  %v5291_v37 = vpop.f32.mrf.mxu3 }
 0x7bd   :  { %v5688_v3 = vpop.f32.mrf.mxu1 }
 0x7be   :  { %v5689_v13 = vadd.f32 %v5688_v3, %v5480_v52  ;;  %v5277_v34 = vadd.f32 %v11807_v30, %v5068_v6  ;;  %v5500_v42 = vpop.f32.mrf.mxu0  ;;  %v12584_v3 = vld [vmem:[#allocation122_spill] sm:$0xff] }
 0x7c0   :  { %5960 = vrot.lane.b32.xlu1 %v5689_v13, %s6302_s22  ;;  %v5486_v12 = vadd.f32 %v5485_v28, %v5277_v34 }
 0x7c2   :  { %v5939_v22 = vpop.permute.xlu2 %5938 }
 0x7c3   :  { %v5070_v53 = vpop.f32.mrf.mxu2  ;;  %6094 = vst.msk [vmem:[%s12008_s7 + $0x128] sm:$0xff] %vm6056_vm10, %v5939_v22 }
 0x7c4   :  { %v5071_v44 = vadd.f32 %v5070_v53, %v12579_v40  ;;  %v5294_v25 = vpop.f32.mrf.mxu3 }
 0x7c5   :  { %v5691_v17 = vpop.f32.mrf.mxu1 }
 0x7c6   :  { %v5692_v60 = vadd.f32 %v5691_v17, %v5483_v20  ;;  %v5280_v18 = vadd.f32 %v5279_v49, %v5071_v44  ;;  %v5503_v47 = vpop.f32.mrf.mxu0 }
 0x7c8   :  { %5962 = vrot.lane.b32.xlu2 %v5692_v60, %s6302_s22  ;;  %v5489_v41 = vadd.f32 %v5488_v15, %v5280_v18 }
 0x7ca   :  { %v5935_v9 = vpop.permute.xlu0 %5934 }
 0x7cb   :  { %v5073_v16 = vpop.f32.mrf.mxu2  ;;  %6092 = vst.msk [vmem:[%s12008_s7 + $0x118] sm:$0xff] %vm6056_vm10, %v5935_v9 }
 0x7cc   :  { %v5074_v36 = vadd.f32 %v5073_v16, %v12580_v61  ;;  %v5297_v59 = vpop.f32.mrf.mxu3 }
 0x7cd   :  { %v5694_v51 = vpop.f32.mrf.mxu1 }
 0x7ce   :  { %v5695_v8 = vadd.f32 %v5694_v51, %v5486_v12  ;;  %v5283_v24 = vadd.f32 %v5282_v27, %v5074_v36  ;;  %v5506_v31 = vpop.f32.mrf.mxu0  ;;  %v12586_v51 = vld [vmem:[#allocation127_spill] sm:$0xff] }
 0x7d0   :  { %5964 = vrot.lane.b32.xlu0 %v5695_v8, %s6302_s22  ;;  %v5492_v57 = vadd.f32 %v5491_v50, %v5283_v24 }
 0x7d2   :  { %v5937_v54 = vpop.permute.xlu1 %5936 }
 0x7d3   :  { %v5076_v30 = vpop.f32.mrf.mxu2  ;;  %6093 = vst.msk [vmem:[%s12008_s7 + $0x120] sm:$0xff] %vm6056_vm10, %v5937_v54 }
 0x7d4   :  { %v5077_v62 = vadd.f32 %v5076_v30, %v12581_v10  ;;  %v5300_v2 = vpop.f32.mrf.mxu3 }
 0x7d5   :  { %v5697_v28 = vpop.f32.mrf.mxu1 }
 0x7d6   :  { %v5698_v46 = vadd.f32 %v5697_v28, %v5489_v41  ;;  %v5286_v29 = vadd.f32 %v5285_v26, %v5077_v62  ;;  %v5509_v52 = vpop.f32.mrf.mxu0 }
 0x7d8   :  { %5966 = vrot.lane.b32.xlu1 %v5698_v46, %s6302_s22  ;;  %v5495_v48 = vadd.f32 %v5494_v19, %v5286_v29 }
 0x7da   :  { %v5945_v23 = vpop.permute.xlu2 %5944 }
 0x7db   :  { %v5079_v49 = vpop.f32.mrf.mxu2  ;;  %6097 = vst.msk [vmem:[%s12008_s7 + $0x140] sm:$0xff] %vm6056_vm10, %v5945_v23 }
 0x7dc   :  { %v5080_v15 = vadd.f32 %v5079_v49, %v12582_v11  ;;  %v5303_v14 = vpop.f32.mrf.mxu3 }
 0x7dd   :  { %v5700_v58 = vpop.f32.mrf.mxu1 }
 0x7de   :  { %v5701_v7 = vadd.f32 %v5700_v58, %v5492_v57  ;;  %v5289_v39 = vadd.f32 %v5288_v56, %v5080_v15  ;;  %v12585_v56 = vld [vmem:[#allocation125_spill] sm:$0xff]  ;;  %v5512_v16 = vpop.f32.mrf.mxu0  ;;  %v12588_v58 = vld [vmem:[#allocation131_spill] sm:$0xff] }
 0x7e0   :  { %5968 = vrot.lane.b32.xlu2 %v5701_v7, %s6302_s22  ;;  %v5498_v50 = vadd.f32 %v5497_v35, %v5289_v39 }
 0x7e2   :  { %v5941_v55 = vpop.permute.xlu0 %5940 }
 0x7e3   :  { %v5082_v5 = vpop.f32.mrf.mxu2  ;;  %6095 = vst.msk [vmem:[%s12008_s7 + $0x130] sm:$0xff] %vm6056_vm10, %v5941_v55 }
 0x7e4   :  { %v5083_v63 = vadd.f32 %v5082_v5, %v12583_v33  ;;  %v5306_v44 = vpop.f32.mrf.mxu3 }
 0x7e5   :  { %v5703_v27 = vpop.f32.mrf.mxu1 }
 0x7e6   :  { %v5704_v1 = vadd.f32 %v5703_v27, %v5495_v48  ;;  %v5292_v21 = vadd.f32 %v5291_v37, %v5083_v63  ;;  %v5515_v61 = vpop.f32.mrf.mxu0  ;;  %v12589_v27 = vld [vmem:[#allocation133_spill] sm:$0xff] }
 0x7e8   :  { %5970 = vrot.lane.b32.xlu0 %v5704_v1, %s6302_s22  ;;  %v5501_v4 = vadd.f32 %v5500_v42, %v5292_v21  ;;  %v12587_v42 = vld [vmem:[#allocation129_spill] sm:$0xff] }
 0x7ea   :  { %v5943_v38 = vpop.permute.xlu1 %5942 }
 0x7eb   :  { %v5085_v32 = vpop.f32.mrf.mxu2  ;;  %6096 = vst.msk [vmem:[%s12008_s7 + $0x138] sm:$0xff] %vm6056_vm10, %v5943_v38 }
 0x7ec   :  { %v5086_v13 = vadd.f32 %v5085_v32, %v12584_v3  ;;  %v5309_v41 = vpop.f32.mrf.mxu3 }
 0x7ed   :  { %v5706_v26 = vpop.f32.mrf.mxu1 }
 0x7ee   :  { %v5707_v43 = vadd.f32 %v5706_v26, %v5498_v50  ;;  %v5295_v6 = vadd.f32 %v5294_v25, %v5086_v13  ;;  %v5518_v10 = vpop.f32.mrf.mxu0 }
 0x7f0   :  { %5972 = vrot.lane.b32.xlu1 %v5707_v43, %s6302_s22  ;;  %v5504_v60 = vadd.f32 %v5503_v47, %v5295_v6  ;;  %v12591_v43 = vld [vmem:[#allocation137_spill] sm:$0xff] }
 0x7f2   :  { %v5951_v45 = vpop.permute.xlu2 %5950 }
 0x7f3   :  { %v5088_v0 = vpop.f32.mrf.mxu2  ;;  %6100 = vst.msk [vmem:[%s12008_s7 + $0x158] sm:$0xff] %vm6056_vm10, %v5951_v45 }
 0x7f4   :  { %v5089_v17 = vadd.f32 %v5088_v0, %v12585_v56  ;;  %v5312_v29 = vpop.f32.mrf.mxu3 }
 0x7f5   :  { %v5709_v19 = vpop.f32.mrf.mxu1 }
 0x7f6   :  { %v5710_v53 = vadd.f32 %v5709_v19, %v5501_v4  ;;  %v5298_v40 = vadd.f32 %v5297_v59, %v5089_v17  ;;  %v5521_v48 = vpop.f32.mrf.mxu0 }
 0x7f8   :  { %5974 = vrot.lane.b32.xlu2 %v5710_v53, %s6302_s22  ;;  %v5507_v37 = vadd.f32 %v5506_v31, %v5298_v40 }
 0x7fa   :  { %v5947_v22 = vpop.permute.xlu0 %5946 }
 0x7fb   :  { %v5091_v20 = vpop.f32.mrf.mxu2  ;;  %6098 = vst.msk [vmem:[%s12008_s7 + $0x148] sm:$0xff] %vm6056_vm10, %v5947_v22 }
 0x7fc   :  { %v5092_v8 = vadd.f32 %v5091_v20, %v12586_v51  ;;  %v5315_v32 = vpop.f32.mrf.mxu3 }
 0x7fd   :  { %v5712_v34 = vpop.f32.mrf.mxu1 }
 0x7fe   :  { %v5713_v35 = vadd.f32 %v5712_v34, %v5504_v60  ;;  %v5301_v36 = vadd.f32 %v5300_v2, %v5092_v8  ;;  %v12590_v2 = vld [vmem:[#allocation135_spill] sm:$0xff] }
 0x800   :  { %5976 = vrot.lane.b32.xlu0 %v5713_v35, %s6302_s22  ;;  %v5510_v24 = vadd.f32 %v5509_v52, %v5301_v36  ;;  %v5524_v52 = vpop.f32.mrf.mxu0 }
 0x802   :  { %v5949_v9 = vpop.permute.xlu1 %5948 }
 0x803   :  { %v5094_v12 = vpop.f32.mrf.mxu2  ;;  %6099 = vst.msk [vmem:[%s12008_s7 + $0x150] sm:$0xff] %vm6056_vm10, %v5949_v9 }
 0x804   :  { %v5095_v46 = vadd.f32 %v5094_v12, %v12587_v42  ;;  %v5733_v4 = vpop.f32.mrf.mxu3 }
 0x805   :  { %v5715_v18 = vpop.f32.mrf.mxu1 }
 0x806   :  { %v5716_v30 = vadd.f32 %v5715_v18, %v5507_v37  ;;  %v5304_v49 = vadd.f32 %v5303_v14, %v5095_v46 }
 0x808   :  { %5978 = vrot.lane.b32.xlu1 %v5716_v30, %s6302_s22  ;;  %v5513_v47 = vadd.f32 %v5512_v16, %v5304_v49 }
 0x80a   :  { %v5957_v54 = vpop.permute.xlu2 %5956 }
 0x80b   :  { %6103 = vst.msk [vmem:[%s12008_s7 + $0x170] sm:$0xff] %vm6056_vm10, %v5957_v54  ;;  %v5097_v28 = vpop.f32.mrf.mxu2 }
 0x80c   :  { %v5098_v7 = vadd.f32 %v5097_v28, %v12588_v58 }
 0x80d   :  { %v5718_v25 = vpop.f32.mrf.mxu1 }
 0x80e   :  { %v5719_v23 = vadd.f32 %v5718_v25, %v5510_v24  ;;  %v5307_v11 = vadd.f32 %v5306_v44, %v5098_v7 }
 0x810   :  { %5980 = vrot.lane.b32.xlu2 %v5719_v23, %s6302_s22  ;;  %v5516_v39 = vadd.f32 %v5515_v61, %v5307_v11 }
 0x812   :  { %v5953_v62 = vpop.permute.xlu0 %5952 }
 0x813   :  { %v5100_v57 = vpop.f32.mrf.mxu2  ;;  %6101 = vst.msk [vmem:[%s12008_s7 + $0x160] sm:$0xff] %vm6056_vm10, %v5953_v62 }
 0x814   :  { %v5101_v1 = vadd.f32 %v5100_v57, %v12589_v27 }
 0x815   :  { %v5721_v59 = vpop.f32.mrf.mxu1 }
 0x816   :  { %v5722_v5 = vadd.f32 %v5721_v59, %v5513_v47  ;;  %v5310_v33 = vadd.f32 %v5309_v41, %v5101_v1 }
 0x818   :  { %5982 = vrot.lane.b32.xlu0 %v5722_v5, %s6302_s22  ;;  %v5519_v45 = vadd.f32 %v5518_v10, %v5310_v33 }
 0x81a   :  { %v5955_v15 = vpop.permute.xlu1 %5954 }
 0x81b   :  { %6102 = vst.msk [vmem:[%s12008_s7 + $0x168] sm:$0xff] %vm6056_vm10, %v5955_v15  ;;  %v5103_v55 = vpop.f32.mrf.mxu2 }
 0x81c   :  { %v5104_v26 = vadd.f32 %v5103_v55, %v12590_v2 }
 0x81d   :  { %v5724_v31 = vpop.f32.mrf.mxu1 }
 0x81e   :  { %v5725_v38 = vadd.f32 %v5724_v31, %v5516_v39  ;;  %v5313_v19 = vadd.f32 %v5312_v29, %v5104_v26 }
 0x820   :  { %5984 = vrot.lane.b32.xlu1 %v5725_v38, %s6302_s22  ;;  %v5522_v22 = vadd.f32 %v5521_v48, %v5313_v19 }
 0x822   :  { %v5963_v63 = vpop.permute.xlu2 %5962 }
 0x823   :  { %6106 = vst.msk [vmem:[%s12008_s7 + $0x188] sm:$0xff] %vm6056_vm10, %v5963_v63  ;;  %v5106_v50 = vpop.f32.mrf.mxu2 }
 0x824   :  { %v5107_v21 = vadd.f32 %v5106_v50, %v12591_v43 }
 0x825   :  { %v5727_v0 = vpop.f32.mrf.mxu1 }
 0x826   :  { %v5728_v3 = vadd.f32 %v5727_v0, %v5519_v45  ;;  %v5316_v13 = vadd.f32 %v5315_v32, %v5107_v21 }
 0x828   :  { %v5525_v53 = vadd.f32 %v5524_v52, %v5316_v13  ;;  %5986 = vrot.lane.b32.xlu2 %v5728_v3, %s6302_s22 }
 0x82a   :  { %v5734_v14 = vadd.f32 %v5733_v4, %v5525_v53  ;;  %v5959_v6 = vpop.permute.xlu0 %5958 }
 0x82b   :  { %6104 = vst.msk [vmem:[%s12008_s7 + $0x178] sm:$0xff] %vm6056_vm10, %v5959_v6 }
 0x82c   :  { %5990 = vrot.lane.b32.xlu1 %v5734_v14, %s6302_s22 }
 0x82d   :  { %v5730_v20 = vpop.f32.mrf.mxu1 }
 0x82e   :  { %v5731_v56 = vadd.f32 %v5730_v20, %v5522_v22 }
 0x830   :  { %5988 = vrot.lane.b32.xlu0 %v5731_v56, %s6302_s22 }
 0x832   :  { %v5961_v17 = vpop.permute.xlu1 %5960 }
 0x833   :  { %6105 = vst.msk [vmem:[%s12008_s7 + $0x180] sm:$0xff] %vm6056_vm10, %v5961_v17 }
 0x83a   :  { %v5969_v60 = vpop.permute.xlu2 %5968 }
 0x83b   :  { %6109 = vst.msk [vmem:[%s12008_s7 + $0x1a0] sm:$0xff] %vm6056_vm10, %v5969_v60 }
 0x842   :  { %v5965_v34 = vpop.permute.xlu0 %5964 }
 0x843   :  { %6107 = vst.msk [vmem:[%s12008_s7 + $0x190] sm:$0xff] %vm6056_vm10, %v5965_v34 }
 0x84a   :  { %v5967_v16 = vpop.permute.xlu1 %5966 }
 0x84b   :  { %6108 = vst.msk [vmem:[%s12008_s7 + $0x198] sm:$0xff] %vm6056_vm10, %v5967_v16 }
 0x852   :  { %v5975_v35 = vpop.permute.xlu2 %5974 }
 0x853   :  { %6112 = vst.msk [vmem:[%s12008_s7 + $0x1b8] sm:$0xff] %vm6056_vm10, %v5975_v35 }
 0x85a   :  { %v5971_v40 = vpop.permute.xlu0 %5970 }
 0x85b   :  { %6110 = vst.msk [vmem:[%s12008_s7 + $0x1a8] sm:$0xff] %vm6056_vm10, %v5971_v40 }
 0x862   :  { %v5973_v44 = vpop.permute.xlu1 %5972 }
 0x863   :  { %6111 = vst.msk [vmem:[%s12008_s7 + $0x1b0] sm:$0xff] %vm6056_vm10, %v5973_v44 }
 0x86a   :  { %v5981_v9 = vpop.permute.xlu2 %5980 }
 0x86b   :  { %6115 = vst.msk [vmem:[%s12008_s7 + $0x1d0] sm:$0xff] %vm6056_vm10, %v5981_v9 }
 0x872   :  { %v5977_v12 = vpop.permute.xlu0 %5976 }
 0x873   :  { %6113 = vst.msk [vmem:[%s12008_s7 + $0x1c0] sm:$0xff] %vm6056_vm10, %v5977_v12 }
 0x87a   :  { %v5979_v51 = vpop.permute.xlu1 %5978 }
 0x87b   :  { %6114 = vst.msk [vmem:[%s12008_s7 + $0x1c8] sm:$0xff] %vm6056_vm10, %v5979_v51 }
 0x882   :  { %v5987_v8 = vpop.permute.xlu2 %5986 }
 0x883   :  { %6118 = vst.msk [vmem:[%s12008_s7 + $0x1e8] sm:$0xff] %vm6056_vm10, %v5987_v8 }
 0x88a   :  { %v5983_v37 = vpop.permute.xlu0 %5982 }
 0x88b   :  { %6116 = vst.msk [vmem:[%s12008_s7 + $0x1d8] sm:$0xff] %vm6056_vm10, %v5983_v37 }
 0x892   :  { %v5985_v18 = vpop.permute.xlu1 %5984 }
 0x893   :  { %6117 = vst.msk [vmem:[%s12008_s7 + $0x1e0] sm:$0xff] %vm6056_vm10, %v5985_v18 }
 0x89e   :  { %v5991_v30 = vpop.permute.xlu1 %5990 }
 0x89f   :  { %6120 = vst.msk [vmem:[%s12008_s7 + $0x1f8] sm:$0xff] %vm6056_vm10, %v5991_v30 }
 0x8a2   :  { %v5989_v61 = vpop.permute.xlu0 %5988 }
 0x8a3   :  { %6119 = vst.msk [vmem:[%s12008_s7 + $0x1f0] sm:$0xff] %vm6056_vm10, %v5989_v61 }

</bundles_post_ra>
